<compile_context>
chip_gen: v7x
topology: tpu7x:2x2x1
jax: 0.10.0
libtpu: 0.0.40
codegen_flags: <defaults>
</compile_context>

<pallas_src>
import functools

import jax
import jax.numpy as jnp
from jax.experimental import pallas as pl
from jax.experimental.pallas import tpu as pltpu


# ---------------------------------------------------------------------------
# Small helpers
# ---------------------------------------------------------------------------
def _round_up(x, m):
    return ((x + m - 1) // m) * m


def _pick_tile(dim, candidates):
    for c in candidates:
        if dim % c == 0:
            return c
    return dim


def _largest_divisor_leq(n, cap):
    for d in range(min(n, cap), 0, -1):
        if n % d == 0:
            return d
    return 1


# ---------------------------------------------------------------------------
# Pallas kernels
# ---------------------------------------------------------------------------
def _matmul_bias_kernel(x_ref, w_ref, b_ref, o_ref):
    """One (tm, K) x (K, tn) tile of  X @ W + b."""
    o_ref[...] = (
        jnp.dot(x_ref[...], w_ref[...], preferred_element_type=jnp.float32)
        + b_ref[...]
    ).astype(o_ref.dtype)


def _fused_lstm2_kernel(gx0_ref, whh0_ref, wih1_ref, whh1_ref, b1_ref, out_ref,
                        h0, c0, h1, c1):
    """Fused 2-layer LSTM recurrence.

    gx0_ref : (TT, Bp, 4H) precomputed layer-0 input gates (x @ W_ih0^T + b0)
    whh0_ref: (H, 4H)   layer-0 recurrent weight
    wih1_ref: (H, 4H)   layer-1 input weight (input = layer-0 hidden)
    whh1_ref: (H, 4H)   layer-1 recurrent weight
    b1_ref  : (1, 4H)   layer-1 combined bias
    out_ref : (TT, Bp, H) layer-1 hidden sequence
    Grid axis 0 = timestep block (sequential); h/c carried in VMEM scratch.
    """
    @pl.when(pl.program_id(0) == 0)
    def _():
        h0[...] = jnp.zeros_like(h0)
        c0[...] = jnp.zeros_like(c0)
        h1[...] = jnp.zeros_like(h1)
        c1[...] = jnp.zeros_like(c1)

    H = h0.shape[-1]
    TT = gx0_ref.shape[0]

    def _gates_to_hc(gates, c_prev):
        # PyTorch gate order: input, forget, cell(g), output.
        # (slices land on 128-lane boundaries since H is a multiple of 128)
        i = jax.nn.sigmoid(gates[:, 0 * H:1 * H])
        f = jax.nn.sigmoid(gates[:, 1 * H:2 * H])
        g = jnp.tanh(gates[:, 2 * H:3 * H])
        o = jax.nn.sigmoid(gates[:, 3 * H:4 * H])
        c = f * c_prev + i * g
        h = o * jnp.tanh(c)
        return h, c

    def step(tt, carry):
        # Layer 0: input projection + bias already hoisted into gx0.
        g0 = gx0_ref[tt] + jnp.dot(h0[...], whh0_ref[...],
                                   preferred_element_type=jnp.float32)
        h0_new, c0_new = _gates_to_hc(g0, c0[...])
        h0[...] = h0_new
        c0[...] = c0_new

        # Layer 1: input is layer-0 hidden of the SAME timestep.
        g1 = (jnp.dot(h0_new, wih1_ref[...], preferred_element_type=jnp.float32)
              + jnp.dot(h1[...], whh1_ref[...], preferred_element_type=jnp.float32)
              + b1_ref[...])
        h1_new, c1_new = _gates_to_hc(g1, c1[...])
        h1[...] = h1_new
        c1[...] = c1_new

        out_ref[tt] = h1_new.astype(out_ref.dtype)
        return carry

    jax.lax.fori_loop(0, TT, step, 0, unroll=True)


# ---------------------------------------------------------------------------
# Wrappers
# ---------------------------------------------------------------------------
def matmul_bias(x, w_t, b):
    """Tiled, lane-dense X @ W_t + b.  x: (N, K); w_t: (K, M); b: (1, M)."""
    N, K = x.shape
    M = w_t.shape[1]
    Np = _round_up(N, 8)
    Mp = _round_up(M, 128)           # lane-dense output (no masked partial stores)

    tm = Np if Np <= 512 else _pick_tile(Np, (256, 128, 64, 32, 16, 8))
    tn = Mp if Mp <= 2048 else _pick_tile(Mp, (1024, 512, 256, 128))

    xp = jnp.pad(x, ((0, Np - N), (0, 0))) if Np != N else x
    wp = jnp.pad(w_t, ((0, 0), (0, Mp - M))) if Mp != M else w_t
    bp = jnp.pad(b, ((0, 0), (0, Mp - M))) if Mp != M else b

    out = pl.pallas_call(
        _matmul_bias_kernel,
        out_shape=jax.ShapeDtypeStruct((Np, Mp), jnp.float32),
        grid_spec=pltpu.PrefetchScalarGridSpec(
            num_scalar_prefetch=0,
            grid=(Np // tm, Mp // tn),
            in_specs=[
                pl.BlockSpec((tm, K), lambda i, j: (i, 0)),
                pl.BlockSpec((K, tn), lambda i, j: (0, j)),
                pl.BlockSpec((1, tn), lambda i, j: (0, j)),
            ],
            out_specs=pl.BlockSpec((tm, tn), lambda i, j: (i, j)),
        ),
        compiler_params=pltpu.CompilerParams(
            dimension_semantics=("parallel", "parallel")),
    )(xp, wp, bp)
    return out[:N, :M]


def fused_lstm2(gx0_tbg, whh0_t, wih1_t, whh1_t, b1):
    """gx0_tbg: (T, Bp, 4H) time-major precomputed layer-0 input gates."""
    T, Bp, G4 = gx0_tbg.shape
    H = whh0_t.shape[0]
    tt = _largest_divisor_leq(T, 16)   # timesteps per grid iteration

    return pl.pallas_call(
        _fused_lstm2_kernel,
        out_shape=jax.ShapeDtypeStruct((T, Bp, H), jnp.float32),
        grid_spec=pltpu.PrefetchScalarGridSpec(
            num_scalar_prefetch=0,
            grid=(T // tt,),
            in_specs=[
                pl.BlockSpec((tt, Bp, G4), lambda b: (b, 0, 0)),
                pl.BlockSpec((H, G4), lambda b: (0, 0)),
                pl.BlockSpec((H, G4), lambda b: (0, 0)),
                pl.BlockSpec((H, G4), lambda b: (0, 0)),
                pl.BlockSpec((1, G4), lambda b: (0, 0)),
            ],
            out_specs=pl.BlockSpec((tt, Bp, H), lambda b: (b, 0, 0)),
            scratch_shapes=[
                pltpu.VMEM((Bp, H), jnp.float32),   # h layer 0
                pltpu.VMEM((Bp, H), jnp.float32),   # c layer 0
                pltpu.VMEM((Bp, H), jnp.float32),   # h layer 1
                pltpu.VMEM((Bp, H), jnp.float32),   # c layer 1
            ],
        ),
        compiler_params=pltpu.CompilerParams(
            dimension_semantics=("arbitrary",)),    # recurrence: sequential
    )(gx0_tbg, whh0_t, wih1_t, whh1_t, b1)


@functools.partial(jax.jit, static_argnames=())
def rnn_model_forward(tokens, params):
    """tokens: (B, T) int32 -> logits (B, T, vocab). batch_first like PyTorch."""
    B, T = tokens.shape
    assert len(params["lstm"]) == 2, "fused recurrence kernel expects 2 layers"
    l0, l1 = params["lstm"]
    H = l0["w_hh_t"].shape[0]
    E = params["embedding"].shape[1]
    V = params["fc_w_t"].shape[1]
    Bp = _round_up(B, 8)                             # fill sublanes

    # Embedding lookup: glue (gather) in plain JAX.
    # TODO(synk): embedding gather left in XLA; no clean tiled Pallas gather here.
    emb = params["embedding"][tokens]                # (B, T, E)
    x_tbe = jnp.transpose(emb, (1, 0, 2))            # time-major (T, B, E)
    if Bp != B:
        x_tbe = jnp.pad(x_tbe, ((0, 0), (0, Bp - B), (0, 0)))

    # Hoisted layer-0 input projection (+ bias) over ALL timesteps: one big matmul.
    gx0 = matmul_bias(x_tbe.reshape(T * Bp, E), l0["w_ih_t"], l0["bias"])
    gx0 = gx0.reshape(T, Bp, 4 * H)

    # Fused 2-layer LSTM recurrence (only h @ W_hh left per step for layer 0).
    h2 = fused_lstm2(gx0, l0["w_hh_t"], l1["w_ih_t"], l1["w_hh_t"], l1["bias"])

    # Final FC: tiled matmul with lane-dense (padded) vocab dimension.
    logits = matmul_bias(h2.reshape(T * Bp, H), params["fc_w_t"], params["fc_b"])
    logits = logits.reshape(T, Bp, V)[:, :B, :]      # drop batch padding
    return jnp.transpose(logits, (1, 0, 2))          # (B, T, V)


# ---------------------------------------------------------------------------
# Deterministic parameter init (PyTorch-style shapes, synthetic values)
# ---------------------------------------------------------------------------
def init_params(key, vocab_size, embedding_dim, hidden_dim, num_layers):
    keys = jax.random.split(key, 2 + 4 * num_layers + 2)
    k_iter = iter(keys)
    H = hidden_dim
    bound = 1.0 / jnp.sqrt(H)

    params = {
        "embedding": jax.random.normal(next(k_iter), (vocab_size, embedding_dim),
                                       jnp.float32),
        "lstm": [],
    }
    in_dim = embedding_dim
    for _ in range(num_layers):
        w_ih = jax.random.uniform(next(k_iter), (4 * H, in_dim), jnp.float32,
                                  -bound, bound)
        w_hh = jax.random.uniform(next(k_iter), (4 * H, H), jnp.float32,
                                  -bound, bound)
        b_ih = jax.random.uniform(next(k_iter), (4 * H,), jnp.float32, -bound, bound)
        b_hh = jax.random.uniform(next(k_iter), (4 * H,), jnp.float32, -bound, bound)
        params["lstm"].append({
            "w_ih_t": w_ih.T,                        # (in_dim, 4H)
            "w_hh_t": w_hh.T,                        # (H, 4H)
            "bias": (b_ih + b_hh)[None, :],          # (1, 4H)
        })
        in_dim = H

    fc_w = jax.random.uniform(next(k_iter), (vocab_size, H), jnp.float32,
                              -bound, bound)
    fc_b = jax.random.uniform(next(k_iter), (vocab_size,), jnp.float32,
                              -bound, bound)
    params["fc_w_t"] = fc_w.T                        # (H, vocab)
    params["fc_b"] = fc_b[None, :]                   # (1, vocab)
    return params


# ---------------------------------------------------------------------------
# Pure-JAX reference (for sanity check)
# ---------------------------------------------------------------------------
def reference_forward(tokens, params):
    B, T = tokens.shape
    x = jnp.transpose(params["embedding"][tokens], (1, 0, 2))  # (T, B, E)
    for layer in params["lstm"]:
        H = layer["w_hh_t"].shape[0]

        def step(carry, x_t, layer=layer, H=H):
            h, c = carry
            gates = x_t @ layer["w_ih_t"] + h @ layer["w_hh_t"] + layer["bias"]
            i = jax.nn.sigmoid(gates[:, 0 * H:1 * H])
            f = jax.nn.sigmoid(gates[:, 1 * H:2 * H])
            g = jnp.tanh(gates[:, 2 * H:3 * H])
            o = jax.nn.sigmoid(gates[:, 3 * H:4 * H])
            c = f * c + i * g
            h = o * jnp.tanh(c)
            return (h, c), h

        init = (jnp.zeros((B, H), jnp.float32), jnp.zeros((B, H), jnp.float32))
        _, x = jax.lax.scan(step, init, x)
    H = x.shape[-1]
    out = jnp.transpose(x, (1, 0, 2)).reshape(B * T, H)
    logits = out @ params["fc_w_t"] + params["fc_b"]
    return logits.reshape(B, T, -1)


# ---------------------------------------------------------------------------
if __name__ == "__main__":
    vocab_size, embedding_dim, hidden_dim, num_layers = 32, 64, 128, 2
    B, T = 2, 8

    key = jax.random.PRNGKey(0)
    k_params, k_tok = jax.random.split(key)
    params = init_params(k_params, vocab_size, embedding_dim, hidden_dim, num_layers)
    tokens = jax.random.randint(k_tok, (B, T), 0, vocab_size, dtype=jnp.int32)

    logits = rnn_model_forward(tokens, params)
    jax.block_until_ready(logits)

    ref = reference_forward(tokens, params)
    assert logits.shape == (B, T, vocab_size)
    assert jnp.allclose(logits, ref, atol=1e-4, rtol=1e-4), "mismatch vs reference"

    print("KERNEL_OK")
</pallas_src>

<mosaic_0001>
module attributes {stable_mosaic.version = 11 : i64} {
  func.func @_matmul_bias_kernel(%arg0: i32, %arg1: i32, %arg2: memref<64x64xf32, #tpu.memory_space<vmem>>, %arg3: memref<64x512xf32, #tpu.memory_space<vmem>>, %arg4: memref<1x512xf32, #tpu.memory_space<vmem>>, %arg5: memref<64x512xf32, #tpu.memory_space<vmem>>) attributes {dimension_semantics = [#tpu.dimension_semantics<parallel>, #tpu.dimension_semantics<parallel>], iteration_bounds = array<i64: 1, 1>, scalar_prefetch = 0 : i64, scratch_operands = 0 : i64, tpu.core_type = #tpu.core_type<tc>, window_params = [{transform_indices = @transform_0, window_bounds = array<i64: 64, 64>}, {transform_indices = @transform_1, window_bounds = array<i64: 64, 512>}, {transform_indices = @transform_2, window_bounds = array<i64: 1, 512>}, {transform_indices = @transform_3, window_bounds = array<i64: 64, 512>}]} {
    %c0 = arith.constant 0 : index
    %c0_0 = arith.constant 0 : index
    %0 = vector.load %arg2[%c0, %c0_0] : memref<64x64xf32, #tpu.memory_space<vmem>>, vector<64x64xf32>
    %c0_1 = arith.constant 0 : index
    %c0_2 = arith.constant 0 : index
    %1 = vector.load %arg3[%c0_1, %c0_2] : memref<64x512xf32, #tpu.memory_space<vmem>>, vector<64x512xf32>
    %cst = arith.constant dense<0.000000e+00> : vector<64x512xf32>
    %2 = tpu.matmul %0, %1, %cst {dimension_numbers = #tpu.dot_dimension_numbers<[1], [0], [0], [1], [0, 0, 1, 1], [], []>} : vector<64x64xf32>, vector<64x512xf32>, vector<64x512xf32> -> vector<64x512xf32>
    %c0_3 = arith.constant 0 : index
    %c0_4 = arith.constant 0 : index
    %3 = vector.load %arg4[%c0_3, %c0_4] : memref<1x512xf32, #tpu.memory_space<vmem>>, vector<1x512xf32>
    %4 = vector.broadcast %3 : vector<1x512xf32> to vector<64x512xf32>
    %5 = arith.addf %2, %4 : vector<64x512xf32>
    %c0_5 = arith.constant 0 : index
    %c0_6 = arith.constant 0 : index
    %6 = vector.load %arg5[%c0_5, %c0_6] : memref<64x512xf32, #tpu.memory_space<vmem>>, vector<64x512xf32>
    tpu.vector_store %arg5[%c0_5, %c0_6], %5 {strides = array<i32>} : memref<64x512xf32, #tpu.memory_space<vmem>>, vector<64x512xf32>,
    return
  }
  func.func @transform_0(%arg0: i32, %arg1: i32) -> (i32, i32) {
    %c0_i32 = arith.constant 0 : i32
    %c0_i32_0 = arith.constant 0 : i32
    return %arg0, %c0_i32 : i32, i32
  }
  func.func @transform_1(%arg0: i32, %arg1: i32) -> (i32, i32) {
    %c0_i32 = arith.constant 0 : i32
    %c0_i32_0 = arith.constant 0 : i32
    return %c0_i32, %arg1 : i32, i32
  }
  func.func @transform_2(%arg0: i32, %arg1: i32) -> (i32, i32) {
    %c0_i32 = arith.constant 0 : i32
    %c0_i32_0 = arith.constant 0 : i32
    return %c0_i32, %arg1 : i32, i32
  }
  func.func @transform_3(%arg0: i32, %arg1: i32) -> (i32, i32) {
    %c0_i32 = arith.constant 0 : i32
    return %arg0, %arg1 : i32, i32
  }
}

module attributes {stable_mosaic.version = 11 : i64} {
  func.func @_matmul_bias_kernel(%arg0: i32, %arg1: i32, %arg2: memref<64x128xf32, #tpu.memory_space<vmem>>, %arg3: memref<128x128xf32, #tpu.memory_space<vmem>>, %arg4: memref<1x128xf32, #tpu.memory_space<vmem>>, %arg5: memref<64x128xf32, #tpu.memory_space<vmem>>) attributes {dimension_semantics = [#tpu.dimension_semantics<parallel>, #tpu.dimension_semantics<parallel>], iteration_bounds = array<i64: 1, 1>, scalar_prefetch = 0 : i64, scratch_operands = 0 : i64, tpu.core_type = #tpu.core_type<tc>, window_params = [{transform_indices = @transform_0, window_bounds = array<i64: 64, 128>}, {transform_indices = @transform_1, window_bounds = array<i64: 128, 128>}, {transform_indices = @transform_2, window_bounds = array<i64: 1, 128>}, {transform_indices = @transform_3, window_bounds = array<i64: 64, 128>}]} {
    %c0 = arith.constant 0 : index
    %c0_0 = arith.constant 0 : index
    %0 = vector.load %arg2[%c0, %c0_0] : memref<64x128xf32, #tpu.memory_space<vmem>>, vector<64x128xf32>
    %c0_1 = arith.constant 0 : index
    %c0_2 = arith.constant 0 : index
    %1 = vector.load %arg3[%c0_1, %c0_2] : memref<128x128xf32, #tpu.memory_space<vmem>>, vector<128x128xf32>
    %cst = arith.constant dense<0.000000e+00> : vector<64x128xf32>
    %2 = tpu.matmul %0, %1, %cst {dimension_numbers = #tpu.dot_dimension_numbers<[1], [0], [0], [1], [0, 0, 1, 1], [], []>} : vector<64x128xf32>, vector<128x128xf32>, vector<64x128xf32> -> vector<64x128xf32>
    %c0_3 = arith.constant 0 : index
    %c0_4 = arith.constant 0 : index
    %3 = vector.load %arg4[%c0_3, %c0_4] : memref<1x128xf32, #tpu.memory_space<vmem>>, vector<1x128xf32>
    %4 = vector.broadcast %3 : vector<1x128xf32> to vector<64x128xf32>
    %5 = arith.addf %2, %4 : vector<64x128xf32>
    %c0_5 = arith.constant 0 : index
    %c0_6 = arith.constant 0 : index
    %6 = vector.load %arg5[%c0_5, %c0_6] : memref<64x128xf32, #tpu.memory_space<vmem>>, vector<64x128xf32>
    tpu.vector_store %arg5[%c0_5, %c0_6], %5 {strides = array<i32>} : memref<64x128xf32, #tpu.memory_space<vmem>>, vector<64x128xf32>,
    return
  }
  func.func @transform_0(%arg0: i32, %arg1: i32) -> (i32, i32) {
    %c0_i32 = arith.constant 0 : i32
    %c0_i32_0 = arith.constant 0 : i32
    return %arg0, %c0_i32 : i32, i32
  }
  func.func @transform_1(%arg0: i32, %arg1: i32) -> (i32, i32) {
    %c0_i32 = arith.constant 0 : i32
    %c0_i32_0 = arith.constant 0 : i32
    return %c0_i32, %arg1 : i32, i32
  }
  func.func @transform_2(%arg0: i32, %arg1: i32) -> (i32, i32) {
    %c0_i32 = arith.constant 0 : i32
    %c0_i32_0 = arith.constant 0 : i32
    return %c0_i32, %arg1 : i32, i32
  }
  func.func @transform_3(%arg0: i32, %arg1: i32) -> (i32, i32) {
    %c0_i32 = arith.constant 0 : i32
    return %arg0, %arg1 : i32, i32
  }
}

module attributes {stable_mosaic.version = 11 : i64} {
  func.func @_fused_lstm2_kernel(%arg0: i32, %arg1: memref<8x8x512xf32, #tpu.memory_space<vmem>>, %arg2: memref<128x512xf32, #tpu.memory_space<vmem>>, %arg3: memref<128x512xf32, #tpu.memory_space<vmem>>, %arg4: memref<128x512xf32, #tpu.memory_space<vmem>>, %arg5: memref<1x512xf32, #tpu.memory_space<vmem>>, %arg6: memref<8x8x128xf32, #tpu.memory_space<vmem>>, %arg7: memref<8x128xf32, #tpu.memory_space<vmem>>, %arg8: memref<8x128xf32, #tpu.memory_space<vmem>>, %arg9: memref<8x128xf32, #tpu.memory_space<vmem>>, %arg10: memref<8x128xf32, #tpu.memory_space<vmem>>) attributes {dimension_semantics = [#tpu.dimension_semantics<arbitrary>], iteration_bounds = array<i64: 1>, scalar_prefetch = 0 : i64, scratch_operands = 4 : i64, tpu.core_type = #tpu.core_type<tc>, window_params = [{transform_indices = @transform_0, window_bounds = array<i64: 8, 8, 512>}, {pipeline_mode = #tpu.pipeline_mode<synchronous>, transform_indices = @transform_1, window_bounds = array<i64: 128, 512>}, {pipeline_mode = #tpu.pipeline_mode<synchronous>, transform_indices = @transform_2, window_bounds = array<i64: 128, 512>}, {pipeline_mode = #tpu.pipeline_mode<synchronous>, transform_indices = @transform_3, window_bounds = array<i64: 128, 512>}, {pipeline_mode = #tpu.pipeline_mode<synchronous>, transform_indices = @transform_4, window_bounds = array<i64: 1, 512>}, {transform_indices = @transform_5, window_bounds = array<i64: 8, 8, 128>}]} {
    %c0_i32 = arith.constant 0 : i32
    %0 = arith.cmpi eq, %arg0, %c0_i32 : i32
    %1 = arith.extui %0 : i1 to i32
    %c0_i32_0 = arith.constant 0 : i32
    %2 = arith.cmpi ne, %1, %c0_i32_0 : i32
    scf.if %2 {
      %cst_296 = arith.constant 0.000000e+00 : f32
      %611 = vector.broadcast %cst_296 : f32 to vector<8x128xf32>
      %c0_297 = arith.constant 0 : index
      %c0_298 = arith.constant 0 : index
      %612 = vector.load %arg7[%c0_297, %c0_298] : memref<8x128xf32, #tpu.memory_space<vmem>>, vector<8x128xf32>
      tpu.vector_store %arg7[%c0_297, %c0_298], %611 {strides = array<i32>} : memref<8x128xf32, #tpu.memory_space<vmem>>, vector<8x128xf32>,
      %cst_299 = arith.constant 0.000000e+00 : f32
      %613 = vector.broadcast %cst_299 : f32 to vector<8x128xf32>
      %c0_300 = arith.constant 0 : index
      %c0_301 = arith.constant 0 : index
      %614 = vector.load %arg8[%c0_300, %c0_301] : memref<8x128xf32, #tpu.memory_space<vmem>>, vector<8x128xf32>
      tpu.vector_store %arg8[%c0_300, %c0_301], %613 {strides = array<i32>} : memref<8x128xf32, #tpu.memory_space<vmem>>, vector<8x128xf32>,
      %cst_302 = arith.constant 0.000000e+00 : f32
      %615 = vector.broadcast %cst_302 : f32 to vector<8x128xf32>
      %c0_303 = arith.constant 0 : index
      %c0_304 = arith.constant 0 : index
      %616 = vector.load %arg9[%c0_303, %c0_304] : memref<8x128xf32, #tpu.memory_space<vmem>>, vector<8x128xf32>
      tpu.vector_store %arg9[%c0_303, %c0_304], %615 {strides = array<i32>} : memref<8x128xf32, #tpu.memory_space<vmem>>, vector<8x128xf32>,
      %cst_305 = arith.constant 0.000000e+00 : f32
      %617 = vector.broadcast %cst_305 : f32 to vector<8x128xf32>
      %c0_306 = arith.constant 0 : index
      %c0_307 = arith.constant 0 : index
      %618 = vector.load %arg10[%c0_306, %c0_307] : memref<8x128xf32, #tpu.memory_space<vmem>>, vector<8x128xf32>
      tpu.vector_store %arg10[%c0_306, %c0_307], %617 {strides = array<i32>} : memref<8x128xf32, #tpu.memory_space<vmem>>, vector<8x128xf32>,
    } else {
    }
    %c0_i32_1 = arith.constant 0 : i32
    %3 = arith.index_cast %c0_i32_1 : i32 to index
    %c0 = arith.constant 0 : index
    %c0_2 = arith.constant 0 : index
    %4 = vector.load %arg1[%3, %c0, %c0_2] : memref<8x8x512xf32, #tpu.memory_space<vmem>>, vector<1x8x512xf32>
    %5 = vector.shape_cast %4 : vector<1x8x512xf32> to vector<8x512xf32>
    %c0_3 = arith.constant 0 : index
    %c0_4 = arith.constant 0 : index
    %6 = vector.load %arg7[%c0_3, %c0_4] : memref<8x128xf32, #tpu.memory_space<vmem>>, vector<8x128xf32>
    %c0_5 = arith.constant 0 : index
    %c0_6 = arith.constant 0 : index
    %7 = vector.load %arg2[%c0_5, %c0_6] : memref<128x512xf32, #tpu.memory_space<vmem>>, vector<128x512xf32>
    %cst = arith.constant dense<0.000000e+00> : vector<8x512xf32>
    %8 = tpu.matmul %6, %7, %cst {dimension_numbers = #tpu.dot_dimension_numbers<[1], [0], [0], [1], [0, 0, 1, 1], [], []>} : vector<8x128xf32>, vector<128x512xf32>, vector<8x512xf32> -> vector<8x512xf32>
    %9 = arith.addf %5, %8 : vector<8x512xf32>
    %c0_7 = arith.constant 0 : index
    %c0_8 = arith.constant 0 : index
    %10 = vector.load %arg8[%c0_7, %c0_8] : memref<8x128xf32, #tpu.memory_space<vmem>>, vector<8x128xf32>
    %11 = vector.extract_strided_slice %9 {offsets = [0, 0], sizes = [8, 128], strides = [1, 1]} : vector<8x512xf32> to vector<8x128xf32>
    %12 = arith.negf %11 : vector<8x128xf32>
    %13 = math.exp %12 : vector<8x128xf32>
    %cst_9 = arith.constant 1.000000e+00 : f32
    %14 = vector.broadcast %cst_9 : f32 to vector<8x128xf32>
    %15 = arith.addf %14, %13 : vector<8x128xf32>
    %16 = arith.divf %14, %15 : vector<8x128xf32>
    %17 = vector.extract_strided_slice %9 {offsets = [0, 128], sizes = [8, 128], strides = [1, 1]} : vector<8x512xf32> to vector<8x128xf32>
    %18 = arith.negf %17 : vector<8x128xf32>
    %19 = math.exp %18 : vector<8x128xf32>
    %cst_10 = arith.constant 1.000000e+00 : f32
    %20 = vector.broadcast %cst_10 : f32 to vector<8x128xf32>
    %21 = arith.addf %20, %19 : vector<8x128xf32>
    %22 = arith.divf %20, %21 : vector<8x128xf32>
    %23 = vector.extract_strided_slice %9 {offsets = [0, 256], sizes = [8, 128], strides = [1, 1]} : vector<8x512xf32> to vector<8x128xf32>
    %24 = math.tanh %23 : vector<8x128xf32>
    %25 = vector.extract_strided_slice %9 {offsets = [0, 384], sizes = [8, 128], strides = [1, 1]} : vector<8x512xf32> to vector<8x128xf32>
    %26 = arith.negf %25 : vector<8x128xf32>
    %27 = math.exp %26 : vector<8x128xf32>
    %cst_11 = arith.constant 1.000000e+00 : f32
    %28 = vector.broadcast %cst_11 : f32 to vector<8x128xf32>
    %29 = arith.addf %28, %27 : vector<8x128xf32>
    %30 = arith.divf %28, %29 : vector<8x128xf32>
    %31 = arith.mulf %22, %10 : vector<8x128xf32>
    %32 = arith.mulf %16, %24 : vector<8x128xf32>
    %33 = arith.addf %31, %32 : vector<8x128xf32>
    %34 = math.tanh %33 : vector<8x128xf32>
    %35 = arith.mulf %30, %34 : vector<8x128xf32>
    %c0_12 = arith.constant 0 : index
    %c0_13 = arith.constant 0 : index
    %36 = vector.load %arg7[%c0_12, %c0_13] : memref<8x128xf32, #tpu.memory_space<vmem>>, vector<8x128xf32>
    tpu.vector_store %arg7[%c0_12, %c0_13], %35 {strides = array<i32>} : memref<8x128xf32, #tpu.memory_space<vmem>>, vector<8x128xf32>,
    %c0_14 = arith.constant 0 : index
    %c0_15 = arith.constant 0 : index
    %37 = vector.load %arg8[%c0_14, %c0_15] : memref<8x128xf32, #tpu.memory_space<vmem>>, vector<8x128xf32>
    tpu.vector_store %arg8[%c0_14, %c0_15], %33 {strides = array<i32>} : memref<8x128xf32, #tpu.memory_space<vmem>>, vector<8x128xf32>,
    %c0_16 = arith.constant 0 : index
    %c0_17 = arith.constant 0 : index
    %38 = vector.load %arg3[%c0_16, %c0_17] : memref<128x512xf32, #tpu.memory_space<vmem>>, vector<128x512xf32>
    %cst_18 = arith.constant dense<0.000000e+00> : vector<8x512xf32>
    %39 = tpu.matmul %35, %38, %cst_18 {dimension_numbers = #tpu.dot_dimension_numbers<[1], [0], [0], [1], [0, 0, 1, 1], [], []>} : vector<8x128xf32>, vector<128x512xf32>, vector<8x512xf32> -> vector<8x512xf32>
    %c0_19 = arith.constant 0 : index
    %c0_20 = arith.constant 0 : index
    %40 = vector.load %arg9[%c0_19, %c0_20] : memref<8x128xf32, #tpu.memory_space<vmem>>, vector<8x128xf32>
    %c0_21 = arith.constant 0 : index
    %c0_22 = arith.constant 0 : index
    %41 = vector.load %arg4[%c0_21, %c0_22] : memref<128x512xf32, #tpu.memory_space<vmem>>, vector<128x512xf32>
    %cst_23 = arith.constant dense<0.000000e+00> : vector<8x512xf32>
    %42 = tpu.matmul %40, %41, %cst_23 {dimension_numbers = #tpu.dot_dimension_numbers<[1], [0], [0], [1], [0, 0, 1, 1], [], []>} : vector<8x128xf32>, vector<128x512xf32>, vector<8x512xf32> -> vector<8x512xf32>
    %43 = arith.addf %39, %42 : vector<8x512xf32>
    %c0_24 = arith.constant 0 : index
    %c0_25 = arith.constant 0 : index
    %44 = vector.load %arg5[%c0_24, %c0_25] : memref<1x512xf32, #tpu.memory_space<vmem>>, vector<1x512xf32>
    %45 = vector.broadcast %44 : vector<1x512xf32> to vector<8x512xf32>
    %46 = arith.addf %43, %45 : vector<8x512xf32>
    %c0_26 = arith.constant 0 : index
    %c0_27 = arith.constant 0 : index
    %47 = vector.load %arg10[%c0_26, %c0_27] : memref<8x128xf32, #tpu.memory_space<vmem>>, vector<8x128xf32>
    %48 = vector.extract_strided_slice %46 {offsets = [0, 0], sizes = [8, 128], strides = [1, 1]} : vector<8x512xf32> to vector<8x128xf32>
    %49 = arith.negf %48 : vector<8x128xf32>
    %50 = math.exp %49 : vector<8x128xf32>
    %cst_28 = arith.constant 1.000000e+00 : f32
    %51 = vector.broadcast %cst_28 : f32 to vector<8x128xf32>
    %52 = arith.addf %51, %50 : vector<8x128xf32>
    %53 = arith.divf %51, %52 : vector<8x128xf32>
    %54 = vector.extract_strided_slice %46 {offsets = [0, 128], sizes = [8, 128], strides = [1, 1]} : vector<8x512xf32> to vector<8x128xf32>
    %55 = arith.negf %54 : vector<8x128xf32>
    %56 = math.exp %55 : vector<8x128xf32>
    %cst_29 = arith.constant 1.000000e+00 : f32
    %57 = vector.broadcast %cst_29 : f32 to vector<8x128xf32>
    %58 = arith.addf %57, %56 : vector<8x128xf32>
    %59 = arith.divf %57, %58 : vector<8x128xf32>
    %60 = vector.extract_strided_slice %46 {offsets = [0, 256], sizes = [8, 128], strides = [1, 1]} : vector<8x512xf32> to vector<8x128xf32>
    %61 = math.tanh %60 : vector<8x128xf32>
    %62 = vector.extract_strided_slice %46 {offsets = [0, 384], sizes = [8, 128], strides = [1, 1]} : vector<8x512xf32> to vector<8x128xf32>
    %63 = arith.negf %62 : vector<8x128xf32>
    %64 = math.exp %63 : vector<8x128xf32>
    %cst_30 = arith.constant 1.000000e+00 : f32
    %65 = vector.broadcast %cst_30 : f32 to vector<8x128xf32>
    %66 = arith.addf %65, %64 : vector<8x128xf32>
    %67 = arith.divf %65, %66 : vector<8x128xf32>
    %68 = arith.mulf %59, %47 : vector<8x128xf32>
    %69 = arith.mulf %53, %61 : vector<8x128xf32>
    %70 = arith.addf %68, %69 : vector<8x128xf32>
    %71 = math.tanh %70 : vector<8x128xf32>
    %72 = arith.mulf %67, %71 : vector<8x128xf32>
    %c0_31 = arith.constant 0 : index
    %c0_32 = arith.constant 0 : index
    %73 = vector.load %arg9[%c0_31, %c0_32] : memref<8x128xf32, #tpu.memory_space<vmem>>, vector<8x128xf32>
    tpu.vector_store %arg9[%c0_31, %c0_32], %72 {strides = array<i32>} : memref<8x128xf32, #tpu.memory_space<vmem>>, vector<8x128xf32>,
    %c0_33 = arith.constant 0 : index
    %c0_34 = arith.constant 0 : index
    %74 = vector.load %arg10[%c0_33, %c0_34] : memref<8x128xf32, #tpu.memory_space<vmem>>, vector<8x128xf32>
    tpu.vector_store %arg10[%c0_33, %c0_34], %70 {strides = array<i32>} : memref<8x128xf32, #tpu.memory_space<vmem>>, vector<8x128xf32>,
    %75 = arith.index_cast %c0_i32_1 : i32 to index
    %c0_35 = arith.constant 0 : index
    %c0_36 = arith.constant 0 : index
    %76 = vector.load %arg6[%75, %c0_35, %c0_36] : memref<8x8x128xf32, #tpu.memory_space<vmem>>, vector<1x8x128xf32>
    %77 = vector.shape_cast %76 : vector<1x8x128xf32> to vector<8x128xf32>
    %78 = vector.shape_cast %72 : vector<8x128xf32> to vector<1x8x128xf32>
    tpu.vector_store %arg6[%75, %c0_35, %c0_36], %78 {strides = array<i32>} : memref<8x8x128xf32, #tpu.memory_space<vmem>>, vector<1x8x128xf32>,
    %c1_i32 = arith.constant 1 : i32
    %79 = arith.index_cast %c1_i32 : i32 to index
    %c0_37 = arith.constant 0 : index
    %c0_38 = arith.constant 0 : index
    %80 = vector.load %arg1[%79, %c0_37, %c0_38] : memref<8x8x512xf32, #tpu.memory_space<vmem>>, vector<1x8x512xf32>
    %81 = vector.shape_cast %80 : vector<1x8x512xf32> to vector<8x512xf32>
    %c0_39 = arith.constant 0 : index
    %c0_40 = arith.constant 0 : index
    %82 = vector.load %arg7[%c0_39, %c0_40] : memref<8x128xf32, #tpu.memory_space<vmem>>, vector<8x128xf32>
    %c0_41 = arith.constant 0 : index
    %c0_42 = arith.constant 0 : index
    %83 = vector.load %arg2[%c0_41, %c0_42] : memref<128x512xf32, #tpu.memory_space<vmem>>, vector<128x512xf32>
    %cst_43 = arith.constant dense<0.000000e+00> : vector<8x512xf32>
    %84 = tpu.matmul %82, %83, %cst_43 {dimension_numbers = #tpu.dot_dimension_numbers<[1], [0], [0], [1], [0, 0, 1, 1], [], []>} : vector<8x128xf32>, vector<128x512xf32>, vector<8x512xf32> -> vector<8x512xf32>
    %85 = arith.addf %81, %84 : vector<8x512xf32>
    %c0_44 = arith.constant 0 : index
    %c0_45 = arith.constant 0 : index
    %86 = vector.load %arg8[%c0_44, %c0_45] : memref<8x128xf32, #tpu.memory_space<vmem>>, vector<8x128xf32>
    %87 = vector.extract_strided_slice %85 {offsets = [0, 0], sizes = [8, 128], strides = [1, 1]} : vector<8x512xf32> to vector<8x128xf32>
    %88 = arith.negf %87 : vector<8x128xf32>
    %89 = math.exp %88 : vector<8x128xf32>
    %cst_46 = arith.constant 1.000000e+00 : f32
    %90 = vector.broadcast %cst_46 : f32 to vector<8x128xf32>
    %91 = arith.addf %90, %89 : vector<8x128xf32>
    %92 = arith.divf %90, %91 : vector<8x128xf32>
    %93 = vector.extract_strided_slice %85 {offsets = [0, 128], sizes = [8, 128], strides = [1, 1]} : vector<8x512xf32> to vector<8x128xf32>
    %94 = arith.negf %93 : vector<8x128xf32>
    %95 = math.exp %94 : vector<8x128xf32>
    %cst_47 = arith.constant 1.000000e+00 : f32
    %96 = vector.broadcast %cst_47 : f32 to vector<8x128xf32>
    %97 = arith.addf %96, %95 : vector<8x128xf32>
    %98 = arith.divf %96, %97 : vector<8x128xf32>
    %99 = vector.extract_strided_slice %85 {offsets = [0, 256], sizes = [8, 128], strides = [1, 1]} : vector<8x512xf32> to vector<8x128xf32>
    %100 = math.tanh %99 : vector<8x128xf32>
    %101 = vector.extract_strided_slice %85 {offsets = [0, 384], sizes = [8, 128], strides = [1, 1]} : vector<8x512xf32> to vector<8x128xf32>
    %102 = arith.negf %101 : vector<8x128xf32>
    %103 = math.exp %102 : vector<8x128xf32>
    %cst_48 = arith.constant 1.000000e+00 : f32
    %104 = vector.broadcast %cst_48 : f32 to vector<8x128xf32>
    %105 = arith.addf %104, %103 : vector<8x128xf32>
    %106 = arith.divf %104, %105 : vector<8x128xf32>
    %107 = arith.mulf %98, %86 : vector<8x128xf32>
    %108 = arith.mulf %92, %100 : vector<8x128xf32>
    %109 = arith.addf %107, %108 : vector<8x128xf32>
    %110 = math.tanh %109 : vector<8x128xf32>
    %111 = arith.mulf %106, %110 : vector<8x128xf32>
    %c0_49 = arith.constant 0 : index
    %c0_50 = arith.constant 0 : index
    %112 = vector.load %arg7[%c0_49, %c0_50] : memref<8x128xf32, #tpu.memory_space<vmem>>, vector<8x128xf32>
    tpu.vector_store %arg7[%c0_49, %c0_50], %111 {strides = array<i32>} : memref<8x128xf32, #tpu.memory_space<vmem>>, vector<8x128xf32>,
    %c0_51 = arith.constant 0 : index
    %c0_52 = arith.constant 0 : index
    %113 = vector.load %arg8[%c0_51, %c0_52] : memref<8x128xf32, #tpu.memory_space<vmem>>, vector<8x128xf32>
    tpu.vector_store %arg8[%c0_51, %c0_52], %109 {strides = array<i32>} : memref<8x128xf32, #tpu.memory_space<vmem>>, vector<8x128xf32>,
    %c0_53 = arith.constant 0 : index
    %c0_54 = arith.constant 0 : index
    %114 = vector.load %arg3[%c0_53, %c0_54] : memref<128x512xf32, #tpu.memory_space<vmem>>, vector<128x512xf32>
    %cst_55 = arith.constant dense<0.000000e+00> : vector<8x512xf32>
    %115 = tpu.matmul %111, %114, %cst_55 {dimension_numbers = #tpu.dot_dimension_numbers<[1], [0], [0], [1], [0, 0, 1, 1], [], []>} : vector<8x128xf32>, vector<128x512xf32>, vector<8x512xf32> -> vector<8x512xf32>
    %c0_56 = arith.constant 0 : index
    %c0_57 = arith.constant 0 : index
    %116 = vector.load %arg9[%c0_56, %c0_57] : memref<8x128xf32, #tpu.memory_space<vmem>>, vector<8x128xf32>
    %c0_58 = arith.constant 0 : index
    %c0_59 = arith.constant 0 : index
    %117 = vector.load %arg4[%c0_58, %c0_59] : memref<128x512xf32, #tpu.memory_space<vmem>>, vector<128x512xf32>
    %cst_60 = arith.constant dense<0.000000e+00> : vector<8x512xf32>
    %118 = tpu.matmul %116, %117, %cst_60 {dimension_numbers = #tpu.dot_dimension_numbers<[1], [0], [0], [1], [0, 0, 1, 1], [], []>} : vector<8x128xf32>, vector<128x512xf32>, vector<8x512xf32> -> vector<8x512xf32>
    %119 = arith.addf %115, %118 : vector<8x512xf32>
    %c0_61 = arith.constant 0 : index
    %c0_62 = arith.constant 0 : index
    %120 = vector.load %arg5[%c0_61, %c0_62] : memref<1x512xf32, #tpu.memory_space<vmem>>, vector<1x512xf32>
    %121 = vector.broadcast %120 : vector<1x512xf32> to vector<8x512xf32>
    %122 = arith.addf %119, %121 : vector<8x512xf32>
    %c0_63 = arith.constant 0 : index
    %c0_64 = arith.constant 0 : index
    %123 = vector.load %arg10[%c0_63, %c0_64] : memref<8x128xf32, #tpu.memory_space<vmem>>, vector<8x128xf32>
    %124 = vector.extract_strided_slice %122 {offsets = [0, 0], sizes = [8, 128], strides = [1, 1]} : vector<8x512xf32> to vector<8x128xf32>
    %125 = arith.negf %124 : vector<8x128xf32>
    %126 = math.exp %125 : vector<8x128xf32>
    %cst_65 = arith.constant 1.000000e+00 : f32
    %127 = vector.broadcast %cst_65 : f32 to vector<8x128xf32>
    %128 = arith.addf %127, %126 : vector<8x128xf32>
    %129 = arith.divf %127, %128 : vector<8x128xf32>
    %130 = vector.extract_strided_slice %122 {offsets = [0, 128], sizes = [8, 128], strides = [1, 1]} : vector<8x512xf32> to vector<8x128xf32>
    %131 = arith.negf %130 : vector<8x128xf32>
    %132 = math.exp %131 : vector<8x128xf32>
    %cst_66 = arith.constant 1.000000e+00 : f32
    %133 = vector.broadcast %cst_66 : f32 to vector<8x128xf32>
    %134 = arith.addf %133, %132 : vector<8x128xf32>
    %135 = arith.divf %133, %134 : vector<8x128xf32>
    %136 = vector.extract_strided_slice %122 {offsets = [0, 256], sizes = [8, 128], strides = [1, 1]} : vector<8x512xf32> to vector<8x128xf32>
    %137 = math.tanh %136 : vector<8x128xf32>
    %138 = vector.extract_strided_slice %122 {offsets = [0, 384], sizes = [8, 128], strides = [1, 1]} : vector<8x512xf32> to vector<8x128xf32>
    %139 = arith.negf %138 : vector<8x128xf32>
    %140 = math.exp %139 : vector<8x128xf32>
    %cst_67 = arith.constant 1.000000e+00 : f32
    %141 = vector.broadcast %cst_67 : f32 to vector<8x128xf32>
    %142 = arith.addf %141, %140 : vector<8x128xf32>
    %143 = arith.divf %141, %142 : vector<8x128xf32>
    %144 = arith.mulf %135, %123 : vector<8x128xf32>
    %145 = arith.mulf %129, %137 : vector<8x128xf32>
    %146 = arith.addf %144, %145 : vector<8x128xf32>
    %147 = math.tanh %146 : vector<8x128xf32>
    %148 = arith.mulf %143, %147 : vector<8x128xf32>
    %c0_68 = arith.constant 0 : index
    %c0_69 = arith.constant 0 : index
    %149 = vector.load %arg9[%c0_68, %c0_69] : memref<8x128xf32, #tpu.memory_space<vmem>>, vector<8x128xf32>
    tpu.vector_store %arg9[%c0_68, %c0_69], %148 {strides = array<i32>} : memref<8x128xf32, #tpu.memory_space<vmem>>, vector<8x128xf32>,
    %c0_70 = arith.constant 0 : index
    %c0_71 = arith.constant 0 : index
    %150 = vector.load %arg10[%c0_70, %c0_71] : memref<8x128xf32, #tpu.memory_space<vmem>>, vector<8x128xf32>
    tpu.vector_store %arg10[%c0_70, %c0_71], %146 {strides = array<i32>} : memref<8x128xf32, #tpu.memory_space<vmem>>, vector<8x128xf32>,
    %151 = arith.index_cast %c1_i32 : i32 to index
    %c0_72 = arith.constant 0 : index
    %c0_73 = arith.constant 0 : index
    %152 = vector.load %arg6[%151, %c0_72, %c0_73] : memref<8x8x128xf32, #tpu.memory_space<vmem>>, vector<1x8x128xf32>
    %153 = vector.shape_cast %152 : vector<1x8x128xf32> to vector<8x128xf32>
    %154 = vector.shape_cast %148 : vector<8x128xf32> to vector<1x8x128xf32>
    tpu.vector_store %arg6[%151, %c0_72, %c0_73], %154 {strides = array<i32>} : memref<8x8x128xf32, #tpu.memory_space<vmem>>, vector<1x8x128xf32>,
    %c2_i32 = arith.constant 2 : i32
    %155 = arith.index_cast %c2_i32 : i32 to index
    %c0_74 = arith.constant 0 : index
    %c0_75 = arith.constant 0 : index
    %156 = vector.load %arg1[%155, %c0_74, %c0_75] : memref<8x8x512xf32, #tpu.memory_space<vmem>>, vector<1x8x512xf32>
    %157 = vector.shape_cast %156 : vector<1x8x512xf32> to vector<8x512xf32>
    %c0_76 = arith.constant 0 : index
    %c0_77 = arith.constant 0 : index
    %158 = vector.load %arg7[%c0_76, %c0_77] : memref<8x128xf32, #tpu.memory_space<vmem>>, vector<8x128xf32>
    %c0_78 = arith.constant 0 : index
    %c0_79 = arith.constant 0 : index
    %159 = vector.load %arg2[%c0_78, %c0_79] : memref<128x512xf32, #tpu.memory_space<vmem>>, vector<128x512xf32>
    %cst_80 = arith.constant dense<0.000000e+00> : vector<8x512xf32>
    %160 = tpu.matmul %158, %159, %cst_80 {dimension_numbers = #tpu.dot_dimension_numbers<[1], [0], [0], [1], [0, 0, 1, 1], [], []>} : vector<8x128xf32>, vector<128x512xf32>, vector<8x512xf32> -> vector<8x512xf32>
    %161 = arith.addf %157, %160 : vector<8x512xf32>
    %c0_81 = arith.constant 0 : index
    %c0_82 = arith.constant 0 : index
    %162 = vector.load %arg8[%c0_81, %c0_82] : memref<8x128xf32, #tpu.memory_space<vmem>>, vector<8x128xf32>
    %163 = vector.extract_strided_slice %161 {offsets = [0, 0], sizes = [8, 128], strides = [1, 1]} : vector<8x512xf32> to vector<8x128xf32>
    %164 = arith.negf %163 : vector<8x128xf32>
    %165 = math.exp %164 : vector<8x128xf32>
    %cst_83 = arith.constant 1.000000e+00 : f32
    %166 = vector.broadcast %cst_83 : f32 to vector<8x128xf32>
    %167 = arith.addf %166, %165 : vector<8x128xf32>
    %168 = arith.divf %166, %167 : vector<8x128xf32>
    %169 = vector.extract_strided_slice %161 {offsets = [0, 128], sizes = [8, 128], strides = [1, 1]} : vector<8x512xf32> to vector<8x128xf32>
    %170 = arith.negf %169 : vector<8x128xf32>
    %171 = math.exp %170 : vector<8x128xf32>
    %cst_84 = arith.constant 1.000000e+00 : f32
    %172 = vector.broadcast %cst_84 : f32 to vector<8x128xf32>
    %173 = arith.addf %172, %171 : vector<8x128xf32>
    %174 = arith.divf %172, %173 : vector<8x128xf32>
    %175 = vector.extract_strided_slice %161 {offsets = [0, 256], sizes = [8, 128], strides = [1, 1]} : vector<8x512xf32> to vector<8x128xf32>
    %176 = math.tanh %175 : vector<8x128xf32>
    %177 = vector.extract_strided_slice %161 {offsets = [0, 384], sizes = [8, 128], strides = [1, 1]} : vector<8x512xf32> to vector<8x128xf32>
    %178 = arith.negf %177 : vector<8x128xf32>
    %179 = math.exp %178 : vector<8x128xf32>
    %cst_85 = arith.constant 1.000000e+00 : f32
    %180 = vector.broadcast %cst_85 : f32 to vector<8x128xf32>
    %181 = arith.addf %180, %179 : vector<8x128xf32>
    %182 = arith.divf %180, %181 : vector<8x128xf32>
    %183 = arith.mulf %174, %162 : vector<8x128xf32>
    %184 = arith.mulf %168, %176 : vector<8x128xf32>
    %185 = arith.addf %183, %184 : vector<8x128xf32>
    %186 = math.tanh %185 : vector<8x128xf32>
    %187 = arith.mulf %182, %186 : vector<8x128xf32>
    %c0_86 = arith.constant 0 : index
    %c0_87 = arith.constant 0 : index
    %188 = vector.load %arg7[%c0_86, %c0_87] : memref<8x128xf32, #tpu.memory_space<vmem>>, vector<8x128xf32>
    tpu.vector_store %arg7[%c0_86, %c0_87], %187 {strides = array<i32>} : memref<8x128xf32, #tpu.memory_space<vmem>>, vector<8x128xf32>,
    %c0_88 = arith.constant 0 : index
    %c0_89 = arith.constant 0 : index
    %189 = vector.load %arg8[%c0_88, %c0_89] : memref<8x128xf32, #tpu.memory_space<vmem>>, vector<8x128xf32>
    tpu.vector_store %arg8[%c0_88, %c0_89], %185 {strides = array<i32>} : memref<8x128xf32, #tpu.memory_space<vmem>>, vector<8x128xf32>,
    %c0_90 = arith.constant 0 : index
    %c0_91 = arith.constant 0 : index
    %190 = vector.load %arg3[%c0_90, %c0_91] : memref<128x512xf32, #tpu.memory_space<vmem>>, vector<128x512xf32>
    %cst_92 = arith.constant dense<0.000000e+00> : vector<8x512xf32>
    %191 = tpu.matmul %187, %190, %cst_92 {dimension_numbers = #tpu.dot_dimension_numbers<[1], [0], [0], [1], [0, 0, 1, 1], [], []>} : vector<8x128xf32>, vector<128x512xf32>, vector<8x512xf32> -> vector<8x512xf32>
    %c0_93 = arith.constant 0 : index
    %c0_94 = arith.constant 0 : index
    %192 = vector.load %arg9[%c0_93, %c0_94] : memref<8x128xf32, #tpu.memory_space<vmem>>, vector<8x128xf32>
    %c0_95 = arith.constant 0 : index
    %c0_96 = arith.constant 0 : index
    %193 = vector.load %arg4[%c0_95, %c0_96] : memref<128x512xf32, #tpu.memory_space<vmem>>, vector<128x512xf32>
    %cst_97 = arith.constant dense<0.000000e+00> : vector<8x512xf32>
    %194 = tpu.matmul %192, %193, %cst_97 {dimension_numbers = #tpu.dot_dimension_numbers<[1], [0], [0], [1], [0, 0, 1, 1], [], []>} : vector<8x128xf32>, vector<128x512xf32>, vector<8x512xf32> -> vector<8x512xf32>
    %195 = arith.addf %191, %194 : vector<8x512xf32>
    %c0_98 = arith.constant 0 : index
    %c0_99 = arith.constant 0 : index
    %196 = vector.load %arg5[%c0_98, %c0_99] : memref<1x512xf32, #tpu.memory_space<vmem>>, vector<1x512xf32>
    %197 = vector.broadcast %196 : vector<1x512xf32> to vector<8x512xf32>
    %198 = arith.addf %195, %197 : vector<8x512xf32>
    %c0_100 = arith.constant 0 : index
    %c0_101 = arith.constant 0 : index
    %199 = vector.load %arg10[%c0_100, %c0_101] : memref<8x128xf32, #tpu.memory_space<vmem>>, vector<8x128xf32>
    %200 = vector.extract_strided_slice %198 {offsets = [0, 0], sizes = [8, 128], strides = [1, 1]} : vector<8x512xf32> to vector<8x128xf32>
    %201 = arith.negf %200 : vector<8x128xf32>
    %202 = math.exp %201 : vector<8x128xf32>
    %cst_102 = arith.constant 1.000000e+00 : f32
    %203 = vector.broadcast %cst_102 : f32 to vector<8x128xf32>
    %204 = arith.addf %203, %202 : vector<8x128xf32>
    %205 = arith.divf %203, %204 : vector<8x128xf32>
    %206 = vector.extract_strided_slice %198 {offsets = [0, 128], sizes = [8, 128], strides = [1, 1]} : vector<8x512xf32> to vector<8x128xf32>
    %207 = arith.negf %206 : vector<8x128xf32>
    %208 = math.exp %207 : vector<8x128xf32>
    %cst_103 = arith.constant 1.000000e+00 : f32
    %209 = vector.broadcast %cst_103 : f32 to vector<8x128xf32>
    %210 = arith.addf %209, %208 : vector<8x128xf32>
    %211 = arith.divf %209, %210 : vector<8x128xf32>
    %212 = vector.extract_strided_slice %198 {offsets = [0, 256], sizes = [8, 128], strides = [1, 1]} : vector<8x512xf32> to vector<8x128xf32>
    %213 = math.tanh %212 : vector<8x128xf32>
    %214 = vector.extract_strided_slice %198 {offsets = [0, 384], sizes = [8, 128], strides = [1, 1]} : vector<8x512xf32> to vector<8x128xf32>
    %215 = arith.negf %214 : vector<8x128xf32>
    %216 = math.exp %215 : vector<8x128xf32>
    %cst_104 = arith.constant 1.000000e+00 : f32
    %217 = vector.broadcast %cst_104 : f32 to vector<8x128xf32>
    %218 = arith.addf %217, %216 : vector<8x128xf32>
    %219 = arith.divf %217, %218 : vector<8x128xf32>
    %220 = arith.mulf %211, %199 : vector<8x128xf32>
    %221 = arith.mulf %205, %213 : vector<8x128xf32>
    %222 = arith.addf %220, %221 : vector<8x128xf32>
    %223 = math.tanh %222 : vector<8x128xf32>
    %224 = arith.mulf %219, %223 : vector<8x128xf32>
    %c0_105 = arith.constant 0 : index
    %c0_106 = arith.constant 0 : index
    %225 = vector.load %arg9[%c0_105, %c0_106] : memref<8x128xf32, #tpu.memory_space<vmem>>, vector<8x128xf32>
    tpu.vector_store %arg9[%c0_105, %c0_106], %224 {strides = array<i32>} : memref<8x128xf32, #tpu.memory_space<vmem>>, vector<8x128xf32>,
    %c0_107 = arith.constant 0 : index
    %c0_108 = arith.constant 0 : index
    %226 = vector.load %arg10[%c0_107, %c0_108] : memref<8x128xf32, #tpu.memory_space<vmem>>, vector<8x128xf32>
    tpu.vector_store %arg10[%c0_107, %c0_108], %222 {strides = array<i32>} : memref<8x128xf32, #tpu.memory_space<vmem>>, vector<8x128xf32>,
    %227 = arith.index_cast %c2_i32 : i32 to index
    %c0_109 = arith.constant 0 : index
    %c0_110 = arith.constant 0 : index
    %228 = vector.load %arg6[%227, %c0_109, %c0_110] : memref<8x8x128xf32, #tpu.memory_space<vmem>>, vector<1x8x128xf32>
    %229 = vector.shape_cast %228 : vector<1x8x128xf32> to vector<8x128xf32>
    %230 = vector.shape_cast %224 : vector<8x128xf32> to vector<1x8x128xf32>
    tpu.vector_store %arg6[%227, %c0_109, %c0_110], %230 {strides = array<i32>} : memref<8x8x128xf32, #tpu.memory_space<vmem>>, vector<1x8x128xf32>,
    %c3_i32 = arith.constant 3 : i32
    %231 = arith.index_cast %c3_i32 : i32 to index
    %c0_111 = arith.constant 0 : index
    %c0_112 = arith.constant 0 : index
    %232 = vector.load %arg1[%231, %c0_111, %c0_112] : memref<8x8x512xf32, #tpu.memory_space<vmem>>, vector<1x8x512xf32>
    %233 = vector.shape_cast %232 : vector<1x8x512xf32> to vector<8x512xf32>
    %c0_113 = arith.constant 0 : index
    %c0_114 = arith.constant 0 : index
    %234 = vector.load %arg7[%c0_113, %c0_114] : memref<8x128xf32, #tpu.memory_space<vmem>>, vector<8x128xf32>
    %c0_115 = arith.constant 0 : index
    %c0_116 = arith.constant 0 : index
    %235 = vector.load %arg2[%c0_115, %c0_116] : memref<128x512xf32, #tpu.memory_space<vmem>>, vector<128x512xf32>
    %cst_117 = arith.constant dense<0.000000e+00> : vector<8x512xf32>
    %236 = tpu.matmul %234, %235, %cst_117 {dimension_numbers = #tpu.dot_dimension_numbers<[1], [0], [0], [1], [0, 0, 1, 1], [], []>} : vector<8x128xf32>, vector<128x512xf32>, vector<8x512xf32> -> vector<8x512xf32>
    %237 = arith.addf %233, %236 : vector<8x512xf32>
    %c0_118 = arith.constant 0 : index
    %c0_119 = arith.constant 0 : index
    %238 = vector.load %arg8[%c0_118, %c0_119] : memref<8x128xf32, #tpu.memory_space<vmem>>, vector<8x128xf32>
    %239 = vector.extract_strided_slice %237 {offsets = [0, 0], sizes = [8, 128], strides = [1, 1]} : vector<8x512xf32> to vector<8x128xf32>
    %240 = arith.negf %239 : vector<8x128xf32>
    %241 = math.exp %240 : vector<8x128xf32>
    %cst_120 = arith.constant 1.000000e+00 : f32
    %242 = vector.broadcast %cst_120 : f32 to vector<8x128xf32>
    %243 = arith.addf %242, %241 : vector<8x128xf32>
    %244 = arith.divf %242, %243 : vector<8x128xf32>
    %245 = vector.extract_strided_slice %237 {offsets = [0, 128], sizes = [8, 128], strides = [1, 1]} : vector<8x512xf32> to vector<8x128xf32>
    %246 = arith.negf %245 : vector<8x128xf32>
    %247 = math.exp %246 : vector<8x128xf32>
    %cst_121 = arith.constant 1.000000e+00 : f32
    %248 = vector.broadcast %cst_121 : f32 to vector<8x128xf32>
    %249 = arith.addf %248, %247 : vector<8x128xf32>
    %250 = arith.divf %248, %249 : vector<8x128xf32>
    %251 = vector.extract_strided_slice %237 {offsets = [0, 256], sizes = [8, 128], strides = [1, 1]} : vector<8x512xf32> to vector<8x128xf32>
    %252 = math.tanh %251 : vector<8x128xf32>
    %253 = vector.extract_strided_slice %237 {offsets = [0, 384], sizes = [8, 128], strides = [1, 1]} : vector<8x512xf32> to vector<8x128xf32>
    %254 = arith.negf %253 : vector<8x128xf32>
    %255 = math.exp %254 : vector<8x128xf32>
    %cst_122 = arith.constant 1.000000e+00 : f32
    %256 = vector.broadcast %cst_122 : f32 to vector<8x128xf32>
    %257 = arith.addf %256, %255 : vector<8x128xf32>
    %258 = arith.divf %256, %257 : vector<8x128xf32>
    %259 = arith.mulf %250, %238 : vector<8x128xf32>
    %260 = arith.mulf %244, %252 : vector<8x128xf32>
    %261 = arith.addf %259, %260 : vector<8x128xf32>
    %262 = math.tanh %261 : vector<8x128xf32>
    %263 = arith.mulf %258, %262 : vector<8x128xf32>
    %c0_123 = arith.constant 0 : index
    %c0_124 = arith.constant 0 : index
    %264 = vector.load %arg7[%c0_123, %c0_124] : memref<8x128xf32, #tpu.memory_space<vmem>>, vector<8x128xf32>
    tpu.vector_store %arg7[%c0_123, %c0_124], %263 {strides = array<i32>} : memref<8x128xf32, #tpu.memory_space<vmem>>, vector<8x128xf32>,
    %c0_125 = arith.constant 0 : index
    %c0_126 = arith.constant 0 : index
    %265 = vector.load %arg8[%c0_125, %c0_126] : memref<8x128xf32, #tpu.memory_space<vmem>>, vector<8x128xf32>
    tpu.vector_store %arg8[%c0_125, %c0_126], %261 {strides = array<i32>} : memref<8x128xf32, #tpu.memory_space<vmem>>, vector<8x128xf32>,
    %c0_127 = arith.constant 0 : index
    %c0_128 = arith.constant 0 : index
    %266 = vector.load %arg3[%c0_127, %c0_128] : memref<128x512xf32, #tpu.memory_space<vmem>>, vector<128x512xf32>
    %cst_129 = arith.constant dense<0.000000e+00> : vector<8x512xf32>
    %267 = tpu.matmul %263, %266, %cst_129 {dimension_numbers = #tpu.dot_dimension_numbers<[1], [0], [0], [1], [0, 0, 1, 1], [], []>} : vector<8x128xf32>, vector<128x512xf32>, vector<8x512xf32> -> vector<8x512xf32>
    %c0_130 = arith.constant 0 : index
    %c0_131 = arith.constant 0 : index
    %268 = vector.load %arg9[%c0_130, %c0_131] : memref<8x128xf32, #tpu.memory_space<vmem>>, vector<8x128xf32>
    %c0_132 = arith.constant 0 : index
    %c0_133 = arith.constant 0 : index
    %269 = vector.load %arg4[%c0_132, %c0_133] : memref<128x512xf32, #tpu.memory_space<vmem>>, vector<128x512xf32>
    %cst_134 = arith.constant dense<0.000000e+00> : vector<8x512xf32>
    %270 = tpu.matmul %268, %269, %cst_134 {dimension_numbers = #tpu.dot_dimension_numbers<[1], [0], [0], [1], [0, 0, 1, 1], [], []>} : vector<8x128xf32>, vector<128x512xf32>, vector<8x512xf32> -> vector<8x512xf32>
    %271 = arith.addf %267, %270 : vector<8x512xf32>
    %c0_135 = arith.constant 0 : index
    %c0_136 = arith.constant 0 : index
    %272 = vector.load %arg5[%c0_135, %c0_136] : memref<1x512xf32, #tpu.memory_space<vmem>>, vector<1x512xf32>
    %273 = vector.broadcast %272 : vector<1x512xf32> to vector<8x512xf32>
    %274 = arith.addf %271, %273 : vector<8x512xf32>
    %c0_137 = arith.constant 0 : index
    %c0_138 = arith.constant 0 : index
    %275 = vector.load %arg10[%c0_137, %c0_138] : memref<8x128xf32, #tpu.memory_space<vmem>>, vector<8x128xf32>
    %276 = vector.extract_strided_slice %274 {offsets = [0, 0], sizes = [8, 128], strides = [1, 1]} : vector<8x512xf32> to vector<8x128xf32>
    %277 = arith.negf %276 : vector<8x128xf32>
    %278 = math.exp %277 : vector<8x128xf32>
    %cst_139 = arith.constant 1.000000e+00 : f32
    %279 = vector.broadcast %cst_139 : f32 to vector<8x128xf32>
    %280 = arith.addf %279, %278 : vector<8x128xf32>
    %281 = arith.divf %279, %280 : vector<8x128xf32>
    %282 = vector.extract_strided_slice %274 {offsets = [0, 128], sizes = [8, 128], strides = [1, 1]} : vector<8x512xf32> to vector<8x128xf32>
    %283 = arith.negf %282 : vector<8x128xf32>
    %284 = math.exp %283 : vector<8x128xf32>
    %cst_140 = arith.constant 1.000000e+00 : f32
    %285 = vector.broadcast %cst_140 : f32 to vector<8x128xf32>
    %286 = arith.addf %285, %284 : vector<8x128xf32>
    %287 = arith.divf %285, %286 : vector<8x128xf32>
    %288 = vector.extract_strided_slice %274 {offsets = [0, 256], sizes = [8, 128], strides = [1, 1]} : vector<8x512xf32> to vector<8x128xf32>
    %289 = math.tanh %288 : vector<8x128xf32>
    %290 = vector.extract_strided_slice %274 {offsets = [0, 384], sizes = [8, 128], strides = [1, 1]} : vector<8x512xf32> to vector<8x128xf32>
    %291 = arith.negf %290 : vector<8x128xf32>
    %292 = math.exp %291 : vector<8x128xf32>
    %cst_141 = arith.constant 1.000000e+00 : f32
    %293 = vector.broadcast %cst_141 : f32 to vector<8x128xf32>
    %294 = arith.addf %293, %292 : vector<8x128xf32>
    %295 = arith.divf %293, %294 : vector<8x128xf32>
    %296 = arith.mulf %287, %275 : vector<8x128xf32>
    %297 = arith.mulf %281, %289 : vector<8x128xf32>
    %298 = arith.addf %296, %297 : vector<8x128xf32>
    %299 = math.tanh %298 : vector<8x128xf32>
    %300 = arith.mulf %295, %299 : vector<8x128xf32>
    %c0_142 = arith.constant 0 : index
    %c0_143 = arith.constant 0 : index
    %301 = vector.load %arg9[%c0_142, %c0_143] : memref<8x128xf32, #tpu.memory_space<vmem>>, vector<8x128xf32>
    tpu.vector_store %arg9[%c0_142, %c0_143], %300 {strides = array<i32>} : memref<8x128xf32, #tpu.memory_space<vmem>>, vector<8x128xf32>,
    %c0_144 = arith.constant 0 : index
    %c0_145 = arith.constant 0 : index
    %302 = vector.load %arg10[%c0_144, %c0_145] : memref<8x128xf32, #tpu.memory_space<vmem>>, vector<8x128xf32>
    tpu.vector_store %arg10[%c0_144, %c0_145], %298 {strides = array<i32>} : memref<8x128xf32, #tpu.memory_space<vmem>>, vector<8x128xf32>,
    %303 = arith.index_cast %c3_i32 : i32 to index
    %c0_146 = arith.constant 0 : index
    %c0_147 = arith.constant 0 : index
    %304 = vector.load %arg6[%303, %c0_146, %c0_147] : memref<8x8x128xf32, #tpu.memory_space<vmem>>, vector<1x8x128xf32>
    %305 = vector.shape_cast %304 : vector<1x8x128xf32> to vector<8x128xf32>
    %306 = vector.shape_cast %300 : vector<8x128xf32> to vector<1x8x128xf32>
    tpu.vector_store %arg6[%303, %c0_146, %c0_147], %306 {strides = array<i32>} : memref<8x8x128xf32, #tpu.memory_space<vmem>>, vector<1x8x128xf32>,
    %c4_i32 = arith.constant 4 : i32
    %307 = arith.index_cast %c4_i32 : i32 to index
    %c0_148 = arith.constant 0 : index
    %c0_149 = arith.constant 0 : index
    %308 = vector.load %arg1[%307, %c0_148, %c0_149] : memref<8x8x512xf32, #tpu.memory_space<vmem>>, vector<1x8x512xf32>
    %309 = vector.shape_cast %308 : vector<1x8x512xf32> to vector<8x512xf32>
    %c0_150 = arith.constant 0 : index
    %c0_151 = arith.constant 0 : index
    %310 = vector.load %arg7[%c0_150, %c0_151] : memref<8x128xf32, #tpu.memory_space<vmem>>, vector<8x128xf32>
    %c0_152 = arith.constant 0 : index
    %c0_153 = arith.constant 0 : index
    %311 = vector.load %arg2[%c0_152, %c0_153] : memref<128x512xf32, #tpu.memory_space<vmem>>, vector<128x512xf32>
    %cst_154 = arith.constant dense<0.000000e+00> : vector<8x512xf32>
    %312 = tpu.matmul %310, %311, %cst_154 {dimension_numbers = #tpu.dot_dimension_numbers<[1], [0], [0], [1], [0, 0, 1, 1], [], []>} : vector<8x128xf32>, vector<128x512xf32>, vector<8x512xf32> -> vector<8x512xf32>
    %313 = arith.addf %309, %312 : vector<8x512xf32>
    %c0_155 = arith.constant 0 : index
    %c0_156 = arith.constant 0 : index
    %314 = vector.load %arg8[%c0_155, %c0_156] : memref<8x128xf32, #tpu.memory_space<vmem>>, vector<8x128xf32>
    %315 = vector.extract_strided_slice %313 {offsets = [0, 0], sizes = [8, 128], strides = [1, 1]} : vector<8x512xf32> to vector<8x128xf32>
    %316 = arith.negf %315 : vector<8x128xf32>
    %317 = math.exp %316 : vector<8x128xf32>
    %cst_157 = arith.constant 1.000000e+00 : f32
    %318 = vector.broadcast %cst_157 : f32 to vector<8x128xf32>
    %319 = arith.addf %318, %317 : vector<8x128xf32>
    %320 = arith.divf %318, %319 : vector<8x128xf32>
    %321 = vector.extract_strided_slice %313 {offsets = [0, 128], sizes = [8, 128], strides = [1, 1]} : vector<8x512xf32> to vector<8x128xf32>
    %322 = arith.negf %321 : vector<8x128xf32>
    %323 = math.exp %322 : vector<8x128xf32>
    %cst_158 = arith.constant 1.000000e+00 : f32
    %324 = vector.broadcast %cst_158 : f32 to vector<8x128xf32>
    %325 = arith.addf %324, %323 : vector<8x128xf32>
    %326 = arith.divf %324, %325 : vector<8x128xf32>
    %327 = vector.extract_strided_slice %313 {offsets = [0, 256], sizes = [8, 128], strides = [1, 1]} : vector<8x512xf32> to vector<8x128xf32>
    %328 = math.tanh %327 : vector<8x128xf32>
    %329 = vector.extract_strided_slice %313 {offsets = [0, 384], sizes = [8, 128], strides = [1, 1]} : vector<8x512xf32> to vector<8x128xf32>
    %330 = arith.negf %329 : vector<8x128xf32>
    %331 = math.exp %330 : vector<8x128xf32>
    %cst_159 = arith.constant 1.000000e+00 : f32
    %332 = vector.broadcast %cst_159 : f32 to vector<8x128xf32>
    %333 = arith.addf %332, %331 : vector<8x128xf32>
    %334 = arith.divf %332, %333 : vector<8x128xf32>
    %335 = arith.mulf %326, %314 : vector<8x128xf32>
    %336 = arith.mulf %320, %328 : vector<8x128xf32>
    %337 = arith.addf %335, %336 : vector<8x128xf32>
    %338 = math.tanh %337 : vector<8x128xf32>
    %339 = arith.mulf %334, %338 : vector<8x128xf32>
    %c0_160 = arith.constant 0 : index
    %c0_161 = arith.constant 0 : index
    %340 = vector.load %arg7[%c0_160, %c0_161] : memref<8x128xf32, #tpu.memory_space<vmem>>, vector<8x128xf32>
    tpu.vector_store %arg7[%c0_160, %c0_161], %339 {strides = array<i32>} : memref<8x128xf32, #tpu.memory_space<vmem>>, vector<8x128xf32>,
    %c0_162 = arith.constant 0 : index
    %c0_163 = arith.constant 0 : index
    %341 = vector.load %arg8[%c0_162, %c0_163] : memref<8x128xf32, #tpu.memory_space<vmem>>, vector<8x128xf32>
    tpu.vector_store %arg8[%c0_162, %c0_163], %337 {strides = array<i32>} : memref<8x128xf32, #tpu.memory_space<vmem>>, vector<8x128xf32>,
    %c0_164 = arith.constant 0 : index
    %c0_165 = arith.constant 0 : index
    %342 = vector.load %arg3[%c0_164, %c0_165] : memref<128x512xf32, #tpu.memory_space<vmem>>, vector<128x512xf32>
    %cst_166 = arith.constant dense<0.000000e+00> : vector<8x512xf32>
    %343 = tpu.matmul %339, %342, %cst_166 {dimension_numbers = #tpu.dot_dimension_numbers<[1], [0], [0], [1], [0, 0, 1, 1], [], []>} : vector<8x128xf32>, vector<128x512xf32>, vector<8x512xf32> -> vector<8x512xf32>
    %c0_167 = arith.constant 0 : index
    %c0_168 = arith.constant 0 : index
    %344 = vector.load %arg9[%c0_167, %c0_168] : memref<8x128xf32, #tpu.memory_space<vmem>>, vector<8x128xf32>
    %c0_169 = arith.constant 0 : index
    %c0_170 = arith.constant 0 : index
    %345 = vector.load %arg4[%c0_169, %c0_170] : memref<128x512xf32, #tpu.memory_space<vmem>>, vector<128x512xf32>
    %cst_171 = arith.constant dense<0.000000e+00> : vector<8x512xf32>
    %346 = tpu.matmul %344, %345, %cst_171 {dimension_numbers = #tpu.dot_dimension_numbers<[1], [0], [0], [1], [0, 0, 1, 1], [], []>} : vector<8x128xf32>, vector<128x512xf32>, vector<8x512xf32> -> vector<8x512xf32>
    %347 = arith.addf %343, %346 : vector<8x512xf32>
    %c0_172 = arith.constant 0 : index
    %c0_173 = arith.constant 0 : index
    %348 = vector.load %arg5[%c0_172, %c0_173] : memref<1x512xf32, #tpu.memory_space<vmem>>, vector<1x512xf32>
    %349 = vector.broadcast %348 : vector<1x512xf32> to vector<8x512xf32>
    %350 = arith.addf %347, %349 : vector<8x512xf32>
    %c0_174 = arith.constant 0 : index
    %c0_175 = arith.constant 0 : index
    %351 = vector.load %arg10[%c0_174, %c0_175] : memref<8x128xf32, #tpu.memory_space<vmem>>, vector<8x128xf32>
    %352 = vector.extract_strided_slice %350 {offsets = [0, 0], sizes = [8, 128], strides = [1, 1]} : vector<8x512xf32> to vector<8x128xf32>
    %353 = arith.negf %352 : vector<8x128xf32>
    %354 = math.exp %353 : vector<8x128xf32>
    %cst_176 = arith.constant 1.000000e+00 : f32
    %355 = vector.broadcast %cst_176 : f32 to vector<8x128xf32>
    %356 = arith.addf %355, %354 : vector<8x128xf32>
    %357 = arith.divf %355, %356 : vector<8x128xf32>
    %358 = vector.extract_strided_slice %350 {offsets = [0, 128], sizes = [8, 128], strides = [1, 1]} : vector<8x512xf32> to vector<8x128xf32>
    %359 = arith.negf %358 : vector<8x128xf32>
    %360 = math.exp %359 : vector<8x128xf32>
    %cst_177 = arith.constant 1.000000e+00 : f32
    %361 = vector.broadcast %cst_177 : f32 to vector<8x128xf32>
    %362 = arith.addf %361, %360 : vector<8x128xf32>
    %363 = arith.divf %361, %362 : vector<8x128xf32>
    %364 = vector.extract_strided_slice %350 {offsets = [0, 256], sizes = [8, 128], strides = [1, 1]} : vector<8x512xf32> to vector<8x128xf32>
    %365 = math.tanh %364 : vector<8x128xf32>
    %366 = vector.extract_strided_slice %350 {offsets = [0, 384], sizes = [8, 128], strides = [1, 1]} : vector<8x512xf32> to vector<8x128xf32>
    %367 = arith.negf %366 : vector<8x128xf32>
    %368 = math.exp %367 : vector<8x128xf32>
    %cst_178 = arith.constant 1.000000e+00 : f32
    %369 = vector.broadcast %cst_178 : f32 to vector<8x128xf32>
    %370 = arith.addf %369, %368 : vector<8x128xf32>
    %371 = arith.divf %369, %370 : vector<8x128xf32>
    %372 = arith.mulf %363, %351 : vector<8x128xf32>
    %373 = arith.mulf %357, %365 : vector<8x128xf32>
    %374 = arith.addf %372, %373 : vector<8x128xf32>
    %375 = math.tanh %374 : vector<8x128xf32>
    %376 = arith.mulf %371, %375 : vector<8x128xf32>
    %c0_179 = arith.constant 0 : index
    %c0_180 = arith.constant 0 : index
    %377 = vector.load %arg9[%c0_179, %c0_180] : memref<8x128xf32, #tpu.memory_space<vmem>>, vector<8x128xf32>
    tpu.vector_store %arg9[%c0_179, %c0_180], %376 {strides = array<i32>} : memref<8x128xf32, #tpu.memory_space<vmem>>, vector<8x128xf32>,
    %c0_181 = arith.constant 0 : index
    %c0_182 = arith.constant 0 : index
    %378 = vector.load %arg10[%c0_181, %c0_182] : memref<8x128xf32, #tpu.memory_space<vmem>>, vector<8x128xf32>
    tpu.vector_store %arg10[%c0_181, %c0_182], %374 {strides = array<i32>} : memref<8x128xf32, #tpu.memory_space<vmem>>, vector<8x128xf32>,
    %379 = arith.index_cast %c4_i32 : i32 to index
    %c0_183 = arith.constant 0 : index
    %c0_184 = arith.constant 0 : index
    %380 = vector.load %arg6[%379, %c0_183, %c0_184] : memref<8x8x128xf32, #tpu.memory_space<vmem>>, vector<1x8x128xf32>
    %381 = vector.shape_cast %380 : vector<1x8x128xf32> to vector<8x128xf32>
    %382 = vector.shape_cast %376 : vector<8x128xf32> to vector<1x8x128xf32>
    tpu.vector_store %arg6[%379, %c0_183, %c0_184], %382 {strides = array<i32>} : memref<8x8x128xf32, #tpu.memory_space<vmem>>, vector<1x8x128xf32>,
    %c5_i32 = arith.constant 5 : i32
    %383 = arith.index_cast %c5_i32 : i32 to index
    %c0_185 = arith.constant 0 : index
    %c0_186 = arith.constant 0 : index
    %384 = vector.load %arg1[%383, %c0_185, %c0_186] : memref<8x8x512xf32, #tpu.memory_space<vmem>>, vector<1x8x512xf32>
    %385 = vector.shape_cast %384 : vector<1x8x512xf32> to vector<8x512xf32>
    %c0_187 = arith.constant 0 : index
    %c0_188 = arith.constant 0 : index
    %386 = vector.load %arg7[%c0_187, %c0_188] : memref<8x128xf32, #tpu.memory_space<vmem>>, vector<8x128xf32>
    %c0_189 = arith.constant 0 : index
    %c0_190 = arith.constant 0 : index
    %387 = vector.load %arg2[%c0_189, %c0_190] : memref<128x512xf32, #tpu.memory_space<vmem>>, vector<128x512xf32>
    %cst_191 = arith.constant dense<0.000000e+00> : vector<8x512xf32>
    %388 = tpu.matmul %386, %387, %cst_191 {dimension_numbers = #tpu.dot_dimension_numbers<[1], [0], [0], [1], [0, 0, 1, 1], [], []>} : vector<8x128xf32>, vector<128x512xf32>, vector<8x512xf32> -> vector<8x512xf32>
    %389 = arith.addf %385, %388 : vector<8x512xf32>
    %c0_192 = arith.constant 0 : index
    %c0_193 = arith.constant 0 : index
    %390 = vector.load %arg8[%c0_192, %c0_193] : memref<8x128xf32, #tpu.memory_space<vmem>>, vector<8x128xf32>
    %391 = vector.extract_strided_slice %389 {offsets = [0, 0], sizes = [8, 128], strides = [1, 1]} : vector<8x512xf32> to vector<8x128xf32>
    %392 = arith.negf %391 : vector<8x128xf32>
    %393 = math.exp %392 : vector<8x128xf32>
    %cst_194 = arith.constant 1.000000e+00 : f32
    %394 = vector.broadcast %cst_194 : f32 to vector<8x128xf32>
    %395 = arith.addf %394, %393 : vector<8x128xf32>
    %396 = arith.divf %394, %395 : vector<8x128xf32>
    %397 = vector.extract_strided_slice %389 {offsets = [0, 128], sizes = [8, 128], strides = [1, 1]} : vector<8x512xf32> to vector<8x128xf32>
    %398 = arith.negf %397 : vector<8x128xf32>
    %399 = math.exp %398 : vector<8x128xf32>
    %cst_195 = arith.constant 1.000000e+00 : f32
    %400 = vector.broadcast %cst_195 : f32 to vector<8x128xf32>
    %401 = arith.addf %400, %399 : vector<8x128xf32>
    %402 = arith.divf %400, %401 : vector<8x128xf32>
    %403 = vector.extract_strided_slice %389 {offsets = [0, 256], sizes = [8, 128], strides = [1, 1]} : vector<8x512xf32> to vector<8x128xf32>
    %404 = math.tanh %403 : vector<8x128xf32>
    %405 = vector.extract_strided_slice %389 {offsets = [0, 384], sizes = [8, 128], strides = [1, 1]} : vector<8x512xf32> to vector<8x128xf32>
    %406 = arith.negf %405 : vector<8x128xf32>
    %407 = math.exp %406 : vector<8x128xf32>
    %cst_196 = arith.constant 1.000000e+00 : f32
    %408 = vector.broadcast %cst_196 : f32 to vector<8x128xf32>
    %409 = arith.addf %408, %407 : vector<8x128xf32>
    %410 = arith.divf %408, %409 : vector<8x128xf32>
    %411 = arith.mulf %402, %390 : vector<8x128xf32>
    %412 = arith.mulf %396, %404 : vector<8x128xf32>
    %413 = arith.addf %411, %412 : vector<8x128xf32>
    %414 = math.tanh %413 : vector<8x128xf32>
    %415 = arith.mulf %410, %414 : vector<8x128xf32>
    %c0_197 = arith.constant 0 : index
    %c0_198 = arith.constant 0 : index
    %416 = vector.load %arg7[%c0_197, %c0_198] : memref<8x128xf32, #tpu.memory_space<vmem>>, vector<8x128xf32>
    tpu.vector_store %arg7[%c0_197, %c0_198], %415 {strides = array<i32>} : memref<8x128xf32, #tpu.memory_space<vmem>>, vector<8x128xf32>,
    %c0_199 = arith.constant 0 : index
    %c0_200 = arith.constant 0 : index
    %417 = vector.load %arg8[%c0_199, %c0_200] : memref<8x128xf32, #tpu.memory_space<vmem>>, vector<8x128xf32>
    tpu.vector_store %arg8[%c0_199, %c0_200], %413 {strides = array<i32>} : memref<8x128xf32, #tpu.memory_space<vmem>>, vector<8x128xf32>,
    %c0_201 = arith.constant 0 : index
    %c0_202 = arith.constant 0 : index
    %418 = vector.load %arg3[%c0_201, %c0_202] : memref<128x512xf32, #tpu.memory_space<vmem>>, vector<128x512xf32>
    %cst_203 = arith.constant dense<0.000000e+00> : vector<8x512xf32>
    %419 = tpu.matmul %415, %418, %cst_203 {dimension_numbers = #tpu.dot_dimension_numbers<[1], [0], [0], [1], [0, 0, 1, 1], [], []>} : vector<8x128xf32>, vector<128x512xf32>, vector<8x512xf32> -> vector<8x512xf32>
    %c0_204 = arith.constant 0 : index
    %c0_205 = arith.constant 0 : index
    %420 = vector.load %arg9[%c0_204, %c0_205] : memref<8x128xf32, #tpu.memory_space<vmem>>, vector<8x128xf32>
    %c0_206 = arith.constant 0 : index
    %c0_207 = arith.constant 0 : index
    %421 = vector.load %arg4[%c0_206, %c0_207] : memref<128x512xf32, #tpu.memory_space<vmem>>, vector<128x512xf32>
    %cst_208 = arith.constant dense<0.000000e+00> : vector<8x512xf32>
    %422 = tpu.matmul %420, %421, %cst_208 {dimension_numbers = #tpu.dot_dimension_numbers<[1], [0], [0], [1], [0, 0, 1, 1], [], []>} : vector<8x128xf32>, vector<128x512xf32>, vector<8x512xf32> -> vector<8x512xf32>
    %423 = arith.addf %419, %422 : vector<8x512xf32>
    %c0_209 = arith.constant 0 : index
    %c0_210 = arith.constant 0 : index
    %424 = vector.load %arg5[%c0_209, %c0_210] : memref<1x512xf32, #tpu.memory_space<vmem>>, vector<1x512xf32>
    %425 = vector.broadcast %424 : vector<1x512xf32> to vector<8x512xf32>
    %426 = arith.addf %423, %425 : vector<8x512xf32>
    %c0_211 = arith.constant 0 : index
    %c0_212 = arith.constant 0 : index
    %427 = vector.load %arg10[%c0_211, %c0_212] : memref<8x128xf32, #tpu.memory_space<vmem>>, vector<8x128xf32>
    %428 = vector.extract_strided_slice %426 {offsets = [0, 0], sizes = [8, 128], strides = [1, 1]} : vector<8x512xf32> to vector<8x128xf32>
    %429 = arith.negf %428 : vector<8x128xf32>
    %430 = math.exp %429 : vector<8x128xf32>
    %cst_213 = arith.constant 1.000000e+00 : f32
    %431 = vector.broadcast %cst_213 : f32 to vector<8x128xf32>
    %432 = arith.addf %431, %430 : vector<8x128xf32>
    %433 = arith.divf %431, %432 : vector<8x128xf32>
    %434 = vector.extract_strided_slice %426 {offsets = [0, 128], sizes = [8, 128], strides = [1, 1]} : vector<8x512xf32> to vector<8x128xf32>
    %435 = arith.negf %434 : vector<8x128xf32>
    %436 = math.exp %435 : vector<8x128xf32>
    %cst_214 = arith.constant 1.000000e+00 : f32
    %437 = vector.broadcast %cst_214 : f32 to vector<8x128xf32>
    %438 = arith.addf %437, %436 : vector<8x128xf32>
    %439 = arith.divf %437, %438 : vector<8x128xf32>
    %440 = vector.extract_strided_slice %426 {offsets = [0, 256], sizes = [8, 128], strides = [1, 1]} : vector<8x512xf32> to vector<8x128xf32>
    %441 = math.tanh %440 : vector<8x128xf32>
    %442 = vector.extract_strided_slice %426 {offsets = [0, 384], sizes = [8, 128], strides = [1, 1]} : vector<8x512xf32> to vector<8x128xf32>
    %443 = arith.negf %442 : vector<8x128xf32>
    %444 = math.exp %443 : vector<8x128xf32>
    %cst_215 = arith.constant 1.000000e+00 : f32
    %445 = vector.broadcast %cst_215 : f32 to vector<8x128xf32>
    %446 = arith.addf %445, %444 : vector<8x128xf32>
    %447 = arith.divf %445, %446 : vector<8x128xf32>
    %448 = arith.mulf %439, %427 : vector<8x128xf32>
    %449 = arith.mulf %433, %441 : vector<8x128xf32>
    %450 = arith.addf %448, %449 : vector<8x128xf32>
    %451 = math.tanh %450 : vector<8x128xf32>
    %452 = arith.mulf %447, %451 : vector<8x128xf32>
    %c0_216 = arith.constant 0 : index
    %c0_217 = arith.constant 0 : index
    %453 = vector.load %arg9[%c0_216, %c0_217] : memref<8x128xf32, #tpu.memory_space<vmem>>, vector<8x128xf32>
    tpu.vector_store %arg9[%c0_216, %c0_217], %452 {strides = array<i32>} : memref<8x128xf32, #tpu.memory_space<vmem>>, vector<8x128xf32>,
    %c0_218 = arith.constant 0 : index
    %c0_219 = arith.constant 0 : index
    %454 = vector.load %arg10[%c0_218, %c0_219] : memref<8x128xf32, #tpu.memory_space<vmem>>, vector<8x128xf32>
    tpu.vector_store %arg10[%c0_218, %c0_219], %450 {strides = array<i32>} : memref<8x128xf32, #tpu.memory_space<vmem>>, vector<8x128xf32>,
    %455 = arith.index_cast %c5_i32 : i32 to index
    %c0_220 = arith.constant 0 : index
    %c0_221 = arith.constant 0 : index
    %456 = vector.load %arg6[%455, %c0_220, %c0_221] : memref<8x8x128xf32, #tpu.memory_space<vmem>>, vector<1x8x128xf32>
    %457 = vector.shape_cast %456 : vector<1x8x128xf32> to vector<8x128xf32>
    %458 = vector.shape_cast %452 : vector<8x128xf32> to vector<1x8x128xf32>
    tpu.vector_store %arg6[%455, %c0_220, %c0_221], %458 {strides = array<i32>} : memref<8x8x128xf32, #tpu.memory_space<vmem>>, vector<1x8x128xf32>,
    %c6_i32 = arith.constant 6 : i32
    %459 = arith.index_cast %c6_i32 : i32 to index
    %c0_222 = arith.constant 0 : index
    %c0_223 = arith.constant 0 : index
    %460 = vector.load %arg1[%459, %c0_222, %c0_223] : memref<8x8x512xf32, #tpu.memory_space<vmem>>, vector<1x8x512xf32>
    %461 = vector.shape_cast %460 : vector<1x8x512xf32> to vector<8x512xf32>
    %c0_224 = arith.constant 0 : index
    %c0_225 = arith.constant 0 : index
    %462 = vector.load %arg7[%c0_224, %c0_225] : memref<8x128xf32, #tpu.memory_space<vmem>>, vector<8x128xf32>
    %c0_226 = arith.constant 0 : index
    %c0_227 = arith.constant 0 : index
    %463 = vector.load %arg2[%c0_226, %c0_227] : memref<128x512xf32, #tpu.memory_space<vmem>>, vector<128x512xf32>
    %cst_228 = arith.constant dense<0.000000e+00> : vector<8x512xf32>
    %464 = tpu.matmul %462, %463, %cst_228 {dimension_numbers = #tpu.dot_dimension_numbers<[1], [0], [0], [1], [0, 0, 1, 1], [], []>} : vector<8x128xf32>, vector<128x512xf32>, vector<8x512xf32> -> vector<8x512xf32>
    %465 = arith.addf %461, %464 : vector<8x512xf32>
    %c0_229 = arith.constant 0 : index
    %c0_230 = arith.constant 0 : index
    %466 = vector.load %arg8[%c0_229, %c0_230] : memref<8x128xf32, #tpu.memory_space<vmem>>, vector<8x128xf32>
    %467 = vector.extract_strided_slice %465 {offsets = [0, 0], sizes = [8, 128], strides = [1, 1]} : vector<8x512xf32> to vector<8x128xf32>
    %468 = arith.negf %467 : vector<8x128xf32>
    %469 = math.exp %468 : vector<8x128xf32>
    %cst_231 = arith.constant 1.000000e+00 : f32
    %470 = vector.broadcast %cst_231 : f32 to vector<8x128xf32>
    %471 = arith.addf %470, %469 : vector<8x128xf32>
    %472 = arith.divf %470, %471 : vector<8x128xf32>
    %473 = vector.extract_strided_slice %465 {offsets = [0, 128], sizes = [8, 128], strides = [1, 1]} : vector<8x512xf32> to vector<8x128xf32>
    %474 = arith.negf %473 : vector<8x128xf32>
    %475 = math.exp %474 : vector<8x128xf32>
    %cst_232 = arith.constant 1.000000e+00 : f32
    %476 = vector.broadcast %cst_232 : f32 to vector<8x128xf32>
    %477 = arith.addf %476, %475 : vector<8x128xf32>
    %478 = arith.divf %476, %477 : vector<8x128xf32>
    %479 = vector.extract_strided_slice %465 {offsets = [0, 256], sizes = [8, 128], strides = [1, 1]} : vector<8x512xf32> to vector<8x128xf32>
    %480 = math.tanh %479 : vector<8x128xf32>
    %481 = vector.extract_strided_slice %465 {offsets = [0, 384], sizes = [8, 128], strides = [1, 1]} : vector<8x512xf32> to vector<8x128xf32>
    %482 = arith.negf %481 : vector<8x128xf32>
    %483 = math.exp %482 : vector<8x128xf32>
    %cst_233 = arith.constant 1.000000e+00 : f32
    %484 = vector.broadcast %cst_233 : f32 to vector<8x128xf32>
    %485 = arith.addf %484, %483 : vector<8x128xf32>
    %486 = arith.divf %484, %485 : vector<8x128xf32>
    %487 = arith.mulf %478, %466 : vector<8x128xf32>
    %488 = arith.mulf %472, %480 : vector<8x128xf32>
    %489 = arith.addf %487, %488 : vector<8x128xf32>
    %490 = math.tanh %489 : vector<8x128xf32>
    %491 = arith.mulf %486, %490 : vector<8x128xf32>
    %c0_234 = arith.constant 0 : index
    %c0_235 = arith.constant 0 : index
    %492 = vector.load %arg7[%c0_234, %c0_235] : memref<8x128xf32, #tpu.memory_space<vmem>>, vector<8x128xf32>
    tpu.vector_store %arg7[%c0_234, %c0_235], %491 {strides = array<i32>} : memref<8x128xf32, #tpu.memory_space<vmem>>, vector<8x128xf32>,
    %c0_236 = arith.constant 0 : index
    %c0_237 = arith.constant 0 : index
    %493 = vector.load %arg8[%c0_236, %c0_237] : memref<8x128xf32, #tpu.memory_space<vmem>>, vector<8x128xf32>
    tpu.vector_store %arg8[%c0_236, %c0_237], %489 {strides = array<i32>} : memref<8x128xf32, #tpu.memory_space<vmem>>, vector<8x128xf32>,
    %c0_238 = arith.constant 0 : index
    %c0_239 = arith.constant 0 : index
    %494 = vector.load %arg3[%c0_238, %c0_239] : memref<128x512xf32, #tpu.memory_space<vmem>>, vector<128x512xf32>
    %cst_240 = arith.constant dense<0.000000e+00> : vector<8x512xf32>
    %495 = tpu.matmul %491, %494, %cst_240 {dimension_numbers = #tpu.dot_dimension_numbers<[1], [0], [0], [1], [0, 0, 1, 1], [], []>} : vector<8x128xf32>, vector<128x512xf32>, vector<8x512xf32> -> vector<8x512xf32>
    %c0_241 = arith.constant 0 : index
    %c0_242 = arith.constant 0 : index
    %496 = vector.load %arg9[%c0_241, %c0_242] : memref<8x128xf32, #tpu.memory_space<vmem>>, vector<8x128xf32>
    %c0_243 = arith.constant 0 : index
    %c0_244 = arith.constant 0 : index
    %497 = vector.load %arg4[%c0_243, %c0_244] : memref<128x512xf32, #tpu.memory_space<vmem>>, vector<128x512xf32>
    %cst_245 = arith.constant dense<0.000000e+00> : vector<8x512xf32>
    %498 = tpu.matmul %496, %497, %cst_245 {dimension_numbers = #tpu.dot_dimension_numbers<[1], [0], [0], [1], [0, 0, 1, 1], [], []>} : vector<8x128xf32>, vector<128x512xf32>, vector<8x512xf32> -> vector<8x512xf32>
    %499 = arith.addf %495, %498 : vector<8x512xf32>
    %c0_246 = arith.constant 0 : index
    %c0_247 = arith.constant 0 : index
    %500 = vector.load %arg5[%c0_246, %c0_247] : memref<1x512xf32, #tpu.memory_space<vmem>>, vector<1x512xf32>
    %501 = vector.broadcast %500 : vector<1x512xf32> to vector<8x512xf32>
    %502 = arith.addf %499, %501 : vector<8x512xf32>
    %c0_248 = arith.constant 0 : index
    %c0_249 = arith.constant 0 : index
    %503 = vector.load %arg10[%c0_248, %c0_249] : memref<8x128xf32, #tpu.memory_space<vmem>>, vector<8x128xf32>
    %504 = vector.extract_strided_slice %502 {offsets = [0, 0], sizes = [8, 128], strides = [1, 1]} : vector<8x512xf32> to vector<8x128xf32>
    %505 = arith.negf %504 : vector<8x128xf32>
    %506 = math.exp %505 : vector<8x128xf32>
    %cst_250 = arith.constant 1.000000e+00 : f32
    %507 = vector.broadcast %cst_250 : f32 to vector<8x128xf32>
    %508 = arith.addf %507, %506 : vector<8x128xf32>
    %509 = arith.divf %507, %508 : vector<8x128xf32>
    %510 = vector.extract_strided_slice %502 {offsets = [0, 128], sizes = [8, 128], strides = [1, 1]} : vector<8x512xf32> to vector<8x128xf32>
    %511 = arith.negf %510 : vector<8x128xf32>
    %512 = math.exp %511 : vector<8x128xf32>
    %cst_251 = arith.constant 1.000000e+00 : f32
    %513 = vector.broadcast %cst_251 : f32 to vector<8x128xf32>
    %514 = arith.addf %513, %512 : vector<8x128xf32>
    %515 = arith.divf %513, %514 : vector<8x128xf32>
    %516 = vector.extract_strided_slice %502 {offsets = [0, 256], sizes = [8, 128], strides = [1, 1]} : vector<8x512xf32> to vector<8x128xf32>
    %517 = math.tanh %516 : vector<8x128xf32>
    %518 = vector.extract_strided_slice %502 {offsets = [0, 384], sizes = [8, 128], strides = [1, 1]} : vector<8x512xf32> to vector<8x128xf32>
    %519 = arith.negf %518 : vector<8x128xf32>
    %520 = math.exp %519 : vector<8x128xf32>
    %cst_252 = arith.constant 1.000000e+00 : f32
    %521 = vector.broadcast %cst_252 : f32 to vector<8x128xf32>
    %522 = arith.addf %521, %520 : vector<8x128xf32>
    %523 = arith.divf %521, %522 : vector<8x128xf32>
    %524 = arith.mulf %515, %503 : vector<8x128xf32>
    %525 = arith.mulf %509, %517 : vector<8x128xf32>
    %526 = arith.addf %524, %525 : vector<8x128xf32>
    %527 = math.tanh %526 : vector<8x128xf32>
    %528 = arith.mulf %523, %527 : vector<8x128xf32>
    %c0_253 = arith.constant 0 : index
    %c0_254 = arith.constant 0 : index
    %529 = vector.load %arg9[%c0_253, %c0_254] : memref<8x128xf32, #tpu.memory_space<vmem>>, vector<8x128xf32>
    tpu.vector_store %arg9[%c0_253, %c0_254], %528 {strides = array<i32>} : memref<8x128xf32, #tpu.memory_space<vmem>>, vector<8x128xf32>,
    %c0_255 = arith.constant 0 : index
    %c0_256 = arith.constant 0 : index
    %530 = vector.load %arg10[%c0_255, %c0_256] : memref<8x128xf32, #tpu.memory_space<vmem>>, vector<8x128xf32>
    tpu.vector_store %arg10[%c0_255, %c0_256], %526 {strides = array<i32>} : memref<8x128xf32, #tpu.memory_space<vmem>>, vector<8x128xf32>,
    %531 = arith.index_cast %c6_i32 : i32 to index
    %c0_257 = arith.constant 0 : index
    %c0_258 = arith.constant 0 : index
    %532 = vector.load %arg6[%531, %c0_257, %c0_258] : memref<8x8x128xf32, #tpu.memory_space<vmem>>, vector<1x8x128xf32>
    %533 = vector.shape_cast %532 : vector<1x8x128xf32> to vector<8x128xf32>
    %534 = vector.shape_cast %528 : vector<8x128xf32> to vector<1x8x128xf32>
    tpu.vector_store %arg6[%531, %c0_257, %c0_258], %534 {strides = array<i32>} : memref<8x8x128xf32, #tpu.memory_space<vmem>>, vector<1x8x128xf32>,
    %c7_i32 = arith.constant 7 : i32
    %535 = arith.index_cast %c7_i32 : i32 to index
    %c0_259 = arith.constant 0 : index
    %c0_260 = arith.constant 0 : index
    %536 = vector.load %arg1[%535, %c0_259, %c0_260] : memref<8x8x512xf32, #tpu.memory_space<vmem>>, vector<1x8x512xf32>
    %537 = vector.shape_cast %536 : vector<1x8x512xf32> to vector<8x512xf32>
    %c0_261 = arith.constant 0 : index
    %c0_262 = arith.constant 0 : index
    %538 = vector.load %arg7[%c0_261, %c0_262] : memref<8x128xf32, #tpu.memory_space<vmem>>, vector<8x128xf32>
    %c0_263 = arith.constant 0 : index
    %c0_264 = arith.constant 0 : index
    %539 = vector.load %arg2[%c0_263, %c0_264] : memref<128x512xf32, #tpu.memory_space<vmem>>, vector<128x512xf32>
    %cst_265 = arith.constant dense<0.000000e+00> : vector<8x512xf32>
    %540 = tpu.matmul %538, %539, %cst_265 {dimension_numbers = #tpu.dot_dimension_numbers<[1], [0], [0], [1], [0, 0, 1, 1], [], []>} : vector<8x128xf32>, vector<128x512xf32>, vector<8x512xf32> -> vector<8x512xf32>
    %541 = arith.addf %537, %540 : vector<8x512xf32>
    %c0_266 = arith.constant 0 : index
    %c0_267 = arith.constant 0 : index
    %542 = vector.load %arg8[%c0_266, %c0_267] : memref<8x128xf32, #tpu.memory_space<vmem>>, vector<8x128xf32>
    %543 = vector.extract_strided_slice %541 {offsets = [0, 0], sizes = [8, 128], strides = [1, 1]} : vector<8x512xf32> to vector<8x128xf32>
    %544 = arith.negf %543 : vector<8x128xf32>
    %545 = math.exp %544 : vector<8x128xf32>
    %cst_268 = arith.constant 1.000000e+00 : f32
    %546 = vector.broadcast %cst_268 : f32 to vector<8x128xf32>
    %547 = arith.addf %546, %545 : vector<8x128xf32>
    %548 = arith.divf %546, %547 : vector<8x128xf32>
    %549 = vector.extract_strided_slice %541 {offsets = [0, 128], sizes = [8, 128], strides = [1, 1]} : vector<8x512xf32> to vector<8x128xf32>
    %550 = arith.negf %549 : vector<8x128xf32>
    %551 = math.exp %550 : vector<8x128xf32>
    %cst_269 = arith.constant 1.000000e+00 : f32
    %552 = vector.broadcast %cst_269 : f32 to vector<8x128xf32>
    %553 = arith.addf %552, %551 : vector<8x128xf32>
    %554 = arith.divf %552, %553 : vector<8x128xf32>
    %555 = vector.extract_strided_slice %541 {offsets = [0, 256], sizes = [8, 128], strides = [1, 1]} : vector<8x512xf32> to vector<8x128xf32>
    %556 = math.tanh %555 : vector<8x128xf32>
    %557 = vector.extract_strided_slice %541 {offsets = [0, 384], sizes = [8, 128], strides = [1, 1]} : vector<8x512xf32> to vector<8x128xf32>
    %558 = arith.negf %557 : vector<8x128xf32>
    %559 = math.exp %558 : vector<8x128xf32>
    %cst_270 = arith.constant 1.000000e+00 : f32
    %560 = vector.broadcast %cst_270 : f32 to vector<8x128xf32>
    %561 = arith.addf %560, %559 : vector<8x128xf32>
    %562 = arith.divf %560, %561 : vector<8x128xf32>
    %563 = arith.mulf %554, %542 : vector<8x128xf32>
    %564 = arith.mulf %548, %556 : vector<8x128xf32>
    %565 = arith.addf %563, %564 : vector<8x128xf32>
    %566 = math.tanh %565 : vector<8x128xf32>
    %567 = arith.mulf %562, %566 : vector<8x128xf32>
    %c0_271 = arith.constant 0 : index
    %c0_272 = arith.constant 0 : index
    %568 = vector.load %arg7[%c0_271, %c0_272] : memref<8x128xf32, #tpu.memory_space<vmem>>, vector<8x128xf32>
    tpu.vector_store %arg7[%c0_271, %c0_272], %567 {strides = array<i32>} : memref<8x128xf32, #tpu.memory_space<vmem>>, vector<8x128xf32>,
    %c0_273 = arith.constant 0 : index
    %c0_274 = arith.constant 0 : index
    %569 = vector.load %arg8[%c0_273, %c0_274] : memref<8x128xf32, #tpu.memory_space<vmem>>, vector<8x128xf32>
    tpu.vector_store %arg8[%c0_273, %c0_274], %565 {strides = array<i32>} : memref<8x128xf32, #tpu.memory_space<vmem>>, vector<8x128xf32>,
    %c0_275 = arith.constant 0 : index
    %c0_276 = arith.constant 0 : index
    %570 = vector.load %arg3[%c0_275, %c0_276] : memref<128x512xf32, #tpu.memory_space<vmem>>, vector<128x512xf32>
    %cst_277 = arith.constant dense<0.000000e+00> : vector<8x512xf32>
    %571 = tpu.matmul %567, %570, %cst_277 {dimension_numbers = #tpu.dot_dimension_numbers<[1], [0], [0], [1], [0, 0, 1, 1], [], []>} : vector<8x128xf32>, vector<128x512xf32>, vector<8x512xf32> -> vector<8x512xf32>
    %c0_278 = arith.constant 0 : index
    %c0_279 = arith.constant 0 : index
    %572 = vector.load %arg9[%c0_278, %c0_279] : memref<8x128xf32, #tpu.memory_space<vmem>>, vector<8x128xf32>
    %c0_280 = arith.constant 0 : index
    %c0_281 = arith.constant 0 : index
    %573 = vector.load %arg4[%c0_280, %c0_281] : memref<128x512xf32, #tpu.memory_space<vmem>>, vector<128x512xf32>
    %cst_282 = arith.constant dense<0.000000e+00> : vector<8x512xf32>
    %574 = tpu.matmul %572, %573, %cst_282 {dimension_numbers = #tpu.dot_dimension_numbers<[1], [0], [0], [1], [0, 0, 1, 1], [], []>} : vector<8x128xf32>, vector<128x512xf32>, vector<8x512xf32> -> vector<8x512xf32>
    %575 = arith.addf %571, %574 : vector<8x512xf32>
    %c0_283 = arith.constant 0 : index
    %c0_284 = arith.constant 0 : index
    %576 = vector.load %arg5[%c0_283, %c0_284] : memref<1x512xf32, #tpu.memory_space<vmem>>, vector<1x512xf32>
    %577 = vector.broadcast %576 : vector<1x512xf32> to vector<8x512xf32>
    %578 = arith.addf %575, %577 : vector<8x512xf32>
    %c0_285 = arith.constant 0 : index
    %c0_286 = arith.constant 0 : index
    %579 = vector.load %arg10[%c0_285, %c0_286] : memref<8x128xf32, #tpu.memory_space<vmem>>, vector<8x128xf32>
    %580 = vector.extract_strided_slice %578 {offsets = [0, 0], sizes = [8, 128], strides = [1, 1]} : vector<8x512xf32> to vector<8x128xf32>
    %581 = arith.negf %580 : vector<8x128xf32>
    %582 = math.exp %581 : vector<8x128xf32>
    %cst_287 = arith.constant 1.000000e+00 : f32
    %583 = vector.broadcast %cst_287 : f32 to vector<8x128xf32>
    %584 = arith.addf %583, %582 : vector<8x128xf32>
    %585 = arith.divf %583, %584 : vector<8x128xf32>
    %586 = vector.extract_strided_slice %578 {offsets = [0, 128], sizes = [8, 128], strides = [1, 1]} : vector<8x512xf32> to vector<8x128xf32>
    %587 = arith.negf %586 : vector<8x128xf32>
    %588 = math.exp %587 : vector<8x128xf32>
    %cst_288 = arith.constant 1.000000e+00 : f32
    %589 = vector.broadcast %cst_288 : f32 to vector<8x128xf32>
    %590 = arith.addf %589, %588 : vector<8x128xf32>
    %591 = arith.divf %589, %590 : vector<8x128xf32>
    %592 = vector.extract_strided_slice %578 {offsets = [0, 256], sizes = [8, 128], strides = [1, 1]} : vector<8x512xf32> to vector<8x128xf32>
    %593 = math.tanh %592 : vector<8x128xf32>
    %594 = vector.extract_strided_slice %578 {offsets = [0, 384], sizes = [8, 128], strides = [1, 1]} : vector<8x512xf32> to vector<8x128xf32>
    %595 = arith.negf %594 : vector<8x128xf32>
    %596 = math.exp %595 : vector<8x128xf32>
    %cst_289 = arith.constant 1.000000e+00 : f32
    %597 = vector.broadcast %cst_289 : f32 to vector<8x128xf32>
    %598 = arith.addf %597, %596 : vector<8x128xf32>
    %599 = arith.divf %597, %598 : vector<8x128xf32>
    %600 = arith.mulf %591, %579 : vector<8x128xf32>
    %601 = arith.mulf %585, %593 : vector<8x128xf32>
    %602 = arith.addf %600, %601 : vector<8x128xf32>
    %603 = math.tanh %602 : vector<8x128xf32>
    %604 = arith.mulf %599, %603 : vector<8x128xf32>
    %c0_290 = arith.constant 0 : index
    %c0_291 = arith.constant 0 : index
    %605 = vector.load %arg9[%c0_290, %c0_291] : memref<8x128xf32, #tpu.memory_space<vmem>>, vector<8x128xf32>
    tpu.vector_store %arg9[%c0_290, %c0_291], %604 {strides = array<i32>} : memref<8x128xf32, #tpu.memory_space<vmem>>, vector<8x128xf32>,
    %c0_292 = arith.constant 0 : index
    %c0_293 = arith.constant 0 : index
    %606 = vector.load %arg10[%c0_292, %c0_293] : memref<8x128xf32, #tpu.memory_space<vmem>>, vector<8x128xf32>
    tpu.vector_store %arg10[%c0_292, %c0_293], %602 {strides = array<i32>} : memref<8x128xf32, #tpu.memory_space<vmem>>, vector<8x128xf32>,
    %607 = arith.index_cast %c7_i32 : i32 to index
    %c0_294 = arith.constant 0 : index
    %c0_295 = arith.constant 0 : index
    %608 = vector.load %arg6[%607, %c0_294, %c0_295] : memref<8x8x128xf32, #tpu.memory_space<vmem>>, vector<1x8x128xf32>
    %609 = vector.shape_cast %608 : vector<1x8x128xf32> to vector<8x128xf32>
    %610 = vector.shape_cast %604 : vector<8x128xf32> to vector<1x8x128xf32>
    tpu.vector_store %arg6[%607, %c0_294, %c0_295], %610 {strides = array<i32>} : memref<8x8x128xf32, #tpu.memory_space<vmem>>, vector<1x8x128xf32>,
    %c8_i32 = arith.constant 8 : i32
    return
  }
  func.func @transform_0(%arg0: i32) -> (i32, i32, i32) {
    %c0_i32 = arith.constant 0 : i32
    %c0_i32_0 = arith.constant 0 : i32
    %c0_i32_1 = arith.constant 0 : i32
    return %arg0, %c0_i32, %c0_i32_0 : i32, i32, i32
  }
  func.func @transform_1(%arg0: i32) -> (i32, i32) {
    %c0_i32 = arith.constant 0 : i32
    %c0_i32_0 = arith.constant 0 : i32
    %c0_i32_1 = arith.constant 0 : i32
    return %c0_i32, %c0_i32_0 : i32, i32
  }
  func.func @transform_2(%arg0: i32) -> (i32, i32) {
    %c0_i32 = arith.constant 0 : i32
    %c0_i32_0 = arith.constant 0 : i32
    %c0_i32_1 = arith.constant 0 : i32
    return %c0_i32, %c0_i32_0 : i32, i32
  }
  func.func @transform_3(%arg0: i32) -> (i32, i32) {
    %c0_i32 = arith.constant 0 : i32
    %c0_i32_0 = arith.constant 0 : i32
    %c0_i32_1 = arith.constant 0 : i32
    return %c0_i32, %c0_i32_0 : i32, i32
  }
  func.func @transform_4(%arg0: i32) -> (i32, i32) {
    %c0_i32 = arith.constant 0 : i32
    %c0_i32_0 = arith.constant 0 : i32
    %c0_i32_1 = arith.constant 0 : i32
    return %c0_i32, %c0_i32_0 : i32, i32
  }
  func.func @transform_5(%arg0: i32) -> (i32, i32, i32) {
    %c0_i32 = arith.constant 0 : i32
    %c0_i32_0 = arith.constant 0 : i32
    %c0_i32_1 = arith.constant 0 : i32
    return %arg0, %c0_i32, %c0_i32_0 : i32, i32, i32
  }
}

</mosaic_0001>

<bundles_post_ra>
// kernel: rnn_model_forward.5
= control target key start
LH: loop header
LB: loop body
LE: loop exit
PB: predicated region body
PF: predicated region fallthrough
CT: control target
= control target key end

     0   :  { %s398_s1 = inlined_call_operand.vmem [shape: f32[128,128], index: 1, kind: input, shape index: {}]   ;;  %s399_s0 = inlined_call_operand.vmem [shape: f32[64,128], index: 0, kind: input, shape index: {}]   ;;  %s400_s2 = inlined_call_operand.vmem [shape: f32[1,128], index: 2, kind: input, shape index: {}]   ;;  %s401_s3 = inlined_call_operand.vmem [shape: f32[64,128], index: 3, kind: output, shape index: {}]  }
   0x1   :  { %v22_v0 = vld [vmem:[%s398_s1] sm:$0xff]  ;;  %v23_v1 = vld [vmem:[%s398_s1 + $0x8] sm:$0xff]  ;;  %v24_v2 = vld [vmem:[%s398_s1 + $0x10] sm:$0xff] }
   0x2   :  { %v231_v3 = vpack.c.bf16 %v23_v1, %v22_v0  ;;  %v25_v4 = vld [vmem:[%s398_s1 + $0x18] sm:$0xff]  ;;  %v26_v6 = vld [vmem:[%s398_s1 + $0x20] sm:$0xff]  ;;  %v27_v7 = vld [vmem:[%s398_s1 + $0x28] sm:$0xff] }
   0x3   :  { %v235_v5 = vpack.c.bf16 %v25_v4, %v24_v2  ;;  %v239_v8 = vpack.c.bf16 %v27_v7, %v26_v6  ;;  %v14_v9 = vld [vmem:[%s399_s0] sm:$0xff]  ;;  %v28_v11 = vld [vmem:[%s398_s1 + $0x30] sm:$0xff]  ;;  %v29_v12 = vld [vmem:[%s398_s1 + $0x38] sm:$0xff] }
   0x4   :  { %232 = vmatprep.subr.bf16.mxu0 %v231_v3  ;;  %263 = vmatprep.subr.bf16.mxu1 %v231_v3  ;;  %v18_v10 = vld [vmem:[%s399_s0 + $0x20] sm:$0xff]  ;;  %v243_v13 = vpack.c.bf16 %v29_v12, %v28_v11  ;;  %v31_v15 = vld [vmem:[%s398_s1 + $0x48] sm:$0xff]  ;;  %v32_v17 = vld [vmem:[%s398_s1 + $0x50] sm:$0xff] }
   0x5   :  { %234 = vmatpush3.bf16.msra.mxu0 %v231_v3  ;;  %271 = vmatpush3.bf16.msra.mxu1 %v231_v3  ;;  %v30_v14 = vld [vmem:[%s398_s1 + $0x40] sm:$0xff]  ;;  %v33_v18 = vld [vmem:[%s398_s1 + $0x58] sm:$0xff]  ;;  %v35_v21 = vld [vmem:[%s398_s1 + $0x68] sm:$0xff] }
   0x6   :  { %236 = vmatprep.subr.bf16.mxu0 %v235_v5  ;;  %264 = vmatprep.subr.bf16.mxu1 %v235_v5  ;;  %v247_v16 = vpack.c.bf16 %v31_v15, %v30_v14  ;;  %v251_v19 = vpack.c.bf16 %v33_v18, %v32_v17  ;;  %v34_v20 = vld [vmem:[%s398_s1 + $0x60] sm:$0xff]  ;;  %v36_v23 = vld [vmem:[%s398_s1 + $0x70] sm:$0xff]  ;;  %v37_v24 = vld [vmem:[%s398_s1 + $0x78] sm:$0xff] }
   0x7   :  { %219 = vmatprep.mubr.f32.mxu0 %v14_v9  ;;  %225 = vmatprep.mubr.f32.mxu1 %v18_v10  ;;  %v255_v22 = vpack.c.bf16 %v35_v21, %v34_v20  ;;  %v259_v25 = vpack.c.bf16 %v37_v24, %v36_v23  ;;  %v15_v26 = vld [vmem:[%s399_s0 + $0x8] sm:$0xff]  ;;  %v16_v28 = vld [vmem:[%s399_s0 + $0x10] sm:$0xff]  ;;  %v17_v30 = vld [vmem:[%s399_s0 + $0x18] sm:$0xff] }
   0x8   :  { %v19_v27 = vld [vmem:[%s399_s0 + $0x28] sm:$0xff]  ;;  %v20_v29 = vld [vmem:[%s399_s0 + $0x30] sm:$0xff]  ;;  %v21_v31 = vld [vmem:[%s399_s0 + $0x38] sm:$0xff] }
   0x9   :  { %238 = vmatpush3.bf16.msra.mxu0 %v235_v5  ;;  %272 = vmatpush3.bf16.msra.mxu1 %v235_v5  ;;  %v162_v32 = vld [vmem:[%s400_s2] ss:$0 sm:$0xff] }
   0xa   :  { %240 = vmatprep.subr.bf16.mxu0 %v239_v8  ;;  %265 = vmatprep.subr.bf16.mxu1 %v239_v8 }
   0xd   :  { %242 = vmatpush3.bf16.msra.mxu0 %v239_v8  ;;  %273 = vmatpush3.bf16.msra.mxu1 %v239_v8 }
   0xe   :  { %244 = vmatprep.subr.bf16.mxu0 %v243_v13  ;;  %266 = vmatprep.subr.bf16.mxu1 %v243_v13 }
  0x11   :  { %246 = vmatpush3.bf16.msra.mxu0 %v243_v13  ;;  %274 = vmatpush3.bf16.msra.mxu1 %v243_v13 }
  0x12   :  { %248 = vmatprep.subr.bf16.mxu0 %v247_v16  ;;  %267 = vmatprep.subr.bf16.mxu1 %v247_v16 }
  0x15   :  { %250 = vmatpush3.bf16.msra.mxu0 %v247_v16  ;;  %275 = vmatpush3.bf16.msra.mxu1 %v247_v16 }
  0x16   :  { %252 = vmatprep.subr.bf16.mxu0 %v251_v19  ;;  %268 = vmatprep.subr.bf16.mxu1 %v251_v19 }
  0x19   :  { %254 = vmatpush3.bf16.msra.mxu0 %v251_v19  ;;  %276 = vmatpush3.bf16.msra.mxu1 %v251_v19 }
  0x1a   :  { %256 = vmatprep.subr.bf16.mxu0 %v255_v22  ;;  %269 = vmatprep.subr.bf16.mxu1 %v255_v22 }
  0x1d   :  { %258 = vmatpush3.bf16.msra.mxu0 %v255_v22  ;;  %277 = vmatpush3.bf16.msra.mxu1 %v255_v22 }
  0x1e   :  { %260 = vmatprep.subr.bf16.mxu0 %v259_v25  ;;  %270 = vmatprep.subr.bf16.mxu1 %v259_v25 }
  0x21   :  { %262 = vmatpush3.bf16.msra.mxu0 %v259_v25  ;;  %278 = vmatpush3.bf16.msra.mxu1 %v259_v25 }
  0x24   :  { %220 = vmatmul.mubr.f32.vlgmr.msra.gmra.mrb[0].mxu0 %v15_v26  ;;  %226 = vmatmul.mubr.f32.vlgmr.msra.gmra.mrb[0].mxu1 %v19_v27 }
  0x25   :  { %222 = vmatprep.mubr.f32.mxu0 %v16_v28  ;;  %228 = vmatprep.mubr.f32.mxu1 %v20_v29 }
  0x28   :  { %223 = vmatmul.mubr.f32.gmra.mrb[2].mxu0 %v17_v30  ;;  %229 = vmatmul.mubr.f32.gmra.mrb[2].mxu1 %v21_v31 }
  0xf7   :  { %v221_v33 = vpop.f32.mrb[0].mxu0  ;;  %v227_v34 = vpop.f32.mrb[0].mxu1 }
  0xf8   :  { %v117_v35 = vadd.f32 %v221_v33, %v162_v32  ;;  %v137_v36 = vadd.f32 %v227_v34, %v162_v32  ;;  %v111_v37 = vpop.f32.mrb[1].mxu0  ;;  %v131_v38 = vpop.f32.mrb[1].mxu1 }
  0xf9   :  { %v112_v39 = vadd.f32 %v162_v32, %v111_v37  ;;  %v132_v40 = vadd.f32 %v162_v32, %v131_v38 }
  0xfa   :  { %151 = vst [vmem:[%s401_s3 + $0x8] sm:$0xff] %v117_v35  ;;  %155 = vst [vmem:[%s401_s3 + $0x28] sm:$0xff] %v137_v36 }
  0xfb   :  { %150 = vst [vmem:[%s401_s3] sm:$0xff] %v112_v39  ;;  %154 = vst [vmem:[%s401_s3 + $0x20] sm:$0xff] %v132_v40  ;;  %v224_v41 = vpop.f32.mrb[2].mxu0  ;;  %v230_v42 = vpop.f32.mrb[2].mxu1 }
  0xfc   :  { %v127_v43 = vadd.f32 %v224_v41, %v162_v32  ;;  %v147_v44 = vadd.f32 %v230_v42, %v162_v32  ;;  %v121_v45 = vpop.f32.mrb[3].mxu0  ;;  %v141_v46 = vpop.f32.mrb[3].mxu1 }
  0xfd   :  { %v122_v47 = vadd.f32 %v162_v32, %v121_v45  ;;  %v142_v48 = vadd.f32 %v162_v32, %v141_v46 }
  0xfe   :  { %153 = vst [vmem:[%s401_s3 + $0x18] sm:$0xff] %v127_v43  ;;  %157 = vst [vmem:[%s401_s3 + $0x38] sm:$0xff] %v147_v44 }
  0xff   :  { %152 = vst [vmem:[%s401_s3 + $0x10] sm:$0xff] %v122_v47  ;;  %156 = vst [vmem:[%s401_s3 + $0x30] sm:$0xff] %v142_v48 }

// kernel: rnn_model_forward.3
= control target key start
LH: loop header
LB: loop body
LE: loop exit
PB: predicated region body
PF: predicated region fallthrough
CT: control target
= control target key end

     0   :  { %v412_v3 = vmov 0.0   ;;  %vm76_vm0 = vcmask 523264   ;;  %v56_v57 = vlaneseq  ;;  %s724_s1 = inlined_call_operand.vmem [shape: f32[64,512], index: 1, kind: input, shape index: {}]   ;;  %s725_s0 = inlined_call_operand.vmem [shape: f32[64,64], index: 0, kind: input, shape index: {}]   ;;  %s726_s2 = inlined_call_operand.vmem [shape: f32[1,512], index: 2, kind: input, shape index: {}]   ;;  %s727_s3 = inlined_call_operand.vmem [shape: f32[64,512], index: 3, kind: output, shape index: {}]  }
   0x1   :  { %v23_v0 = vld [vmem:[%s724_s1 + $0x8] sm:$0xff]  ;;  %v25_v2 = vld [vmem:[%s724_s1 + $0x18] sm:$0xff]  ;;  %165 = vmatprep.mubr.f32.mxu0 %v412_v3  ;;  %278 = vmatprep.mubr.f32.mxu1 %v412_v3  ;;  %v22_v6 = vld [vmem:[%s724_s1] sm:$0xff] }
   0x2   :  { %v27_v1 = vld [vmem:[%s724_s1 + $0x28] sm:$0xff]  ;;  %v29_v5 = vld [vmem:[%s724_s1 + $0x38] sm:$0xff]  ;;  %v26_v7 = vld [vmem:[%s724_s1 + $0x20] sm:$0xff]  ;;  %v57_v58 = vshrl.u32 %v56_v57, 7 }
   0x3   :  { %v379_v4 = vpack.c.bf16 %v27_v1, %v23_v0  ;;  %v395_v8 = vpack.c.bf16 %v29_v5, %v25_v2  ;;  %v381_v9 = vpack.c.bf16 %v26_v7, %v22_v6  ;;  %v24_v10 = vld [vmem:[%s724_s1 + $0x10] sm:$0xff]  ;;  %v31_v12 = vld [vmem:[%s724_s1 + $0x48] sm:$0xff]  ;;  %v33_v15 = vld [vmem:[%s724_s1 + $0x58] sm:$0xff] }
   0x4   :  { %v28_v11 = vld [vmem:[%s724_s1 + $0x30] sm:$0xff]  ;;  %v35_v14 = vld [vmem:[%s724_s1 + $0x68] sm:$0xff]  ;;  %v37_v16 = vld [vmem:[%s724_s1 + $0x78] sm:$0xff]  ;;  %v58_v59 = vsub.s32 0, %v57_v58  ;;  %v66_v61 = vsub.s32 2, %v57_v58  ;;  %v62_v62 = vsub.s32 1, %v57_v58 }
   0x5   :  { %380 = vmatprep.subr.bf16.mxu0 %v379_v4  ;;  %v397_v13 = vpack.c.bf16 %v28_v11, %v24_v10  ;;  %396 = vmatprep.subr.bf16.mxu1 %v395_v8  ;;  %v383_v17 = vpack.c.bf16 %v35_v14, %v31_v12  ;;  %v399_v18 = vpack.c.bf16 %v37_v16, %v33_v15  ;;  %v30_v19 = vld [vmem:[%s724_s1 + $0x40] sm:$0xff]  ;;  %v32_v21 = vld [vmem:[%s724_s1 + $0x50] sm:$0xff]  ;;  %v39_v24 = vld [vmem:[%s724_s1 + $0x88] sm:$0xff]  ;;  %v70_v63 = vsub.s32 3, %v57_v58 }
   0x6   :  { %382 = vmatpush1.bf16.msra.mxu0 %v381_v9  ;;  %v34_v20 = vld [vmem:[%s724_s1 + $0x60] sm:$0xff]  ;;  %v36_v23 = vld [vmem:[%s724_s1 + $0x70] sm:$0xff]  ;;  %v43_v25 = vld [vmem:[%s724_s1 + $0xa8] sm:$0xff] }
   0x7   :  { %398 = vmatpush1.bf16.msra.mxu1 %v397_v13  ;;  %v385_v22 = vpack.c.bf16 %v34_v20, %v30_v19  ;;  %384 = vmatprep.subr.bf16.mxu0 %v383_v17  ;;  %v401_v26 = vpack.c.bf16 %v36_v23, %v32_v21  ;;  %v387_v27 = vpack.c.bf16 %v43_v25, %v39_v24  ;;  %v41_v28 = vld [vmem:[%s724_s1 + $0x98] sm:$0xff]  ;;  %v38_v30 = vld [vmem:[%s724_s1 + $0x80] sm:$0xff]  ;;  %v40_v33 = vld [vmem:[%s724_s1 + $0x90] sm:$0xff] }
   0x8   :  { %400 = vmatprep.subr.bf16.mxu1 %v399_v18  ;;  %v45_v29 = vld [vmem:[%s724_s1 + $0xb8] sm:$0xff]  ;;  %v42_v32 = vld [vmem:[%s724_s1 + $0xa0] sm:$0xff]  ;;  %v44_v34 = vld [vmem:[%s724_s1 + $0xb0] sm:$0xff] }
   0x9   :  { %v403_v31 = vpack.c.bf16 %v45_v29, %v41_v28  ;;  %v389_v35 = vpack.c.bf16 %v42_v32, %v38_v30  ;;  %v47_v36 = vld [vmem:[%s724_s1 + $0xc8] sm:$0xff]  ;;  %v49_v38 = vld [vmem:[%s724_s1 + $0xd8] sm:$0xff]  ;;  %v405_v39 = vpack.c.bf16 %v44_v34, %v40_v33  ;;  %v46_v42 = vld [vmem:[%s724_s1 + $0xc0] sm:$0xff] }
   0xa   :  { %386 = vmatpush1.bf16.msra.mxu0 %v385_v22  ;;  %v51_v37 = vld [vmem:[%s724_s1 + $0xe8] sm:$0xff]  ;;  %v53_v41 = vld [vmem:[%s724_s1 + $0xf8] sm:$0xff]  ;;  %v50_v43 = vld [vmem:[%s724_s1 + $0xe0] sm:$0xff] }
   0xb   :  { %402 = vmatpush1.bf16.msra.mxu1 %v401_v26  ;;  %388 = vmatprep.subr.bf16.mxu0 %v387_v27  ;;  %v391_v40 = vpack.c.bf16 %v51_v37, %v47_v36  ;;  %v407_v44 = vpack.c.bf16 %v53_v41, %v49_v38  ;;  %v48_v45 = vld [vmem:[%s724_s1 + $0xd0] sm:$0xff]  ;;  %v393_v47 = vpack.c.bf16 %v50_v43, %v46_v42  ;;  %v14_v49 = vld [vmem:[%s725_s0] sm:$0xff]  ;;  %v15_v50 = vld [vmem:[%s725_s0 + $0x8] sm:$0xff] }
   0xc   :  { %404 = vmatprep.subr.bf16.mxu1 %v403_v31  ;;  %v52_v46 = vld [vmem:[%s724_s1 + $0xf0] sm:$0xff]  ;;  %v17_v52 = vld [vmem:[%s725_s0 + $0x18] sm:$0xff]  ;;  %v18_v53 = vld [vmem:[%s725_s0 + $0x20] sm:$0xff] }
   0xd   :  { %v409_v48 = vpack.c.bf16 %v52_v46, %v48_v45  ;;  %v16_v51 = vld [vmem:[%s725_s0 + $0x10] sm:$0xff]  ;;  %v19_v54 = vld [vmem:[%s725_s0 + $0x28] sm:$0xff]  ;;  %v21_v56 = vld [vmem:[%s725_s0 + $0x38] sm:$0xff] }
   0xe   :  { %390 = vmatpush1.bf16.msra.mxu0 %v389_v35  ;;  %v20_v55 = vld [vmem:[%s725_s0 + $0x30] sm:$0xff]  ;;  %v54_v60 = vld [vmem:[%s726_s2] sm:$0xf] }
   0xf   :  { %406 = vmatpush1.bf16.msra.mxu1 %v405_v39  ;;  %392 = vmatprep.subr.bf16.mxu0 %v391_v40  ;;  %v588_v0 = vrot.slane %v54_v60, %v58_v59  ;;  %v590_v1 = vrot.slane %v54_v60, %v66_v61  ;;  %v592_v2 = vrot.slane %v54_v60, %v62_v62 }
  0x10   :  { %408 = vmatprep.subr.bf16.mxu1 %v407_v44 }
  0x12   :  { %394 = vmatpush1.bf16.msra.mxu0 %v393_v47 }
  0x13   :  { %410 = vmatpush1.bf16.msra.mxu1 %v409_v48 }
  0x15   :  { %363 = vmatmul.mubr.msk.f32.vlgmr.msra.gmra.mrb[0].mxu0 %vm76_vm0, %v14_v49 }
  0x16   :  { %371 = vmatmul.mubr.msk.f32.vlgmr.msra.gmra.mrb[0].mxu1 %vm76_vm0, %v14_v49  ;;  %171 = vmatprep.mubr.f32.mxu0 %v412_v3 }
  0x17   :  { %284 = vmatprep.mubr.f32.mxu1 %v412_v3 }
  0x19   :  { %364 = vmatmul.mubr.msk.f32.gmra.mrb[2].mxu0 %vm76_vm0, %v15_v50 }
  0x1a   :  { %372 = vmatmul.mubr.msk.f32.gmra.mrb[2].mxu1 %vm76_vm0, %v15_v50  ;;  %177 = vmatprep.mubr.f32.mxu0 %v412_v3 }
  0x1b   :  { %290 = vmatprep.mubr.f32.mxu1 %v412_v3 }
  0x1d   :  { %365 = vmatmul.mubr.msk.f32.gmra.mrb[4].mxu0 %vm76_vm0, %v16_v51 }
  0x1e   :  { %373 = vmatmul.mubr.msk.f32.gmra.mrb[4].mxu1 %vm76_vm0, %v16_v51  ;;  %183 = vmatprep.mubr.f32.mxu0 %v412_v3 }
  0x1f   :  { %296 = vmatprep.mubr.f32.mxu1 %v412_v3 }
  0x21   :  { %366 = vmatmul.mubr.msk.f32.gmra.mrb[6].mxu0 %vm76_vm0, %v17_v52 }
  0x22   :  { %374 = vmatmul.mubr.msk.f32.gmra.mrb[6].mxu1 %vm76_vm0, %v17_v52  ;;  %189 = vmatprep.mubr.f32.mxu0 %v412_v3 }
  0x23   :  { %302 = vmatprep.mubr.f32.mxu1 %v412_v3 }
  0x25   :  { %367 = vmatmul.mubr.msk.f32.gmra.mrb[8].mxu0 %vm76_vm0, %v18_v53 }
  0x26   :  { %375 = vmatmul.mubr.msk.f32.gmra.mrb[8].mxu1 %vm76_vm0, %v18_v53  ;;  %195 = vmatprep.mubr.f32.mxu0 %v412_v3 }
  0x27   :  { %308 = vmatprep.mubr.f32.mxu1 %v412_v3 }
  0x29   :  { %368 = vmatmul.mubr.msk.f32.gmra.mrb[10].mxu0 %vm76_vm0, %v19_v54 }
  0x2a   :  { %376 = vmatmul.mubr.msk.f32.gmra.mrb[10].mxu1 %vm76_vm0, %v19_v54  ;;  %201 = vmatprep.mubr.f32.mxu0 %v412_v3 }
  0x2b   :  { %314 = vmatprep.mubr.f32.mxu1 %v412_v3 }
  0x2d   :  { %369 = vmatmul.mubr.msk.f32.gmra.mrb[12].mxu0 %vm76_vm0, %v20_v55 }
  0x2e   :  { %377 = vmatmul.mubr.msk.f32.gmra.mrb[12].mxu1 %vm76_vm0, %v20_v55  ;;  %207 = vmatprep.mubr.f32.mxu0 %v412_v3 }
  0x2f   :  { %320 = vmatprep.mubr.f32.mxu1 %v412_v3  ;;  %v594_v3 = vrot.slane %v54_v60, %v70_v63 }
  0x31   :  { %370 = vmatmul.mubr.msk.f32.gmra.mrb[14].mxu0 %vm76_vm0, %v21_v56 }
  0x32   :  { %378 = vmatmul.mubr.msk.f32.gmra.mrb[14].mxu1 %vm76_vm0, %v21_v56 }
  0xe8   :  { %v167_v4 = vpop.f32.mrb[0].mxu0 }
  0xe9   :  { %v168_v5 = vadd.f32 %v167_v4, %v588_v0  ;;  %v280_v6 = vpop.f32.mrb[0].mxu1  ;;  %v169_v7 = vpop.f32.mrb[1].mxu0 }
  0xea   :  { %v281_v8 = vadd.f32 %v280_v6, %v590_v1  ;;  %v170_v9 = vadd.f32 %v169_v7, %v592_v2  ;;  %v282_v10 = vpop.f32.mrb[1].mxu1 }
  0xeb   :  { %327 = vst [vmem:[%s727_s3] sm:$0xff] %v168_v5  ;;  %v283_v11 = vadd.f32 %v282_v10, %v594_v3 }
  0xec   :  { %329 = vst [vmem:[%s727_s3 + $0x10] sm:$0xff] %v281_v8  ;;  %328 = vst [vmem:[%s727_s3 + $0x8] sm:$0xff] %v170_v9  ;;  %v173_v12 = vpop.f32.mrb[2].mxu0 }
  0xed   :  { %330 = vst [vmem:[%s727_s3 + $0x18] sm:$0xff] %v283_v11  ;;  %v174_v13 = vadd.f32 %v173_v12, %v588_v0  ;;  %v286_v14 = vpop.f32.mrb[2].mxu1  ;;  %v175_v15 = vpop.f32.mrb[3].mxu0 }
  0xee   :  { %v287_v16 = vadd.f32 %v286_v14, %v590_v1  ;;  %v176_v17 = vadd.f32 %v175_v15, %v592_v2  ;;  %v288_v18 = vpop.f32.mrb[3].mxu1 }
  0xef   :  { %331 = vst [vmem:[%s727_s3 + $0x20] sm:$0xff] %v174_v13  ;;  %v289_v19 = vadd.f32 %v288_v18, %v594_v3 }
  0xf0   :  { %333 = vst [vmem:[%s727_s3 + $0x30] sm:$0xff] %v287_v16  ;;  %332 = vst [vmem:[%s727_s3 + $0x28] sm:$0xff] %v176_v17  ;;  %v179_v20 = vpop.f32.mrb[4].mxu0 }
  0xf1   :  { %334 = vst [vmem:[%s727_s3 + $0x38] sm:$0xff] %v289_v19  ;;  %v180_v21 = vadd.f32 %v179_v20, %v588_v0  ;;  %v292_v22 = vpop.f32.mrb[4].mxu1  ;;  %v181_v23 = vpop.f32.mrb[5].mxu0 }
  0xf2   :  { %v293_v24 = vadd.f32 %v292_v22, %v590_v1  ;;  %v182_v25 = vadd.f32 %v181_v23, %v592_v2  ;;  %v294_v26 = vpop.f32.mrb[5].mxu1 }
  0xf3   :  { %335 = vst [vmem:[%s727_s3 + $0x40] sm:$0xff] %v180_v21  ;;  %v295_v27 = vadd.f32 %v294_v26, %v594_v3 }
  0xf4   :  { %337 = vst [vmem:[%s727_s3 + $0x50] sm:$0xff] %v293_v24  ;;  %336 = vst [vmem:[%s727_s3 + $0x48] sm:$0xff] %v182_v25  ;;  %v185_v28 = vpop.f32.mrb[6].mxu0 }
  0xf5   :  { %338 = vst [vmem:[%s727_s3 + $0x58] sm:$0xff] %v295_v27  ;;  %v186_v29 = vadd.f32 %v185_v28, %v588_v0  ;;  %v298_v30 = vpop.f32.mrb[6].mxu1  ;;  %v187_v31 = vpop.f32.mrb[7].mxu0 }
  0xf6   :  { %v299_v32 = vadd.f32 %v298_v30, %v590_v1  ;;  %v188_v33 = vadd.f32 %v187_v31, %v592_v2  ;;  %v300_v34 = vpop.f32.mrb[7].mxu1 }
  0xf7   :  { %339 = vst [vmem:[%s727_s3 + $0x60] sm:$0xff] %v186_v29  ;;  %v301_v35 = vadd.f32 %v300_v34, %v594_v3 }
  0xf8   :  { %341 = vst [vmem:[%s727_s3 + $0x70] sm:$0xff] %v299_v32  ;;  %340 = vst [vmem:[%s727_s3 + $0x68] sm:$0xff] %v188_v33  ;;  %v191_v36 = vpop.f32.mrb[8].mxu0 }
  0xf9   :  { %342 = vst [vmem:[%s727_s3 + $0x78] sm:$0xff] %v301_v35  ;;  %v192_v37 = vadd.f32 %v191_v36, %v588_v0  ;;  %v304_v38 = vpop.f32.mrb[8].mxu1  ;;  %v193_v39 = vpop.f32.mrb[9].mxu0 }
  0xfa   :  { %v305_v40 = vadd.f32 %v304_v38, %v590_v1  ;;  %v194_v41 = vadd.f32 %v193_v39, %v592_v2  ;;  %v306_v42 = vpop.f32.mrb[9].mxu1 }
  0xfb   :  { %343 = vst [vmem:[%s727_s3 + $0x80] sm:$0xff] %v192_v37  ;;  %v307_v43 = vadd.f32 %v306_v42, %v594_v3 }
  0xfc   :  { %345 = vst [vmem:[%s727_s3 + $0x90] sm:$0xff] %v305_v40  ;;  %344 = vst [vmem:[%s727_s3 + $0x88] sm:$0xff] %v194_v41  ;;  %v197_v44 = vpop.f32.mrb[10].mxu0 }
  0xfd   :  { %346 = vst [vmem:[%s727_s3 + $0x98] sm:$0xff] %v307_v43  ;;  %v198_v45 = vadd.f32 %v197_v44, %v588_v0  ;;  %v310_v46 = vpop.f32.mrb[10].mxu1  ;;  %v199_v47 = vpop.f32.mrb[11].mxu0 }
  0xfe   :  { %v311_v48 = vadd.f32 %v310_v46, %v590_v1  ;;  %v200_v49 = vadd.f32 %v199_v47, %v592_v2  ;;  %v312_v50 = vpop.f32.mrb[11].mxu1 }
  0xff   :  { %347 = vst [vmem:[%s727_s3 + $0xa0] sm:$0xff] %v198_v45  ;;  %v313_v51 = vadd.f32 %v312_v50, %v594_v3 }
 0x100   :  { %349 = vst [vmem:[%s727_s3 + $0xb0] sm:$0xff] %v311_v48  ;;  %348 = vst [vmem:[%s727_s3 + $0xa8] sm:$0xff] %v200_v49  ;;  %v203_v52 = vpop.f32.mrb[12].mxu0 }
 0x101   :  { %350 = vst [vmem:[%s727_s3 + $0xb8] sm:$0xff] %v313_v51  ;;  %v204_v53 = vadd.f32 %v203_v52, %v588_v0  ;;  %v316_v54 = vpop.f32.mrb[12].mxu1  ;;  %v205_v55 = vpop.f32.mrb[13].mxu0 }
 0x102   :  { %v317_v56 = vadd.f32 %v316_v54, %v590_v1  ;;  %v206_v57 = vadd.f32 %v205_v55, %v592_v2  ;;  %v318_v58 = vpop.f32.mrb[13].mxu1 }
 0x103   :  { %351 = vst [vmem:[%s727_s3 + $0xc0] sm:$0xff] %v204_v53  ;;  %v319_v59 = vadd.f32 %v318_v58, %v594_v3 }
 0x104   :  { %353 = vst [vmem:[%s727_s3 + $0xd0] sm:$0xff] %v317_v56  ;;  %352 = vst [vmem:[%s727_s3 + $0xc8] sm:$0xff] %v206_v57  ;;  %v209_v60 = vpop.f32.mrb[14].mxu0 }
 0x105   :  { %354 = vst [vmem:[%s727_s3 + $0xd8] sm:$0xff] %v319_v59  ;;  %v210_v61 = vadd.f32 %v209_v60, %v588_v0  ;;  %v322_v62 = vpop.f32.mrb[14].mxu1  ;;  %v211_v63 = vpop.f32.mrb[15].mxu0 }
 0x106   :  { %v323_v4 = vadd.f32 %v322_v62, %v590_v1  ;;  %v212_v5 = vadd.f32 %v211_v63, %v592_v2  ;;  %v324_v6 = vpop.f32.mrb[15].mxu1 }
 0x107   :  { %355 = vst [vmem:[%s727_s3 + $0xe0] sm:$0xff] %v210_v61  ;;  %v325_v7 = vadd.f32 %v324_v6, %v594_v3 }
 0x108   :  { %357 = vst [vmem:[%s727_s3 + $0xf0] sm:$0xff] %v323_v4  ;;  %356 = vst [vmem:[%s727_s3 + $0xe8] sm:$0xff] %v212_v5 }
 0x109   :  { %358 = vst [vmem:[%s727_s3 + $0xf8] sm:$0xff] %v325_v7 }

// kernel: rnn_model_forward.4
= control target key start
LH: loop header
LB: loop body
LE: loop exit
PB: predicated region body
PF: predicated region fallthrough
CT: control target
= control target key end

     0   :  { %10 = vsyncpa [#allocation7], 0  ;;  %s10381_s0 = inlined_call_operand.vmem [shape: f32[8,8,512], index: 0, kind: input, shape index: {}]   ;;  %s10382_s1 = inlined_call_operand.vmem [shape: f32[128,512], index: 1, kind: input, shape index: {}]   ;;  %s10383_s2 = inlined_call_operand.hbm [shape: f32[128,512], index: 2, kind: input, shape index: {}]   ;;  %s10384_s3 = inlined_call_operand.hbm [shape: f32[128,512], index: 3, kind: input, shape index: {}]   ;;  %s10385_s4 = inlined_call_operand.vmem [shape: f32[1,512], index: 4, kind: input, shape index: {}]   ;;  %s10386_s5 = inlined_call_operand.vmem [shape: f32[8,8,128], index: 5, kind: output, shape index: {}]  }
   0x1   :  { %11 = vsyncpa [#allocation9], 0  ;;  %s7708_s18 = smov [#allocation6]   ;;  %s7660_s22 = scalar_lea.hbm %s10383_s2, 8192 }
   0x2   :  { %s21_s19 = sshll.u32 %s7708_s18, 4  ;;  %p7661_p0 = scmp.ne.s32.totalorder %s10383_s2, %s7660_s22  ;;  %s22_s19 = int_to_ptr.vmem [resolvable:$true] %s21_s19 }
   0x3   :  { %p7664_p1 = scmp.lt.u32.totalorder %s7660_s22, %s10383_s2 }
   0x5   :  { %p7666_p2 = pnand %p7664_p1, %p7661_p0 }
   0x7   :  { %7669 = shalt.err (!%p7666_p2)
}
   0x8   :  { %s7670_s27 = scalar_lea.vmem %s22_s19, 8192  ;;  %p7675_p4 = scmp.lt.s32.totalorder %s22_s19, %s22_s19 }
   0x9   :  { %p7671_p3 = scmp.ne.s32.totalorder %s22_s19, %s7670_s27  ;;  %p7676_p5 = scmp.lt.s32.totalorder %s7670_s27, %s7670_s27 }
   0xb   :  { %p7677_p6 = por %p7676_p5, %p7675_p4 }
   0xd   :  { %p7678_p7 = pnand %p7677_p6, %p7671_p3 }
   0xf   :  { %7681 = shalt.err (!%p7678_p7)
}
  0x10   :  { %s7709_s28 = smov 512   ;;  %s7710_s29 = smov 32  }
  0x11   :  { %27 = dma.hbm_to_vmem [thread:$0]  %s10383_s2, 8192, %s22_s19, [#allocation7], %s7709_s28, %s7709_s28, %s7710_s29  }
  0x12   :  { %s7711_s7 = smov [#allocation8]   ;;  %s7682_s11 = scalar_lea.hbm %s10384_s3, 8192 }
  0x13   :  { %s33_s8 = sshll.u32 %s7711_s7, 4  ;;  %p7683_p8 = scmp.ne.s32.totalorder %s10384_s3, %s7682_s11  ;;  %s34_s8 = int_to_ptr.vmem [resolvable:$true] %s33_s8 }
  0x14   :  { %p7686_p9 = scmp.lt.u32.totalorder %s7682_s11, %s10384_s3 }
  0x16   :  { %p7688_p10 = pnand %p7686_p9, %p7683_p8 }
  0x18   :  { %7691 = shalt.err (!%p7688_p10)
}
  0x19   :  { %s7692_s16 = scalar_lea.vmem %s34_s8, 8192  ;;  %p7697_p12 = scmp.lt.s32.totalorder %s34_s8, %s34_s8 }
  0x1a   :  { %p7693_p11 = scmp.ne.s32.totalorder %s34_s8, %s7692_s16  ;;  %p7698_p13 = scmp.lt.s32.totalorder %s7692_s16, %s7692_s16 }
  0x1c   :  { %p7699_p0 = por %p7698_p13, %p7697_p12 }
  0x1e   :  { %p7700_p1 = pnand %p7699_p0, %p7693_p11 }
  0x20   :  { %7703 = shalt.err (!%p7700_p1)
}
  0x21   :  { %39 = dma.hbm_to_vmem [thread:$0]  %s10384_s3, 8192, %s34_s8, [#allocation9], %s7709_s28, %s7709_s28, %s7710_s29  }
  0x22   :  { %7704 = dma.done.wait [#allocation7], 8192  }
  0x23   :  { %7705 = vsyncadd [#allocation7], 4294959104 }
  0x24   :  { %7706 = dma.done.wait [#allocation9], 8192  }
  0x25   :  { %7707 = vsyncadd [#allocation9], 4294959104  ;;  %v10387_v0 = vmov 0.0   ;;  %v62_v1 = vld [vmem:[%s10382_s1 + $0x8] sm:$0xff]  ;;  %v61_v3 = vld [vmem:[%s10382_s1] sm:$0xff] }
  0x26   :  { %189 = vmatprep.mubr.f32.mxu0 %v10387_v0  ;;  %260 = vmatprep.mubr.f32.mxu1 %v10387_v0  ;;  %v66_v2 = vld [vmem:[%s10382_s1 + $0x28] sm:$0xff]  ;;  %v65_v5 = vld [vmem:[%s10382_s1 + $0x20] sm:$0xff]  ;;  %v64_v19 = vld [vmem:[%s10382_s1 + $0x18] sm:$0xff] }
  0x27   :  { %v7778_v4 = vpack.c.bf16 %v66_v2, %v62_v1  ;;  %v70_v6 = vld [vmem:[%s10382_s1 + $0x48] sm:$0xff]  ;;  %v7789_v8 = vpack.c.bf16 %v65_v5, %v61_v3  ;;  %v69_v10 = vld [vmem:[%s10382_s1 + $0x40] sm:$0xff]  ;;  %v68_v20 = vld [vmem:[%s10382_s1 + $0x38] sm:$0xff] }
  0x28   :  { %v74_v7 = vld [vmem:[%s10382_s1 + $0x68] sm:$0xff]  ;;  %v73_v11 = vld [vmem:[%s10382_s1 + $0x60] sm:$0xff]  ;;  %v7830_v22 = vpack.c.bf16 %v68_v20, %v64_v19  ;;  %v63_v23 = vld [vmem:[%s10382_s1 + $0x10] sm:$0xff] }
  0x29   :  { %v7791_v9 = vpack.c.bf16 %v74_v7, %v70_v6  ;;  %v78_v12 = vld [vmem:[%s10382_s1 + $0x88] sm:$0xff]  ;;  %5832 = vmatprep.subr.bf16.mxu0 %v7778_v4  ;;  %v7807_v14 = vpack.c.bf16 %v73_v11, %v69_v10  ;;  %v77_v15 = vld [vmem:[%s10382_s1 + $0x80] sm:$0xff]  ;;  %v67_v24 = vld [vmem:[%s10382_s1 + $0x30] sm:$0xff] }
  0x2a   :  { %v82_v13 = vld [vmem:[%s10382_s1 + $0xa8] sm:$0xff]  ;;  %5834 = vmatpush1.bf16.msra.mxu0 %v7789_v8  ;;  %v81_v16 = vld [vmem:[%s10382_s1 + $0xa0] sm:$0xff]  ;;  %v7838_v25 = vpack.c.bf16 %v67_v24, %v63_v23  ;;  %5864 = vmatprep.subr.bf16.mxu1 %v7830_v22  ;;  %v72_v27 = vld [vmem:[%s10382_s1 + $0x58] sm:$0xff] }
  0x2b   :  { %5836 = vmatprep.subr.bf16.mxu0 %v7791_v9  ;;  %v7816_v17 = vpack.c.bf16 %v82_v13, %v78_v12  ;;  %v86_v18 = vld [vmem:[%s10382_s1 + $0xc8] sm:$0xff]  ;;  %v7841_v26 = vpack.c.bf16 %v81_v16, %v77_v15  ;;  %v76_v28 = vld [vmem:[%s10382_s1 + $0x78] sm:$0xff]  ;;  %v71_v29 = vld [vmem:[%s10382_s1 + $0x50] sm:$0xff] }
  0x2c   :  { %v90_v21 = vld [vmem:[%s10382_s1 + $0xe8] sm:$0xff]  ;;  %v85_v31 = vld [vmem:[%s10382_s1 + $0xc0] sm:$0xff]  ;;  %5866 = vmatpush1.bf16.msra.mxu1 %v7838_v25  ;;  %v7863_v33 = vpack.c.bf16 %v76_v28, %v72_v27  ;;  %v75_v34 = vld [vmem:[%s10382_s1 + $0x70] sm:$0xff] }
  0x2d   :  { %v7854_v30 = vpack.c.bf16 %v90_v21, %v86_v18  ;;  %v89_v32 = vld [vmem:[%s10382_s1 + $0xe0] sm:$0xff]  ;;  %v94_v35 = vld [vmem:[%s10382_s1 + $0x108] sm:$0xff]  ;;  %v7874_v37 = vpack.c.bf16 %v75_v34, %v71_v29  ;;  %v80_v38 = vld [vmem:[%s10382_s1 + $0x98] sm:$0xff] }
  0x2e   :  { %5838 = vmatpush1.bf16.msra.mxu0 %v7807_v14  ;;  %v98_v36 = vld [vmem:[%s10382_s1 + $0x128] sm:$0xff]  ;;  %5868 = vmatprep.subr.bf16.mxu1 %v7863_v33  ;;  %v84_v39 = vld [vmem:[%s10382_s1 + $0xb8] sm:$0xff]  ;;  %v79_v40 = vld [vmem:[%s10382_s1 + $0x90] sm:$0xff]  ;;  %v7890_v42 = vpack.c.bf16 %v89_v32, %v85_v31 }
  0x2f   :  { %5840 = vmatprep.subr.bf16.mxu0 %v7816_v17  ;;  %v83_v41 = vld [vmem:[%s10382_s1 + $0xb0] sm:$0xff]  ;;  %v93_v43 = vld [vmem:[%s10382_s1 + $0x100] sm:$0xff]  ;;  %v7898_v45 = vpack.c.bf16 %v84_v39, %v80_v38  ;;  %v7901_v46 = vpack.c.bf16 %v98_v36, %v94_v35  ;;  %v102_v47 = vld [vmem:[%s10382_s1 + $0x148] sm:$0xff] }
  0x30   :  { %v97_v44 = vld [vmem:[%s10382_s1 + $0x120] sm:$0xff]  ;;  %5870 = vmatpush1.bf16.msra.mxu1 %v7874_v37  ;;  %v7907_v48 = vpack.c.bf16 %v83_v41, %v79_v40  ;;  %v88_v49 = vld [vmem:[%s10382_s1 + $0xd8] sm:$0xff]  ;;  %v106_v51 = vld [vmem:[%s10382_s1 + $0x168] sm:$0xff] }
  0x31   :  { %v92_v50 = vld [vmem:[%s10382_s1 + $0xf8] sm:$0xff]  ;;  %5872 = vmatprep.subr.bf16.mxu1 %v7898_v45  ;;  %v87_v53 = vld [vmem:[%s10382_s1 + $0xd0] sm:$0xff]  ;;  %v7928_v55 = vpack.c.bf16 %v97_v44, %v93_v43  ;;  %v7937_v58 = vpack.c.bf16 %v106_v51, %v102_v47  ;;  %v101_v59 = vld [vmem:[%s10382_s1 + $0x140] sm:$0xff] }
  0x32   :  { %5842 = vmatpush1.bf16.msra.mxu0 %v7841_v26  ;;  %v7919_v52 = vpack.c.bf16 %v92_v50, %v88_v49  ;;  %v91_v54 = vld [vmem:[%s10382_s1 + $0xf0] sm:$0xff]  ;;  %v96_v56 = vld [vmem:[%s10382_s1 + $0x118] sm:$0xff]  ;;  %v105_v60 = vld [vmem:[%s10382_s1 + $0x160] sm:$0xff] }
  0x33   :  { %5844 = vmatprep.subr.bf16.mxu0 %v7854_v30  ;;  %v100_v57 = vld [vmem:[%s10382_s1 + $0x138] sm:$0xff]  ;;  %v110_v61 = vld [vmem:[%s10382_s1 + $0x188] sm:$0xff]  ;;  %v7949_v62 = vpack.c.bf16 %v91_v54, %v87_v53  ;;  %v95_v2 = vld [vmem:[%s10382_s1 + $0x110] sm:$0xff]  ;;  %v7970_v7 = vpack.c.bf16 %v105_v60, %v101_v59 }
  0x34   :  { %5874 = vmatpush1.bf16.msra.mxu1 %v7907_v48  ;;  %v114_v63 = vld [vmem:[%s10382_s1 + $0x1a8] sm:$0xff]  ;;  %v7955_v1 = vpack.c.bf16 %v100_v57, %v96_v56  ;;  %v99_v3 = vld [vmem:[%s10382_s1 + $0x130] sm:$0xff]  ;;  %v104_v5 = vld [vmem:[%s10382_s1 + $0x158] sm:$0xff] }
  0x35   :  { %5876 = vmatprep.subr.bf16.mxu1 %v7919_v52  ;;  %v108_v6 = vld [vmem:[%s10382_s1 + $0x178] sm:$0xff]  ;;  %v7973_v10 = vpack.c.bf16 %v114_v63, %v110_v61  ;;  %v109_v11 = vld [vmem:[%s10382_s1 + $0x180] sm:$0xff]  ;;  %v118_v13 = vld [vmem:[%s10382_s1 + $0x1c8] sm:$0xff]  ;;  %v7985_v15 = vpack.c.bf16 %v99_v3, %v95_v2 }
  0x36   :  { %5846 = vmatpush1.bf16.msra.mxu0 %v7890_v42  ;;  %v113_v12 = vld [vmem:[%s10382_s1 + $0x1a0] sm:$0xff]  ;;  %v122_v16 = vld [vmem:[%s10382_s1 + $0x1e8] sm:$0xff]  ;;  %v7991_v18 = vpack.c.bf16 %v108_v6, %v104_v5  ;;  %v103_v19 = vld [vmem:[%s10382_s1 + $0x150] sm:$0xff] }
  0x37   :  { %5848 = vmatprep.subr.bf16.mxu0 %v7901_v46  ;;  %v107_v20 = vld [vmem:[%s10382_s1 + $0x170] sm:$0xff]  ;;  %v112_v21 = vld [vmem:[%s10382_s1 + $0x198] sm:$0xff]  ;;  %v8006_v24 = vpack.c.bf16 %v113_v12, %v109_v11  ;;  %v8009_v27 = vpack.c.bf16 %v122_v16, %v118_v13  ;;  %v117_v28 = vld [vmem:[%s10382_s1 + $0x1c0] sm:$0xff] }
  0x38   :  { %5878 = vmatpush1.bf16.msra.mxu1 %v7949_v62  ;;  %v116_v23 = vld [vmem:[%s10382_s1 + $0x1b8] sm:$0xff]  ;;  %v121_v29 = vld [vmem:[%s10382_s1 + $0x1e0] sm:$0xff]  ;;  %v8018_v31 = vpack.c.bf16 %v107_v20, %v103_v19  ;;  %v111_v32 = vld [vmem:[%s10382_s1 + $0x190] sm:$0xff] }
  0x39   :  { %5880 = vmatprep.subr.bf16.mxu1 %v7955_v1  ;;  %v8024_v34 = vpack.c.bf16 %v116_v23, %v112_v21  ;;  %v115_v35 = vld [vmem:[%s10382_s1 + $0x1b0] sm:$0xff]  ;;  %v364_v36 = vld [vmem:[#allocation8 + $0x8] sm:$0xff]  ;;  %v120_v39 = vld [vmem:[%s10382_s1 + $0x1d8] sm:$0xff]  ;;  %v8036_v41 = vpack.c.bf16 %v121_v29, %v117_v28 }
  0x3a   :  { %5850 = vmatpush1.bf16.msra.mxu0 %v7928_v55  ;;  %v368_v38 = vld [vmem:[#allocation8 + $0x28] sm:$0xff]  ;;  %v124_v40 = vld [vmem:[%s10382_s1 + $0x1f8] sm:$0xff]  ;;  %v8040_v43 = vpack.c.bf16 %v115_v35, %v111_v32  ;;  %v119_v44 = vld [vmem:[%s10382_s1 + $0x1d0] sm:$0xff] }
  0x3b   :  { %5852 = vmatprep.subr.bf16.mxu0 %v7937_v58  ;;  %v8045_v47 = vpack.c.bf16 %v368_v38, %v364_v36  ;;  %v363_v49 = vld [vmem:[#allocation8] sm:$0xff]  ;;  %v8048_v51 = vpack.c.bf16 %v124_v40, %v120_v39  ;;  %v123_v53 = vld [vmem:[%s10382_s1 + $0x1f0] sm:$0xff]  ;;  %v372_v54 = vld [vmem:[#allocation8 + $0x48] sm:$0xff] }
  0x3c   :  { %5882 = vmatpush1.bf16.msra.mxu1 %v7985_v15  ;;  %v367_v50 = vld [vmem:[#allocation8 + $0x20] sm:$0xff]  ;;  %v376_v56 = vld [vmem:[#allocation8 + $0x68] sm:$0xff]  ;;  %v366_v57 = vld [vmem:[#allocation8 + $0x18] sm:$0xff]  ;;  %v8057_v61 = vpack.c.bf16 %v123_v53, %v119_v44 }
  0x3d   :  { %5884 = vmatprep.subr.bf16.mxu1 %v7991_v18  ;;  %v370_v59 = vld [vmem:[#allocation8 + $0x38] sm:$0xff]  ;;  %v8054_v60 = vpack.c.bf16 %v367_v50, %v363_v49  ;;  %v365_v63 = vld [vmem:[#allocation8 + $0x10] sm:$0xff]  ;;  %v8060_v2 = vpack.c.bf16 %v376_v56, %v372_v54  ;;  %v371_v3 = vld [vmem:[#allocation8 + $0x40] sm:$0xff] }
  0x3e   :  { %5854 = vmatpush1.bf16.msra.mxu0 %v7970_v7  ;;  %v375_v5 = vld [vmem:[#allocation8 + $0x60] sm:$0xff]  ;;  %v8063_v6 = vpack.c.bf16 %v370_v59, %v366_v57  ;;  %v369_v11 = vld [vmem:[#allocation8 + $0x30] sm:$0xff]  ;;  %v380_v12 = vld [vmem:[#allocation8 + $0x88] sm:$0xff] }
  0x3f   :  { %5856 = vmatprep.subr.bf16.mxu0 %v7973_v10  ;;  %v384_v13 = vld [vmem:[#allocation8 + $0xa8] sm:$0xff]  ;;  %v374_v16 = vld [vmem:[#allocation8 + $0x58] sm:$0xff]  ;;  %v8067_v20 = vpack.c.bf16 %v375_v5, %v371_v3  ;;  %v8071_v21 = vpack.c.bf16 %v369_v11, %v365_v63  ;;  %v373_v23 = vld [vmem:[#allocation8 + $0x50] sm:$0xff] }
  0x40   :  { %5886 = vmatpush1.bf16.msra.mxu1 %v8018_v31  ;;  %v378_v19 = vld [vmem:[#allocation8 + $0x78] sm:$0xff]  ;;  %v8074_v28 = vpack.c.bf16 %v384_v13, %v380_v12  ;;  %v379_v29 = vld [vmem:[#allocation8 + $0x80] sm:$0xff]  ;;  %v377_v36 = vld [vmem:[#allocation8 + $0x70] sm:$0xff] }
  0x41   :  { %5888 = vmatprep.subr.bf16.mxu1 %v8024_v34  ;;  %v383_v32 = vld [vmem:[#allocation8 + $0xa0] sm:$0xff]  ;;  %v8077_v35 = vpack.c.bf16 %v378_v19, %v374_v16  ;;  %v388_v38 = vld [vmem:[#allocation8 + $0xc8] sm:$0xff]  ;;  %v382_v40 = vld [vmem:[#allocation8 + $0x98] sm:$0xff]  ;;  %v8084_v50 = vpack.c.bf16 %v377_v36, %v373_v23 }
  0x42   :  { %5858 = vmatpush1.bf16.msra.mxu0 %v8006_v24  ;;  %v392_v39 = vld [vmem:[#allocation8 + $0xe8] sm:$0xff]  ;;  %v386_v44 = vld [vmem:[#allocation8 + $0xb8] sm:$0xff]  ;;  %v8081_v49 = vpack.c.bf16 %v383_v32, %v379_v29  ;;  %v381_v53 = vld [vmem:[#allocation8 + $0x90] sm:$0xff] }
  0x43   :  { %5860 = vmatprep.subr.bf16.mxu0 %v8009_v27  ;;  %v8087_v54 = vpack.c.bf16 %v392_v39, %v388_v38  ;;  %v387_v56 = vld [vmem:[#allocation8 + $0xc0] sm:$0xff]  ;;  %v8090_v59 = vpack.c.bf16 %v386_v44, %v382_v40  ;;  %v385_v63 = vld [vmem:[#allocation8 + $0xb0] sm:$0xff]  ;;  %v396_v3 = vld [vmem:[#allocation8 + $0x108] sm:$0xff] }
  0x44   :  { %5890 = vmatpush1.bf16.msra.mxu1 %v8040_v43  ;;  %v391_v57 = vld [vmem:[#allocation8 + $0xe0] sm:$0xff]  ;;  %v400_v5 = vld [vmem:[#allocation8 + $0x128] sm:$0xff]  ;;  %v390_v11 = vld [vmem:[#allocation8 + $0xd8] sm:$0xff]  ;;  %v8097_v16 = vpack.c.bf16 %v385_v63, %v381_v53 }
  0x45   :  { %5892 = vmatprep.subr.bf16.mxu1 %v8048_v51  ;;  %v394_v12 = vld [vmem:[#allocation8 + $0xf8] sm:$0xff]  ;;  %v8094_v13 = vpack.c.bf16 %v391_v57, %v387_v56  ;;  %v8100_v19 = vpack.c.bf16 %v400_v5, %v396_v3  ;;  %v395_v23 = vld [vmem:[#allocation8 + $0x100] sm:$0xff]  ;;  %v389_v36 = vld [vmem:[#allocation8 + $0xd0] sm:$0xff] }
  0x46   :  { %5862 = vmatpush1.bf16.msra.mxu0 %v8036_v41  ;;  %v399_v29 = vld [vmem:[#allocation8 + $0x120] sm:$0xff]  ;;  %v8103_v32 = vpack.c.bf16 %v394_v12, %v390_v11  ;;  %v393_v38 = vld [vmem:[#allocation8 + $0xf0] sm:$0xff]  ;;  %v398_v39 = vld [vmem:[#allocation8 + $0x118] sm:$0xff] }
  0x47   :  { %5896 = vmatprep.subr.bf16.mxu0 %v8045_v47  ;;  %10588 = vst [vmem:[#allocation12_spill] sm:$0xff] %v8094_v13  ;;  %10589 = vst [vmem:[#allocation13_spill] sm:$0xff] %v8100_v19  ;;  %v402_v40 = vld [vmem:[#allocation8 + $0x138] sm:$0xff]  ;;  %v8106_v44 = vpack.c.bf16 %v399_v29, %v395_v23  ;;  %v8109_v53 = vpack.c.bf16 %v393_v38, %v389_v36  ;;  %v397_v57 = vld [vmem:[#allocation8 + $0x110] sm:$0xff] }
  0x48   :  { %5894 = vmatpush1.bf16.msra.mxu1 %v8057_v61  ;;  %v8113_v56 = vpack.c.bf16 %v402_v40, %v398_v39  ;;  %v401_v63 = vld [vmem:[#allocation8 + $0x130] sm:$0xff]  ;;  %v404_v5 = vld [vmem:[#allocation8 + $0x148] sm:$0xff]  ;;  %v406_v12 = vld [vmem:[#allocation8 + $0x158] sm:$0xff] }
  0x49   :  { %190 = vmatmul.mubr.f32.vlgmr.msra.gmra.mrb[0].mxu0 %v10387_v0  ;;  %5928 = vmatprep.subr.bf16.mxu1 %v8063_v6  ;;  %10590 = vst [vmem:[#allocation14_spill] sm:$0xff] %v8106_v44  ;;  %10591 = vst [vmem:[#allocation15_spill] sm:$0xff] %v8109_v53  ;;  %v8117_v3 = vpack.c.bf16 %v401_v63, %v397_v57  ;;  %v408_v11 = vld [vmem:[#allocation8 + $0x168] sm:$0xff]  ;;  %v410_v29 = vld [vmem:[#allocation8 + $0x178] sm:$0xff] }
  0x4a   :  { %5898 = vmatpush1.bf16.msra.mxu0 %v8054_v60  ;;  %491 = vmatprep.mubr.f32.mxu0 %v10387_v0  ;;  %10592 = vst [vmem:[#allocation16_spill] sm:$0xff] %v8113_v56  ;;  %v8121_v23 = vpack.c.bf16 %v408_v11, %v404_v5  ;;  %v403_v36 = vld [vmem:[#allocation8 + $0x140] sm:$0xff]  ;;  %v8123_v39 = vpack.c.bf16 %v410_v29, %v406_v12  ;;  %v412_v63 = vld [vmem:[#allocation8 + $0x188] sm:$0xff]  ;;  %v414_v11 = vld [vmem:[#allocation8 + $0x198] sm:$0xff] }
  0x4b   :  { %5900 = vmatprep.subr.bf16.mxu0 %v8060_v2  ;;  %261 = vmatmul.mubr.f32.vlgmr.msra.gmra.mrb[0].mxu1 %v10387_v0  ;;  %10593 = vst [vmem:[#allocation17_spill] sm:$0xff] %v8117_v3  ;;  %v407_v38 = vld [vmem:[#allocation8 + $0x160] sm:$0xff]  ;;  %v416_v5 = vld [vmem:[#allocation8 + $0x1a8] sm:$0xff]  ;;  %v418_v12 = vld [vmem:[#allocation8 + $0x1b8] sm:$0xff] }
  0x4c   :  { %5930 = vmatpush1.bf16.msra.mxu1 %v8071_v21  ;;  %562 = vmatprep.mubr.f32.mxu1 %v10387_v0  ;;  %10594 = vst [vmem:[#allocation18_spill] sm:$0xff] %v8121_v23  ;;  %10595 = vst [vmem:[#allocation19_spill] sm:$0xff] %v8123_v39  ;;  %v8125_v40 = vpack.c.bf16 %v407_v38, %v403_v36  ;;  %v405_v0 = vld [vmem:[#allocation8 + $0x150] sm:$0xff]  ;;  %v411_v29 = vld [vmem:[#allocation8 + $0x180] sm:$0xff]  ;;  %v8135_v38 = vpack.c.bf16 %v418_v12, %v414_v11 }
  0x4d   :  { %5932 = vmatprep.subr.bf16.mxu1 %v8077_v35  ;;  %v415_v36 = vld [vmem:[#allocation8 + $0x1a0] sm:$0xff]  ;;  %v426_v11 = vld [vmem:[#allocation8 + $0x1f8] sm:$0xff] }
  0x4e   :  { %5902 = vmatpush1.bf16.msra.mxu0 %v8067_v20  ;;  %10596 = vst [vmem:[#allocation20_spill] sm:$0xff] %v8125_v40  ;;  %10599 = vst [vmem:[#allocation23_spill] sm:$0xff] %v8135_v38  ;;  %v419_v12 = vld [vmem:[#allocation8 + $0x1c0] sm:$0xff] }
  0x4f   :  { %5904 = vmatprep.subr.bf16.mxu0 %v8074_v28 }
  0x50   :  { %5934 = vmatpush1.bf16.msra.mxu1 %v8084_v50 }
  0x51   :  { %5936 = vmatprep.subr.bf16.mxu1 %v8090_v59 }
  0x52   :  { %5906 = vmatpush1.bf16.msra.mxu0 %v8081_v49 }
  0x53   :  { %5908 = vmatprep.subr.bf16.mxu0 %v8087_v54 }
  0x54   :  { %5938 = vmatpush1.bf16.msra.mxu1 %v8097_v16 }
  0x55   :  { %5940 = vmatprep.subr.bf16.mxu1 %v8103_v32 }
  0x56   :  { %5910 = vmatpush1.bf16.msra.mxu0 %v8094_v13  ;;  %v346_v13 = vld [vmem:[#allocation6 + $0x180] sm:$0xff] }
  0x57   :  { %5912 = vmatprep.subr.bf16.mxu0 %v8100_v19  ;;  %v318_v19 = vld [vmem:[#allocation6 + $0xa0] sm:$0xff] }
  0x58   :  { %5942 = vmatpush1.bf16.msra.mxu1 %v8109_v53  ;;  %v351_v53 = vld [vmem:[#allocation6 + $0x1a8] sm:$0xff] }
  0x59   :  { %5944 = vmatprep.subr.bf16.mxu1 %v8113_v56  ;;  %v8137_v56 = vpack.c.bf16 %v415_v36, %v411_v29  ;;  %v423_v29 = vld [vmem:[#allocation8 + $0x1e0] sm:$0xff] }
  0x5a   :  { %5914 = vmatpush1.bf16.msra.mxu0 %v8106_v44  ;;  %v409_v44 = vld [vmem:[#allocation8 + $0x170] sm:$0xff] }
  0x5b   :  { %5916 = vmatprep.subr.bf16.mxu0 %v8121_v23  ;;  %v8128_v57 = vpack.c.bf16 %v409_v44, %v405_v0  ;;  %10600 = vst [vmem:[#allocation24_spill] sm:$0xff] %v8137_v56  ;;  %v413_v0 = vld [vmem:[#allocation8 + $0x190] sm:$0xff]  ;;  %v8149_v23 = vpack.c.bf16 %v423_v29, %v419_v12  ;;  %v302_v12 = vld [vmem:[#allocation6 + $0x20] sm:$0xff] }
  0x5c   :  { %5946 = vmatpush1.bf16.msra.mxu1 %v8117_v3  ;;  %v8133_v3 = vpack.c.bf16 %v416_v5, %v412_v63  ;;  %v417_v44 = vld [vmem:[#allocation8 + $0x1b0] sm:$0xff]  ;;  %v424_v63 = vld [vmem:[#allocation8 + $0x1e8] sm:$0xff]  ;;  %v422_v5 = vld [vmem:[#allocation8 + $0x1d8] sm:$0xff] }
  0x5d   :  { %10597 = vst [vmem:[#allocation21_spill] sm:$0xff] %v8128_v57  ;;  %5948 = vmatprep.subr.bf16.mxu1 %v8123_v39  ;;  %v8140_v39 = vpack.c.bf16 %v417_v44, %v413_v0  ;;  %v8147_v36 = vpack.c.bf16 %v426_v11, %v422_v5  ;;  %10604 = vst [vmem:[#allocation28_spill] sm:$0xff] %v8149_v23  ;;  %v421_v0 = vld [vmem:[#allocation8 + $0x1d0] sm:$0xff]  ;;  %v305_v5 = vld [vmem:[#allocation6 + $0x38] sm:$0xff] }
  0x5e   :  { %5918 = vmatpush1.bf16.msra.mxu0 %v8125_v40  ;;  %10598 = vst [vmem:[#allocation22_spill] sm:$0xff] %v8133_v3  ;;  %v425_v44 = vld [vmem:[#allocation8 + $0x1f0] sm:$0xff]  ;;  %v298_v11 = vld [vmem:[#allocation6] sm:$0xff] }
  0x5f   :  { %5920 = vmatprep.subr.bf16.mxu0 %v8133_v3  ;;  %10601 = vst [vmem:[#allocation25_spill] sm:$0xff] %v8140_v39  ;;  %10603 = vst [vmem:[#allocation27_spill] sm:$0xff] %v8147_v36  ;;  %v8161_v3 = vpack.c.bf16 %v302_v12, %v298_v11 }
  0x60   :  { %5950 = vmatpush1.bf16.msra.mxu1 %v8128_v57  ;;  %v420_v57 = vld [vmem:[#allocation8 + $0x1c8] sm:$0xff] }
  0x61   :  { %5952 = vmatprep.subr.bf16.mxu1 %v8135_v38  ;;  %v8145_v40 = vpack.c.bf16 %v424_v63, %v420_v57  ;;  %v8152_v38 = vpack.c.bf16 %v425_v44, %v421_v0  ;;  %v303_v57 = vld [vmem:[#allocation6 + $0x28] sm:$0xff]  ;;  %v301_v63 = vld [vmem:[#allocation6 + $0x18] sm:$0xff]  ;;  %10608 = vst [vmem:[#allocation32_spill] sm:$0xff] %v8161_v3  ;;  %v300_v0 = vld [vmem:[#allocation6 + $0x10] sm:$0xff] }
  0x62   :  { %5922 = vmatpush1.bf16.msra.mxu0 %v8137_v56  ;;  %v8159_v29 = vpack.c.bf16 %v305_v5, %v301_v63  ;;  %v304_v44 = vld [vmem:[#allocation6 + $0x30] sm:$0xff]  ;;  %v309_v63 = vld [vmem:[#allocation6 + $0x58] sm:$0xff] }
  0x63   :  { %10602 = vst [vmem:[#allocation26_spill] sm:$0xff] %v8145_v40  ;;  %5924 = vmatprep.subr.bf16.mxu0 %v8145_v40  ;;  %10605 = vst [vmem:[#allocation29_spill] sm:$0xff] %v8152_v38  ;;  %v313_v5 = vld [vmem:[#allocation6 + $0x78] sm:$0xff]  ;;  %v314_v40 = vld [vmem:[#allocation6 + $0x80] sm:$0xff] }
  0x64   :  { %5954 = vmatpush1.bf16.msra.mxu1 %v8140_v39  ;;  %v299_v39 = vld [vmem:[#allocation6 + $0x8] sm:$0xff]  ;;  %10607 = vst [vmem:[#allocation31_spill] sm:$0xff] %v8159_v29  ;;  %v8173_v12 = vpack.c.bf16 %v313_v5, %v309_v63  ;;  %v317_v63 = vld [vmem:[#allocation6 + $0x98] sm:$0xff] }
  0x65   :  { %5956 = vmatprep.subr.bf16.mxu1 %v8147_v36  ;;  %v8157_v56 = vpack.c.bf16 %v303_v57, %v299_v39  ;;  %v10609_v36 = vmov 0.0   ;;  %v307_v39 = vld [vmem:[#allocation6 + $0x48] sm:$0xff] }
  0x66   :  { %5926 = vmatpush1.bf16.msra.mxu0 %v8149_v23  ;;  %v8165_v23 = vpack.c.bf16 %v304_v44, %v300_v0  ;;  %v311_v57 = vld [vmem:[#allocation6 + $0x68] sm:$0xff]  ;;  %10612 = vst [vmem:[#allocation35_spill] sm:$0xff] %v8173_v12  ;;  %v308_v0 = vld [vmem:[#allocation6 + $0x50] sm:$0xff] }
  0x67   :  { %10606 = vst [vmem:[#allocation30_spill] sm:$0xff] %v8157_v56  ;;  %5960 = vmatprep.subr.bf16.mxu0 %v8157_v56  ;;  %v8171_v11 = vpack.c.bf16 %v311_v57, %v307_v39  ;;  %v306_v56 = vld [vmem:[#allocation6 + $0x40] sm:$0xff]  ;;  %v315_v39 = vld [vmem:[#allocation6 + $0x88] sm:$0xff] }
  0x68   :  { %5958 = vmatpush1.bf16.msra.mxu1 %v8152_v38  ;;  %10610 = vst [vmem:[#allocation33_spill] sm:$0xff] %v8165_v23  ;;  %v310_v38 = vld [vmem:[#allocation6 + $0x60] sm:$0xff]  ;;  %v319_v57 = vld [vmem:[#allocation6 + $0xa8] sm:$0xff] }
  0x69   :  { %492 = vmatmul.mubr.f32.vlgmr.msra.gmra.mrb[2].mxu0 %v10609_v36  ;;  %5992 = vmatprep.subr.bf16.mxu1 %v8159_v29  ;;  %10611 = vst [vmem:[#allocation34_spill] sm:$0xff] %v8171_v11  ;;  %v8177_v44 = vpack.c.bf16 %v310_v38, %v306_v56  ;;  %v312_v29 = vld [vmem:[#allocation6 + $0x70] sm:$0xff]  ;;  %v8184_v5 = vpack.c.bf16 %v319_v57, %v315_v39  ;;  %v327_v39 = vld [vmem:[#allocation6 + $0xe8] sm:$0xff]  ;;  %v325_v57 = vld [vmem:[#allocation6 + $0xd8] sm:$0xff] }
  0x6a   :  { %5962 = vmatpush1.bf16.msra.mxu0 %v8161_v3  ;;  %633 = vmatprep.mubr.f32.mxu0 %v10609_v36  ;;  %v321_v3 = vld [vmem:[#allocation6 + $0xb8] sm:$0xff]  ;;  %v8189_v38 = vpack.c.bf16 %v318_v19, %v314_v40 }
  0x6b   :  { %563 = vmatmul.mubr.f32.vlgmr.msra.gmra.mrb[2].mxu1 %v10609_v36  ;;  %10613 = vst [vmem:[#allocation36_spill] sm:$0xff] %v8177_v44  ;;  %5964 = vmatprep.subr.bf16.mxu0 %v8171_v11  ;;  %10615 = vst [vmem:[#allocation38_spill] sm:$0xff] %v8184_v5  ;;  %v8187_v56 = vpack.c.bf16 %v321_v3, %v317_v63  ;;  %v316_v11 = vld [vmem:[#allocation6 + $0x90] sm:$0xff]  ;;  %v322_v3 = vld [vmem:[#allocation6 + $0xc0] sm:$0xff] }
  0x6c   :  { %5994 = vmatpush1.bf16.msra.mxu1 %v8165_v23  ;;  %704 = vmatprep.mubr.f32.mxu1 %v10609_v36  ;;  %v8181_v23 = vpack.c.bf16 %v312_v29, %v308_v0  ;;  %10617 = vst [vmem:[#allocation40_spill] sm:$0xff] %v8189_v38  ;;  %v323_v0 = vld [vmem:[#allocation6 + $0xc8] sm:$0xff]  ;;  %v326_v63 = vld [vmem:[#allocation6 + $0xe0] sm:$0xff] }
  0x6d   :  { %5996 = vmatprep.subr.bf16.mxu1 %v8173_v12  ;;  %10616 = vst [vmem:[#allocation39_spill] sm:$0xff] %v8187_v56  ;;  %v320_v12 = vld [vmem:[#allocation6 + $0xb0] sm:$0xff]  ;;  %v8201_v40 = vpack.c.bf16 %v326_v63, %v322_v3 }
  0x6e   :  { %10614 = vst [vmem:[#allocation37_spill] sm:$0xff] %v8181_v23  ;;  %5966 = vmatpush1.bf16.msra.mxu0 %v8177_v44  ;;  %v8192_v29 = vpack.c.bf16 %v320_v12, %v316_v11  ;;  %v8196_v44 = vpack.c.bf16 %v327_v39, %v323_v0  ;;  %v324_v11 = vld [vmem:[#allocation6 + $0xd0] sm:$0xff]  ;;  %v335_v0 = vld [vmem:[#allocation6 + $0x128] sm:$0xff]  ;;  %v333_v39 = vld [vmem:[#allocation6 + $0x118] sm:$0xff] }
  0x6f   :  { %5968 = vmatprep.subr.bf16.mxu0 %v8184_v5  ;;  %10621 = vst [vmem:[#allocation44_spill] sm:$0xff] %v8201_v40  ;;  %v328_v12 = vld [vmem:[#allocation6 + $0xf0] sm:$0xff] }
  0x70   :  { %5998 = vmatpush1.bf16.msra.mxu1 %v8181_v23  ;;  %10618 = vst [vmem:[#allocation41_spill] sm:$0xff] %v8192_v29  ;;  %10619 = vst [vmem:[#allocation42_spill] sm:$0xff] %v8196_v44  ;;  %v329_v23 = vld [vmem:[#allocation6 + $0xf8] sm:$0xff] }
  0x71   :  { %6000 = vmatprep.subr.bf16.mxu1 %v8187_v56  ;;  %v8199_v19 = vpack.c.bf16 %v329_v23, %v325_v57  ;;  %v8204_v56 = vpack.c.bf16 %v328_v12, %v324_v11  ;;  %v330_v23 = vld [vmem:[#allocation6 + $0x100] sm:$0xff]  ;;  %v332_v11 = vld [vmem:[#allocation6 + $0x110] sm:$0xff] }
  0x72   :  { %5970 = vmatpush1.bf16.msra.mxu0 %v8189_v38  ;;  %v331_v38 = vld [vmem:[#allocation6 + $0x108] sm:$0xff]  ;;  %v334_v57 = vld [vmem:[#allocation6 + $0x120] sm:$0xff]  ;;  %v336_v12 = vld [vmem:[#allocation6 + $0x130] sm:$0xff] }
  0x73   :  { %10620 = vst [vmem:[#allocation43_spill] sm:$0xff] %v8199_v19  ;;  %5972 = vmatprep.subr.bf16.mxu0 %v8196_v44  ;;  %10622 = vst [vmem:[#allocation45_spill] sm:$0xff] %v8204_v56  ;;  %v8208_v5 = vpack.c.bf16 %v335_v0, %v331_v38  ;;  %v8213_v63 = vpack.c.bf16 %v334_v57, %v330_v23  ;;  %v343_v38 = vld [vmem:[#allocation6 + $0x168] sm:$0xff]  ;;  %v341_v0 = vld [vmem:[#allocation6 + $0x158] sm:$0xff] }
  0x74   :  { %6002 = vmatpush1.bf16.msra.mxu1 %v8192_v29  ;;  %v337_v29 = vld [vmem:[#allocation6 + $0x138] sm:$0xff] }
  0x75   :  { %6004 = vmatprep.subr.bf16.mxu1 %v8199_v19  ;;  %10623 = vst [vmem:[#allocation46_spill] sm:$0xff] %v8208_v5  ;;  %v8211_v3 = vpack.c.bf16 %v337_v29, %v333_v39  ;;  %10625 = vst [vmem:[#allocation48_spill] sm:$0xff] %v8213_v63  ;;  %v8216_v19 = vpack.c.bf16 %v336_v12, %v332_v11  ;;  %v338_v29 = vld [vmem:[#allocation6 + $0x140] sm:$0xff]  ;;  %v340_v11 = vld [vmem:[#allocation6 + $0x150] sm:$0xff] }
  0x76   :  { %5974 = vmatpush1.bf16.msra.mxu0 %v8201_v40  ;;  %v339_v40 = vld [vmem:[#allocation6 + $0x148] sm:$0xff]  ;;  %v342_v39 = vld [vmem:[#allocation6 + $0x160] sm:$0xff]  ;;  %v344_v12 = vld [vmem:[#allocation6 + $0x170] sm:$0xff] }
  0x77   :  { %10624 = vst [vmem:[#allocation47_spill] sm:$0xff] %v8211_v3  ;;  %5976 = vmatprep.subr.bf16.mxu0 %v8208_v5  ;;  %10626 = vst [vmem:[#allocation49_spill] sm:$0xff] %v8216_v19  ;;  %v8220_v44 = vpack.c.bf16 %v343_v38, %v339_v40  ;;  %v8225_v57 = vpack.c.bf16 %v342_v39, %v338_v29  ;;  %v347_v5 = vld [vmem:[#allocation6 + $0x188] sm:$0xff]  ;;  %v353_v38 = vld [vmem:[#allocation6 + $0x1b8] sm:$0xff] }
  0x78   :  { %6006 = vmatpush1.bf16.msra.mxu1 %v8204_v56  ;;  %v345_v56 = vld [vmem:[#allocation6 + $0x178] sm:$0xff]  ;;  %v8231_v40 = vpack.c.bf16 %v351_v53, %v347_v5  ;;  %v348_v29 = vld [vmem:[#allocation6 + $0x190] sm:$0xff]  ;;  %v359_v53 = vld [vmem:[#allocation6 + $0x1e8] sm:$0xff] }
  0x79   :  { %6008 = vmatprep.subr.bf16.mxu1 %v8211_v3  ;;  %10627 = vst [vmem:[#allocation50_spill] sm:$0xff] %v8220_v44  ;;  %v8223_v23 = vpack.c.bf16 %v345_v56, %v341_v0  ;;  %10629 = vst [vmem:[#allocation52_spill] sm:$0xff] %v8225_v57  ;;  %v8228_v3 = vpack.c.bf16 %v344_v12, %v340_v11  ;;  %v352_v39 = vld [vmem:[#allocation6 + $0x1b0] sm:$0xff]  ;;  %v355_v11 = vld [vmem:[#allocation6 + $0x1c8] sm:$0xff] }
  0x7a   :  { %5978 = vmatpush1.bf16.msra.mxu0 %v8213_v63  ;;  %v349_v63 = vld [vmem:[#allocation6 + $0x198] sm:$0xff]  ;;  %v8240_v12 = vpack.c.bf16 %v352_v39, %v348_v29  ;;  %v57_v39 = vld [vmem:[%s10381_s0 + $0x8] sm:$0xff] }
  0x7b   :  { %10628 = vst [vmem:[#allocation51_spill] sm:$0xff] %v8223_v23  ;;  %5980 = vmatprep.subr.bf16.mxu0 %v8220_v44  ;;  %10630 = vst [vmem:[#allocation53_spill] sm:$0xff] %v8228_v3  ;;  %v8234_v56 = vpack.c.bf16 %v353_v38, %v349_v63  ;;  %v357_v5 = vld [vmem:[#allocation6 + $0x1d8] sm:$0xff]  ;;  %v8243_v44 = vpack.c.bf16 %v359_v53, %v355_v11  ;;  %v356_v38 = vld [vmem:[#allocation6 + $0x1d0] sm:$0xff] }
  0x7c   :  { %6010 = vmatpush1.bf16.msra.mxu1 %v8216_v19  ;;  %v350_v19 = vld [vmem:[#allocation6 + $0x1a0] sm:$0xff]  ;;  %10632 = vst [vmem:[#allocation55_spill] sm:$0xff] %v8240_v12 }
  0x7d   :  { %6012 = vmatprep.subr.bf16.mxu1 %v8223_v23  ;;  %v8236_v0 = vpack.c.bf16 %v350_v19, %v346_v13  ;;  %v361_v23 = vld [vmem:[#allocation6 + $0x1f8] sm:$0xff]  ;;  %10633 = vst [vmem:[#allocation56_spill] sm:$0xff] %v8243_v44  ;;  %v354_v13 = vld [vmem:[#allocation6 + $0x1c0] sm:$0xff] }
  0x7e   :  { %5982 = vmatpush1.bf16.msra.mxu0 %v8225_v57  ;;  %v8245_v63 = vpack.c.bf16 %v361_v23, %v357_v5  ;;  %v358_v19 = vld [vmem:[#allocation6 + $0x1e0] sm:$0xff]  ;;  %v360_v57 = vld [vmem:[#allocation6 + $0x1f0] sm:$0xff] }
  0x7f   :  { %10631 = vst [vmem:[#allocation54_spill] sm:$0xff] %v8236_v0  ;;  %5984 = vmatprep.subr.bf16.mxu0 %v8231_v40  ;;  %v8252_v29 = vpack.c.bf16 %v360_v57, %v356_v38  ;;  %v56_v23 = vld [vmem:[%s10381_s0] sm:$0xff] }
  0x80   :  { %6014 = vmatpush1.bf16.msra.mxu1 %v8228_v3  ;;  %10634 = vst [vmem:[#allocation57_spill] sm:$0xff] %v8245_v63  ;;  %v8248_v3 = vpack.c.bf16 %v358_v19, %v354_v13 }
  0x81   :  { %6016 = vmatprep.subr.bf16.mxu1 %v8234_v56  ;;  %10636 = vst [vmem:[#allocation59_spill] sm:$0xff] %v8252_v29 }
  0x82   :  { %5986 = vmatpush1.bf16.msra.mxu0 %v8236_v0  ;;  %10635 = vst [vmem:[#allocation58_spill] sm:$0xff] %v8248_v3 }
  0x83   :  { %5988 = vmatprep.subr.bf16.mxu0 %v8243_v44 }
  0x84   :  { %6018 = vmatpush1.bf16.msra.mxu1 %v8240_v12 }
  0x85   :  { %6020 = vmatprep.subr.bf16.mxu1 %v8245_v63 }
  0x86   :  { %5990 = vmatpush1.bf16.msra.mxu0 %v8248_v3  ;;  %v58_v3 = vld [vmem:[%s10381_s0 + $0x10] sm:$0xff] }
  0x87   :  { %6024 = vmatprep.subr.bf16.mxu0 %v7778_v4  ;;  %v59_v4 = vld [vmem:[%s10381_s0 + $0x18] sm:$0xff] }
  0x88   :  { %6022 = vmatpush1.bf16.msra.mxu1 %v8252_v29 }
  0x89   :  { %6056 = vmatprep.subr.bf16.mxu1 %v7830_v22 }
 0x11c   :  { %v191_v57 = vpop.f32.mrb[0].mxu0 }
 0x11d   :  { %v267_v11 = vadd.f32 %v191_v57, %v56_v23  ;;  %v193_v53 = vpop.f32.mrb[1].mxu0 }
 0x11e   :  { %v268_v5 = vadd.f32 %v193_v53, %v57_v39  ;;  %v262_v22 = vpop.f32.mrb[0].mxu1 }
 0x11f   :  { %v5748_v13 = vmul.f32 -1.442695, %v267_v11  ;;  %v264_v38 = vpop.f32.mrb[1].mxu1  ;;  %v269_v44 = vadd.f32 %v262_v22, %v58_v3 }
 0x120   :  { %v5749_v19 = vmul.f32 -1.442695, %v268_v5  ;;  %v270_v29 = vadd.f32 %v264_v38, %v59_v4 }
 0x121   :  { %7404 = vpow2.f32 %v5748_v13 }
 0x122   :  { %7406 = vpow2.f32 %v5749_v19  ;;  %v5750_v63 = vmul.f32 -1.442695, %v270_v29 }
 0x124   :  { %7408 = vpow2.f32 %v5750_v63 }
 0x125   :  { %7410 = vtanh.f32 %v269_v44 }
 0x12b   :  { %v7405_v23 = vpop.eup %7404 }
 0x12c   :  { %v7407_v39 = vpop.eup %7406  ;;  %v275_v57 = vadd.f32 1.0, %v7405_v23 }
 0x12d   :  { %v281_v11 = vadd.f32 1.0, %v7407_v39 }
 0x12e   :  { %7412 = vrcp.f32 %v275_v57  ;;  %v7409_v53 = vpop.eup %7408 }
 0x12f   :  { %7414 = vrcp.f32 %v281_v11  ;;  %v7411_v5 = vpop.eup %7410  ;;  %v288_v19 = vadd.f32 1.0, %v7409_v53 }
 0x131   :  { %7416 = vrcp.f32 %v288_v19  ;;  %v5755_v19 = vld [vmem:[%s10381_s0 + $0x28] sm:$0xff] }
 0x138   :  { %v7413_v13 = vpop.eup %7412 }
 0x139   :  { %v7415_v12 = vpop.eup %7414  ;;  %v292_v4 = vmul.f32 %v7413_v13, %v7411_v5  ;;  %v5754_v13 = vld [vmem:[%s10381_s0 + $0x20] sm:$0xff] }
 0x13a   :  { %v291_v38 = vmul.f32 0.0, %v7415_v12 }
 0x13b   :  { %v7417_v3 = vpop.eup %7416 }
 0x13c   :  { %v8271_v0 = vadd.f32 %v292_v4, %v291_v38 }
 0x13e   :  { %7418 = vtanh.f32 %v8271_v0 }
 0x148   :  { %v7419_v63 = vpop.eup %7418 }
 0x149   :  { %v295_v29 = vmul.f32 %v7419_v63, %v7417_v3 }
 0x14b   :  { %634 = vmatmul.mubr.f32.vlgmr.msra.gmra.mrb[2].mxu0 %v295_v29  ;;  %705 = vmatmul.mubr.f32.vlgmr.msra.gmra.mrb[2].mxu1 %v295_v29 }
 0x14c   :  { %6026 = vmatpush1.bf16.msra.mxu0 %v7789_v8  ;;  %6058 = vmatpush1.bf16.msra.mxu1 %v7838_v25  ;;  %v10637_v8 = vld [vmem:[#allocation12_spill] sm:$0xff]  ;;  %v10641_v25 = vld [vmem:[#allocation14_spill] sm:$0xff] }
 0x14d   :  { %6028 = vmatprep.subr.bf16.mxu0 %v7791_v9  ;;  %6060 = vmatprep.subr.bf16.mxu1 %v7863_v33  ;;  %v10638_v9 = vld [vmem:[#allocation15_spill] sm:$0xff] }
 0x14e   :  { %899 = vmatprep.mubr.f32.mxu0 %v10609_v36  ;;  %970 = vmatprep.mubr.f32.mxu1 %v10609_v36  ;;  %v10644_v33 = vld [vmem:[#allocation19_spill] sm:$0xff] }
 0x150   :  { %6030 = vmatpush1.bf16.msra.mxu0 %v7807_v14  ;;  %6062 = vmatpush1.bf16.msra.mxu1 %v7874_v37  ;;  %v10639_v14 = vld [vmem:[#allocation13_spill] sm:$0xff]  ;;  %v10645_v37 = vld [vmem:[#allocation20_spill] sm:$0xff] }
 0x151   :  { %6032 = vmatprep.subr.bf16.mxu0 %v7816_v17  ;;  %6064 = vmatprep.subr.bf16.mxu1 %v7898_v45  ;;  %v10640_v17 = vld [vmem:[#allocation16_spill] sm:$0xff]  ;;  %v10647_v45 = vld [vmem:[#allocation22_spill] sm:$0xff] }
 0x154   :  { %6034 = vmatpush1.bf16.msra.mxu0 %v7841_v26  ;;  %6066 = vmatpush1.bf16.msra.mxu1 %v7907_v48  ;;  %v10642_v26 = vld [vmem:[#allocation17_spill] sm:$0xff]  ;;  %v10649_v48 = vld [vmem:[#allocation24_spill] sm:$0xff] }
 0x155   :  { %6036 = vmatprep.subr.bf16.mxu0 %v7854_v30  ;;  %6068 = vmatprep.subr.bf16.mxu1 %v7919_v52  ;;  %v10643_v30 = vld [vmem:[#allocation18_spill] sm:$0xff]  ;;  %v10650_v52 = vld [vmem:[#allocation25_spill] sm:$0xff] }
 0x158   :  { %6038 = vmatpush1.bf16.msra.mxu0 %v7890_v42  ;;  %6070 = vmatpush1.bf16.msra.mxu1 %v7949_v62  ;;  %v10646_v42 = vld [vmem:[#allocation21_spill] sm:$0xff]  ;;  %v10653_v62 = vld [vmem:[#allocation28_spill] sm:$0xff] }
 0x159   :  { %6040 = vmatprep.subr.bf16.mxu0 %v7901_v46  ;;  %6072 = vmatprep.subr.bf16.mxu1 %v7955_v1  ;;  %v10648_v46 = vld [vmem:[#allocation23_spill] sm:$0xff]  ;;  %v10654_v1 = vld [vmem:[#allocation29_spill] sm:$0xff] }
 0x15c   :  { %6042 = vmatpush1.bf16.msra.mxu0 %v7928_v55  ;;  %6074 = vmatpush1.bf16.msra.mxu1 %v7985_v15  ;;  %v10651_v55 = vld [vmem:[#allocation26_spill] sm:$0xff]  ;;  %v713_v15 = vlaneseq }
 0x15d   :  { %6044 = vmatprep.subr.bf16.mxu0 %v7937_v58  ;;  %6076 = vmatprep.subr.bf16.mxu1 %v7991_v18  ;;  %v10652_v58 = vld [vmem:[#allocation27_spill] sm:$0xff] }
 0x15e   :  { %v714_v18 = vshrl.u32 %v713_v15, 7  ;;  %v10665_v15 = vld [vmem:[#allocation36_spill] sm:$0xff] }
 0x160   :  { %6046 = vmatpush1.bf16.msra.mxu0 %v7970_v7  ;;  %6078 = vmatpush1.bf16.msra.mxu1 %v8018_v31  ;;  %v10655_v7 = vld [vmem:[#allocation30_spill] sm:$0xff]  ;;  %v8347_v31 = vsub.s32 1, %v714_v18 }
 0x161   :  { %6048 = vmatprep.subr.bf16.mxu0 %v7973_v10  ;;  %6080 = vmatprep.subr.bf16.mxu1 %v8024_v34  ;;  %v10656_v10 = vld [vmem:[#allocation31_spill] sm:$0xff] }
 0x162   :  { %10658 = vst [vmem:[#allocation15_spill] sm:$0xff] %v8347_v31 }
 0x164   :  { %6050 = vmatpush1.bf16.msra.mxu0 %v8006_v24  ;;  %6082 = vmatpush1.bf16.msra.mxu1 %v8040_v43  ;;  %v8342_v24 = vsub.s32 0, %v714_v18 }
 0x165   :  { %6052 = vmatprep.subr.bf16.mxu0 %v8009_v27  ;;  %6084 = vmatprep.subr.bf16.mxu1 %v8048_v51  ;;  %v711_v27 = vld [vmem:[%s10385_s4] sm:$0xf]  ;;  %v8351_v51 = vsub.s32 3, %v714_v18 }
 0x166   :  { %10657 = vst [vmem:[#allocation12_spill] sm:$0xff] %v8342_v24  ;;  %v716_v34 = vrot.slane %v711_v27, %v8342_v24 }
 0x167   :  { %10659 = vst [vmem:[#allocation13_spill] sm:$0xff] %v8351_v51 }
 0x168   :  { %6054 = vmatpush1.bf16.msra.mxu0 %v8036_v41  ;;  %6086 = vmatpush1.bf16.msra.mxu1 %v8057_v61  ;;  %v720_v41 = vrot.slane %v711_v27, %v8347_v31 }
 0x169   :  { %6088 = vmatprep.subr.bf16.mxu0 %v8045_v47  ;;  %6120 = vmatprep.subr.bf16.mxu1 %v8063_v6 }
 0x16b   :  { %900 = vmatmul.mubr.f32.vlgmr.msra.gmra.mrb[4].mxu0 %v295_v29  ;;  %971 = vmatmul.mubr.f32.vlgmr.msra.gmra.mrb[4].mxu1 %v295_v29 }
 0x16c   :  { %6090 = vmatpush1.bf16.msra.mxu0 %v8054_v60  ;;  %6122 = vmatpush1.bf16.msra.mxu1 %v8071_v21 }
 0x16d   :  { %6092 = vmatprep.subr.bf16.mxu0 %v8060_v2  ;;  %6124 = vmatprep.subr.bf16.mxu1 %v8077_v35  ;;  %v8354_v35 = vsub.s32 2, %v714_v18  ;;  %v10666_v18 = vld [vmem:[#allocation37_spill] sm:$0xff] }
 0x16e   :  { %1201 = vmatprep.mubr.f32.mxu0 %v10609_v36  ;;  %1272 = vmatprep.mubr.f32.mxu1 %v10609_v36 }
 0x16f   :  { %10660 = vst [vmem:[#allocation16_spill] sm:$0xff] %v8354_v35 }
 0x170   :  { %6094 = vmatpush1.bf16.msra.mxu0 %v8067_v20  ;;  %6126 = vmatpush1.bf16.msra.mxu1 %v8084_v50  ;;  %v724_v50 = vrot.slane %v711_v27, %v8354_v35 }
 0x171   :  { %6096 = vmatprep.subr.bf16.mxu0 %v8074_v28  ;;  %6128 = vmatprep.subr.bf16.mxu1 %v8090_v59  ;;  %v728_v28 = vrot.slane %v711_v27, %v8351_v51  ;;  %v10667_v27 = vld [vmem:[#allocation38_spill] sm:$0xff] }
 0x174   :  { %6098 = vmatpush1.bf16.msra.mxu0 %v8081_v49  ;;  %6130 = vmatpush1.bf16.msra.mxu1 %v8097_v16 }
 0x175   :  { %6100 = vmatprep.subr.bf16.mxu0 %v8087_v54  ;;  %6132 = vmatprep.subr.bf16.mxu1 %v8103_v32 }
 0x178   :  { %6102 = vmatpush1.bf16.msra.mxu0 %v10637_v8  ;;  %6134 = vmatpush1.bf16.msra.mxu1 %v10638_v9 }
 0x179   :  { %6104 = vmatprep.subr.bf16.mxu0 %v10639_v14  ;;  %6136 = vmatprep.subr.bf16.mxu1 %v10640_v17 }
 0x17c   :  { %6106 = vmatpush1.bf16.msra.mxu0 %v10641_v25  ;;  %6138 = vmatpush1.bf16.msra.mxu1 %v10642_v26  ;;  %v5757_v25 = vld [vmem:[%s10381_s0 + $0x38] sm:$0xff] }
 0x17d   :  { %6108 = vmatprep.subr.bf16.mxu0 %v10643_v30  ;;  %6140 = vmatprep.subr.bf16.mxu1 %v10644_v33  ;;  %v5756_v30 = vld [vmem:[%s10381_s0 + $0x30] sm:$0xff] }
 0x180   :  { %6110 = vmatpush1.bf16.msra.mxu0 %v10645_v37  ;;  %6142 = vmatpush1.bf16.msra.mxu1 %v10646_v42 }
 0x181   :  { %6112 = vmatprep.subr.bf16.mxu0 %v10647_v45  ;;  %6144 = vmatprep.subr.bf16.mxu1 %v10648_v46 }
 0x184   :  { %6114 = vmatpush1.bf16.msra.mxu0 %v10649_v48  ;;  %6146 = vmatpush1.bf16.msra.mxu1 %v10650_v52 }
 0x185   :  { %6116 = vmatprep.subr.bf16.mxu0 %v10651_v55  ;;  %6148 = vmatprep.subr.bf16.mxu1 %v10652_v58  ;;  %v10661_v58 = vld [vmem:[#allocation32_spill] sm:$0xff] }
 0x188   :  { %6118 = vmatpush1.bf16.msra.mxu0 %v10653_v62  ;;  %6150 = vmatpush1.bf16.msra.mxu1 %v10654_v1  ;;  %v10662_v62 = vld [vmem:[#allocation33_spill] sm:$0xff] }
 0x189   :  { %6152 = vmatprep.subr.bf16.mxu0 %v10655_v7  ;;  %6184 = vmatprep.subr.bf16.mxu1 %v10656_v10  ;;  %v10663_v7 = vld [vmem:[#allocation34_spill] sm:$0xff]  ;;  %v10664_v10 = vld [vmem:[#allocation35_spill] sm:$0xff] }
 0x21e   :  { %v635_v43 = vpop.f32.mrb[2].mxu0  ;;  %v706_v47 = vpop.f32.mrb[2].mxu1 }
 0x21f   :  { %v733_v60 = vadd.f32 %v716_v34, %v635_v43  ;;  %v637_v61 = vpop.f32.mrb[3].mxu0  ;;  %v708_v2 = vpop.f32.mrb[3].mxu1  ;;  %v735_v59 = vadd.f32 %v724_v50, %v706_v47  ;;  %v10668_v34 = vld [vmem:[#allocation39_spill] sm:$0xff]  ;;  %v10670_v43 = vld [vmem:[#allocation41_spill] sm:$0xff]  ;;  %v10671_v47 = vld [vmem:[#allocation42_spill] sm:$0xff] }
 0x220   :  { %v734_v6 = vadd.f32 %v720_v41, %v637_v61  ;;  %v736_v49 = vadd.f32 %v728_v28, %v708_v2  ;;  %v10669_v41 = vld [vmem:[#allocation40_spill] sm:$0xff] }
 0x221   :  { %v5751_v20 = vmul.f32 -1.442695, %v733_v60  ;;  %v10672_v60 = vld [vmem:[#allocation43_spill] sm:$0xff] }
 0x222   :  { %v5752_v21 = vmul.f32 -1.442695, %v734_v6  ;;  %v5753_v54 = vmul.f32 -1.442695, %v736_v49 }
 0x223   :  { %7420 = vpow2.f32 %v5751_v20  ;;  %v10673_v20 = vld [vmem:[#allocation44_spill] sm:$0xff] }
 0x224   :  { %7422 = vpow2.f32 %v5752_v21  ;;  %v10674_v21 = vld [vmem:[#allocation45_spill] sm:$0xff] }
 0x225   :  { %7424 = vpow2.f32 %v5753_v54  ;;  %v10675_v54 = vld [vmem:[#allocation46_spill] sm:$0xff] }
 0x226   :  { %7426 = vtanh.f32 %v735_v59  ;;  %v10676_v59 = vld [vmem:[#allocation47_spill] sm:$0xff] }
 0x22d   :  { %v7421_v16 = vpop.eup %7420 }
 0x22e   :  { %v7423_v32 = vpop.eup %7422  ;;  %v741_v44 = vadd.f32 1.0, %v7421_v16 }
 0x22f   :  { %v747_v12 = vadd.f32 1.0, %v7423_v32  ;;  %v7425_v22 = vpop.eup %7424 }
 0x230   :  { %7428 = vrcp.f32 %v741_v44  ;;  %v7427_v23 = vpop.eup %7426  ;;  %v754_v53 = vadd.f32 1.0, %v7425_v22  ;;  %v10677_v44 = vld [vmem:[#allocation48_spill] sm:$0xff]  ;;  %v10679_v22 = vld [vmem:[#allocation50_spill] sm:$0xff] }
 0x231   :  { %7430 = vrcp.f32 %v747_v12  ;;  %v10678_v12 = vld [vmem:[#allocation49_spill] sm:$0xff] }
 0x232   :  { %7432 = vrcp.f32 %v754_v53  ;;  %v1485_v53 = vld [vmem:[%s10382_s1 + $0x18] sm:$0xff] }
 0x23a   :  { %v7429_v39 = vpop.eup %7428 }
 0x23b   :  { %v7431_v57 = vpop.eup %7430  ;;  %v758_v11 = vmul.f32 %v7429_v39, %v7427_v23  ;;  %v10680_v23 = vld [vmem:[#allocation51_spill] sm:$0xff]  ;;  %v10681_v39 = vld [vmem:[#allocation52_spill] sm:$0xff] }
 0x23c   :  { %v757_v5 = vmul.f32 0.0, %v7431_v57  ;;  %v7433_v33 = vpop.eup %7432  ;;  %v10682_v57 = vld [vmem:[#allocation53_spill] sm:$0xff] }
 0x23e   :  { %v8363_v4 = vadd.f32 %v758_v11, %v757_v5  ;;  %v901_v38 = vpop.f32.mrb[4].mxu0  ;;  %v972_v3 = vpop.f32.mrb[4].mxu1  ;;  %v1487_v11 = vld [vmem:[%s10382_s1 + $0x28] sm:$0xff]  ;;  %v1489_v5 = vld [vmem:[%s10382_s1 + $0x38] sm:$0xff] }
 0x23f   :  { %v977_v63 = vadd.f32 %v5754_v13, %v901_v38  ;;  %v903_v29 = vpop.f32.mrb[5].mxu0  ;;  %v974_v8 = vpop.f32.mrb[5].mxu1  ;;  %v979_v45 = vadd.f32 %v5756_v30, %v972_v3  ;;  %v10683_v13 = vld [vmem:[#allocation54_spill] sm:$0xff]  ;;  %v10685_v38 = vld [vmem:[#allocation56_spill] sm:$0xff]  ;;  %v10686_v3 = vld [vmem:[#allocation57_spill] sm:$0xff] }
 0x240   :  { %7434 = vtanh.f32 %v8363_v4  ;;  %v978_v9 = vadd.f32 %v5755_v19, %v903_v29  ;;  %v980_v26 = vadd.f32 %v5757_v25, %v974_v8  ;;  %v1486_v19 = vld [vmem:[%s10382_s1 + $0x20] sm:$0xff]  ;;  %v8429_v29 = vpack.c.bf16 %v1489_v5, %v1485_v53  ;;  %v1484_v8 = vld [vmem:[%s10382_s1 + $0x10] sm:$0xff]  ;;  %v1493_v25 = vld [vmem:[%s10382_s1 + $0x58] sm:$0xff] }
 0x241   :  { %v5758_v14 = vmul.f32 -1.442695, %v977_v63 }
 0x242   :  { %v5759_v17 = vmul.f32 -1.442695, %v978_v9  ;;  %v5760_v42 = vmul.f32 -1.442695, %v980_v26  ;;  %v1488_v9 = vld [vmem:[%s10382_s1 + $0x30] sm:$0xff]  ;;  %v1497_v26 = vld [vmem:[%s10382_s1 + $0x78] sm:$0xff] }
 0x243   :  { %7436 = vpow2.f32 %v5758_v14  ;;  %v1491_v14 = vld [vmem:[%s10382_s1 + $0x48] sm:$0xff] }
 0x244   :  { %7438 = vpow2.f32 %v5759_v17  ;;  %v1495_v17 = vld [vmem:[%s10382_s1 + $0x68] sm:$0xff] }
 0x245   :  { %7440 = vpow2.f32 %v5760_v42  ;;  %v10688_v42 = vld [vmem:[#allocation59_spill] sm:$0xff] }
 0x246   :  { %7442 = vtanh.f32 %v979_v45 }
 0x24a   :  { %v7435_v37 = vpop.eup %7434 }
 0x24b   :  { %v761_v46 = vmul.f32 %v7435_v37, %v7433_v33  ;;  %v10687_v37 = vld [vmem:[#allocation58_spill] sm:$0xff] }
 0x24d   :  { %v7437_v48 = vpop.eup %7436  ;;  %764 = vst [vmem:[%s10386_s5] sm:$0xff] %v761_v46  ;;  %1202 = vmatmul.mubr.f32.vlgmr.msra.gmra.mrb[6].mxu0 %v761_v46  ;;  %1273 = vmatmul.mubr.f32.vlgmr.msra.gmra.mrb[6].mxu1 %v761_v46  ;;  %v8453_v46 = vpack.c.bf16 %v1488_v9, %v1484_v8  ;;  %v1523_v8 = vld [vmem:[%s10382_s1 + $0x148] sm:$0xff] }
 0x24e   :  { %v7439_v52 = vpop.eup %7438  ;;  %v985_v55 = vadd.f32 1.0, %v7437_v48  ;;  %6154 = vmatpush1.bf16.msra.mxu0 %v10661_v58  ;;  %6186 = vmatpush1.bf16.msra.mxu1 %v10662_v62  ;;  %v1490_v48 = vld [vmem:[%s10382_s1 + $0x40] sm:$0xff]  ;;  %v8465_v58 = vpack.c.bf16 %v1495_v17, %v1491_v14  ;;  %v8467_v62 = vpack.c.bf16 %v1497_v26, %v1493_v25  ;;  %v1527_v9 = vld [vmem:[%s10382_s1 + $0x168] sm:$0xff]  ;;  %v1525_v14 = vld [vmem:[%s10382_s1 + $0x158] sm:$0xff] }
 0x24f   :  { %v991_v1 = vadd.f32 1.0, %v7439_v52  ;;  %6156 = vmatprep.subr.bf16.mxu0 %v10663_v7  ;;  %6188 = vmatprep.subr.bf16.mxu1 %v10664_v10  ;;  %v7441_v61 = vpop.eup %7440  ;;  %v1494_v52 = vld [vmem:[%s10382_s1 + $0x60] sm:$0xff]  ;;  %v1496_v7 = vld [vmem:[%s10382_s1 + $0x70] sm:$0xff]  ;;  %v1499_v10 = vld [vmem:[%s10382_s1 + $0x88] sm:$0xff] }
 0x250   :  { %7444 = vrcp.f32 %v985_v55  ;;  %1343 = vmatprep.mubr.f32.mxu0 %v10609_v36  ;;  %1414 = vmatprep.mubr.f32.mxu1 %v10609_v36  ;;  %v7443_v2 = vpop.eup %7442  ;;  %v998_v50 = vadd.f32 1.0, %v7441_v61  ;;  %v1529_v17 = vld [vmem:[%s10382_s1 + $0x178] sm:$0xff] }
 0x251   :  { %7446 = vrcp.f32 %v991_v1  ;;  %v1492_v1 = vld [vmem:[%s10382_s1 + $0x50] sm:$0xff] }
 0x252   :  { %6158 = vmatpush1.bf16.msra.mxu0 %v10665_v15  ;;  %6190 = vmatpush1.bf16.msra.mxu1 %v10666_v18  ;;  %7448 = vrcp.f32 %v998_v50  ;;  %v1503_v15 = vld [vmem:[%s10382_s1 + $0xa8] sm:$0xff]  ;;  %v1501_v18 = vld [vmem:[%s10382_s1 + $0x98] sm:$0xff] }
 0x253   :  { %6160 = vmatprep.subr.bf16.mxu0 %v10667_v27  ;;  %6192 = vmatprep.subr.bf16.mxu1 %v10668_v34  ;;  %v1505_v27 = vld [vmem:[%s10382_s1 + $0xb8] sm:$0xff]  ;;  %v8491_v34 = vpack.c.bf16 %v1494_v52, %v1490_v48  ;;  %v1524_v48 = vld [vmem:[%s10382_s1 + $0x150] sm:$0xff] }
 0x254   :  { %v8505_v61 = vpack.c.bf16 %v1505_v27, %v1501_v18  ;;  %v1528_v52 = vld [vmem:[%s10382_s1 + $0x170] sm:$0xff] }
 0x255   :  { %v8639_v27 = vpack.c.bf16 %v1528_v52, %v1524_v48  ;;  %v1788_v48 = vld [vmem:[#allocation8 + $0x20] sm:$0xff] }
 0x256   :  { %6162 = vmatpush1.bf16.msra.mxu0 %v10669_v41  ;;  %6194 = vmatpush1.bf16.msra.mxu1 %v10670_v43  ;;  %v8493_v41 = vpack.c.bf16 %v1496_v7, %v1492_v1  ;;  %v1498_v43 = vld [vmem:[%s10382_s1 + $0x80] sm:$0xff]  ;;  %v1531_v1 = vld [vmem:[%s10382_s1 + $0x188] sm:$0xff] }
 0x257   :  { %6164 = vmatprep.subr.bf16.mxu0 %v10671_v47  ;;  %6196 = vmatprep.subr.bf16.mxu1 %v10672_v60  ;;  %v1502_v47 = vld [vmem:[%s10382_s1 + $0xa0] sm:$0xff]  ;;  %v8503_v60 = vpack.c.bf16 %v1503_v15, %v1499_v10  ;;  %v1535_v7 = vld [vmem:[%s10382_s1 + $0x1a8] sm:$0xff]  ;;  %v1533_v10 = vld [vmem:[%s10382_s1 + $0x198] sm:$0xff] }
 0x258   :  { %v8529_v50 = vpack.c.bf16 %v1502_v47, %v1498_v43  ;;  %v1537_v15 = vld [vmem:[%s10382_s1 + $0x1b8] sm:$0xff]  ;;  %v1530_v43 = vld [vmem:[%s10382_s1 + $0x180] sm:$0xff] }
 0x259   :  { %v1534_v47 = vld [vmem:[%s10382_s1 + $0x1a0] sm:$0xff] }
 0x25a   :  { %v7445_v6 = vpop.eup %7444  ;;  %6166 = vmatpush1.bf16.msra.mxu0 %v10673_v20  ;;  %6198 = vmatpush1.bf16.msra.mxu1 %v10674_v21  ;;  %v1507_v20 = vld [vmem:[%s10382_s1 + $0xc8] sm:$0xff] }
 0x25b   :  { %v7447_v28 = vpop.eup %7446  ;;  %v1002_v49 = vmul.f32 %v7445_v6, %v7443_v2  ;;  %6168 = vmatprep.subr.bf16.mxu0 %v10675_v54  ;;  %6200 = vmatprep.subr.bf16.mxu1 %v10676_v59  ;;  %v1500_v2 = vld [vmem:[%s10382_s1 + $0x90] sm:$0xff]  ;;  %v1511_v21 = vld [vmem:[%s10382_s1 + $0xe8] sm:$0xff]  ;;  %v1506_v59 = vld [vmem:[%s10382_s1 + $0xc0] sm:$0xff] }
 0x25c   :  { %v1001_v16 = vmul.f32 %v7447_v28, %v8271_v0  ;;  %v1483_v0 = vld [vmem:[%s10382_s1 + $0x8] sm:$0xff]  ;;  %v7449_v30 = vpop.eup %7448  ;;  %v1504_v6 = vld [vmem:[%s10382_s1 + $0xb0] sm:$0xff]  ;;  %v1509_v28 = vld [vmem:[%s10382_s1 + $0xd8] sm:$0xff] }
 0x25d   :  { %v8427_v63 = vpack.c.bf16 %v1487_v11, %v1483_v0  ;;  %v8531_v54 = vpack.c.bf16 %v1504_v6, %v1500_v2  ;;  %v1517_v0 = vld [vmem:[%s10382_s1 + $0x118] sm:$0xff]  ;;  %v8649_v2 = vpack.c.bf16 %v1535_v7, %v1531_v1  ;;  %v8651_v6 = vpack.c.bf16 %v1537_v15, %v1533_v10  ;;  %v1786_v7 = vld [vmem:[#allocation8 + $0x10] sm:$0xff]  ;;  %v1793_v15 = vld [vmem:[#allocation8 + $0x48] sm:$0xff] }
 0x25e   :  { %v8394_v32 = vadd.f32 %v1002_v49, %v1001_v16  ;;  %6170 = vmatpush1.bf16.msra.mxu0 %v10677_v44  ;;  %6202 = vmatpush1.bf16.msra.mxu1 %v10678_v12  ;;  %v1513_v49 = vld [vmem:[%s10382_s1 + $0xf8] sm:$0xff]  ;;  %v1510_v16 = vld [vmem:[%s10382_s1 + $0xe0] sm:$0xff]  ;;  %v8541_v44 = vpack.c.bf16 %v1511_v21, %v1507_v20  ;;  %v1532_v20 = vld [vmem:[%s10382_s1 + $0x190] sm:$0xff] }
 0x25f   :  { %6172 = vmatprep.subr.bf16.mxu0 %v10679_v22  ;;  %6204 = vmatprep.subr.bf16.mxu1 %v10680_v23  ;;  %v8543_v12 = vpack.c.bf16 %v1513_v49, %v1509_v28  ;;  %v1508_v22 = vld [vmem:[%s10382_s1 + $0xd0] sm:$0xff]  ;;  %v1521_v11 = vld [vmem:[%s10382_s1 + $0x138] sm:$0xff]  ;;  %v8565_v53 = vpack.c.bf16 %v1510_v16, %v1506_v59  ;;  %v1539_v28 = vld [vmem:[%s10382_s1 + $0x1c8] sm:$0xff] }
 0x260   :  { %7450 = vtanh.f32 %v8394_v32  ;;  %v1512_v23 = vld [vmem:[%s10382_s1 + $0xf0] sm:$0xff]  ;;  %v1543_v49 = vld [vmem:[%s10382_s1 + $0x1e8] sm:$0xff]  ;;  %v1541_v59 = vld [vmem:[%s10382_s1 + $0x1d8] sm:$0xff] }
 0x261   :  { %v8567_v5 = vpack.c.bf16 %v1512_v23, %v1508_v22  ;;  %v1536_v21 = vld [vmem:[%s10382_s1 + $0x1b0] sm:$0xff]  ;;  %v1545_v16 = vld [vmem:[%s10382_s1 + $0x1f8] sm:$0xff]  ;;  %v8673_v22 = vpack.c.bf16 %v1534_v47, %v1530_v43  ;;  %v1797_v43 = vld [vmem:[#allocation8 + $0x68] sm:$0xff] }
 0x262   :  { %6174 = vmatpush1.bf16.msra.mxu0 %v10681_v39  ;;  %6206 = vmatpush1.bf16.msra.mxu1 %v10682_v57  ;;  %v1515_v39 = vld [vmem:[%s10382_s1 + $0x108] sm:$0xff]  ;;  %v8675_v23 = vpack.c.bf16 %v1536_v21, %v1532_v20  ;;  %v1790_v10 = vld [vmem:[#allocation8 + $0x30] sm:$0xff]  ;;  %v1795_v47 = vld [vmem:[#allocation8 + $0x58] sm:$0xff]  ;;  %v8721_v20 = vpack.c.bf16 %v1797_v43, %v1793_v15 }
 0x263   :  { %6176 = vmatprep.subr.bf16.mxu0 %v8231_v40  ;;  %6208 = vmatprep.subr.bf16.mxu1 %v8234_v56  ;;  %v10684_v40 = vld [vmem:[#allocation55_spill] sm:$0xff]  ;;  %v1482_v56 = vld [vmem:[%s10382_s1] sm:$0xff]  ;;  %v1519_v57 = vld [vmem:[%s10382_s1 + $0x128] sm:$0xff] }
 0x264   :  { %v8451_v45 = vpack.c.bf16 %v1486_v19, %v1482_v56  ;;  %v8577_v56 = vpack.c.bf16 %v1519_v57, %v1515_v39  ;;  %v8579_v19 = vpack.c.bf16 %v1521_v11, %v1517_v0  ;;  %v1538_v39 = vld [vmem:[%s10382_s1 + $0x1c0] sm:$0xff]  ;;  %v8682_v57 = vpack.c.bf16 %v1543_v49, %v1539_v28  ;;  %10692 = vst [vmem:[#allocation19_spill] sm:$0xff] %v8721_v20  ;;  %v1799_v21 = vld [vmem:[#allocation8 + $0x78] sm:$0xff]  ;;  %v1802_v15 = vld [vmem:[#allocation8 + $0x90] sm:$0xff] }
 0x265   :  { %v8684_v0 = vpack.c.bf16 %v1545_v16, %v1541_v59  ;;  %v1542_v11 = vld [vmem:[%s10382_s1 + $0x1e0] sm:$0xff]  ;;  %v8723_v59 = vpack.c.bf16 %v1799_v21, %v1795_v47  ;;  %v1806_v43 = vld [vmem:[#allocation8 + $0xb0] sm:$0xff]  ;;  %v1809_v21 = vld [vmem:[#allocation8 + $0xc8] sm:$0xff] }
 0x266   :  { %6178 = vmatpush1.bf16.msra.mxu0 %v10683_v13  ;;  %6210 = vmatpush1.bf16.msra.mxu1 %v10684_v40  ;;  %v1514_v13 = vld [vmem:[%s10382_s1 + $0x100] sm:$0xff]  ;;  %v8740_v47 = vpack.c.bf16 %v1806_v43, %v1802_v15  ;;  %v1817_v43 = vld [vmem:[#allocation8 + $0x108] sm:$0xff] }
 0x267   :  { %6180 = vmatprep.subr.bf16.mxu0 %v10685_v38  ;;  %6212 = vmatprep.subr.bf16.mxu1 %v10686_v3  ;;  %v1518_v40 = vld [vmem:[%s10382_s1 + $0x120] sm:$0xff]  ;;  %v1516_v38 = vld [vmem:[%s10382_s1 + $0x110] sm:$0xff]  ;;  %10693 = vst [vmem:[#allocation20_spill] sm:$0xff] %v8723_v59 }
 0x268   :  { %v1520_v3 = vld [vmem:[%s10382_s1 + $0x130] sm:$0xff]  ;;  %v8601_v25 = vpack.c.bf16 %v1518_v40, %v1514_v13  ;;  %v1792_v28 = vld [vmem:[#allocation8 + $0x40] sm:$0xff]  ;;  %10699 = vst [vmem:[#allocation26_spill] sm:$0xff] %v8740_v47 }
 0x269   :  { %v8603_v26 = vpack.c.bf16 %v1520_v3, %v1516_v38  ;;  %v1540_v13 = vld [vmem:[%s10382_s1 + $0x1d0] sm:$0xff]  ;;  %v8697_v38 = vpack.c.bf16 %v1542_v11, %v1538_v39  ;;  %v1796_v49 = vld [vmem:[#allocation8 + $0x60] sm:$0xff] }
 0x26a   :  { %v7451_v33 = vpop.eup %7450  ;;  %6182 = vmatpush1.bf16.msra.mxu0 %v10687_v37  ;;  %6214 = vmatpush1.bf16.msra.mxu1 %v10688_v42  ;;  %v8613_v37 = vpack.c.bf16 %v1527_v9, %v1523_v8  ;;  %v8615_v42 = vpack.c.bf16 %v1529_v17, %v1525_v14  ;;  %v1544_v40 = vld [vmem:[%s10382_s1 + $0x1f0] sm:$0xff]  ;;  %v1785_v8 = vld [vmem:[#allocation8 + $0x8] sm:$0xff]  ;;  %v1787_v14 = vld [vmem:[#allocation8 + $0x18] sm:$0xff]  ;;  %v8725_v16 = vpack.c.bf16 %v1796_v49, %v1792_v28 }
 0x26b   :  { %v8461_v55 = vmul.f32 %v7451_v33, %v7449_v30  ;;  %6216 = vmatprep.subr.bf16.mxu0 %v8427_v63  ;;  %6248 = vmatprep.subr.bf16.mxu1 %v8429_v29  ;;  %v1522_v30 = vld [vmem:[%s10382_s1 + $0x140] sm:$0xff]  ;;  %v8699_v3 = vpack.c.bf16 %v1544_v40, %v1540_v13  ;;  %v1789_v9 = vld [vmem:[#allocation8 + $0x28] sm:$0xff]  ;;  %v1794_v39 = vld [vmem:[#allocation8 + $0x50] sm:$0xff] }
 0x26c   :  { %v1526_v33 = vld [vmem:[%s10382_s1 + $0x160] sm:$0xff]  ;;  %v8709_v17 = vpack.c.bf16 %v1789_v9, %v1785_v8  ;;  %10694 = vst [vmem:[#allocation21_spill] sm:$0xff] %v8725_v16  ;;  %v1798_v11 = vld [vmem:[#allocation8 + $0x70] sm:$0xff]  ;;  %v1801_v40 = vld [vmem:[#allocation8 + $0x88] sm:$0xff] }
 0x26d   :  { %1344 = vmatmul.mubr.f32.vlgmr.msra.gmra.mrb[6].mxu0 %v8461_v55  ;;  %1415 = vmatmul.mubr.f32.vlgmr.msra.gmra.mrb[6].mxu1 %v8461_v55  ;;  %v8637_v18 = vpack.c.bf16 %v1526_v33, %v1522_v30  ;;  %v1791_v30 = vld [vmem:[#allocation8 + $0x38] sm:$0xff]  ;;  %v1784_v33 = vld [vmem:[#allocation8] sm:$0xff]  ;;  %v8728_v13 = vpack.c.bf16 %v1798_v11, %v1794_v39  ;;  %v1805_v8 = vld [vmem:[#allocation8 + $0xa8] sm:$0xff] }
 0x26e   :  { %6218 = vmatpush1.bf16.msra.mxu0 %v8451_v45  ;;  %6250 = vmatpush1.bf16.msra.mxu1 %v8453_v46  ;;  %v8711_v52 = vpack.c.bf16 %v1791_v30, %v1787_v14  ;;  %v8713_v1 = vpack.c.bf16 %v1788_v48, %v1784_v33  ;;  %v1803_v9 = vld [vmem:[#allocation8 + $0x98] sm:$0xff]  ;;  %v8733_v14 = vpack.c.bf16 %v1805_v8, %v1801_v40  ;;  %v1800_v33 = vld [vmem:[#allocation8 + $0x80] sm:$0xff]  ;;  %v1813_v28 = vld [vmem:[#allocation8 + $0xe8] sm:$0xff] }
 0x26f   :  { %6220 = vmatprep.subr.bf16.mxu0 %v8465_v58  ;;  %6252 = vmatprep.subr.bf16.mxu1 %v8467_v62  ;;  %10695 = vst [vmem:[#allocation22_spill] sm:$0xff] %v8728_v13  ;;  %v1807_v30 = vld [vmem:[#allocation8 + $0xb8] sm:$0xff]  ;;  %v1804_v48 = vld [vmem:[#allocation8 + $0xa0] sm:$0xff]  ;;  %v8745_v39 = vpack.c.bf16 %v1813_v28, %v1809_v21  ;;  %v1821_v21 = vld [vmem:[#allocation8 + $0x128] sm:$0xff] }
 0x270   :  { %1610 = vmatprep.mubr.f32.mxu0 %v10609_v36  ;;  %1681 = vmatprep.mubr.f32.mxu1 %v10609_v36  ;;  %10689 = vst [vmem:[#allocation14_spill] sm:$0xff] %v8711_v52  ;;  %10690 = vst [vmem:[#allocation17_spill] sm:$0xff] %v8713_v1  ;;  %v1811_v49 = vld [vmem:[#allocation8 + $0xd8] sm:$0xff]  ;;  %v1808_v40 = vld [vmem:[#allocation8 + $0xc0] sm:$0xff] }
 0x271   :  { %10696 = vst [vmem:[#allocation23_spill] sm:$0xff] %v8733_v14  ;;  %10700 = vst [vmem:[#allocation27_spill] sm:$0xff] %v8745_v39  ;;  %v1815_v11 = vld [vmem:[#allocation8 + $0xf8] sm:$0xff]  ;;  %v1812_v8 = vld [vmem:[#allocation8 + $0xe0] sm:$0xff] }
 0x272   :  { %6222 = vmatpush1.bf16.msra.mxu0 %v8491_v34  ;;  %6254 = vmatpush1.bf16.msra.mxu1 %v8493_v41  ;;  %v1819_v28 = vld [vmem:[#allocation8 + $0x118] sm:$0xff] }
 0x273   :  { %6224 = vmatprep.subr.bf16.mxu0 %v8503_v60  ;;  %6256 = vmatprep.subr.bf16.mxu1 %v8505_v61 }
 0x276   :  { %6226 = vmatpush1.bf16.msra.mxu0 %v8529_v50  ;;  %6258 = vmatpush1.bf16.msra.mxu1 %v8531_v54 }
 0x277   :  { %6228 = vmatprep.subr.bf16.mxu0 %v8541_v44  ;;  %6260 = vmatprep.subr.bf16.mxu1 %v8543_v12 }
 0x27a   :  { %6230 = vmatpush1.bf16.msra.mxu0 %v8565_v53  ;;  %6262 = vmatpush1.bf16.msra.mxu1 %v8567_v5 }
 0x27b   :  { %6232 = vmatprep.subr.bf16.mxu0 %v8577_v56  ;;  %6264 = vmatprep.subr.bf16.mxu1 %v8579_v19 }
 0x27e   :  { %6234 = vmatpush1.bf16.msra.mxu0 %v8601_v25  ;;  %6266 = vmatpush1.bf16.msra.mxu1 %v8603_v26 }
 0x27f   :  { %6236 = vmatprep.subr.bf16.mxu0 %v8613_v37  ;;  %6268 = vmatprep.subr.bf16.mxu1 %v8615_v42 }
 0x282   :  { %6238 = vmatpush1.bf16.msra.mxu0 %v8637_v18  ;;  %6270 = vmatpush1.bf16.msra.mxu1 %v8639_v27 }
 0x283   :  { %6240 = vmatprep.subr.bf16.mxu0 %v8649_v2  ;;  %6272 = vmatprep.subr.bf16.mxu1 %v8651_v6 }
 0x286   :  { %6242 = vmatpush1.bf16.msra.mxu0 %v8673_v22  ;;  %6274 = vmatpush1.bf16.msra.mxu1 %v8675_v23 }
 0x287   :  { %6244 = vmatprep.subr.bf16.mxu0 %v8682_v57  ;;  %6276 = vmatprep.subr.bf16.mxu1 %v8684_v0 }
 0x28a   :  { %6246 = vmatpush1.bf16.msra.mxu0 %v8697_v38  ;;  %6278 = vmatpush1.bf16.msra.mxu1 %v8699_v3 }
 0x28b   :  { %6280 = vmatprep.subr.bf16.mxu0 %v8709_v17  ;;  %6312 = vmatprep.subr.bf16.mxu1 %v8711_v52 }
 0x28d   :  { %1611 = vmatmul.mubr.f32.vlgmr.msra.gmra.mrb[8].mxu0 %v8461_v55  ;;  %1682 = vmatmul.mubr.f32.vlgmr.msra.gmra.mrb[8].mxu1 %v8461_v55  ;;  %v8716_v55 = vpack.c.bf16 %v1790_v10, %v1786_v7  ;;  %v8735_v7 = vpack.c.bf16 %v1807_v30, %v1803_v9  ;;  %v8737_v10 = vpack.c.bf16 %v1804_v48, %v1800_v33  ;;  %v1810_v33 = vld [vmem:[#allocation8 + $0xd0] sm:$0xff] }
 0x28e   :  { %1912 = vmatprep.mubr.f32.mxu0 %v10609_v36  ;;  %1983 = vmatprep.mubr.f32.mxu1 %v10609_v36  ;;  %v8747_v9 = vpack.c.bf16 %v1815_v11, %v1811_v49  ;;  %v8749_v30 = vpack.c.bf16 %v1812_v8, %v1808_v40  ;;  %v1814_v48 = vld [vmem:[#allocation8 + $0xf0] sm:$0xff]  ;;  %v1823_v49 = vld [vmem:[#allocation8 + $0x138] sm:$0xff]  ;;  %v1816_v11 = vld [vmem:[#allocation8 + $0x100] sm:$0xff] }
 0x28f   :  { %10691 = vst [vmem:[#allocation18_spill] sm:$0xff] %v8716_v55  ;;  %6282 = vmatpush1.bf16.msra.mxu0 %v8713_v1  ;;  %6314 = vmatpush1.bf16.msra.mxu1 %v8716_v55  ;;  %10697 = vst [vmem:[#allocation24_spill] sm:$0xff] %v8735_v7  ;;  %v8752_v15 = vpack.c.bf16 %v1814_v48, %v1810_v33  ;;  %v1820_v40 = vld [vmem:[#allocation8 + $0x120] sm:$0xff]  ;;  %v8759_v8 = vpack.c.bf16 %v1823_v49, %v1819_v28  ;;  %v1818_v33 = vld [vmem:[#allocation8 + $0x110] sm:$0xff] }
 0x290   :  { %6284 = vmatprep.subr.bf16.mxu0 %v8721_v20  ;;  %6316 = vmatprep.subr.bf16.mxu1 %v8723_v59  ;;  %10698 = vst [vmem:[#allocation25_spill] sm:$0xff] %v8737_v10  ;;  %10701 = vst [vmem:[#allocation28_spill] sm:$0xff] %v8747_v9  ;;  %v1822_v48 = vld [vmem:[#allocation8 + $0x130] sm:$0xff]  ;;  %v1827_v28 = vld [vmem:[#allocation8 + $0x158] sm:$0xff] }
 0x291   :  { %10702 = vst [vmem:[#allocation29_spill] sm:$0xff] %v8749_v30  ;;  %10703 = vst [vmem:[#allocation30_spill] sm:$0xff] %v8752_v15  ;;  %v1831_v49 = vld [vmem:[#allocation8 + $0x178] sm:$0xff]  ;;  %v1736_v59 = vld [vmem:[#allocation6 + $0x88] sm:$0xff] }
 0x292   :  { %10705 = vst [vmem:[#allocation32_spill] sm:$0xff] %v8759_v8  ;;  %v1740_v20 = vld [vmem:[#allocation6 + $0xa8] sm:$0xff]  ;;  %v1738_v55 = vld [vmem:[#allocation6 + $0x98] sm:$0xff] }
 0x293   :  { %6286 = vmatpush1.bf16.msra.mxu0 %v8725_v16  ;;  %6318 = vmatpush1.bf16.msra.mxu1 %v8728_v13  ;;  %v1729_v13 = vld [vmem:[#allocation6 + $0x50] sm:$0xff]  ;;  %v1742_v1 = vld [vmem:[#allocation6 + $0xb8] sm:$0xff] }
 0x294   :  { %6288 = vmatprep.subr.bf16.mxu0 %v8733_v14  ;;  %6320 = vmatprep.subr.bf16.mxu1 %v8735_v7  ;;  %v1840_v14 = vld [vmem:[#allocation8 + $0x1c0] sm:$0xff]  ;;  %v1733_v16 = vld [vmem:[#allocation6 + $0x70] sm:$0xff] }
 0x297   :  { %6290 = vmatpush1.bf16.msra.mxu0 %v8737_v10  ;;  %6322 = vmatpush1.bf16.msra.mxu1 %v8740_v47  ;;  %v8757_v47 = vpack.c.bf16 %v1821_v21, %v1817_v43  ;;  %v8761_v10 = vpack.c.bf16 %v1820_v40, %v1816_v11  ;;  %v1829_v43 = vld [vmem:[#allocation8 + $0x168] sm:$0xff]  ;;  %v8771_v11 = vpack.c.bf16 %v1831_v49, %v1827_v28  ;;  %v1824_v40 = vld [vmem:[#allocation8 + $0x140] sm:$0xff] }
 0x298   :  { %6292 = vmatprep.subr.bf16.mxu0 %v8745_v39  ;;  %6324 = vmatprep.subr.bf16.mxu1 %v8747_v9  ;;  %v8764_v9 = vpack.c.bf16 %v1822_v48, %v1818_v33  ;;  %v1826_v33 = vld [vmem:[#allocation8 + $0x150] sm:$0xff]  ;;  %v1839_v39 = vld [vmem:[#allocation8 + $0x1b8] sm:$0xff]  ;;  %v1832_v28 = vld [vmem:[#allocation8 + $0x180] sm:$0xff] }
 0x299   :  { %10704 = vst [vmem:[#allocation31_spill] sm:$0xff] %v8757_v47  ;;  %10706 = vst [vmem:[#allocation33_spill] sm:$0xff] %v8761_v10  ;;  %v1830_v48 = vld [vmem:[#allocation8 + $0x170] sm:$0xff]  ;;  %v1836_v49 = vld [vmem:[#allocation8 + $0x1a0] sm:$0xff] }
 0x29a   :  { %10707 = vst [vmem:[#allocation34_spill] sm:$0xff] %v8764_v9  ;;  %10709 = vst [vmem:[#allocation36_spill] sm:$0xff] %v8771_v11  ;;  %v8785_v7 = vpack.c.bf16 %v1836_v49, %v1832_v28  ;;  %v1842_v28 = vld [vmem:[#allocation8 + $0x1d0] sm:$0xff] }
 0x29b   :  { %6294 = vmatpush1.bf16.msra.mxu0 %v8749_v30  ;;  %6326 = vmatpush1.bf16.msra.mxu1 %v8752_v15  ;;  %v1825_v15 = vld [vmem:[#allocation8 + $0x148] sm:$0xff]  ;;  %v1846_v49 = vld [vmem:[#allocation8 + $0x1f0] sm:$0xff] }
 0x29c   :  { %6296 = vmatprep.subr.bf16.mxu0 %v8757_v47  ;;  %6328 = vmatprep.subr.bf16.mxu1 %v8759_v8  ;;  %v8769_v21 = vpack.c.bf16 %v1829_v43, %v1825_v15  ;;  %v1828_v47 = vld [vmem:[#allocation8 + $0x160] sm:$0xff]  ;;  %v1833_v30 = vld [vmem:[#allocation8 + $0x188] sm:$0xff]  ;;  %v1835_v15 = vld [vmem:[#allocation8 + $0x198] sm:$0xff]  ;;  %10714 = vst [vmem:[#allocation41_spill] sm:$0xff] %v8785_v7 }
 0x29d   :  { %v8775_v8 = vpack.c.bf16 %v1828_v47, %v1824_v40  ;;  %v1834_v47 = vld [vmem:[#allocation8 + $0x190] sm:$0xff] }
 0x29e   :  { %10708 = vst [vmem:[#allocation35_spill] sm:$0xff] %v8769_v21  ;;  %v1838_v40 = vld [vmem:[#allocation8 + $0x1b0] sm:$0xff] }
 0x29f   :  { %6298 = vmatpush1.bf16.msra.mxu0 %v8761_v10  ;;  %6330 = vmatpush1.bf16.msra.mxu1 %v8764_v9  ;;  %10710 = vst [vmem:[#allocation37_spill] sm:$0xff] %v8775_v8  ;;  %v8777_v10 = vpack.c.bf16 %v1830_v48, %v1826_v33  ;;  %v1837_v9 = vld [vmem:[#allocation8 + $0x1a8] sm:$0xff]  ;;  %v8788_v33 = vpack.c.bf16 %v1838_v40, %v1834_v47  ;;  %v1843_v48 = vld [vmem:[#allocation8 + $0x1d8] sm:$0xff] }
 0x2a0   :  { %6300 = vmatprep.subr.bf16.mxu0 %v8769_v21  ;;  %6332 = vmatprep.subr.bf16.mxu1 %v8771_v11  ;;  %v8779_v43 = vpack.c.bf16 %v1837_v9, %v1833_v30  ;;  %v8783_v21 = vpack.c.bf16 %v1839_v39, %v1835_v15  ;;  %v1841_v9 = vld [vmem:[#allocation8 + $0x1c8] sm:$0xff]  ;;  %v8800_v47 = vpack.c.bf16 %v1846_v49, %v1842_v28 }
 0x2a1   :  { %10711 = vst [vmem:[#allocation38_spill] sm:$0xff] %v8777_v10  ;;  %10715 = vst [vmem:[#allocation42_spill] sm:$0xff] %v8788_v33  ;;  %v1845_v30 = vld [vmem:[#allocation8 + $0x1e8] sm:$0xff] }
 0x2a2   :  { %10712 = vst [vmem:[#allocation39_spill] sm:$0xff] %v8779_v43  ;;  %10713 = vst [vmem:[#allocation40_spill] sm:$0xff] %v8783_v21  ;;  %v8791_v11 = vpack.c.bf16 %v1845_v30, %v1841_v9  ;;  %v1720_v40 = vld [vmem:[#allocation6 + $0x8] sm:$0xff]  ;;  %v1722_v30 = vld [vmem:[#allocation6 + $0x18] sm:$0xff] }
 0x2a3   :  { %6302 = vmatpush1.bf16.msra.mxu0 %v8775_v8  ;;  %6334 = vmatpush1.bf16.msra.mxu1 %v8777_v10  ;;  %v1847_v8 = vld [vmem:[#allocation8 + $0x1f8] sm:$0xff]  ;;  %v1844_v10 = vld [vmem:[#allocation8 + $0x1e0] sm:$0xff]  ;;  %10719 = vst [vmem:[#allocation46_spill] sm:$0xff] %v8800_v47  ;;  %v1724_v9 = vld [vmem:[#allocation6 + $0x28] sm:$0xff] }
 0x2a4   :  { %6304 = vmatprep.subr.bf16.mxu0 %v8779_v43  ;;  %6336 = vmatprep.subr.bf16.mxu1 %v8783_v21  ;;  %10716 = vst [vmem:[#allocation43_spill] sm:$0xff] %v8791_v11  ;;  %v8795_v39 = vpack.c.bf16 %v1847_v8, %v1843_v48  ;;  %v8797_v15 = vpack.c.bf16 %v1844_v10, %v1840_v14  ;;  %v1421_v10 = vld [vmem:[%s10385_s4] sm:$0xf] }
 0x2a5   :  { %v8803_v21 = vpack.c.bf16 %v1724_v9, %v1720_v40  ;;  %v1426_v8 = vrot.slane %v1421_v10, %v8342_v24  ;;  %v1430_v48 = vrot.slane %v1421_v10, %v8347_v31 }
 0x2a6   :  { %10717 = vst [vmem:[#allocation44_spill] sm:$0xff] %v8795_v39  ;;  %10718 = vst [vmem:[#allocation45_spill] sm:$0xff] %v8797_v15 }
 0x2a7   :  { %6306 = vmatpush1.bf16.msra.mxu0 %v8785_v7  ;;  %6338 = vmatpush1.bf16.msra.mxu1 %v8788_v33  ;;  %10720 = vst [vmem:[#allocation47_spill] sm:$0xff] %v8803_v21  ;;  %v1726_v7 = vld [vmem:[#allocation6 + $0x38] sm:$0xff] }
 0x2a8   :  { %6308 = vmatprep.subr.bf16.mxu0 %v8791_v11  ;;  %6340 = vmatprep.subr.bf16.mxu1 %v8795_v39  ;;  %v8807_v14 = vpack.c.bf16 %v1726_v7, %v1722_v30  ;;  %v1434_v39 = vrot.slane %v1421_v10, %v8354_v35 }
 0x2aa   :  { %10721 = vst [vmem:[#allocation48_spill] sm:$0xff] %v8807_v14 }
 0x2ab   :  { %6310 = vmatpush1.bf16.msra.mxu0 %v8797_v15  ;;  %6342 = vmatpush1.bf16.msra.mxu1 %v8800_v47 }
 0x2ac   :  { %6344 = vmatprep.subr.bf16.mxu0 %v8803_v21  ;;  %6376 = vmatprep.subr.bf16.mxu1 %v8807_v14  ;;  %v1438_v21 = vrot.slane %v1421_v10, %v8351_v51 }
 0x340   :  { %v1345_v28 = vpop.f32.mrb[6].mxu0  ;;  %v1416_v49 = vpop.f32.mrb[6].mxu1 }
 0x341   :  { %v1443_v40 = vadd.f32 %v1426_v8, %v1345_v28  ;;  %v1347_v9 = vpop.f32.mrb[7].mxu0  ;;  %v1418_v15 = vpop.f32.mrb[7].mxu1  ;;  %v1445_v33 = vadd.f32 %v1434_v39, %v1416_v49  ;;  %v5765_v39 = vld [vmem:[%s10381_s0 + $0x40] sm:$0xff] }
 0x342   :  { %v1444_v47 = vadd.f32 %v1430_v48, %v1347_v9  ;;  %v1446_v14 = vadd.f32 %v1438_v21, %v1418_v15 }
 0x343   :  { %v5761_v7 = vmul.f32 -1.442695, %v1443_v40 }
 0x344   :  { %v5762_v30 = vmul.f32 -1.442695, %v1444_v47  ;;  %v5763_v11 = vmul.f32 -1.442695, %v1446_v14 }
 0x345   :  { %7452 = vpow2.f32 %v5761_v7 }
 0x346   :  { %7454 = vpow2.f32 %v5762_v30  ;;  %v5768_v30 = vld [vmem:[%s10381_s0 + $0x58] sm:$0xff] }
 0x347   :  { %7456 = vpow2.f32 %v5763_v11 }
 0x348   :  { %7458 = vtanh.f32 %v1445_v33 }
 0x34f   :  { %v7453_v24 = vpop.eup %7452 }
 0x350   :  { %v7455_v43 = vpop.eup %7454  ;;  %v1451_v31 = vadd.f32 1.0, %v7453_v24  ;;  %v5766_v24 = vld [vmem:[%s10381_s0 + $0x48] sm:$0xff] }
 0x351   :  { %v1457_v8 = vadd.f32 1.0, %v7455_v43  ;;  %v7457_v48 = vpop.eup %7456 }
 0x352   :  { %7460 = vrcp.f32 %v1451_v31  ;;  %v7459_v28 = vpop.eup %7458  ;;  %v1464_v7 = vadd.f32 1.0, %v7457_v48 }
 0x353   :  { %7462 = vrcp.f32 %v1457_v8  ;;  %v5767_v8 = vld [vmem:[%s10381_s0 + $0x50] sm:$0xff] }
 0x354   :  { %7464 = vrcp.f32 %v1464_v7  ;;  %v1728_v7 = vld [vmem:[#allocation6 + $0x48] sm:$0xff] }
 0x35c   :  { %v7461_v47 = vpop.eup %7460 }
 0x35d   :  { %v7463_v40 = vpop.eup %7462  ;;  %v1468_v9 = vmul.f32 %v7461_v47, %v7459_v28  ;;  %v1719_v28 = vld [vmem:[#allocation6] sm:$0xff] }
 0x35e   :  { %v1467_v21 = vmul.f32 %v7463_v40, %v8363_v4  ;;  %v1723_v47 = vld [vmem:[#allocation6 + $0x20] sm:$0xff]  ;;  %v1721_v40 = vld [vmem:[#allocation6 + $0x10] sm:$0xff] }
 0x360   :  { %v8825_v11 = vadd.f32 %v1468_v9, %v1467_v21  ;;  %v1612_v31 = vpop.f32.mrb[8].mxu0  ;;  %v1683_v43 = vpop.f32.mrb[8].mxu1  ;;  %v1725_v9 = vld [vmem:[#allocation6 + $0x30] sm:$0xff]  ;;  %v1732_v21 = vld [vmem:[#allocation6 + $0x68] sm:$0xff] }
 0x361   :  { %v1688_v33 = vadd.f32 %v5765_v39, %v1612_v31  ;;  %v1614_v15 = vpop.f32.mrb[9].mxu0  ;;  %v1685_v14 = vpop.f32.mrb[9].mxu1  ;;  %v1730_v39 = vld [vmem:[#allocation6 + $0x58] sm:$0xff]  ;;  %v1690_v35 = vadd.f32 %v5767_v8, %v1683_v43 }
 0x362   :  { %10722 = vst [vmem:[#allocation49_spill] sm:$0xff] %v8825_v11  ;;  %v1689_v10 = vadd.f32 %v5766_v24, %v1614_v15  ;;  %7466 = vtanh.f32 %v8825_v11  ;;  %v1691_v48 = vadd.f32 %v5768_v30, %v1685_v14  ;;  %v1734_v24 = vld [vmem:[#allocation6 + $0x78] sm:$0xff]  ;;  %v7465_v31 = vpop.eup %7464  ;;  %v1731_v11 = vld [vmem:[#allocation6 + $0x60] sm:$0xff]  ;;  %v8838_v14 = vpack.c.bf16 %v1732_v21, %v1728_v7  ;;  %v1737_v7 = vld [vmem:[#allocation6 + $0x90] sm:$0xff] }
 0x363   :  { %v5769_v4 = vmul.f32 -1.442695, %v1688_v33  ;;  %v8840_v30 = vpack.c.bf16 %v1734_v24, %v1730_v39  ;;  %v1741_v21 = vld [vmem:[#allocation6 + $0xb0] sm:$0xff]  ;;  %v1744_v39 = vld [vmem:[#allocation6 + $0xc8] sm:$0xff]  ;;  %v1746_v24 = vld [vmem:[#allocation6 + $0xd8] sm:$0xff] }
 0x364   :  { %v5770_v49 = vmul.f32 -1.442695, %v1689_v10  ;;  %v5771_v15 = vmul.f32 -1.442695, %v1691_v48  ;;  %v8834_v10 = vpack.c.bf16 %v1723_v47, %v1719_v28  ;;  %v8849_v28 = vpack.c.bf16 %v1733_v16, %v1729_v13  ;;  %v1735_v47 = vld [vmem:[#allocation6 + $0x80] sm:$0xff]  ;;  %v1750_v16 = vld [vmem:[#allocation6 + $0xf8] sm:$0xff] }
 0x365   :  { %7468 = vpow2.f32 %v5769_v4  ;;  %v8836_v4 = vpack.c.bf16 %v1725_v9, %v1721_v40  ;;  %10723 = vst [vmem:[#allocation50_spill] sm:$0xff] %v8840_v30  ;;  %v1739_v40 = vld [vmem:[#allocation6 + $0xa0] sm:$0xff]  ;;  %v8869_v13 = vpack.c.bf16 %v1750_v16, %v1746_v24  ;;  %v1757_v24 = vld [vmem:[#allocation6 + $0x130] sm:$0xff]  ;;  %v1760_v16 = vld [vmem:[#allocation6 + $0x148] sm:$0xff] }
 0x366   :  { %7470 = vpow2.f32 %v5770_v49  ;;  %v1727_v49 = vld [vmem:[#allocation6 + $0x40] sm:$0xff]  ;;  %10725 = vst [vmem:[#allocation52_spill] sm:$0xff] %v8849_v28 }
 0x367   :  { %7472 = vpow2.f32 %v5771_v15  ;;  %v8847_v8 = vpack.c.bf16 %v1731_v11, %v1727_v49  ;;  %v1748_v11 = vld [vmem:[#allocation6 + $0xe8] sm:$0xff]  ;;  %10731 = vst [vmem:[#allocation58_spill] sm:$0xff] %v8869_v13 }
 0x368   :  { %7474 = vtanh.f32 %v1690_v35  ;;  %v8861_v35 = vpack.c.bf16 %v1739_v40, %v1735_v47  ;;  %v1752_v15 = vld [vmem:[#allocation6 + $0x108] sm:$0xff] }
 0x369   :  { %10724 = vst [vmem:[#allocation51_spill] sm:$0xff] %v8847_v8  ;;  %v1756_v49 = vld [vmem:[#allocation6 + $0x128] sm:$0xff] }
 0x36a   :  { %10728 = vst [vmem:[#allocation55_spill] sm:$0xff] %v8861_v35 }
 0x36c   :  { %v7467_v33 = vpop.eup %7466 }
 0x36d   :  { %v1471_v51 = vmul.f32 %v7467_v33, %v7465_v31  ;;  %v1745_v31 = vld [vmem:[#allocation6 + $0xd0] sm:$0xff] }
 0x36e   :  { %v1749_v33 = vld [vmem:[#allocation6 + $0xf0] sm:$0xff] }
 0x36f   :  { %v7469_v52 = vpop.eup %7468  ;;  %5764 = vst [vmem:[%s10386_s5 + $0x8] sm:$0xff] %v1471_v51  ;;  %1913 = vmatmul.mubr.f32.vlgmr.msra.gmra.mrb[10].mxu0 %v1471_v51  ;;  %1984 = vmatmul.mubr.f32.vlgmr.msra.gmra.mrb[10].mxu1 %v1471_v51  ;;  %v8853_v51 = vpack.c.bf16 %v1740_v20, %v1736_v59  ;;  %v1747_v20 = vld [vmem:[#allocation6 + $0xe0] sm:$0xff]  ;;  %v8867_v59 = vpack.c.bf16 %v1748_v11, %v1744_v39  ;;  %v1753_v11 = vld [vmem:[#allocation6 + $0x110] sm:$0xff] }
 0x370   :  { %v7471_v48 = vpop.eup %7470  ;;  %v1696_v43 = vadd.f32 1.0, %v7469_v52  ;;  %6346 = vmatpush1.bf16.msra.mxu0 %v8834_v10  ;;  %6378 = vmatpush1.bf16.msra.mxu1 %v8836_v4  ;;  %v8855_v52 = vpack.c.bf16 %v1742_v1, %v1738_v55  ;;  %v8863_v1 = vpack.c.bf16 %v1741_v21, %v1737_v7  ;;  %v1743_v55 = vld [vmem:[#allocation6 + $0xc0] sm:$0xff]  ;;  %v8875_v40 = vpack.c.bf16 %v1749_v33, %v1745_v31 }
 0x371   :  { %v1702_v9 = vadd.f32 1.0, %v7471_v48  ;;  %6348 = vmatprep.subr.bf16.mxu0 %v8838_v14  ;;  %6380 = vmatprep.subr.bf16.mxu1 %v8840_v30  ;;  %10726 = vst [vmem:[#allocation53_spill] sm:$0xff] %v8853_v51  ;;  %10730 = vst [vmem:[#allocation57_spill] sm:$0xff] %v8867_v59  ;;  %v1754_v48 = vld [vmem:[#allocation6 + $0x118] sm:$0xff]  ;;  %v8873_v47 = vpack.c.bf16 %v1747_v20, %v1743_v55  ;;  %v1755_v7 = vld [vmem:[#allocation6 + $0x120] sm:$0xff]  ;;  %v8879_v21 = vpack.c.bf16 %v1756_v49, %v1752_v15 }
 0x372   :  { %10727 = vst [vmem:[#allocation54_spill] sm:$0xff] %v8855_v52  ;;  %7476 = vrcp.f32 %v1696_v43  ;;  %2054 = vmatprep.mubr.f32.mxu0 %v10609_v36  ;;  %2125 = vmatprep.mubr.f32.mxu1 %v10609_v36  ;;  %10729 = vst [vmem:[#allocation56_spill] sm:$0xff] %v8863_v1  ;;  %v1758_v43 = vld [vmem:[#allocation6 + $0x138] sm:$0xff]  ;;  %v1759_v15 = vld [vmem:[#allocation6 + $0x140] sm:$0xff] }
 0x373   :  { %7478 = vrcp.f32 %v1702_v9  ;;  %10732 = vst [vmem:[#allocation59_spill] sm:$0xff] %v8873_v47  ;;  %10733 = vst [vmem:[#allocation60_spill] sm:$0xff] %v8875_v40  ;;  %v1751_v9 = vld [vmem:[#allocation6 + $0x100] sm:$0xff]  ;;  %v8881_v39 = vpack.c.bf16 %v1758_v43, %v1754_v48  ;;  %v1766_v55 = vld [vmem:[#allocation6 + $0x178] sm:$0xff] }
 0x374   :  { %6350 = vmatpush1.bf16.msra.mxu0 %v8847_v8  ;;  %6382 = vmatpush1.bf16.msra.mxu1 %v8849_v28  ;;  %v8885_v33 = vpack.c.bf16 %v1755_v7, %v1751_v9  ;;  %v1763_v49 = vld [vmem:[#allocation6 + $0x160] sm:$0xff]  ;;  %v1765_v8 = vld [vmem:[#allocation6 + $0x170] sm:$0xff]  ;;  %v1772_v7 = vld [vmem:[#allocation6 + $0x1a8] sm:$0xff] }
 0x375   :  { %6352 = vmatprep.subr.bf16.mxu0 %v8853_v51  ;;  %6384 = vmatprep.subr.bf16.mxu1 %v8855_v52  ;;  %v1764_v52 = vld [vmem:[#allocation6 + $0x168] sm:$0xff] }
 0x376   :  { %v8891_v51 = vpack.c.bf16 %v1764_v52, %v1760_v16  ;;  %v1771_v16 = vld [vmem:[#allocation6 + $0x1a0] sm:$0xff] }
 0x378   :  { %6354 = vmatpush1.bf16.msra.mxu0 %v8861_v35  ;;  %6386 = vmatpush1.bf16.msra.mxu1 %v8863_v1  ;;  %v7473_v35 = vpop.eup %7472  ;;  %v1762_v1 = vld [vmem:[#allocation6 + $0x158] sm:$0xff] }
 0x379   :  { %6356 = vmatprep.subr.bf16.mxu0 %v8867_v59  ;;  %6388 = vmatprep.subr.bf16.mxu1 %v8869_v13  ;;  %v7475_v20 = vpop.eup %7474  ;;  %v8887_v13 = vpack.c.bf16 %v1757_v24, %v1753_v11  ;;  %v1709_v59 = vadd.f32 1.0, %v7473_v35  ;;  %v8893_v28 = vpack.c.bf16 %v1766_v55, %v1762_v1  ;;  %v1770_v11 = vld [vmem:[#allocation6 + $0x198] sm:$0xff]  ;;  %v8900_v35 = vpack.c.bf16 %v1763_v49, %v1759_v15  ;;  %v1767_v1 = vld [vmem:[#allocation6 + $0x180] sm:$0xff] }
 0x37a   :  { %v1774_v24 = vld [vmem:[#allocation6 + $0x1b8] sm:$0xff] }
 0x37b   :  { %7480 = vrcp.f32 %v1709_v59  ;;  %v8908_v55 = vpack.c.bf16 %v1774_v24, %v1770_v11  ;;  %v1782_v15 = vld [vmem:[#allocation6 + $0x1f8] sm:$0xff]  ;;  %v1777_v11 = vld [vmem:[#allocation6 + $0x1d0] sm:$0xff] }
 0x37c   :  { %v7477_v31 = vpop.eup %7476  ;;  %6358 = vmatpush1.bf16.msra.mxu0 %v8873_v47  ;;  %6390 = vmatpush1.bf16.msra.mxu1 %v8875_v40  ;;  %v1761_v47 = vld [vmem:[#allocation6 + $0x150] sm:$0xff]  ;;  %v1768_v40 = vld [vmem:[#allocation6 + $0x188] sm:$0xff] }
 0x37d   :  { %v7479_v48 = vpop.eup %7478  ;;  %v1713_v43 = vmul.f32 %v7477_v31, %v7475_v20  ;;  %6360 = vmatprep.subr.bf16.mxu0 %v8879_v21  ;;  %6392 = vmatprep.subr.bf16.mxu1 %v8881_v39  ;;  %v8902_v52 = vpack.c.bf16 %v1765_v8, %v1761_v47  ;;  %v1769_v20 = vld [vmem:[#allocation6 + $0x190] sm:$0xff]  ;;  %v8913_v8 = vpack.c.bf16 %v1771_v16, %v1767_v1  ;;  %v1775_v47 = vld [vmem:[#allocation6 + $0x1c0] sm:$0xff] }
 0x37e   :  { %v1712_v9 = vmul.f32 %v7479_v48, %v8394_v32  ;;  %v8906_v32 = vpack.c.bf16 %v1772_v7, %v1768_v40  ;;  %v1773_v31 = vld [vmem:[#allocation6 + $0x1b0] sm:$0xff]  ;;  %v1776_v48 = vld [vmem:[#allocation6 + $0x1c8] sm:$0xff]  ;;  %v1779_v7 = vld [vmem:[#allocation6 + $0x1e0] sm:$0xff] }
 0x37f   :  { %v8915_v59 = vpack.c.bf16 %v1773_v31, %v1769_v20  ;;  %v1781_v24 = vld [vmem:[#allocation6 + $0x1f0] sm:$0xff]  ;;  %v8925_v1 = vpack.c.bf16 %v1779_v7, %v1775_v47  ;;  %v10768_v47 = vld [vmem:[#allocation15_spill] sm:$0xff] }
 0x380   :  { %v8896_v30 = vadd.f32 %v1713_v43, %v1712_v9  ;;  %6362 = vmatpush1.bf16.msra.mxu0 %v8885_v33  ;;  %6394 = vmatpush1.bf16.msra.mxu1 %v8887_v13  ;;  %v1780_v43 = vld [vmem:[#allocation6 + $0x1e8] sm:$0xff]  ;;  %v1778_v9 = vld [vmem:[#allocation6 + $0x1d8] sm:$0xff]  ;;  %v8927_v16 = vpack.c.bf16 %v1781_v24, %v1777_v11 }
 0x381   :  { %6364 = vmatprep.subr.bf16.mxu0 %v8891_v51  ;;  %6396 = vmatprep.subr.bf16.mxu1 %v8893_v28  ;;  %v8919_v40 = vpack.c.bf16 %v1780_v43, %v1776_v48  ;;  %v8921_v49 = vpack.c.bf16 %v1782_v15, %v1778_v9  ;;  %v2132_v43 = vld [vmem:[%s10385_s4] sm:$0xf] }
 0x382   :  { %7482 = vtanh.f32 %v8896_v30  ;;  %v10767_v9 = vld [vmem:[#allocation12_spill] sm:$0xff]  ;;  %v2141_v7 = vrot.slane %v2132_v43, %v10768_v47 }
 0x383   :  { %v2137_v15 = vrot.slane %v2132_v43, %v10767_v9 }
 0x384   :  { %6366 = vmatpush1.bf16.msra.mxu0 %v8900_v35  ;;  %6398 = vmatpush1.bf16.msra.mxu1 %v8902_v52 }
 0x385   :  { %6368 = vmatprep.subr.bf16.mxu0 %v8906_v32  ;;  %6400 = vmatprep.subr.bf16.mxu1 %v8908_v55  ;;  %v7481_v20 = vpop.eup %7480 }
 0x388   :  { %6370 = vmatpush1.bf16.msra.mxu0 %v8913_v8  ;;  %6402 = vmatpush1.bf16.msra.mxu1 %v8915_v59 }
 0x389   :  { %6372 = vmatprep.subr.bf16.mxu0 %v8919_v40  ;;  %6404 = vmatprep.subr.bf16.mxu1 %v8921_v49 }
 0x38c   :  { %v7483_v31 = vpop.eup %7482  ;;  %6374 = vmatpush1.bf16.msra.mxu0 %v8925_v1  ;;  %6406 = vmatpush1.bf16.msra.mxu1 %v8927_v16 }
 0x38d   :  { %6408 = vmatprep.subr.bf16.mxu0 %v8427_v63  ;;  %6440 = vmatprep.subr.bf16.mxu1 %v8429_v29  ;;  %v1716_v48 = vmul.f32 %v7483_v31, %v7481_v20  ;;  %v10734_v63 = vld [vmem:[#allocation14_spill] sm:$0xff]  ;;  %v10735_v29 = vld [vmem:[#allocation17_spill] sm:$0xff] }
 0x38f   :  { %2055 = vmatmul.mubr.f32.vlgmr.msra.gmra.mrb[10].mxu0 %v1716_v48  ;;  %2126 = vmatmul.mubr.f32.vlgmr.msra.gmra.mrb[10].mxu1 %v1716_v48 }
 0x390   :  { %6410 = vmatpush1.bf16.msra.mxu0 %v8451_v45  ;;  %6442 = vmatpush1.bf16.msra.mxu1 %v8453_v46  ;;  %v10736_v45 = vld [vmem:[#allocation18_spill] sm:$0xff]  ;;  %v10737_v46 = vld [vmem:[#allocation19_spill] sm:$0xff] }
 0x391   :  { %6412 = vmatprep.subr.bf16.mxu0 %v8465_v58  ;;  %6444 = vmatprep.subr.bf16.mxu1 %v8467_v62  ;;  %v10738_v58 = vld [vmem:[#allocation20_spill] sm:$0xff]  ;;  %v10739_v62 = vld [vmem:[#allocation21_spill] sm:$0xff] }
 0x392   :  { %2321 = vmatprep.mubr.f32.mxu0 %v10609_v36  ;;  %2392 = vmatprep.mubr.f32.mxu1 %v10609_v36 }
 0x394   :  { %6414 = vmatpush1.bf16.msra.mxu0 %v8491_v34  ;;  %6446 = vmatpush1.bf16.msra.mxu1 %v8493_v41  ;;  %v10740_v34 = vld [vmem:[#allocation22_spill] sm:$0xff]  ;;  %v10741_v41 = vld [vmem:[#allocation23_spill] sm:$0xff] }
 0x395   :  { %6416 = vmatprep.subr.bf16.mxu0 %v8503_v60  ;;  %6448 = vmatprep.subr.bf16.mxu1 %v8505_v61  ;;  %v10742_v60 = vld [vmem:[#allocation24_spill] sm:$0xff]  ;;  %v10743_v61 = vld [vmem:[#allocation25_spill] sm:$0xff] }
 0x398   :  { %6418 = vmatpush1.bf16.msra.mxu0 %v8529_v50  ;;  %6450 = vmatpush1.bf16.msra.mxu1 %v8531_v54  ;;  %v10744_v50 = vld [vmem:[#allocation26_spill] sm:$0xff]  ;;  %v10745_v54 = vld [vmem:[#allocation27_spill] sm:$0xff] }
 0x399   :  { %6420 = vmatprep.subr.bf16.mxu0 %v8541_v44  ;;  %6452 = vmatprep.subr.bf16.mxu1 %v8543_v12  ;;  %v10746_v44 = vld [vmem:[#allocation28_spill] sm:$0xff]  ;;  %v10747_v12 = vld [vmem:[#allocation29_spill] sm:$0xff] }
 0x39c   :  { %6422 = vmatpush1.bf16.msra.mxu0 %v8565_v53  ;;  %6454 = vmatpush1.bf16.msra.mxu1 %v8567_v5  ;;  %v10748_v53 = vld [vmem:[#allocation30_spill] sm:$0xff]  ;;  %v10749_v5 = vld [vmem:[#allocation31_spill] sm:$0xff] }
 0x39d   :  { %6424 = vmatprep.subr.bf16.mxu0 %v8577_v56  ;;  %6456 = vmatprep.subr.bf16.mxu1 %v8579_v19  ;;  %v10750_v56 = vld [vmem:[#allocation32_spill] sm:$0xff]  ;;  %v10751_v19 = vld [vmem:[#allocation33_spill] sm:$0xff] }
 0x3a0   :  { %6426 = vmatpush1.bf16.msra.mxu0 %v8601_v25  ;;  %6458 = vmatpush1.bf16.msra.mxu1 %v8603_v26  ;;  %v10752_v25 = vld [vmem:[#allocation34_spill] sm:$0xff]  ;;  %v10753_v26 = vld [vmem:[#allocation35_spill] sm:$0xff] }
 0x3a1   :  { %6428 = vmatprep.subr.bf16.mxu0 %v8613_v37  ;;  %6460 = vmatprep.subr.bf16.mxu1 %v8615_v42  ;;  %v10754_v37 = vld [vmem:[#allocation36_spill] sm:$0xff]  ;;  %v10755_v42 = vld [vmem:[#allocation37_spill] sm:$0xff] }
 0x3a4   :  { %6430 = vmatpush1.bf16.msra.mxu0 %v8637_v18  ;;  %6462 = vmatpush1.bf16.msra.mxu1 %v8639_v27  ;;  %v10756_v18 = vld [vmem:[#allocation38_spill] sm:$0xff]  ;;  %v10757_v27 = vld [vmem:[#allocation39_spill] sm:$0xff] }
 0x3a5   :  { %6432 = vmatprep.subr.bf16.mxu0 %v8649_v2  ;;  %6464 = vmatprep.subr.bf16.mxu1 %v8651_v6  ;;  %v10758_v2 = vld [vmem:[#allocation40_spill] sm:$0xff]  ;;  %v10759_v6 = vld [vmem:[#allocation41_spill] sm:$0xff] }
 0x3a8   :  { %6434 = vmatpush1.bf16.msra.mxu0 %v8673_v22  ;;  %6466 = vmatpush1.bf16.msra.mxu1 %v8675_v23  ;;  %v10760_v22 = vld [vmem:[#allocation42_spill] sm:$0xff]  ;;  %v10761_v23 = vld [vmem:[#allocation43_spill] sm:$0xff] }
 0x3a9   :  { %6436 = vmatprep.subr.bf16.mxu0 %v8682_v57  ;;  %6468 = vmatprep.subr.bf16.mxu1 %v8684_v0  ;;  %v10762_v57 = vld [vmem:[#allocation44_spill] sm:$0xff]  ;;  %v10763_v0 = vld [vmem:[#allocation45_spill] sm:$0xff] }
 0x3ac   :  { %6438 = vmatpush1.bf16.msra.mxu0 %v8697_v38  ;;  %6470 = vmatpush1.bf16.msra.mxu1 %v8699_v3  ;;  %v10764_v38 = vld [vmem:[#allocation46_spill] sm:$0xff]  ;;  %v10765_v3 = vld [vmem:[#allocation47_spill] sm:$0xff] }
 0x3ad   :  { %6472 = vmatprep.subr.bf16.mxu0 %v8709_v17  ;;  %6504 = vmatprep.subr.bf16.mxu1 %v10734_v63  ;;  %v10766_v17 = vld [vmem:[#allocation48_spill] sm:$0xff] }
 0x3af   :  { %2322 = vmatmul.mubr.f32.vlgmr.msra.gmra.mrb[12].mxu0 %v1716_v48  ;;  %2393 = vmatmul.mubr.f32.vlgmr.msra.gmra.mrb[12].mxu1 %v1716_v48 }
 0x3b0   :  { %6474 = vmatpush1.bf16.msra.mxu0 %v10735_v29  ;;  %6506 = vmatpush1.bf16.msra.mxu1 %v10736_v45 }
 0x3b1   :  { %6476 = vmatprep.subr.bf16.mxu0 %v10737_v46  ;;  %6508 = vmatprep.subr.bf16.mxu1 %v10738_v58  ;;  %v10769_v46 = vld [vmem:[#allocation13_spill] sm:$0xff] }
 0x3b2   :  { %2623 = vmatprep.mubr.f32.mxu0 %v10609_v36  ;;  %2694 = vmatprep.mubr.f32.mxu1 %v10609_v36  ;;  %v2149_v58 = vrot.slane %v2132_v43, %v10769_v46 }
 0x3b4   :  { %6478 = vmatpush1.bf16.msra.mxu0 %v10739_v62  ;;  %6510 = vmatpush1.bf16.msra.mxu1 %v10740_v34  ;;  %v10770_v34 = vld [vmem:[#allocation16_spill] sm:$0xff] }
 0x3b5   :  { %6480 = vmatprep.subr.bf16.mxu0 %v10741_v41  ;;  %6512 = vmatprep.subr.bf16.mxu1 %v10742_v60  ;;  %v2145_v41 = vrot.slane %v2132_v43, %v10770_v34  ;;  %v5779_v43 = vld [vmem:[%s10381_s0 + $0x78] sm:$0xff] }
 0x3b8   :  { %6482 = vmatpush1.bf16.msra.mxu0 %v10743_v61  ;;  %6514 = vmatpush1.bf16.msra.mxu1 %v10744_v50 }
 0x3b9   :  { %6484 = vmatprep.subr.bf16.mxu0 %v10745_v54  ;;  %6516 = vmatprep.subr.bf16.mxu1 %v10746_v44 }
 0x3bc   :  { %6486 = vmatpush1.bf16.msra.mxu0 %v10747_v12  ;;  %6518 = vmatpush1.bf16.msra.mxu1 %v10748_v53 }
 0x3bd   :  { %6488 = vmatprep.subr.bf16.mxu0 %v10749_v5  ;;  %6520 = vmatprep.subr.bf16.mxu1 %v10750_v56 }
 0x3c0   :  { %6490 = vmatpush1.bf16.msra.mxu0 %v10751_v19  ;;  %6522 = vmatpush1.bf16.msra.mxu1 %v10752_v25 }
 0x3c1   :  { %6492 = vmatprep.subr.bf16.mxu0 %v10753_v26  ;;  %6524 = vmatprep.subr.bf16.mxu1 %v10754_v37  ;;  %v10771_v37 = vld [vmem:[#allocation49_spill] sm:$0xff] }
 0x3c4   :  { %6494 = vmatpush1.bf16.msra.mxu0 %v10755_v42  ;;  %6526 = vmatpush1.bf16.msra.mxu1 %v10756_v18  ;;  %v5776_v18 = vld [vmem:[%s10381_s0 + $0x60] sm:$0xff] }
 0x3c5   :  { %6496 = vmatprep.subr.bf16.mxu0 %v10757_v27  ;;  %6528 = vmatprep.subr.bf16.mxu1 %v10758_v2  ;;  %v5777_v27 = vld [vmem:[%s10381_s0 + $0x68] sm:$0xff] }
 0x3c8   :  { %6498 = vmatpush1.bf16.msra.mxu0 %v10759_v6  ;;  %6530 = vmatpush1.bf16.msra.mxu1 %v10760_v22 }
 0x3c9   :  { %6500 = vmatprep.subr.bf16.mxu0 %v10761_v23  ;;  %6532 = vmatprep.subr.bf16.mxu1 %v10762_v57 }
 0x3cc   :  { %6502 = vmatpush1.bf16.msra.mxu0 %v10763_v0  ;;  %6534 = vmatpush1.bf16.msra.mxu1 %v10764_v38 }
 0x3cd   :  { %6536 = vmatprep.subr.bf16.mxu0 %v10765_v3  ;;  %6568 = vmatprep.subr.bf16.mxu1 %v10766_v17 }
 0x462   :  { %v2056_v11 = vpop.f32.mrb[10].mxu0  ;;  %v2127_v24 = vpop.f32.mrb[10].mxu1 }
 0x463   :  { %v2154_v20 = vadd.f32 %v2137_v15, %v2056_v11  ;;  %v2058_v31 = vpop.f32.mrb[11].mxu0  ;;  %v2129_v48 = vpop.f32.mrb[11].mxu1  ;;  %v2156_v61 = vadd.f32 %v2145_v41, %v2127_v24  ;;  %v10773_v41 = vld [vmem:[#allocation51_spill] sm:$0xff] }
 0x464   :  { %v2155_v63 = vadd.f32 %v2141_v7, %v2058_v31  ;;  %v2157_v62 = vadd.f32 %v2149_v58, %v2129_v48  ;;  %v5778_v7 = vld [vmem:[%s10381_s0 + $0x70] sm:$0xff] }
 0x465   :  { %v5772_v29 = vmul.f32 -1.442695, %v2154_v20 }
 0x466   :  { %v5773_v45 = vmul.f32 -1.442695, %v2155_v63  ;;  %v5774_v60 = vmul.f32 -1.442695, %v2157_v62  ;;  %v10772_v62 = vld [vmem:[#allocation50_spill] sm:$0xff] }
 0x467   :  { %7484 = vpow2.f32 %v5772_v29 }
 0x468   :  { %7486 = vpow2.f32 %v5773_v45 }
 0x469   :  { %7488 = vpow2.f32 %v5774_v60  ;;  %v10774_v60 = vld [vmem:[#allocation52_spill] sm:$0xff] }
 0x46a   :  { %7490 = vtanh.f32 %v2156_v61  ;;  %v10775_v61 = vld [vmem:[#allocation53_spill] sm:$0xff] }
 0x471   :  { %v7485_v50 = vpop.eup %7484 }
 0x472   :  { %v7487_v54 = vpop.eup %7486  ;;  %v2162_v44 = vadd.f32 1.0, %v7485_v50  ;;  %v10778_v50 = vld [vmem:[#allocation56_spill] sm:$0xff] }
 0x473   :  { %v2168_v12 = vadd.f32 1.0, %v7487_v54  ;;  %v7489_v53 = vpop.eup %7488  ;;  %v10780_v54 = vld [vmem:[#allocation58_spill] sm:$0xff] }
 0x474   :  { %7492 = vrcp.f32 %v2162_v44  ;;  %v7491_v5 = vpop.eup %7490  ;;  %v2175_v26 = vadd.f32 1.0, %v7489_v53 }
 0x475   :  { %7494 = vrcp.f32 %v2168_v12 }
 0x476   :  { %7496 = vrcp.f32 %v2175_v26 }
 0x47e   :  { %v7493_v56 = vpop.eup %7492 }
 0x47f   :  { %v7495_v19 = vpop.eup %7494  ;;  %v2179_v25 = vmul.f32 %v7493_v56, %v7491_v5  ;;  %v10781_v5 = vld [vmem:[#allocation59_spill] sm:$0xff]  ;;  %v10782_v56 = vld [vmem:[#allocation60_spill] sm:$0xff] }
 0x480   :  { %v2178_v42 = vmul.f32 %v7495_v19, %v10771_v37  ;;  %v7497_v11 = vpop.eup %7496 }
 0x482   :  { %v9017_v2 = vadd.f32 %v2179_v25, %v2178_v42  ;;  %v2323_v6 = vpop.f32.mrb[12].mxu0  ;;  %v2394_v22 = vpop.f32.mrb[12].mxu1 }
 0x483   :  { %v2399_v23 = vadd.f32 %v5776_v18, %v2323_v6  ;;  %v2325_v57 = vpop.f32.mrb[13].mxu0  ;;  %v2396_v0 = vpop.f32.mrb[13].mxu1  ;;  %v2401_v31 = vadd.f32 %v5778_v7, %v2394_v22  ;;  %v2912_v22 = vld [vmem:[%s10382_s1 + $0x40] sm:$0xff] }
 0x484   :  { %v2400_v38 = vadd.f32 %v5777_v27, %v2325_v57  ;;  %7498 = vtanh.f32 %v9017_v2  ;;  %v2402_v15 = vadd.f32 %v5779_v43, %v2396_v0  ;;  %v2914_v0 = vld [vmem:[%s10382_s1 + $0x50] sm:$0xff]  ;;  %v2923_v43 = vld [vmem:[%s10382_s1 + $0x98] sm:$0xff] }
 0x485   :  { %v5780_v3 = vmul.f32 -1.442695, %v2399_v23  ;;  %v2916_v23 = vld [vmem:[%s10382_s1 + $0x60] sm:$0xff] }
 0x486   :  { %v5781_v17 = vmul.f32 -1.442695, %v2400_v38  ;;  %v5782_v20 = vmul.f32 -1.442695, %v2402_v15  ;;  %v2918_v38 = vld [vmem:[%s10382_s1 + $0x70] sm:$0xff]  ;;  %v2927_v15 = vld [vmem:[%s10382_s1 + $0xb8] sm:$0xff]  ;;  %v9145_v7 = vpack.c.bf16 %v2916_v23, %v2912_v22 }
 0x487   :  { %7500 = vpow2.f32 %v5780_v3  ;;  %v2921_v3 = vld [vmem:[%s10382_s1 + $0x88] sm:$0xff]  ;;  %v2946_v22 = vld [vmem:[%s10382_s1 + $0x150] sm:$0xff] }
 0x488   :  { %7502 = vpow2.f32 %v5781_v17  ;;  %v2925_v17 = vld [vmem:[%s10382_s1 + $0xa8] sm:$0xff]  ;;  %v2950_v23 = vld [vmem:[%s10382_s1 + $0x170] sm:$0xff] }
 0x489   :  { %7504 = vpow2.f32 %v5782_v20  ;;  %v2924_v20 = vld [vmem:[%s10382_s1 + $0xa0] sm:$0xff] }
 0x48a   :  { %7506 = vtanh.f32 %v2401_v31  ;;  %v9157_v31 = vpack.c.bf16 %v2925_v17, %v2921_v3  ;;  %v2955_v3 = vld [vmem:[%s10382_s1 + $0x198] sm:$0xff] }
 0x48b   :  { %v2959_v17 = vld [vmem:[%s10382_s1 + $0x1b8] sm:$0xff] }
 0x48e   :  { %v7499_v24 = vpop.eup %7498 }
 0x48f   :  { %v2182_v48 = vmul.f32 %v7499_v24, %v7497_v11  ;;  %v9147_v11 = vpack.c.bf16 %v2918_v38, %v2914_v0  ;;  %v2920_v24 = vld [vmem:[%s10382_s1 + $0x80] sm:$0xff]  ;;  %v2953_v0 = vld [vmem:[%s10382_s1 + $0x188] sm:$0xff] }
 0x490   :  { %v2957_v38 = vld [vmem:[%s10382_s1 + $0x1a8] sm:$0xff] }
 0x491   :  { %v7501_v63 = vpop.eup %7500  ;;  %5775 = vst [vmem:[%s10386_s5 + $0x10] sm:$0xff] %v2182_v48  ;;  %2624 = vmatmul.mubr.f32.vlgmr.msra.gmra.mrb[14].mxu0 %v2182_v48  ;;  %2695 = vmatmul.mubr.f32.vlgmr.msra.gmra.mrb[14].mxu1 %v2182_v48  ;;  %v9159_v48 = vpack.c.bf16 %v2927_v15, %v2923_v43  ;;  %v9293_v15 = vpack.c.bf16 %v2950_v23, %v2946_v22  ;;  %v3210_v22 = vld [vmem:[#allocation8 + $0x20] sm:$0xff] }
 0x492   :  { %v7503_v29 = vpop.eup %7502  ;;  %v2407_v45 = vadd.f32 1.0, %v7501_v63  ;;  %6538 = vmatpush1.bf16.msra.mxu0 %v8834_v10  ;;  %6570 = vmatpush1.bf16.msra.mxu1 %v8836_v4  ;;  %v10776_v10 = vld [vmem:[#allocation54_spill] sm:$0xff]  ;;  %v10777_v4 = vld [vmem:[#allocation55_spill] sm:$0xff] }
 0x493   :  { %v2413_v58 = vadd.f32 1.0, %v7503_v29  ;;  %6540 = vmatprep.subr.bf16.mxu0 %v8838_v14  ;;  %6572 = vmatprep.subr.bf16.mxu1 %v10772_v62  ;;  %v10779_v14 = vld [vmem:[#allocation57_spill] sm:$0xff]  ;;  %v7505_v44 = vpop.eup %7504  ;;  %v2922_v63 = vld [vmem:[%s10382_s1 + $0x90] sm:$0xff]  ;;  %v2931_v62 = vld [vmem:[%s10382_s1 + $0xd8] sm:$0xff] }
 0x494   :  { %7508 = vrcp.f32 %v2407_v45  ;;  %2765 = vmatprep.mubr.f32.mxu0 %v10609_v36  ;;  %2836 = vmatprep.mubr.f32.mxu1 %v10609_v36  ;;  %v7507_v12 = vpop.eup %7506  ;;  %v2420_v26 = vadd.f32 1.0, %v7505_v44  ;;  %v2926_v29 = vld [vmem:[%s10382_s1 + $0xb0] sm:$0xff]  ;;  %v2929_v45 = vld [vmem:[%s10382_s1 + $0xc8] sm:$0xff] }
 0x495   :  { %7510 = vrcp.f32 %v2413_v58  ;;  %v2933_v58 = vld [vmem:[%s10382_s1 + $0xe8] sm:$0xff]  ;;  %v2934_v44 = vld [vmem:[%s10382_s1 + $0xf0] sm:$0xff] }
 0x496   :  { %6542 = vmatpush1.bf16.msra.mxu0 %v10773_v41  ;;  %6574 = vmatpush1.bf16.msra.mxu1 %v10774_v60  ;;  %7512 = vrcp.f32 %v2420_v26  ;;  %v2935_v41 = vld [vmem:[%s10382_s1 + $0xf8] sm:$0xff]  ;;  %v9183_v60 = vpack.c.bf16 %v2924_v20, %v2920_v24  ;;  %v2936_v26 = vld [vmem:[%s10382_s1 + $0x100] sm:$0xff] }
 0x497   :  { %6544 = vmatprep.subr.bf16.mxu0 %v10775_v61  ;;  %6576 = vmatprep.subr.bf16.mxu1 %v10776_v10  ;;  %v9185_v61 = vpack.c.bf16 %v2926_v29, %v2922_v63  ;;  %v2928_v10 = vld [vmem:[%s10382_s1 + $0xc0] sm:$0xff]  ;;  %v9303_v63 = vpack.c.bf16 %v2957_v38, %v2953_v0  ;;  %v9305_v29 = vpack.c.bf16 %v2959_v17, %v2955_v3  ;;  %v3208_v38 = vld [vmem:[#allocation8 + $0x10] sm:$0xff]  ;;  %v3215_v17 = vld [vmem:[#allocation8 + $0x48] sm:$0xff] }
 0x498   :  { %v2952_v24 = vld [vmem:[%s10382_s1 + $0x180] sm:$0xff]  ;;  %v3212_v3 = vld [vmem:[#allocation8 + $0x30] sm:$0xff] }
 0x499   :  { %v2956_v20 = vld [vmem:[%s10382_s1 + $0x1a0] sm:$0xff] }
 0x49a   :  { %6546 = vmatpush1.bf16.msra.mxu0 %v10777_v4  ;;  %6578 = vmatpush1.bf16.msra.mxu1 %v10778_v50  ;;  %v2932_v4 = vld [vmem:[%s10382_s1 + $0xe0] sm:$0xff]  ;;  %v9195_v50 = vpack.c.bf16 %v2933_v58, %v2929_v45  ;;  %v2954_v45 = vld [vmem:[%s10382_s1 + $0x190] sm:$0xff] }
 0x49b   :  { %6548 = vmatprep.subr.bf16.mxu0 %v10779_v14  ;;  %6580 = vmatprep.subr.bf16.mxu1 %v10780_v54  ;;  %v9197_v14 = vpack.c.bf16 %v2935_v41, %v2931_v62  ;;  %v2930_v54 = vld [vmem:[%s10382_s1 + $0xd0] sm:$0xff]  ;;  %v2961_v62 = vld [vmem:[%s10382_s1 + $0x1c8] sm:$0xff] }
 0x49c   :  { %v2958_v58 = vld [vmem:[%s10382_s1 + $0x1b0] sm:$0xff]  ;;  %v2965_v41 = vld [vmem:[%s10382_s1 + $0x1e8] sm:$0xff] }
 0x49e   :  { %v7509_v53 = vpop.eup %7508  ;;  %6550 = vmatpush1.bf16.msra.mxu0 %v10781_v5  ;;  %6582 = vmatpush1.bf16.msra.mxu1 %v10782_v56  ;;  %v2939_v5 = vld [vmem:[%s10382_s1 + $0x118] sm:$0xff] }
 0x49f   :  { %v7511_v19 = vpop.eup %7510  ;;  %v2424_v25 = vmul.f32 %v7509_v53, %v7507_v12  ;;  %6552 = vmatprep.subr.bf16.mxu0 %v8879_v21  ;;  %6584 = vmatprep.subr.bf16.mxu1 %v8881_v39  ;;  %v2904_v21 = vld [vmem:[%s10382_s1] sm:$0xff]  ;;  %v2937_v12 = vld [vmem:[%s10382_s1 + $0x108] sm:$0xff]  ;;  %v2943_v56 = vld [vmem:[%s10382_s1 + $0x138] sm:$0xff] }
 0x4a0   :  { %v2423_v37 = vmul.f32 %v7511_v19, %v8896_v30  ;;  %v2905_v30 = vld [vmem:[%s10382_s1 + $0x8] sm:$0xff]  ;;  %v2908_v39 = vld [vmem:[%s10382_s1 + $0x20] sm:$0xff]  ;;  %v9219_v19 = vpack.c.bf16 %v2932_v4, %v2928_v10  ;;  %v2963_v10 = vld [vmem:[%s10382_s1 + $0x1d8] sm:$0xff] }
 0x4a1   :  { %v9105_v27 = vpack.c.bf16 %v2908_v39, %v2904_v21  ;;  %v2941_v53 = vld [vmem:[%s10382_s1 + $0x128] sm:$0xff]  ;;  %v2967_v4 = vld [vmem:[%s10382_s1 + $0x1f8] sm:$0xff] }
 0x4a2   :  { %v9048_v42 = vadd.f32 %v2424_v25, %v2423_v37  ;;  %6554 = vmatpush1.bf16.msra.mxu0 %v8885_v33  ;;  %6586 = vmatpush1.bf16.msra.mxu1 %v8887_v13  ;;  %v2911_v13 = vld [vmem:[%s10382_s1 + $0x38] sm:$0xff]  ;;  %v9221_v25 = vpack.c.bf16 %v2934_v44, %v2930_v54  ;;  %v2940_v37 = vld [vmem:[%s10382_s1 + $0x120] sm:$0xff]  ;;  %v2945_v21 = vld [vmem:[%s10382_s1 + $0x148] sm:$0xff]  ;;  %v9327_v54 = vpack.c.bf16 %v2956_v20, %v2952_v24 }
 0x4a3   :  { %6556 = vmatprep.subr.bf16.mxu0 %v8891_v51  ;;  %6588 = vmatprep.subr.bf16.mxu1 %v8893_v28  ;;  %v2909_v51 = vld [vmem:[%s10382_s1 + $0x28] sm:$0xff]  ;;  %v2907_v28 = vld [vmem:[%s10382_s1 + $0x18] sm:$0xff]  ;;  %v9329_v44 = vpack.c.bf16 %v2958_v58, %v2954_v45 }
 0x4a4   :  { %7514 = vtanh.f32 %v9048_v42  ;;  %v9081_v33 = vpack.c.bf16 %v2909_v51, %v2905_v30  ;;  %v9231_v30 = vpack.c.bf16 %v2941_v53, %v2937_v12  ;;  %v9233_v51 = vpack.c.bf16 %v2943_v56, %v2939_v5  ;;  %v2949_v39 = vld [vmem:[%s10382_s1 + $0x168] sm:$0xff]  ;;  %v2960_v12 = vld [vmem:[%s10382_s1 + $0x1c0] sm:$0xff]  ;;  %v3217_v20 = vld [vmem:[#allocation8 + $0x58] sm:$0xff] }
 0x4a5   :  { %v9336_v53 = vpack.c.bf16 %v2965_v41, %v2961_v62  ;;  %v9338_v5 = vpack.c.bf16 %v2967_v4, %v2963_v10  ;;  %v2964_v56 = vld [vmem:[%s10382_s1 + $0x1e0] sm:$0xff]  ;;  %v3219_v24 = vld [vmem:[#allocation8 + $0x68] sm:$0xff]  ;;  %v3221_v58 = vld [vmem:[#allocation8 + $0x78] sm:$0xff] }
 0x4a6   :  { %6558 = vmatpush1.bf16.msra.mxu0 %v8900_v35  ;;  %6590 = vmatpush1.bf16.msra.mxu1 %v8902_v52  ;;  %v9083_v35 = vpack.c.bf16 %v2911_v13, %v2907_v28  ;;  %v2906_v52 = vld [vmem:[%s10382_s1 + $0x10] sm:$0xff]  ;;  %v9375_v45 = vpack.c.bf16 %v3219_v24, %v3215_v17  ;;  %v3214_v62 = vld [vmem:[#allocation8 + $0x40] sm:$0xff]  ;;  %v9377_v10 = vpack.c.bf16 %v3221_v58, %v3217_v20  ;;  %v3231_v58 = vld [vmem:[#allocation8 + $0xc8] sm:$0xff] }
 0x4a7   :  { %6560 = vmatprep.subr.bf16.mxu0 %v8906_v32  ;;  %6592 = vmatprep.subr.bf16.mxu1 %v8908_v55  ;;  %v2910_v32 = vld [vmem:[%s10382_s1 + $0x30] sm:$0xff]  ;;  %v2913_v55 = vld [vmem:[%s10382_s1 + $0x48] sm:$0xff]  ;;  %v3218_v41 = vld [vmem:[#allocation8 + $0x60] sm:$0xff] }
 0x4a8   :  { %v9107_v6 = vpack.c.bf16 %v2910_v32, %v2906_v52  ;;  %v2938_v28 = vld [vmem:[%s10382_s1 + $0x110] sm:$0xff]  ;;  %v2947_v52 = vld [vmem:[%s10382_s1 + $0x158] sm:$0xff]  ;;  %10786 = vst [vmem:[#allocation19_spill] sm:$0xff] %v9375_v45  ;;  %10787 = vst [vmem:[#allocation20_spill] sm:$0xff] %v9377_v10  ;;  %v9379_v4 = vpack.c.bf16 %v3218_v41, %v3214_v62 }
 0x4a9   :  { %v2942_v13 = vld [vmem:[%s10382_s1 + $0x130] sm:$0xff]  ;;  %v2951_v32 = vld [vmem:[%s10382_s1 + $0x178] sm:$0xff]  ;;  %v3235_v62 = vld [vmem:[#allocation8 + $0xe8] sm:$0xff] }
 0x4aa   :  { %6562 = vmatpush1.bf16.msra.mxu0 %v8913_v8  ;;  %6594 = vmatpush1.bf16.msra.mxu1 %v8915_v59  ;;  %v2917_v8 = vld [vmem:[%s10382_s1 + $0x68] sm:$0xff]  ;;  %v2915_v59 = vld [vmem:[%s10382_s1 + $0x58] sm:$0xff]  ;;  %10788 = vst [vmem:[#allocation21_spill] sm:$0xff] %v9379_v4  ;;  %v3224_v17 = vld [vmem:[#allocation8 + $0x90] sm:$0xff] }
 0x4ab   :  { %6564 = vmatprep.subr.bf16.mxu0 %v8919_v40  ;;  %6596 = vmatprep.subr.bf16.mxu1 %v8921_v49  ;;  %v2919_v40 = vld [vmem:[%s10382_s1 + $0x78] sm:$0xff]  ;;  %v7513_v49 = vpop.eup %7512  ;;  %v3228_v24 = vld [vmem:[#allocation8 + $0xb0] sm:$0xff] }
 0x4ac   :  { %v9394_v20 = vpack.c.bf16 %v3228_v24, %v3224_v17  ;;  %v3233_v41 = vld [vmem:[#allocation8 + $0xd8] sm:$0xff]  ;;  %v3239_v24 = vld [vmem:[#allocation8 + $0x108] sm:$0xff] }
 0x4ae   :  { %v7515_v18 = vpop.eup %7514  ;;  %6566 = vmatpush1.bf16.msra.mxu0 %v8925_v1  ;;  %6598 = vmatpush1.bf16.msra.mxu1 %v8927_v16  ;;  %v9119_v1 = vpack.c.bf16 %v2917_v8, %v2913_v55  ;;  %v9121_v16 = vpack.c.bf16 %v2919_v40, %v2915_v59  ;;  %v9255_v55 = vpack.c.bf16 %v2940_v37, %v2936_v26  ;;  %v2944_v59 = vld [vmem:[%s10382_s1 + $0x140] sm:$0xff]  ;;  %v2962_v26 = vld [vmem:[%s10382_s1 + $0x1d0] sm:$0xff] }
 0x4af   :  { %v9115_v57 = vmul.f32 %v7515_v18, %v7513_v49  ;;  %6600 = vmatprep.subr.bf16.mxu0 %v9081_v33  ;;  %6632 = vmatprep.subr.bf16.mxu1 %v9083_v35  ;;  %v9257_v8 = vpack.c.bf16 %v2942_v13, %v2938_v28  ;;  %v2948_v40 = vld [vmem:[%s10382_s1 + $0x160] sm:$0xff]  ;;  %v9267_v49 = vpack.c.bf16 %v2949_v39, %v2945_v21  ;;  %v2966_v37 = vld [vmem:[%s10382_s1 + $0x1f0] sm:$0xff]  ;;  %v3207_v21 = vld [vmem:[#allocation8 + $0x8] sm:$0xff] }
 0x4b0   :  { %v9269_v18 = vpack.c.bf16 %v2951_v32, %v2947_v52  ;;  %v9291_v43 = vpack.c.bf16 %v2948_v40, %v2944_v59  ;;  %v9351_v28 = vpack.c.bf16 %v2964_v56, %v2960_v12  ;;  %v9353_v13 = vpack.c.bf16 %v2966_v37, %v2962_v26  ;;  %v3211_v39 = vld [vmem:[#allocation8 + $0x28] sm:$0xff]  ;;  %v3209_v52 = vld [vmem:[#allocation8 + $0x18] sm:$0xff]  ;;  %v3206_v40 = vld [vmem:[#allocation8] sm:$0xff]  ;;  %10793 = vst [vmem:[#allocation26_spill] sm:$0xff] %v9394_v20 }
 0x4b1   :  { %2766 = vmatmul.mubr.f32.vlgmr.msra.gmra.mrb[14].mxu0 %v9115_v57  ;;  %2837 = vmatmul.mubr.f32.vlgmr.msra.gmra.mrb[14].mxu1 %v9115_v57  ;;  %v9363_v32 = vpack.c.bf16 %v3211_v39, %v3207_v21  ;;  %v3213_v59 = vld [vmem:[#allocation8 + $0x38] sm:$0xff]  ;;  %v9367_v0 = vpack.c.bf16 %v3210_v22, %v3206_v40  ;;  %v3216_v12 = vld [vmem:[#allocation8 + $0x50] sm:$0xff]  ;;  %v3223_v37 = vld [vmem:[#allocation8 + $0x88] sm:$0xff] }
 0x4b2   :  { %6602 = vmatpush1.bf16.msra.mxu0 %v9105_v27  ;;  %6634 = vmatpush1.bf16.msra.mxu1 %v9107_v6  ;;  %v9365_v23 = vpack.c.bf16 %v3213_v59, %v3209_v52  ;;  %v3220_v56 = vld [vmem:[#allocation8 + $0x70] sm:$0xff]  ;;  %v3227_v21 = vld [vmem:[#allocation8 + $0xa8] sm:$0xff]  ;;  %v3225_v39 = vld [vmem:[#allocation8 + $0x98] sm:$0xff] }
 0x4b3   :  { %6604 = vmatprep.subr.bf16.mxu0 %v9119_v1  ;;  %6636 = vmatprep.subr.bf16.mxu1 %v9121_v16  ;;  %10784 = vst [vmem:[#allocation17_spill] sm:$0xff] %v9367_v0  ;;  %v9382_v26 = vpack.c.bf16 %v3220_v56, %v3216_v12  ;;  %v9387_v52 = vpack.c.bf16 %v3227_v21, %v3223_v37  ;;  %v3229_v59 = vld [vmem:[#allocation8 + $0xb8] sm:$0xff]  ;;  %v3222_v40 = vld [vmem:[#allocation8 + $0x80] sm:$0xff] }
 0x4b4   :  { %3032 = vmatprep.mubr.f32.mxu0 %v10609_v36  ;;  %3103 = vmatprep.mubr.f32.mxu1 %v10609_v36  ;;  %10783 = vst [vmem:[#allocation14_spill] sm:$0xff] %v9365_v23  ;;  %v3226_v22 = vld [vmem:[#allocation8 + $0xa0] sm:$0xff]  ;;  %v9399_v12 = vpack.c.bf16 %v3235_v62, %v3231_v58  ;;  %v3237_v56 = vld [vmem:[#allocation8 + $0xf8] sm:$0xff]  ;;  %v3243_v58 = vld [vmem:[#allocation8 + $0x128] sm:$0xff] }
 0x4b5   :  { %10789 = vst [vmem:[#allocation22_spill] sm:$0xff] %v9382_v26  ;;  %10790 = vst [vmem:[#allocation23_spill] sm:$0xff] %v9387_v52  ;;  %v3230_v37 = vld [vmem:[#allocation8 + $0xc0] sm:$0xff]  ;;  %v3241_v62 = vld [vmem:[#allocation8 + $0x118] sm:$0xff] }
 0x4b6   :  { %6606 = vmatpush1.bf16.msra.mxu0 %v9145_v7  ;;  %6638 = vmatpush1.bf16.msra.mxu1 %v9147_v11  ;;  %10794 = vst [vmem:[#allocation27_spill] sm:$0xff] %v9399_v12  ;;  %v3234_v21 = vld [vmem:[#allocation8 + $0xe0] sm:$0xff] }
 0x4b7   :  { %6608 = vmatprep.subr.bf16.mxu0 %v9157_v31  ;;  %6640 = vmatprep.subr.bf16.mxu1 %v9159_v48 }
 0x4ba   :  { %6610 = vmatpush1.bf16.msra.mxu0 %v9183_v60  ;;  %6642 = vmatpush1.bf16.msra.mxu1 %v9185_v61 }
 0x4bb   :  { %6612 = vmatprep.subr.bf16.mxu0 %v9195_v50  ;;  %6644 = vmatprep.subr.bf16.mxu1 %v9197_v14 }
 0x4be   :  { %6614 = vmatpush1.bf16.msra.mxu0 %v9219_v19  ;;  %6646 = vmatpush1.bf16.msra.mxu1 %v9221_v25 }
 0x4bf   :  { %6616 = vmatprep.subr.bf16.mxu0 %v9231_v30  ;;  %6648 = vmatprep.subr.bf16.mxu1 %v9233_v51 }
 0x4c2   :  { %6618 = vmatpush1.bf16.msra.mxu0 %v9255_v55  ;;  %6650 = vmatpush1.bf16.msra.mxu1 %v9257_v8 }
 0x4c3   :  { %6620 = vmatprep.subr.bf16.mxu0 %v9267_v49  ;;  %6652 = vmatprep.subr.bf16.mxu1 %v9269_v18 }
 0x4c6   :  { %6622 = vmatpush1.bf16.msra.mxu0 %v9291_v43  ;;  %6654 = vmatpush1.bf16.msra.mxu1 %v9293_v15 }
 0x4c7   :  { %6624 = vmatprep.subr.bf16.mxu0 %v9303_v63  ;;  %6656 = vmatprep.subr.bf16.mxu1 %v9305_v29 }
 0x4ca   :  { %6626 = vmatpush1.bf16.msra.mxu0 %v9327_v54  ;;  %6658 = vmatpush1.bf16.msra.mxu1 %v9329_v44 }
 0x4cb   :  { %6628 = vmatprep.subr.bf16.mxu0 %v9336_v53  ;;  %6660 = vmatprep.subr.bf16.mxu1 %v9338_v5 }
 0x4ce   :  { %6630 = vmatpush1.bf16.msra.mxu0 %v9351_v28  ;;  %6662 = vmatpush1.bf16.msra.mxu1 %v9353_v13 }
 0x4cf   :  { %6664 = vmatprep.subr.bf16.mxu0 %v9363_v32  ;;  %6696 = vmatprep.subr.bf16.mxu1 %v9365_v23 }
 0x4d1   :  { %3033 = vmatmul.mubr.f32.vlgmr.msra.gmra.mrb[16].mxu0 %v9115_v57  ;;  %3104 = vmatmul.mubr.f32.vlgmr.msra.gmra.mrb[16].mxu1 %v9115_v57  ;;  %v9370_v57 = vpack.c.bf16 %v3212_v3, %v3208_v38  ;;  %v9389_v38 = vpack.c.bf16 %v3229_v59, %v3225_v39  ;;  %v9391_v3 = vpack.c.bf16 %v3226_v22, %v3222_v40  ;;  %v3232_v40 = vld [vmem:[#allocation8 + $0xd0] sm:$0xff] }
 0x4d2   :  { %3334 = vmatprep.mubr.f32.mxu0 %v10609_v36  ;;  %3405 = vmatprep.mubr.f32.mxu1 %v10609_v36  ;;  %v9401_v39 = vpack.c.bf16 %v3237_v56, %v3233_v41  ;;  %v9403_v59 = vpack.c.bf16 %v3234_v21, %v3230_v37  ;;  %v3236_v22 = vld [vmem:[#allocation8 + $0xf0] sm:$0xff]  ;;  %v3245_v41 = vld [vmem:[#allocation8 + $0x138] sm:$0xff]  ;;  %v3238_v56 = vld [vmem:[#allocation8 + $0x100] sm:$0xff] }
 0x4d3   :  { %10785 = vst [vmem:[#allocation18_spill] sm:$0xff] %v9370_v57  ;;  %6666 = vmatpush1.bf16.msra.mxu0 %v9367_v0  ;;  %6698 = vmatpush1.bf16.msra.mxu1 %v9370_v57  ;;  %10791 = vst [vmem:[#allocation24_spill] sm:$0xff] %v9389_v38  ;;  %v9406_v17 = vpack.c.bf16 %v3236_v22, %v3232_v40  ;;  %v3242_v37 = vld [vmem:[#allocation8 + $0x120] sm:$0xff]  ;;  %v9413_v21 = vpack.c.bf16 %v3245_v41, %v3241_v62  ;;  %v3240_v40 = vld [vmem:[#allocation8 + $0x110] sm:$0xff] }
 0x4d4   :  { %6668 = vmatprep.subr.bf16.mxu0 %v9375_v45  ;;  %6700 = vmatprep.subr.bf16.mxu1 %v9377_v10  ;;  %10792 = vst [vmem:[#allocation25_spill] sm:$0xff] %v9391_v3  ;;  %10795 = vst [vmem:[#allocation28_spill] sm:$0xff] %v9401_v39  ;;  %v3244_v22 = vld [vmem:[#allocation8 + $0x130] sm:$0xff]  ;;  %v3249_v62 = vld [vmem:[#allocation8 + $0x158] sm:$0xff] }
 0x4d5   :  { %10796 = vst [vmem:[#allocation29_spill] sm:$0xff] %v9403_v59  ;;  %10797 = vst [vmem:[#allocation30_spill] sm:$0xff] %v9406_v17  ;;  %v3253_v41 = vld [vmem:[#allocation8 + $0x178] sm:$0xff]  ;;  %v3158_v10 = vld [vmem:[#allocation6 + $0x88] sm:$0xff] }
 0x4d6   :  { %10799 = vst [vmem:[#allocation32_spill] sm:$0xff] %v9413_v21  ;;  %v3162_v45 = vld [vmem:[#allocation6 + $0xa8] sm:$0xff]  ;;  %v3160_v57 = vld [vmem:[#allocation6 + $0x98] sm:$0xff] }
 0x4d7   :  { %6670 = vmatpush1.bf16.msra.mxu0 %v9379_v4  ;;  %6702 = vmatpush1.bf16.msra.mxu1 %v9382_v26  ;;  %v3151_v26 = vld [vmem:[#allocation6 + $0x50] sm:$0xff]  ;;  %v3164_v0 = vld [vmem:[#allocation6 + $0xb8] sm:$0xff] }
 0x4d8   :  { %6672 = vmatprep.subr.bf16.mxu0 %v9387_v52  ;;  %6704 = vmatprep.subr.bf16.mxu1 %v9389_v38  ;;  %v3262_v52 = vld [vmem:[#allocation8 + $0x1c0] sm:$0xff]  ;;  %v3155_v4 = vld [vmem:[#allocation6 + $0x70] sm:$0xff] }
 0x4db   :  { %6674 = vmatpush1.bf16.msra.mxu0 %v9391_v3  ;;  %6706 = vmatpush1.bf16.msra.mxu1 %v9394_v20  ;;  %v9411_v20 = vpack.c.bf16 %v3243_v58, %v3239_v24  ;;  %v9415_v3 = vpack.c.bf16 %v3242_v37, %v3238_v56  ;;  %v3251_v24 = vld [vmem:[#allocation8 + $0x168] sm:$0xff]  ;;  %v9425_v56 = vpack.c.bf16 %v3253_v41, %v3249_v62  ;;  %v3246_v37 = vld [vmem:[#allocation8 + $0x140] sm:$0xff] }
 0x4dc   :  { %6676 = vmatprep.subr.bf16.mxu0 %v9399_v12  ;;  %6708 = vmatprep.subr.bf16.mxu1 %v9401_v39  ;;  %v9418_v39 = vpack.c.bf16 %v3244_v22, %v3240_v40  ;;  %v3248_v40 = vld [vmem:[#allocation8 + $0x150] sm:$0xff]  ;;  %v3261_v12 = vld [vmem:[#allocation8 + $0x1b8] sm:$0xff]  ;;  %v3254_v62 = vld [vmem:[#allocation8 + $0x180] sm:$0xff] }
 0x4dd   :  { %10798 = vst [vmem:[#allocation31_spill] sm:$0xff] %v9411_v20  ;;  %10800 = vst [vmem:[#allocation33_spill] sm:$0xff] %v9415_v3  ;;  %v3252_v22 = vld [vmem:[#allocation8 + $0x170] sm:$0xff]  ;;  %v3258_v41 = vld [vmem:[#allocation8 + $0x1a0] sm:$0xff] }
 0x4de   :  { %10801 = vst [vmem:[#allocation34_spill] sm:$0xff] %v9418_v39  ;;  %10803 = vst [vmem:[#allocation36_spill] sm:$0xff] %v9425_v56  ;;  %v9439_v38 = vpack.c.bf16 %v3258_v41, %v3254_v62  ;;  %v3264_v62 = vld [vmem:[#allocation8 + $0x1d0] sm:$0xff] }
 0x4df   :  { %6678 = vmatpush1.bf16.msra.mxu0 %v9403_v59  ;;  %6710 = vmatpush1.bf16.msra.mxu1 %v9406_v17  ;;  %v3247_v17 = vld [vmem:[#allocation8 + $0x148] sm:$0xff]  ;;  %v3268_v41 = vld [vmem:[#allocation8 + $0x1f0] sm:$0xff] }
 0x4e0   :  { %6680 = vmatprep.subr.bf16.mxu0 %v9411_v20  ;;  %6712 = vmatprep.subr.bf16.mxu1 %v9413_v21  ;;  %v9423_v58 = vpack.c.bf16 %v3251_v24, %v3247_v17  ;;  %v3250_v20 = vld [vmem:[#allocation8 + $0x160] sm:$0xff]  ;;  %v3255_v59 = vld [vmem:[#allocation8 + $0x188] sm:$0xff]  ;;  %v3257_v17 = vld [vmem:[#allocation8 + $0x198] sm:$0xff]  ;;  %10808 = vst [vmem:[#allocation41_spill] sm:$0xff] %v9439_v38 }
 0x4e1   :  { %v9429_v21 = vpack.c.bf16 %v3250_v20, %v3246_v37  ;;  %v3256_v20 = vld [vmem:[#allocation8 + $0x190] sm:$0xff] }
 0x4e2   :  { %10802 = vst [vmem:[#allocation35_spill] sm:$0xff] %v9423_v58  ;;  %v3260_v37 = vld [vmem:[#allocation8 + $0x1b0] sm:$0xff] }
 0x4e3   :  { %6682 = vmatpush1.bf16.msra.mxu0 %v9415_v3  ;;  %6714 = vmatpush1.bf16.msra.mxu1 %v9418_v39  ;;  %10804 = vst [vmem:[#allocation37_spill] sm:$0xff] %v9429_v21  ;;  %v9431_v3 = vpack.c.bf16 %v3252_v22, %v3248_v40  ;;  %v3259_v39 = vld [vmem:[#allocation8 + $0x1a8] sm:$0xff]  ;;  %v9442_v40 = vpack.c.bf16 %v3260_v37, %v3256_v20  ;;  %v3265_v22 = vld [vmem:[#allocation8 + $0x1d8] sm:$0xff] }
 0x4e4   :  { %6684 = vmatprep.subr.bf16.mxu0 %v9423_v58  ;;  %6716 = vmatprep.subr.bf16.mxu1 %v9425_v56  ;;  %v9433_v24 = vpack.c.bf16 %v3259_v39, %v3255_v59  ;;  %v9437_v58 = vpack.c.bf16 %v3261_v12, %v3257_v17  ;;  %v3263_v39 = vld [vmem:[#allocation8 + $0x1c8] sm:$0xff]  ;;  %v9454_v20 = vpack.c.bf16 %v3268_v41, %v3264_v62 }
 0x4e5   :  { %10805 = vst [vmem:[#allocation38_spill] sm:$0xff] %v9431_v3  ;;  %10809 = vst [vmem:[#allocation42_spill] sm:$0xff] %v9442_v40  ;;  %v3267_v59 = vld [vmem:[#allocation8 + $0x1e8] sm:$0xff] }
 0x4e6   :  { %10806 = vst [vmem:[#allocation39_spill] sm:$0xff] %v9433_v24  ;;  %10807 = vst [vmem:[#allocation40_spill] sm:$0xff] %v9437_v58  ;;  %v9445_v56 = vpack.c.bf16 %v3267_v59, %v3263_v39  ;;  %v3142_v37 = vld [vmem:[#allocation6 + $0x8] sm:$0xff]  ;;  %v3144_v59 = vld [vmem:[#allocation6 + $0x18] sm:$0xff] }
 0x4e7   :  { %6686 = vmatpush1.bf16.msra.mxu0 %v9429_v21  ;;  %6718 = vmatpush1.bf16.msra.mxu1 %v9431_v3  ;;  %v3269_v21 = vld [vmem:[#allocation8 + $0x1f8] sm:$0xff]  ;;  %v3266_v3 = vld [vmem:[#allocation8 + $0x1e0] sm:$0xff]  ;;  %10813 = vst [vmem:[#allocation46_spill] sm:$0xff] %v9454_v20  ;;  %v3146_v39 = vld [vmem:[#allocation6 + $0x28] sm:$0xff] }
 0x4e8   :  { %6688 = vmatprep.subr.bf16.mxu0 %v9433_v24  ;;  %6720 = vmatprep.subr.bf16.mxu1 %v9437_v58  ;;  %10810 = vst [vmem:[#allocation43_spill] sm:$0xff] %v9445_v56  ;;  %v9449_v12 = vpack.c.bf16 %v3269_v21, %v3265_v22  ;;  %v9451_v17 = vpack.c.bf16 %v3266_v3, %v3262_v52  ;;  %v2843_v3 = vld [vmem:[%s10385_s4] sm:$0xf] }
 0x4e9   :  { %v9457_v58 = vpack.c.bf16 %v3146_v39, %v3142_v37  ;;  %v2848_v21 = vrot.slane %v2843_v3, %v10767_v9  ;;  %v2852_v22 = vrot.slane %v2843_v3, %v10768_v47 }
 0x4ea   :  { %10811 = vst [vmem:[#allocation44_spill] sm:$0xff] %v9449_v12  ;;  %10812 = vst [vmem:[#allocation45_spill] sm:$0xff] %v9451_v17 }
 0x4eb   :  { %6690 = vmatpush1.bf16.msra.mxu0 %v9439_v38  ;;  %6722 = vmatpush1.bf16.msra.mxu1 %v9442_v40  ;;  %10814 = vst [vmem:[#allocation47_spill] sm:$0xff] %v9457_v58  ;;  %v3148_v38 = vld [vmem:[#allocation6 + $0x38] sm:$0xff] }
 0x4ec   :  { %6692 = vmatprep.subr.bf16.mxu0 %v9445_v56  ;;  %6724 = vmatprep.subr.bf16.mxu1 %v9449_v12  ;;  %v9461_v52 = vpack.c.bf16 %v3148_v38, %v3144_v59  ;;  %v2856_v12 = vrot.slane %v2843_v3, %v10770_v34 }
 0x4ee   :  { %10815 = vst [vmem:[#allocation48_spill] sm:$0xff] %v9461_v52 }
 0x4ef   :  { %6694 = vmatpush1.bf16.msra.mxu0 %v9451_v17  ;;  %6726 = vmatpush1.bf16.msra.mxu1 %v9454_v20 }
 0x4f0   :  { %6728 = vmatprep.subr.bf16.mxu0 %v9457_v58  ;;  %6760 = vmatprep.subr.bf16.mxu1 %v9461_v52  ;;  %v2860_v58 = vrot.slane %v2843_v3, %v10769_v46 }
 0x584   :  { %v2767_v62 = vpop.f32.mrb[14].mxu0  ;;  %v2838_v41 = vpop.f32.mrb[14].mxu1 }
 0x585   :  { %v2865_v37 = vadd.f32 %v2848_v21, %v2767_v62  ;;  %v2769_v39 = vpop.f32.mrb[15].mxu0  ;;  %v2840_v17 = vpop.f32.mrb[15].mxu1  ;;  %v2867_v40 = vadd.f32 %v2856_v12, %v2838_v41  ;;  %v5787_v12 = vld [vmem:[%s10381_s0 + $0x80] sm:$0xff] }
 0x586   :  { %v2866_v20 = vadd.f32 %v2852_v22, %v2769_v39  ;;  %v2868_v52 = vadd.f32 %v2860_v58, %v2840_v17 }
 0x587   :  { %v5783_v38 = vmul.f32 -1.442695, %v2865_v37 }
 0x588   :  { %v5784_v59 = vmul.f32 -1.442695, %v2866_v20  ;;  %v5785_v56 = vmul.f32 -1.442695, %v2868_v52 }
 0x589   :  { %7516 = vpow2.f32 %v5783_v38 }
 0x58a   :  { %7518 = vpow2.f32 %v5784_v59  ;;  %v5790_v59 = vld [vmem:[%s10381_s0 + $0x98] sm:$0xff] }
 0x58b   :  { %7520 = vpow2.f32 %v5785_v56 }
 0x58c   :  { %7522 = vtanh.f32 %v2867_v40 }
 0x593   :  { %v7517_v9 = vpop.eup %7516 }
 0x594   :  { %v7519_v24 = vpop.eup %7518  ;;  %v2873_v47 = vadd.f32 1.0, %v7517_v9  ;;  %v5788_v9 = vld [vmem:[%s10381_s0 + $0x88] sm:$0xff] }
 0x595   :  { %v2879_v21 = vadd.f32 1.0, %v7519_v24  ;;  %v7521_v22 = vpop.eup %7520 }
 0x596   :  { %7524 = vrcp.f32 %v2873_v47  ;;  %v7523_v62 = vpop.eup %7522  ;;  %v2886_v38 = vadd.f32 1.0, %v7521_v22 }
 0x597   :  { %7526 = vrcp.f32 %v2879_v21  ;;  %v5789_v21 = vld [vmem:[%s10381_s0 + $0x90] sm:$0xff] }
 0x598   :  { %7528 = vrcp.f32 %v2886_v38  ;;  %v3150_v38 = vld [vmem:[#allocation6 + $0x48] sm:$0xff] }
 0x5a0   :  { %v7525_v20 = vpop.eup %7524 }
 0x5a1   :  { %v7527_v37 = vpop.eup %7526  ;;  %v2890_v39 = vmul.f32 %v7525_v20, %v7523_v62  ;;  %v3141_v62 = vld [vmem:[#allocation6] sm:$0xff] }
 0x5a2   :  { %v2889_v58 = vmul.f32 %v7527_v37, %v9017_v2  ;;  %v3145_v20 = vld [vmem:[#allocation6 + $0x20] sm:$0xff]  ;;  %v3143_v37 = vld [vmem:[#allocation6 + $0x10] sm:$0xff] }
 0x5a4   :  { %v9479_v56 = vadd.f32 %v2890_v39, %v2889_v58  ;;  %v3034_v47 = vpop.f32.mrb[16].mxu0  ;;  %v3105_v24 = vpop.f32.mrb[16].mxu1  ;;  %v3147_v39 = vld [vmem:[#allocation6 + $0x30] sm:$0xff]  ;;  %v3154_v58 = vld [vmem:[#allocation6 + $0x68] sm:$0xff] }
 0x5a5   :  { %v3110_v40 = vadd.f32 %v5787_v12, %v3034_v47  ;;  %v3036_v17 = vpop.f32.mrb[17].mxu0  ;;  %v3107_v52 = vpop.f32.mrb[17].mxu1  ;;  %v3152_v12 = vld [vmem:[#allocation6 + $0x58] sm:$0xff]  ;;  %v3112_v34 = vadd.f32 %v5789_v21, %v3105_v24 }
 0x5a6   :  { %10816 = vst [vmem:[#allocation49_spill] sm:$0xff] %v9479_v56  ;;  %v3111_v3 = vadd.f32 %v5788_v9, %v3036_v17  ;;  %7530 = vtanh.f32 %v9479_v56  ;;  %v3113_v22 = vadd.f32 %v5790_v59, %v3107_v52  ;;  %v3156_v9 = vld [vmem:[#allocation6 + $0x78] sm:$0xff]  ;;  %v7529_v47 = vpop.eup %7528  ;;  %v3153_v56 = vld [vmem:[#allocation6 + $0x60] sm:$0xff]  ;;  %v9492_v52 = vpack.c.bf16 %v3154_v58, %v3150_v38  ;;  %v3159_v38 = vld [vmem:[#allocation6 + $0x90] sm:$0xff] }
 0x5a7   :  { %v5791_v2 = vmul.f32 -1.442695, %v3110_v40  ;;  %v9494_v59 = vpack.c.bf16 %v3156_v9, %v3152_v12  ;;  %v3163_v58 = vld [vmem:[#allocation6 + $0xb0] sm:$0xff]  ;;  %v3166_v12 = vld [vmem:[#allocation6 + $0xc8] sm:$0xff]  ;;  %v3168_v9 = vld [vmem:[#allocation6 + $0xd8] sm:$0xff] }
 0x5a8   :  { %v5792_v41 = vmul.f32 -1.442695, %v3111_v3  ;;  %v5793_v17 = vmul.f32 -1.442695, %v3113_v22  ;;  %v9488_v3 = vpack.c.bf16 %v3145_v20, %v3141_v62  ;;  %v9503_v62 = vpack.c.bf16 %v3155_v4, %v3151_v26  ;;  %v3157_v20 = vld [vmem:[#allocation6 + $0x80] sm:$0xff]  ;;  %v3172_v4 = vld [vmem:[#allocation6 + $0xf8] sm:$0xff] }
 0x5a9   :  { %7532 = vpow2.f32 %v5791_v2  ;;  %v9490_v2 = vpack.c.bf16 %v3147_v39, %v3143_v37  ;;  %10817 = vst [vmem:[#allocation50_spill] sm:$0xff] %v9494_v59  ;;  %v3161_v37 = vld [vmem:[#allocation6 + $0xa0] sm:$0xff]  ;;  %v9523_v26 = vpack.c.bf16 %v3172_v4, %v3168_v9  ;;  %v3179_v9 = vld [vmem:[#allocation6 + $0x130] sm:$0xff]  ;;  %v3182_v4 = vld [vmem:[#allocation6 + $0x148] sm:$0xff] }
 0x5aa   :  { %7534 = vpow2.f32 %v5792_v41  ;;  %v3149_v41 = vld [vmem:[#allocation6 + $0x40] sm:$0xff]  ;;  %10819 = vst [vmem:[#allocation52_spill] sm:$0xff] %v9503_v62 }
 0x5ab   :  { %7536 = vpow2.f32 %v5793_v17  ;;  %v9501_v21 = vpack.c.bf16 %v3153_v56, %v3149_v41  ;;  %v3170_v56 = vld [vmem:[#allocation6 + $0xe8] sm:$0xff]  ;;  %10825 = vst [vmem:[#allocation58_spill] sm:$0xff] %v9523_v26 }
 0x5ac   :  { %7538 = vtanh.f32 %v3112_v34  ;;  %v9515_v34 = vpack.c.bf16 %v3161_v37, %v3157_v20  ;;  %v3174_v17 = vld [vmem:[#allocation6 + $0x108] sm:$0xff] }
 0x5ad   :  { %10818 = vst [vmem:[#allocation51_spill] sm:$0xff] %v9501_v21  ;;  %v3178_v41 = vld [vmem:[#allocation6 + $0x128] sm:$0xff] }
 0x5ae   :  { %10822 = vst [vmem:[#allocation55_spill] sm:$0xff] %v9515_v34 }
 0x5b0   :  { %v7531_v40 = vpop.eup %7530 }
 0x5b1   :  { %v2893_v46 = vmul.f32 %v7531_v40, %v7529_v47  ;;  %v3167_v47 = vld [vmem:[#allocation6 + $0xd0] sm:$0xff] }
 0x5b2   :  { %v3171_v40 = vld [vmem:[#allocation6 + $0xf0] sm:$0xff] }
 0x5b3   :  { %v7533_v23 = vpop.eup %7532  ;;  %5786 = vst [vmem:[%s10386_s5 + $0x18] sm:$0xff] %v2893_v46  ;;  %3335 = vmatmul.mubr.f32.vlgmr.msra.gmra.mrb[18].mxu0 %v2893_v46  ;;  %3406 = vmatmul.mubr.f32.vlgmr.msra.gmra.mrb[18].mxu1 %v2893_v46  ;;  %v9507_v46 = vpack.c.bf16 %v3162_v45, %v3158_v10  ;;  %v3169_v45 = vld [vmem:[#allocation6 + $0xe0] sm:$0xff]  ;;  %v9521_v10 = vpack.c.bf16 %v3170_v56, %v3166_v12  ;;  %v3175_v56 = vld [vmem:[#allocation6 + $0x110] sm:$0xff] }
 0x5b4   :  { %v7535_v22 = vpop.eup %7534  ;;  %v3118_v24 = vadd.f32 1.0, %v7533_v23  ;;  %6730 = vmatpush1.bf16.msra.mxu0 %v9488_v3  ;;  %6762 = vmatpush1.bf16.msra.mxu1 %v9490_v2  ;;  %v9509_v23 = vpack.c.bf16 %v3164_v0, %v3160_v57  ;;  %v9517_v0 = vpack.c.bf16 %v3163_v58, %v3159_v38  ;;  %v3165_v57 = vld [vmem:[#allocation6 + $0xc0] sm:$0xff]  ;;  %v9529_v37 = vpack.c.bf16 %v3171_v40, %v3167_v47 }
 0x5b5   :  { %v3124_v39 = vadd.f32 1.0, %v7535_v22  ;;  %6732 = vmatprep.subr.bf16.mxu0 %v9492_v52  ;;  %6764 = vmatprep.subr.bf16.mxu1 %v9494_v59  ;;  %10820 = vst [vmem:[#allocation53_spill] sm:$0xff] %v9507_v46  ;;  %10824 = vst [vmem:[#allocation57_spill] sm:$0xff] %v9521_v10  ;;  %v3176_v22 = vld [vmem:[#allocation6 + $0x118] sm:$0xff]  ;;  %v9527_v20 = vpack.c.bf16 %v3169_v45, %v3165_v57  ;;  %v3177_v38 = vld [vmem:[#allocation6 + $0x120] sm:$0xff]  ;;  %v9533_v58 = vpack.c.bf16 %v3178_v41, %v3174_v17 }
 0x5b6   :  { %10821 = vst [vmem:[#allocation54_spill] sm:$0xff] %v9509_v23  ;;  %7540 = vrcp.f32 %v3118_v24  ;;  %3476 = vmatprep.mubr.f32.mxu0 %v10609_v36  ;;  %3547 = vmatprep.mubr.f32.mxu1 %v10609_v36  ;;  %10823 = vst [vmem:[#allocation56_spill] sm:$0xff] %v9517_v0  ;;  %v3180_v24 = vld [vmem:[#allocation6 + $0x138] sm:$0xff]  ;;  %v3181_v17 = vld [vmem:[#allocation6 + $0x140] sm:$0xff] }
 0x5b7   :  { %7542 = vrcp.f32 %v3124_v39  ;;  %10826 = vst [vmem:[#allocation59_spill] sm:$0xff] %v9527_v20  ;;  %10827 = vst [vmem:[#allocation60_spill] sm:$0xff] %v9529_v37  ;;  %v3173_v39 = vld [vmem:[#allocation6 + $0x100] sm:$0xff]  ;;  %v9535_v12 = vpack.c.bf16 %v3180_v24, %v3176_v22  ;;  %v3188_v57 = vld [vmem:[#allocation6 + $0x178] sm:$0xff] }
 0x5b8   :  { %6734 = vmatpush1.bf16.msra.mxu0 %v9501_v21  ;;  %6766 = vmatpush1.bf16.msra.mxu1 %v9503_v62  ;;  %v9539_v40 = vpack.c.bf16 %v3177_v38, %v3173_v39  ;;  %v3185_v41 = vld [vmem:[#allocation6 + $0x160] sm:$0xff]  ;;  %v3187_v21 = vld [vmem:[#allocation6 + $0x170] sm:$0xff]  ;;  %v3194_v38 = vld [vmem:[#allocation6 + $0x1a8] sm:$0xff] }
 0x5b9   :  { %6736 = vmatprep.subr.bf16.mxu0 %v9507_v46  ;;  %6768 = vmatprep.subr.bf16.mxu1 %v9509_v23  ;;  %v3186_v23 = vld [vmem:[#allocation6 + $0x168] sm:$0xff] }
 0x5ba   :  { %v9545_v46 = vpack.c.bf16 %v3186_v23, %v3182_v4  ;;  %v3193_v4 = vld [vmem:[#allocation6 + $0x1a0] sm:$0xff] }
 0x5bc   :  { %6738 = vmatpush1.bf16.msra.mxu0 %v9515_v34  ;;  %6770 = vmatpush1.bf16.msra.mxu1 %v9517_v0  ;;  %v7537_v34 = vpop.eup %7536  ;;  %v3184_v0 = vld [vmem:[#allocation6 + $0x158] sm:$0xff] }
 0x5bd   :  { %6740 = vmatprep.subr.bf16.mxu0 %v9521_v10  ;;  %6772 = vmatprep.subr.bf16.mxu1 %v9523_v26  ;;  %v7539_v45 = vpop.eup %7538  ;;  %v9541_v26 = vpack.c.bf16 %v3179_v9, %v3175_v56  ;;  %v3131_v10 = vadd.f32 1.0, %v7537_v34  ;;  %v9547_v62 = vpack.c.bf16 %v3188_v57, %v3184_v0  ;;  %v3192_v56 = vld [vmem:[#allocation6 + $0x198] sm:$0xff]  ;;  %v9554_v34 = vpack.c.bf16 %v3185_v41, %v3181_v17  ;;  %v3189_v0 = vld [vmem:[#allocation6 + $0x180] sm:$0xff] }
 0x5be   :  { %v3196_v9 = vld [vmem:[#allocation6 + $0x1b8] sm:$0xff] }
 0x5bf   :  { %7544 = vrcp.f32 %v3131_v10  ;;  %v9562_v57 = vpack.c.bf16 %v3196_v9, %v3192_v56  ;;  %v3204_v17 = vld [vmem:[#allocation6 + $0x1f8] sm:$0xff]  ;;  %v3199_v56 = vld [vmem:[#allocation6 + $0x1d0] sm:$0xff] }
 0x5c0   :  { %v7541_v47 = vpop.eup %7540  ;;  %6742 = vmatpush1.bf16.msra.mxu0 %v9527_v20  ;;  %6774 = vmatpush1.bf16.msra.mxu1 %v9529_v37  ;;  %v3183_v20 = vld [vmem:[#allocation6 + $0x150] sm:$0xff]  ;;  %v3190_v37 = vld [vmem:[#allocation6 + $0x188] sm:$0xff] }
 0x5c1   :  { %v7543_v22 = vpop.eup %7542  ;;  %v3135_v24 = vmul.f32 %v7541_v47, %v7539_v45  ;;  %6744 = vmatprep.subr.bf16.mxu0 %v9533_v58  ;;  %6776 = vmatprep.subr.bf16.mxu1 %v9535_v12  ;;  %v9556_v23 = vpack.c.bf16 %v3187_v21, %v3183_v20  ;;  %v3191_v45 = vld [vmem:[#allocation6 + $0x190] sm:$0xff]  ;;  %v9567_v21 = vpack.c.bf16 %v3193_v4, %v3189_v0  ;;  %v3197_v20 = vld [vmem:[#allocation6 + $0x1c0] sm:$0xff] }
 0x5c2   :  { %v3134_v39 = vmul.f32 %v7543_v22, %v9048_v42  ;;  %v9560_v42 = vpack.c.bf16 %v3194_v38, %v3190_v37  ;;  %v3195_v47 = vld [vmem:[#allocation6 + $0x1b0] sm:$0xff]  ;;  %v3198_v22 = vld [vmem:[#allocation6 + $0x1c8] sm:$0xff]  ;;  %v3201_v38 = vld [vmem:[#allocation6 + $0x1e0] sm:$0xff] }
 0x5c3   :  { %v9569_v10 = vpack.c.bf16 %v3195_v47, %v3191_v45  ;;  %v3203_v9 = vld [vmem:[#allocation6 + $0x1f0] sm:$0xff]  ;;  %v9579_v0 = vpack.c.bf16 %v3201_v38, %v3197_v20  ;;  %v10862_v20 = vld [vmem:[#allocation15_spill] sm:$0xff] }
 0x5c4   :  { %v9550_v59 = vadd.f32 %v3135_v24, %v3134_v39  ;;  %6746 = vmatpush1.bf16.msra.mxu0 %v9539_v40  ;;  %6778 = vmatpush1.bf16.msra.mxu1 %v9541_v26  ;;  %v3202_v24 = vld [vmem:[#allocation6 + $0x1e8] sm:$0xff]  ;;  %v3200_v39 = vld [vmem:[#allocation6 + $0x1d8] sm:$0xff]  ;;  %v9581_v4 = vpack.c.bf16 %v3203_v9, %v3199_v56 }
 0x5c5   :  { %6748 = vmatprep.subr.bf16.mxu0 %v9545_v46  ;;  %6780 = vmatprep.subr.bf16.mxu1 %v9547_v62  ;;  %v9573_v37 = vpack.c.bf16 %v3202_v24, %v3198_v22  ;;  %v9575_v41 = vpack.c.bf16 %v3204_v17, %v3200_v39  ;;  %v3554_v24 = vld [vmem:[%s10385_s4] sm:$0xf] }
 0x5c6   :  { %7546 = vtanh.f32 %v9550_v59  ;;  %v10861_v39 = vld [vmem:[#allocation12_spill] sm:$0xff]  ;;  %v3563_v38 = vrot.slane %v3554_v24, %v10862_v20 }
 0x5c7   :  { %v3559_v17 = vrot.slane %v3554_v24, %v10861_v39 }
 0x5c8   :  { %6750 = vmatpush1.bf16.msra.mxu0 %v9554_v34  ;;  %6782 = vmatpush1.bf16.msra.mxu1 %v9556_v23 }
 0x5c9   :  { %6752 = vmatprep.subr.bf16.mxu0 %v9560_v42  ;;  %6784 = vmatprep.subr.bf16.mxu1 %v9562_v57  ;;  %v7545_v45 = vpop.eup %7544 }
 0x5cc   :  { %6754 = vmatpush1.bf16.msra.mxu0 %v9567_v21  ;;  %6786 = vmatpush1.bf16.msra.mxu1 %v9569_v10 }
 0x5cd   :  { %6756 = vmatprep.subr.bf16.mxu0 %v9573_v37  ;;  %6788 = vmatprep.subr.bf16.mxu1 %v9575_v41 }
 0x5d0   :  { %v7547_v47 = vpop.eup %7546  ;;  %6758 = vmatpush1.bf16.msra.mxu0 %v9579_v0  ;;  %6790 = vmatpush1.bf16.msra.mxu1 %v9581_v4 }
 0x5d1   :  { %6792 = vmatprep.subr.bf16.mxu0 %v9081_v33  ;;  %6824 = vmatprep.subr.bf16.mxu1 %v9083_v35  ;;  %v3138_v22 = vmul.f32 %v7547_v47, %v7545_v45  ;;  %v10828_v33 = vld [vmem:[#allocation14_spill] sm:$0xff]  ;;  %v10829_v35 = vld [vmem:[#allocation17_spill] sm:$0xff] }
 0x5d3   :  { %3477 = vmatmul.mubr.f32.vlgmr.msra.gmra.mrb[18].mxu0 %v3138_v22  ;;  %3548 = vmatmul.mubr.f32.vlgmr.msra.gmra.mrb[18].mxu1 %v3138_v22 }
 0x5d4   :  { %6794 = vmatpush1.bf16.msra.mxu0 %v9105_v27  ;;  %6826 = vmatpush1.bf16.msra.mxu1 %v9107_v6  ;;  %v10830_v27 = vld [vmem:[#allocation18_spill] sm:$0xff]  ;;  %v10831_v6 = vld [vmem:[#allocation19_spill] sm:$0xff] }
 0x5d5   :  { %6796 = vmatprep.subr.bf16.mxu0 %v9119_v1  ;;  %6828 = vmatprep.subr.bf16.mxu1 %v9121_v16  ;;  %v10832_v1 = vld [vmem:[#allocation20_spill] sm:$0xff]  ;;  %v10833_v16 = vld [vmem:[#allocation21_spill] sm:$0xff] }
 0x5d6   :  { %3743 = vmatprep.mubr.f32.mxu0 %v10609_v36  ;;  %3814 = vmatprep.mubr.f32.mxu1 %v10609_v36 }
 0x5d8   :  { %6798 = vmatpush1.bf16.msra.mxu0 %v9145_v7  ;;  %6830 = vmatpush1.bf16.msra.mxu1 %v9147_v11  ;;  %v10834_v7 = vld [vmem:[#allocation22_spill] sm:$0xff]  ;;  %v10835_v11 = vld [vmem:[#allocation23_spill] sm:$0xff] }
 0x5d9   :  { %6800 = vmatprep.subr.bf16.mxu0 %v9157_v31  ;;  %6832 = vmatprep.subr.bf16.mxu1 %v9159_v48  ;;  %v10836_v31 = vld [vmem:[#allocation24_spill] sm:$0xff]  ;;  %v10837_v48 = vld [vmem:[#allocation25_spill] sm:$0xff] }
 0x5dc   :  { %6802 = vmatpush1.bf16.msra.mxu0 %v9183_v60  ;;  %6834 = vmatpush1.bf16.msra.mxu1 %v9185_v61  ;;  %v10838_v60 = vld [vmem:[#allocation26_spill] sm:$0xff]  ;;  %v10839_v61 = vld [vmem:[#allocation27_spill] sm:$0xff] }
 0x5dd   :  { %6804 = vmatprep.subr.bf16.mxu0 %v9195_v50  ;;  %6836 = vmatprep.subr.bf16.mxu1 %v9197_v14  ;;  %v10840_v50 = vld [vmem:[#allocation28_spill] sm:$0xff]  ;;  %v10841_v14 = vld [vmem:[#allocation29_spill] sm:$0xff] }
 0x5e0   :  { %6806 = vmatpush1.bf16.msra.mxu0 %v9219_v19  ;;  %6838 = vmatpush1.bf16.msra.mxu1 %v9221_v25  ;;  %v10842_v19 = vld [vmem:[#allocation30_spill] sm:$0xff]  ;;  %v10843_v25 = vld [vmem:[#allocation31_spill] sm:$0xff] }
 0x5e1   :  { %6808 = vmatprep.subr.bf16.mxu0 %v9231_v30  ;;  %6840 = vmatprep.subr.bf16.mxu1 %v9233_v51  ;;  %v10844_v30 = vld [vmem:[#allocation32_spill] sm:$0xff]  ;;  %v10845_v51 = vld [vmem:[#allocation33_spill] sm:$0xff] }
 0x5e4   :  { %6810 = vmatpush1.bf16.msra.mxu0 %v9255_v55  ;;  %6842 = vmatpush1.bf16.msra.mxu1 %v9257_v8  ;;  %v10846_v55 = vld [vmem:[#allocation34_spill] sm:$0xff]  ;;  %v10847_v8 = vld [vmem:[#allocation35_spill] sm:$0xff] }
 0x5e5   :  { %6812 = vmatprep.subr.bf16.mxu0 %v9267_v49  ;;  %6844 = vmatprep.subr.bf16.mxu1 %v9269_v18  ;;  %v10848_v49 = vld [vmem:[#allocation36_spill] sm:$0xff]  ;;  %v10849_v18 = vld [vmem:[#allocation37_spill] sm:$0xff] }
 0x5e8   :  { %6814 = vmatpush1.bf16.msra.mxu0 %v9291_v43  ;;  %6846 = vmatpush1.bf16.msra.mxu1 %v9293_v15  ;;  %v10850_v43 = vld [vmem:[#allocation38_spill] sm:$0xff]  ;;  %v10851_v15 = vld [vmem:[#allocation39_spill] sm:$0xff] }
 0x5e9   :  { %6816 = vmatprep.subr.bf16.mxu0 %v9303_v63  ;;  %6848 = vmatprep.subr.bf16.mxu1 %v9305_v29  ;;  %v10852_v63 = vld [vmem:[#allocation40_spill] sm:$0xff]  ;;  %v10853_v29 = vld [vmem:[#allocation41_spill] sm:$0xff] }
 0x5ec   :  { %6818 = vmatpush1.bf16.msra.mxu0 %v9327_v54  ;;  %6850 = vmatpush1.bf16.msra.mxu1 %v9329_v44  ;;  %v10854_v54 = vld [vmem:[#allocation42_spill] sm:$0xff]  ;;  %v10855_v44 = vld [vmem:[#allocation43_spill] sm:$0xff] }
 0x5ed   :  { %6820 = vmatprep.subr.bf16.mxu0 %v9336_v53  ;;  %6852 = vmatprep.subr.bf16.mxu1 %v9338_v5  ;;  %v10856_v53 = vld [vmem:[#allocation44_spill] sm:$0xff]  ;;  %v10857_v5 = vld [vmem:[#allocation45_spill] sm:$0xff] }
 0x5f0   :  { %6822 = vmatpush1.bf16.msra.mxu0 %v9351_v28  ;;  %6854 = vmatpush1.bf16.msra.mxu1 %v9353_v13  ;;  %v10858_v28 = vld [vmem:[#allocation46_spill] sm:$0xff]  ;;  %v10859_v13 = vld [vmem:[#allocation47_spill] sm:$0xff] }
 0x5f1   :  { %6856 = vmatprep.subr.bf16.mxu0 %v9363_v32  ;;  %6888 = vmatprep.subr.bf16.mxu1 %v10828_v33  ;;  %v10860_v32 = vld [vmem:[#allocation48_spill] sm:$0xff] }
 0x5f3   :  { %3744 = vmatmul.mubr.f32.vlgmr.msra.gmra.mrb[20].mxu0 %v3138_v22  ;;  %3815 = vmatmul.mubr.f32.vlgmr.msra.gmra.mrb[20].mxu1 %v3138_v22 }
 0x5f4   :  { %6858 = vmatpush1.bf16.msra.mxu0 %v10829_v35  ;;  %6890 = vmatpush1.bf16.msra.mxu1 %v10830_v27 }
 0x5f5   :  { %6860 = vmatprep.subr.bf16.mxu0 %v10831_v6  ;;  %6892 = vmatprep.subr.bf16.mxu1 %v10832_v1  ;;  %v10863_v6 = vld [vmem:[#allocation13_spill] sm:$0xff] }
 0x5f6   :  { %4045 = vmatprep.mubr.f32.mxu0 %v10609_v36  ;;  %4116 = vmatprep.mubr.f32.mxu1 %v10609_v36  ;;  %v3571_v1 = vrot.slane %v3554_v24, %v10863_v6 }
 0x5f8   :  { %6862 = vmatpush1.bf16.msra.mxu0 %v10833_v16  ;;  %6894 = vmatpush1.bf16.msra.mxu1 %v10834_v7  ;;  %v10864_v7 = vld [vmem:[#allocation16_spill] sm:$0xff] }
 0x5f9   :  { %6864 = vmatprep.subr.bf16.mxu0 %v10835_v11  ;;  %6896 = vmatprep.subr.bf16.mxu1 %v10836_v31  ;;  %v3567_v11 = vrot.slane %v3554_v24, %v10864_v7  ;;  %v5801_v24 = vld [vmem:[%s10381_s0 + $0xb8] sm:$0xff] }
 0x5fc   :  { %6866 = vmatpush1.bf16.msra.mxu0 %v10837_v48  ;;  %6898 = vmatpush1.bf16.msra.mxu1 %v10838_v60 }
 0x5fd   :  { %6868 = vmatprep.subr.bf16.mxu0 %v10839_v61  ;;  %6900 = vmatprep.subr.bf16.mxu1 %v10840_v50 }
 0x600   :  { %6870 = vmatpush1.bf16.msra.mxu0 %v10841_v14  ;;  %6902 = vmatpush1.bf16.msra.mxu1 %v10842_v19 }
 0x601   :  { %6872 = vmatprep.subr.bf16.mxu0 %v10843_v25  ;;  %6904 = vmatprep.subr.bf16.mxu1 %v10844_v30 }
 0x604   :  { %6874 = vmatpush1.bf16.msra.mxu0 %v10845_v51  ;;  %6906 = vmatpush1.bf16.msra.mxu1 %v10846_v55 }
 0x605   :  { %6876 = vmatprep.subr.bf16.mxu0 %v10847_v8  ;;  %6908 = vmatprep.subr.bf16.mxu1 %v10848_v49  ;;  %v10865_v49 = vld [vmem:[#allocation49_spill] sm:$0xff] }
 0x608   :  { %6878 = vmatpush1.bf16.msra.mxu0 %v10849_v18  ;;  %6910 = vmatpush1.bf16.msra.mxu1 %v10850_v43  ;;  %v5798_v43 = vld [vmem:[%s10381_s0 + $0xa0] sm:$0xff] }
 0x609   :  { %6880 = vmatprep.subr.bf16.mxu0 %v10851_v15  ;;  %6912 = vmatprep.subr.bf16.mxu1 %v10852_v63  ;;  %v5799_v15 = vld [vmem:[%s10381_s0 + $0xa8] sm:$0xff] }
 0x60c   :  { %6882 = vmatpush1.bf16.msra.mxu0 %v10853_v29  ;;  %6914 = vmatpush1.bf16.msra.mxu1 %v10854_v54 }
 0x60d   :  { %6884 = vmatprep.subr.bf16.mxu0 %v10855_v44  ;;  %6916 = vmatprep.subr.bf16.mxu1 %v10856_v53 }
 0x610   :  { %6886 = vmatpush1.bf16.msra.mxu0 %v10857_v5  ;;  %6918 = vmatpush1.bf16.msra.mxu1 %v10858_v28 }
 0x611   :  { %6920 = vmatprep.subr.bf16.mxu0 %v10859_v13  ;;  %6952 = vmatprep.subr.bf16.mxu1 %v10860_v32 }
 0x6a6   :  { %v3478_v56 = vpop.f32.mrb[18].mxu0  ;;  %v3549_v9 = vpop.f32.mrb[18].mxu1 }
 0x6a7   :  { %v3576_v45 = vadd.f32 %v3559_v17, %v3478_v56  ;;  %v3480_v47 = vpop.f32.mrb[19].mxu0  ;;  %v3551_v22 = vpop.f32.mrb[19].mxu1  ;;  %v3578_v48 = vadd.f32 %v3567_v11, %v3549_v9  ;;  %v10867_v11 = vld [vmem:[#allocation51_spill] sm:$0xff] }
 0x6a8   :  { %v3577_v33 = vadd.f32 %v3563_v38, %v3480_v47  ;;  %v3579_v16 = vadd.f32 %v3571_v1, %v3551_v22  ;;  %v5800_v38 = vld [vmem:[%s10381_s0 + $0xb0] sm:$0xff] }
 0x6a9   :  { %v5794_v35 = vmul.f32 -1.442695, %v3576_v45 }
 0x6aa   :  { %v5795_v27 = vmul.f32 -1.442695, %v3577_v33  ;;  %v5796_v31 = vmul.f32 -1.442695, %v3579_v16  ;;  %v10866_v16 = vld [vmem:[#allocation50_spill] sm:$0xff] }
 0x6ab   :  { %7548 = vpow2.f32 %v5794_v35 }
 0x6ac   :  { %7550 = vpow2.f32 %v5795_v27 }
 0x6ad   :  { %7552 = vpow2.f32 %v5796_v31  ;;  %v10868_v31 = vld [vmem:[#allocation52_spill] sm:$0xff] }
 0x6ae   :  { %7554 = vtanh.f32 %v3578_v48  ;;  %v10869_v48 = vld [vmem:[#allocation53_spill] sm:$0xff] }
 0x6b5   :  { %v7549_v60 = vpop.eup %7548 }
 0x6b6   :  { %v7551_v61 = vpop.eup %7550  ;;  %v3584_v50 = vadd.f32 1.0, %v7549_v60  ;;  %v10872_v60 = vld [vmem:[#allocation56_spill] sm:$0xff] }
 0x6b7   :  { %v3590_v14 = vadd.f32 1.0, %v7551_v61  ;;  %v7553_v19 = vpop.eup %7552  ;;  %v10874_v61 = vld [vmem:[#allocation58_spill] sm:$0xff] }
 0x6b8   :  { %7556 = vrcp.f32 %v3584_v50  ;;  %v7555_v25 = vpop.eup %7554  ;;  %v3597_v8 = vadd.f32 1.0, %v7553_v19 }
 0x6b9   :  { %7558 = vrcp.f32 %v3590_v14 }
 0x6ba   :  { %7560 = vrcp.f32 %v3597_v8 }
 0x6c2   :  { %v7557_v30 = vpop.eup %7556 }
 0x6c3   :  { %v7559_v51 = vpop.eup %7558  ;;  %v3601_v55 = vmul.f32 %v7557_v30, %v7555_v25  ;;  %v10875_v25 = vld [vmem:[#allocation59_spill] sm:$0xff]  ;;  %v10876_v30 = vld [vmem:[#allocation60_spill] sm:$0xff] }
 0x6c4   :  { %v3600_v18 = vmul.f32 %v7559_v51, %v10865_v49  ;;  %v7561_v56 = vpop.eup %7560 }
 0x6c6   :  { %v9671_v63 = vadd.f32 %v3601_v55, %v3600_v18  ;;  %v3745_v29 = vpop.f32.mrb[20].mxu0  ;;  %v3816_v54 = vpop.f32.mrb[20].mxu1 }
 0x6c7   :  { %v3821_v44 = vadd.f32 %v5798_v43, %v3745_v29  ;;  %v3747_v53 = vpop.f32.mrb[21].mxu0  ;;  %v3818_v5 = vpop.f32.mrb[21].mxu1  ;;  %v3823_v47 = vadd.f32 %v5800_v38, %v3816_v54  ;;  %v4334_v54 = vld [vmem:[%s10382_s1 + $0x40] sm:$0xff] }
 0x6c8   :  { %v3822_v28 = vadd.f32 %v5799_v15, %v3747_v53  ;;  %7562 = vtanh.f32 %v9671_v63  ;;  %v3824_v17 = vadd.f32 %v5801_v24, %v3818_v5  ;;  %v4336_v5 = vld [vmem:[%s10382_s1 + $0x50] sm:$0xff]  ;;  %v4345_v24 = vld [vmem:[%s10382_s1 + $0x98] sm:$0xff] }
 0x6c9   :  { %v5802_v13 = vmul.f32 -1.442695, %v3821_v44  ;;  %v4338_v44 = vld [vmem:[%s10382_s1 + $0x60] sm:$0xff] }
 0x6ca   :  { %v5803_v32 = vmul.f32 -1.442695, %v3822_v28  ;;  %v5804_v45 = vmul.f32 -1.442695, %v3824_v17  ;;  %v4340_v28 = vld [vmem:[%s10382_s1 + $0x70] sm:$0xff]  ;;  %v4349_v17 = vld [vmem:[%s10382_s1 + $0xb8] sm:$0xff]  ;;  %v9799_v38 = vpack.c.bf16 %v4338_v44, %v4334_v54 }
 0x6cb   :  { %7564 = vpow2.f32 %v5802_v13  ;;  %v4343_v13 = vld [vmem:[%s10382_s1 + $0x88] sm:$0xff]  ;;  %v4368_v54 = vld [vmem:[%s10382_s1 + $0x150] sm:$0xff] }
 0x6cc   :  { %7566 = vpow2.f32 %v5803_v32  ;;  %v4347_v32 = vld [vmem:[%s10382_s1 + $0xa8] sm:$0xff]  ;;  %v4372_v44 = vld [vmem:[%s10382_s1 + $0x170] sm:$0xff] }
 0x6cd   :  { %7568 = vpow2.f32 %v5804_v45  ;;  %v4346_v45 = vld [vmem:[%s10382_s1 + $0xa0] sm:$0xff] }
 0x6ce   :  { %7570 = vtanh.f32 %v3823_v47  ;;  %v9811_v47 = vpack.c.bf16 %v4347_v32, %v4343_v13  ;;  %v4377_v13 = vld [vmem:[%s10382_s1 + $0x198] sm:$0xff] }
 0x6cf   :  { %v4381_v32 = vld [vmem:[%s10382_s1 + $0x1b8] sm:$0xff] }
 0x6d2   :  { %v7563_v9 = vpop.eup %7562 }
 0x6d3   :  { %v3604_v22 = vmul.f32 %v7563_v9, %v7561_v56  ;;  %v9801_v56 = vpack.c.bf16 %v4340_v28, %v4336_v5  ;;  %v4342_v9 = vld [vmem:[%s10382_s1 + $0x80] sm:$0xff]  ;;  %v4375_v5 = vld [vmem:[%s10382_s1 + $0x188] sm:$0xff] }
 0x6d4   :  { %v4379_v28 = vld [vmem:[%s10382_s1 + $0x1a8] sm:$0xff] }
 0x6d5   :  { %v7565_v33 = vpop.eup %7564  ;;  %5797 = vst [vmem:[%s10386_s5 + $0x20] sm:$0xff] %v3604_v22  ;;  %4046 = vmatmul.mubr.f32.vlgmr.msra.gmra.mrb[22].mxu0 %v3604_v22  ;;  %4117 = vmatmul.mubr.f32.vlgmr.msra.gmra.mrb[22].mxu1 %v3604_v22  ;;  %v9813_v22 = vpack.c.bf16 %v4349_v17, %v4345_v24  ;;  %v9947_v17 = vpack.c.bf16 %v4372_v44, %v4368_v54  ;;  %v4632_v54 = vld [vmem:[#allocation8 + $0x20] sm:$0xff] }
 0x6d6   :  { %v7567_v35 = vpop.eup %7566  ;;  %v3829_v27 = vadd.f32 1.0, %v7565_v33  ;;  %6922 = vmatpush1.bf16.msra.mxu0 %v9488_v3  ;;  %6954 = vmatpush1.bf16.msra.mxu1 %v9490_v2  ;;  %v10870_v3 = vld [vmem:[#allocation54_spill] sm:$0xff]  ;;  %v10871_v2 = vld [vmem:[#allocation55_spill] sm:$0xff] }
 0x6d7   :  { %v3835_v1 = vadd.f32 1.0, %v7567_v35  ;;  %6924 = vmatprep.subr.bf16.mxu0 %v9492_v52  ;;  %6956 = vmatprep.subr.bf16.mxu1 %v10866_v16  ;;  %v10873_v52 = vld [vmem:[#allocation57_spill] sm:$0xff]  ;;  %v7569_v50 = vpop.eup %7568  ;;  %v4344_v33 = vld [vmem:[%s10382_s1 + $0x90] sm:$0xff]  ;;  %v4353_v16 = vld [vmem:[%s10382_s1 + $0xd8] sm:$0xff] }
 0x6d8   :  { %7572 = vrcp.f32 %v3829_v27  ;;  %4187 = vmatprep.mubr.f32.mxu0 %v10609_v36  ;;  %4258 = vmatprep.mubr.f32.mxu1 %v10609_v36  ;;  %v7571_v14 = vpop.eup %7570  ;;  %v3842_v8 = vadd.f32 1.0, %v7569_v50  ;;  %v4348_v35 = vld [vmem:[%s10382_s1 + $0xb0] sm:$0xff]  ;;  %v4351_v27 = vld [vmem:[%s10382_s1 + $0xc8] sm:$0xff] }
 0x6d9   :  { %7574 = vrcp.f32 %v3835_v1  ;;  %v4355_v1 = vld [vmem:[%s10382_s1 + $0xe8] sm:$0xff]  ;;  %v4356_v50 = vld [vmem:[%s10382_s1 + $0xf0] sm:$0xff] }
 0x6da   :  { %6926 = vmatpush1.bf16.msra.mxu0 %v10867_v11  ;;  %6958 = vmatpush1.bf16.msra.mxu1 %v10868_v31  ;;  %7576 = vrcp.f32 %v3842_v8  ;;  %v4357_v11 = vld [vmem:[%s10382_s1 + $0xf8] sm:$0xff]  ;;  %v9837_v31 = vpack.c.bf16 %v4346_v45, %v4342_v9  ;;  %v4358_v8 = vld [vmem:[%s10382_s1 + $0x100] sm:$0xff] }
 0x6db   :  { %6928 = vmatprep.subr.bf16.mxu0 %v10869_v48  ;;  %6960 = vmatprep.subr.bf16.mxu1 %v10870_v3  ;;  %v9839_v48 = vpack.c.bf16 %v4348_v35, %v4344_v33  ;;  %v4350_v3 = vld [vmem:[%s10382_s1 + $0xc0] sm:$0xff]  ;;  %v9957_v33 = vpack.c.bf16 %v4379_v28, %v4375_v5  ;;  %v9959_v35 = vpack.c.bf16 %v4381_v32, %v4377_v13  ;;  %v4630_v28 = vld [vmem:[#allocation8 + $0x10] sm:$0xff]  ;;  %v4637_v32 = vld [vmem:[#allocation8 + $0x48] sm:$0xff] }
 0x6dc   :  { %v4374_v9 = vld [vmem:[%s10382_s1 + $0x180] sm:$0xff]  ;;  %v4634_v13 = vld [vmem:[#allocation8 + $0x30] sm:$0xff] }
 0x6dd   :  { %v4378_v45 = vld [vmem:[%s10382_s1 + $0x1a0] sm:$0xff] }
 0x6de   :  { %6930 = vmatpush1.bf16.msra.mxu0 %v10871_v2  ;;  %6962 = vmatpush1.bf16.msra.mxu1 %v10872_v60  ;;  %v4354_v2 = vld [vmem:[%s10382_s1 + $0xe0] sm:$0xff]  ;;  %v9849_v60 = vpack.c.bf16 %v4355_v1, %v4351_v27  ;;  %v4376_v27 = vld [vmem:[%s10382_s1 + $0x190] sm:$0xff] }
 0x6df   :  { %6932 = vmatprep.subr.bf16.mxu0 %v10873_v52  ;;  %6964 = vmatprep.subr.bf16.mxu1 %v10874_v61  ;;  %v9851_v52 = vpack.c.bf16 %v4357_v11, %v4353_v16  ;;  %v4352_v61 = vld [vmem:[%s10382_s1 + $0xd0] sm:$0xff]  ;;  %v4383_v16 = vld [vmem:[%s10382_s1 + $0x1c8] sm:$0xff] }
 0x6e0   :  { %v4380_v1 = vld [vmem:[%s10382_s1 + $0x1b0] sm:$0xff]  ;;  %v4387_v11 = vld [vmem:[%s10382_s1 + $0x1e8] sm:$0xff] }
 0x6e2   :  { %v7573_v19 = vpop.eup %7572  ;;  %6934 = vmatpush1.bf16.msra.mxu0 %v10875_v25  ;;  %6966 = vmatpush1.bf16.msra.mxu1 %v10876_v30  ;;  %v4361_v25 = vld [vmem:[%s10382_s1 + $0x118] sm:$0xff] }
 0x6e3   :  { %v7575_v51 = vpop.eup %7574  ;;  %v3846_v55 = vmul.f32 %v7573_v19, %v7571_v14  ;;  %6936 = vmatprep.subr.bf16.mxu0 %v9533_v58  ;;  %6968 = vmatprep.subr.bf16.mxu1 %v9535_v12  ;;  %v4326_v58 = vld [vmem:[%s10382_s1] sm:$0xff]  ;;  %v4359_v14 = vld [vmem:[%s10382_s1 + $0x108] sm:$0xff]  ;;  %v4365_v30 = vld [vmem:[%s10382_s1 + $0x138] sm:$0xff] }
 0x6e4   :  { %v3845_v49 = vmul.f32 %v7575_v51, %v9550_v59  ;;  %v4327_v59 = vld [vmem:[%s10382_s1 + $0x8] sm:$0xff]  ;;  %v4330_v12 = vld [vmem:[%s10382_s1 + $0x20] sm:$0xff]  ;;  %v9873_v51 = vpack.c.bf16 %v4354_v2, %v4350_v3  ;;  %v4385_v3 = vld [vmem:[%s10382_s1 + $0x1d8] sm:$0xff] }
 0x6e5   :  { %v9759_v15 = vpack.c.bf16 %v4330_v12, %v4326_v58  ;;  %v4363_v19 = vld [vmem:[%s10382_s1 + $0x128] sm:$0xff]  ;;  %v4389_v2 = vld [vmem:[%s10382_s1 + $0x1f8] sm:$0xff] }
 0x6e6   :  { %v9702_v18 = vadd.f32 %v3846_v55, %v3845_v49  ;;  %6938 = vmatpush1.bf16.msra.mxu0 %v9539_v40  ;;  %6970 = vmatpush1.bf16.msra.mxu1 %v9541_v26  ;;  %v4333_v26 = vld [vmem:[%s10382_s1 + $0x38] sm:$0xff]  ;;  %v9875_v55 = vpack.c.bf16 %v4356_v50, %v4352_v61  ;;  %v4362_v49 = vld [vmem:[%s10382_s1 + $0x120] sm:$0xff]  ;;  %v4367_v58 = vld [vmem:[%s10382_s1 + $0x148] sm:$0xff]  ;;  %v9981_v61 = vpack.c.bf16 %v4378_v45, %v4374_v9 }
 0x6e7   :  { %6940 = vmatprep.subr.bf16.mxu0 %v9545_v46  ;;  %6972 = vmatprep.subr.bf16.mxu1 %v9547_v62  ;;  %v4331_v46 = vld [vmem:[%s10382_s1 + $0x28] sm:$0xff]  ;;  %v4329_v62 = vld [vmem:[%s10382_s1 + $0x18] sm:$0xff]  ;;  %v9983_v50 = vpack.c.bf16 %v4380_v1, %v4376_v27 }
 0x6e8   :  { %7578 = vtanh.f32 %v9702_v18  ;;  %v9735_v40 = vpack.c.bf16 %v4331_v46, %v4327_v59  ;;  %v9885_v59 = vpack.c.bf16 %v4363_v19, %v4359_v14  ;;  %v9887_v46 = vpack.c.bf16 %v4365_v30, %v4361_v25  ;;  %v4371_v12 = vld [vmem:[%s10382_s1 + $0x168] sm:$0xff]  ;;  %v4382_v14 = vld [vmem:[%s10382_s1 + $0x1c0] sm:$0xff]  ;;  %v4639_v45 = vld [vmem:[#allocation8 + $0x58] sm:$0xff] }
 0x6e9   :  { %v9990_v19 = vpack.c.bf16 %v4387_v11, %v4383_v16  ;;  %v9992_v25 = vpack.c.bf16 %v4389_v2, %v4385_v3  ;;  %v4386_v30 = vld [vmem:[%s10382_s1 + $0x1e0] sm:$0xff]  ;;  %v4641_v9 = vld [vmem:[#allocation8 + $0x68] sm:$0xff]  ;;  %v4643_v1 = vld [vmem:[#allocation8 + $0x78] sm:$0xff] }
 0x6ea   :  { %6942 = vmatpush1.bf16.msra.mxu0 %v9554_v34  ;;  %6974 = vmatpush1.bf16.msra.mxu1 %v9556_v23  ;;  %v9737_v34 = vpack.c.bf16 %v4333_v26, %v4329_v62  ;;  %v4328_v23 = vld [vmem:[%s10382_s1 + $0x10] sm:$0xff]  ;;  %v10029_v27 = vpack.c.bf16 %v4641_v9, %v4637_v32  ;;  %v4636_v16 = vld [vmem:[#allocation8 + $0x40] sm:$0xff]  ;;  %v10031_v3 = vpack.c.bf16 %v4643_v1, %v4639_v45  ;;  %v4653_v1 = vld [vmem:[#allocation8 + $0xc8] sm:$0xff] }
 0x6eb   :  { %6944 = vmatprep.subr.bf16.mxu0 %v9560_v42  ;;  %6976 = vmatprep.subr.bf16.mxu1 %v9562_v57  ;;  %v4332_v42 = vld [vmem:[%s10382_s1 + $0x30] sm:$0xff]  ;;  %v4335_v57 = vld [vmem:[%s10382_s1 + $0x48] sm:$0xff]  ;;  %v4640_v11 = vld [vmem:[#allocation8 + $0x60] sm:$0xff] }
 0x6ec   :  { %v9761_v29 = vpack.c.bf16 %v4332_v42, %v4328_v23  ;;  %v4360_v62 = vld [vmem:[%s10382_s1 + $0x110] sm:$0xff]  ;;  %v4369_v23 = vld [vmem:[%s10382_s1 + $0x158] sm:$0xff]  ;;  %10880 = vst [vmem:[#allocation19_spill] sm:$0xff] %v10029_v27  ;;  %10881 = vst [vmem:[#allocation20_spill] sm:$0xff] %v10031_v3  ;;  %v10033_v2 = vpack.c.bf16 %v4640_v11, %v4636_v16 }
 0x6ed   :  { %v4364_v26 = vld [vmem:[%s10382_s1 + $0x130] sm:$0xff]  ;;  %v4373_v42 = vld [vmem:[%s10382_s1 + $0x178] sm:$0xff]  ;;  %v4657_v16 = vld [vmem:[#allocation8 + $0xe8] sm:$0xff] }
 0x6ee   :  { %6946 = vmatpush1.bf16.msra.mxu0 %v9567_v21  ;;  %6978 = vmatpush1.bf16.msra.mxu1 %v9569_v10  ;;  %v4339_v21 = vld [vmem:[%s10382_s1 + $0x68] sm:$0xff]  ;;  %v4337_v10 = vld [vmem:[%s10382_s1 + $0x58] sm:$0xff]  ;;  %10882 = vst [vmem:[#allocation21_spill] sm:$0xff] %v10033_v2  ;;  %v4646_v32 = vld [vmem:[#allocation8 + $0x90] sm:$0xff] }
 0x6ef   :  { %6948 = vmatprep.subr.bf16.mxu0 %v9573_v37  ;;  %6980 = vmatprep.subr.bf16.mxu1 %v9575_v41  ;;  %v4341_v37 = vld [vmem:[%s10382_s1 + $0x78] sm:$0xff]  ;;  %v7577_v41 = vpop.eup %7576  ;;  %v4650_v9 = vld [vmem:[#allocation8 + $0xb0] sm:$0xff] }
 0x6f0   :  { %v10048_v45 = vpack.c.bf16 %v4650_v9, %v4646_v32  ;;  %v4655_v11 = vld [vmem:[#allocation8 + $0xd8] sm:$0xff]  ;;  %v4661_v9 = vld [vmem:[#allocation8 + $0x108] sm:$0xff] }
 0x6f2   :  { %v7579_v43 = vpop.eup %7578  ;;  %6950 = vmatpush1.bf16.msra.mxu0 %v9579_v0  ;;  %6982 = vmatpush1.bf16.msra.mxu1 %v9581_v4  ;;  %v9773_v0 = vpack.c.bf16 %v4339_v21, %v4335_v57  ;;  %v9775_v4 = vpack.c.bf16 %v4341_v37, %v4337_v10  ;;  %v9909_v57 = vpack.c.bf16 %v4362_v49, %v4358_v8  ;;  %v4366_v10 = vld [vmem:[%s10382_s1 + $0x140] sm:$0xff]  ;;  %v4384_v8 = vld [vmem:[%s10382_s1 + $0x1d0] sm:$0xff] }
 0x6f3   :  { %v9769_v53 = vmul.f32 %v7579_v43, %v7577_v41  ;;  %6984 = vmatprep.subr.bf16.mxu0 %v9735_v40  ;;  %7016 = vmatprep.subr.bf16.mxu1 %v9737_v34  ;;  %v9911_v21 = vpack.c.bf16 %v4364_v26, %v4360_v62  ;;  %v4370_v37 = vld [vmem:[%s10382_s1 + $0x160] sm:$0xff]  ;;  %v9921_v41 = vpack.c.bf16 %v4371_v12, %v4367_v58  ;;  %v4388_v49 = vld [vmem:[%s10382_s1 + $0x1f0] sm:$0xff]  ;;  %v4629_v58 = vld [vmem:[#allocation8 + $0x8] sm:$0xff] }
 0x6f4   :  { %v9923_v43 = vpack.c.bf16 %v4373_v42, %v4369_v23  ;;  %v9945_v24 = vpack.c.bf16 %v4370_v37, %v4366_v10  ;;  %v10005_v62 = vpack.c.bf16 %v4386_v30, %v4382_v14  ;;  %v10007_v26 = vpack.c.bf16 %v4388_v49, %v4384_v8  ;;  %v4633_v12 = vld [vmem:[#allocation8 + $0x28] sm:$0xff]  ;;  %v4631_v23 = vld [vmem:[#allocation8 + $0x18] sm:$0xff]  ;;  %v4628_v37 = vld [vmem:[#allocation8] sm:$0xff]  ;;  %10887 = vst [vmem:[#allocation26_spill] sm:$0xff] %v10048_v45 }
 0x6f5   :  { %4188 = vmatmul.mubr.f32.vlgmr.msra.gmra.mrb[22].mxu0 %v9769_v53  ;;  %4259 = vmatmul.mubr.f32.vlgmr.msra.gmra.mrb[22].mxu1 %v9769_v53  ;;  %v10017_v42 = vpack.c.bf16 %v4633_v12, %v4629_v58  ;;  %v4635_v10 = vld [vmem:[#allocation8 + $0x38] sm:$0xff]  ;;  %v10021_v5 = vpack.c.bf16 %v4632_v54, %v4628_v37  ;;  %v4638_v14 = vld [vmem:[#allocation8 + $0x50] sm:$0xff]  ;;  %v4645_v49 = vld [vmem:[#allocation8 + $0x88] sm:$0xff] }
 0x6f6   :  { %6986 = vmatpush1.bf16.msra.mxu0 %v9759_v15  ;;  %7018 = vmatpush1.bf16.msra.mxu1 %v9761_v29  ;;  %v10019_v44 = vpack.c.bf16 %v4635_v10, %v4631_v23  ;;  %v4642_v30 = vld [vmem:[#allocation8 + $0x70] sm:$0xff]  ;;  %v4649_v58 = vld [vmem:[#allocation8 + $0xa8] sm:$0xff]  ;;  %v4647_v12 = vld [vmem:[#allocation8 + $0x98] sm:$0xff] }
 0x6f7   :  { %6988 = vmatprep.subr.bf16.mxu0 %v9773_v0  ;;  %7020 = vmatprep.subr.bf16.mxu1 %v9775_v4  ;;  %10878 = vst [vmem:[#allocation17_spill] sm:$0xff] %v10021_v5  ;;  %v10036_v8 = vpack.c.bf16 %v4642_v30, %v4638_v14  ;;  %v10041_v23 = vpack.c.bf16 %v4649_v58, %v4645_v49  ;;  %v4651_v10 = vld [vmem:[#allocation8 + $0xb8] sm:$0xff]  ;;  %v4644_v37 = vld [vmem:[#allocation8 + $0x80] sm:$0xff] }
 0x6f8   :  { %4454 = vmatprep.mubr.f32.mxu0 %v10609_v36  ;;  %4525 = vmatprep.mubr.f32.mxu1 %v10609_v36  ;;  %10877 = vst [vmem:[#allocation14_spill] sm:$0xff] %v10019_v44  ;;  %v4648_v54 = vld [vmem:[#allocation8 + $0xa0] sm:$0xff]  ;;  %v10053_v14 = vpack.c.bf16 %v4657_v16, %v4653_v1  ;;  %v4659_v30 = vld [vmem:[#allocation8 + $0xf8] sm:$0xff]  ;;  %v4665_v1 = vld [vmem:[#allocation8 + $0x128] sm:$0xff] }
 0x6f9   :  { %10883 = vst [vmem:[#allocation22_spill] sm:$0xff] %v10036_v8  ;;  %10884 = vst [vmem:[#allocation23_spill] sm:$0xff] %v10041_v23  ;;  %v4652_v49 = vld [vmem:[#allocation8 + $0xc0] sm:$0xff]  ;;  %v4663_v16 = vld [vmem:[#allocation8 + $0x118] sm:$0xff] }
 0x6fa   :  { %6990 = vmatpush1.bf16.msra.mxu0 %v9799_v38  ;;  %7022 = vmatpush1.bf16.msra.mxu1 %v9801_v56  ;;  %10888 = vst [vmem:[#allocation27_spill] sm:$0xff] %v10053_v14  ;;  %v4656_v58 = vld [vmem:[#allocation8 + $0xe0] sm:$0xff] }
 0x6fb   :  { %6992 = vmatprep.subr.bf16.mxu0 %v9811_v47  ;;  %7024 = vmatprep.subr.bf16.mxu1 %v9813_v22 }
 0x6fe   :  { %6994 = vmatpush1.bf16.msra.mxu0 %v9837_v31  ;;  %7026 = vmatpush1.bf16.msra.mxu1 %v9839_v48 }
 0x6ff   :  { %6996 = vmatprep.subr.bf16.mxu0 %v9849_v60  ;;  %7028 = vmatprep.subr.bf16.mxu1 %v9851_v52 }
 0x702   :  { %6998 = vmatpush1.bf16.msra.mxu0 %v9873_v51  ;;  %7030 = vmatpush1.bf16.msra.mxu1 %v9875_v55 }
 0x703   :  { %7000 = vmatprep.subr.bf16.mxu0 %v9885_v59  ;;  %7032 = vmatprep.subr.bf16.mxu1 %v9887_v46 }
 0x706   :  { %7002 = vmatpush1.bf16.msra.mxu0 %v9909_v57  ;;  %7034 = vmatpush1.bf16.msra.mxu1 %v9911_v21 }
 0x707   :  { %7004 = vmatprep.subr.bf16.mxu0 %v9921_v41  ;;  %7036 = vmatprep.subr.bf16.mxu1 %v9923_v43 }
 0x70a   :  { %7006 = vmatpush1.bf16.msra.mxu0 %v9945_v24  ;;  %7038 = vmatpush1.bf16.msra.mxu1 %v9947_v17 }
 0x70b   :  { %7008 = vmatprep.subr.bf16.mxu0 %v9957_v33  ;;  %7040 = vmatprep.subr.bf16.mxu1 %v9959_v35 }
 0x70e   :  { %7010 = vmatpush1.bf16.msra.mxu0 %v9981_v61  ;;  %7042 = vmatpush1.bf16.msra.mxu1 %v9983_v50 }
 0x70f   :  { %7012 = vmatprep.subr.bf16.mxu0 %v9990_v19  ;;  %7044 = vmatprep.subr.bf16.mxu1 %v9992_v25 }
 0x712   :  { %7014 = vmatpush1.bf16.msra.mxu0 %v10005_v62  ;;  %7046 = vmatpush1.bf16.msra.mxu1 %v10007_v26 }
 0x713   :  { %7048 = vmatprep.subr.bf16.mxu0 %v10017_v42  ;;  %7080 = vmatprep.subr.bf16.mxu1 %v10019_v44 }
 0x715   :  { %4455 = vmatmul.mubr.f32.vlgmr.msra.gmra.mrb[24].mxu0 %v9769_v53  ;;  %4526 = vmatmul.mubr.f32.vlgmr.msra.gmra.mrb[24].mxu1 %v9769_v53  ;;  %v10024_v53 = vpack.c.bf16 %v4634_v13, %v4630_v28  ;;  %v10043_v28 = vpack.c.bf16 %v4651_v10, %v4647_v12  ;;  %v10045_v13 = vpack.c.bf16 %v4648_v54, %v4644_v37  ;;  %v4654_v37 = vld [vmem:[#allocation8 + $0xd0] sm:$0xff] }
 0x716   :  { %4756 = vmatprep.mubr.f32.mxu0 %v10609_v36  ;;  %4827 = vmatprep.mubr.f32.mxu1 %v10609_v36  ;;  %v10055_v12 = vpack.c.bf16 %v4659_v30, %v4655_v11  ;;  %v10057_v10 = vpack.c.bf16 %v4656_v58, %v4652_v49  ;;  %v4658_v54 = vld [vmem:[#allocation8 + $0xf0] sm:$0xff]  ;;  %v4667_v11 = vld [vmem:[#allocation8 + $0x138] sm:$0xff]  ;;  %v4660_v30 = vld [vmem:[#allocation8 + $0x100] sm:$0xff] }
 0x717   :  { %10879 = vst [vmem:[#allocation18_spill] sm:$0xff] %v10024_v53  ;;  %7050 = vmatpush1.bf16.msra.mxu0 %v10021_v5  ;;  %7082 = vmatpush1.bf16.msra.mxu1 %v10024_v53  ;;  %10885 = vst [vmem:[#allocation24_spill] sm:$0xff] %v10043_v28  ;;  %v10060_v32 = vpack.c.bf16 %v4658_v54, %v4654_v37  ;;  %v4664_v49 = vld [vmem:[#allocation8 + $0x120] sm:$0xff]  ;;  %v10067_v58 = vpack.c.bf16 %v4667_v11, %v4663_v16  ;;  %v4662_v37 = vld [vmem:[#allocation8 + $0x110] sm:$0xff] }
 0x718   :  { %7052 = vmatprep.subr.bf16.mxu0 %v10029_v27  ;;  %7084 = vmatprep.subr.bf16.mxu1 %v10031_v3  ;;  %10886 = vst [vmem:[#allocation25_spill] sm:$0xff] %v10045_v13  ;;  %10889 = vst [vmem:[#allocation28_spill] sm:$0xff] %v10055_v12  ;;  %v4666_v54 = vld [vmem:[#allocation8 + $0x130] sm:$0xff]  ;;  %v4671_v16 = vld [vmem:[#allocation8 + $0x158] sm:$0xff] }
 0x719   :  { %10890 = vst [vmem:[#allocation29_spill] sm:$0xff] %v10057_v10  ;;  %10891 = vst [vmem:[#allocation30_spill] sm:$0xff] %v10060_v32  ;;  %v4675_v11 = vld [vmem:[#allocation8 + $0x178] sm:$0xff]  ;;  %v4580_v3 = vld [vmem:[#allocation6 + $0x88] sm:$0xff] }
 0x71a   :  { %10893 = vst [vmem:[#allocation32_spill] sm:$0xff] %v10067_v58  ;;  %v4584_v27 = vld [vmem:[#allocation6 + $0xa8] sm:$0xff]  ;;  %v4582_v53 = vld [vmem:[#allocation6 + $0x98] sm:$0xff] }
 0x71b   :  { %7054 = vmatpush1.bf16.msra.mxu0 %v10033_v2  ;;  %7086 = vmatpush1.bf16.msra.mxu1 %v10036_v8  ;;  %v4573_v8 = vld [vmem:[#allocation6 + $0x50] sm:$0xff]  ;;  %v4586_v5 = vld [vmem:[#allocation6 + $0xb8] sm:$0xff] }
 0x71c   :  { %7056 = vmatprep.subr.bf16.mxu0 %v10041_v23  ;;  %7088 = vmatprep.subr.bf16.mxu1 %v10043_v28  ;;  %v4684_v23 = vld [vmem:[#allocation8 + $0x1c0] sm:$0xff]  ;;  %v4577_v2 = vld [vmem:[#allocation6 + $0x70] sm:$0xff] }
 0x71f   :  { %7058 = vmatpush1.bf16.msra.mxu0 %v10045_v13  ;;  %7090 = vmatpush1.bf16.msra.mxu1 %v10048_v45  ;;  %v10065_v45 = vpack.c.bf16 %v4665_v1, %v4661_v9  ;;  %v10069_v13 = vpack.c.bf16 %v4664_v49, %v4660_v30  ;;  %v4673_v9 = vld [vmem:[#allocation8 + $0x168] sm:$0xff]  ;;  %v10079_v30 = vpack.c.bf16 %v4675_v11, %v4671_v16  ;;  %v4668_v49 = vld [vmem:[#allocation8 + $0x140] sm:$0xff] }
 0x720   :  { %7060 = vmatprep.subr.bf16.mxu0 %v10053_v14  ;;  %7092 = vmatprep.subr.bf16.mxu1 %v10055_v12  ;;  %v10072_v12 = vpack.c.bf16 %v4666_v54, %v4662_v37  ;;  %v4670_v37 = vld [vmem:[#allocation8 + $0x150] sm:$0xff]  ;;  %v4683_v14 = vld [vmem:[#allocation8 + $0x1b8] sm:$0xff]  ;;  %v4676_v16 = vld [vmem:[#allocation8 + $0x180] sm:$0xff] }
 0x721   :  { %10892 = vst [vmem:[#allocation31_spill] sm:$0xff] %v10065_v45  ;;  %10894 = vst [vmem:[#allocation33_spill] sm:$0xff] %v10069_v13  ;;  %v4674_v54 = vld [vmem:[#allocation8 + $0x170] sm:$0xff]  ;;  %v4680_v11 = vld [vmem:[#allocation8 + $0x1a0] sm:$0xff] }
 0x722   :  { %10895 = vst [vmem:[#allocation34_spill] sm:$0xff] %v10072_v12  ;;  %10897 = vst [vmem:[#allocation36_spill] sm:$0xff] %v10079_v30  ;;  %v10093_v28 = vpack.c.bf16 %v4680_v11, %v4676_v16  ;;  %v4686_v16 = vld [vmem:[#allocation8 + $0x1d0] sm:$0xff] }
 0x723   :  { %7062 = vmatpush1.bf16.msra.mxu0 %v10057_v10  ;;  %7094 = vmatpush1.bf16.msra.mxu1 %v10060_v32  ;;  %v4669_v32 = vld [vmem:[#allocation8 + $0x148] sm:$0xff]  ;;  %v4690_v11 = vld [vmem:[#allocation8 + $0x1f0] sm:$0xff] }
 0x724   :  { %7064 = vmatprep.subr.bf16.mxu0 %v10065_v45  ;;  %7096 = vmatprep.subr.bf16.mxu1 %v10067_v58  ;;  %v10077_v1 = vpack.c.bf16 %v4673_v9, %v4669_v32  ;;  %v4672_v45 = vld [vmem:[#allocation8 + $0x160] sm:$0xff]  ;;  %v4677_v10 = vld [vmem:[#allocation8 + $0x188] sm:$0xff]  ;;  %v4679_v32 = vld [vmem:[#allocation8 + $0x198] sm:$0xff]  ;;  %10902 = vst [vmem:[#allocation41_spill] sm:$0xff] %v10093_v28 }
 0x725   :  { %v10083_v58 = vpack.c.bf16 %v4672_v45, %v4668_v49  ;;  %v4678_v45 = vld [vmem:[#allocation8 + $0x190] sm:$0xff] }
 0x726   :  { %10896 = vst [vmem:[#allocation35_spill] sm:$0xff] %v10077_v1  ;;  %v4682_v49 = vld [vmem:[#allocation8 + $0x1b0] sm:$0xff] }
 0x727   :  { %7066 = vmatpush1.bf16.msra.mxu0 %v10069_v13  ;;  %7098 = vmatpush1.bf16.msra.mxu1 %v10072_v12  ;;  %10898 = vst [vmem:[#allocation37_spill] sm:$0xff] %v10083_v58  ;;  %v10085_v13 = vpack.c.bf16 %v4674_v54, %v4670_v37  ;;  %v4681_v12 = vld [vmem:[#allocation8 + $0x1a8] sm:$0xff]  ;;  %v10096_v37 = vpack.c.bf16 %v4682_v49, %v4678_v45  ;;  %v4687_v54 = vld [vmem:[#allocation8 + $0x1d8] sm:$0xff] }
 0x728   :  { %7068 = vmatprep.subr.bf16.mxu0 %v10077_v1  ;;  %7100 = vmatprep.subr.bf16.mxu1 %v10079_v30  ;;  %v10087_v9 = vpack.c.bf16 %v4681_v12, %v4677_v10  ;;  %v10091_v1 = vpack.c.bf16 %v4683_v14, %v4679_v32  ;;  %v4685_v12 = vld [vmem:[#allocation8 + $0x1c8] sm:$0xff]  ;;  %v10108_v45 = vpack.c.bf16 %v4690_v11, %v4686_v16 }
 0x729   :  { %10899 = vst [vmem:[#allocation38_spill] sm:$0xff] %v10085_v13  ;;  %10903 = vst [vmem:[#allocation42_spill] sm:$0xff] %v10096_v37  ;;  %v4689_v10 = vld [vmem:[#allocation8 + $0x1e8] sm:$0xff] }
 0x72a   :  { %10900 = vst [vmem:[#allocation39_spill] sm:$0xff] %v10087_v9  ;;  %10901 = vst [vmem:[#allocation40_spill] sm:$0xff] %v10091_v1  ;;  %v10099_v30 = vpack.c.bf16 %v4689_v10, %v4685_v12  ;;  %v4564_v49 = vld [vmem:[#allocation6 + $0x8] sm:$0xff]  ;;  %v4566_v10 = vld [vmem:[#allocation6 + $0x18] sm:$0xff] }
 0x72b   :  { %7070 = vmatpush1.bf16.msra.mxu0 %v10083_v58  ;;  %7102 = vmatpush1.bf16.msra.mxu1 %v10085_v13  ;;  %v4691_v58 = vld [vmem:[#allocation8 + $0x1f8] sm:$0xff]  ;;  %v4688_v13 = vld [vmem:[#allocation8 + $0x1e0] sm:$0xff]  ;;  %10907 = vst [vmem:[#allocation46_spill] sm:$0xff] %v10108_v45  ;;  %v4568_v12 = vld [vmem:[#allocation6 + $0x28] sm:$0xff] }
 0x72c   :  { %7072 = vmatprep.subr.bf16.mxu0 %v10087_v9  ;;  %7104 = vmatprep.subr.bf16.mxu1 %v10091_v1  ;;  %10904 = vst [vmem:[#allocation43_spill] sm:$0xff] %v10099_v30  ;;  %v10103_v14 = vpack.c.bf16 %v4691_v58, %v4687_v54  ;;  %v10105_v32 = vpack.c.bf16 %v4688_v13, %v4684_v23  ;;  %v4265_v13 = vld [vmem:[%s10385_s4] sm:$0xf] }
 0x72d   :  { %v10111_v1 = vpack.c.bf16 %v4568_v12, %v4564_v49  ;;  %v4270_v58 = vrot.slane %v4265_v13, %v10861_v39  ;;  %v4274_v54 = vrot.slane %v4265_v13, %v10862_v20 }
 0x72e   :  { %10905 = vst [vmem:[#allocation44_spill] sm:$0xff] %v10103_v14  ;;  %10906 = vst [vmem:[#allocation45_spill] sm:$0xff] %v10105_v32 }
 0x72f   :  { %7074 = vmatpush1.bf16.msra.mxu0 %v10093_v28  ;;  %7106 = vmatpush1.bf16.msra.mxu1 %v10096_v37  ;;  %10908 = vst [vmem:[#allocation47_spill] sm:$0xff] %v10111_v1  ;;  %v4570_v28 = vld [vmem:[#allocation6 + $0x38] sm:$0xff] }
 0x730   :  { %7076 = vmatprep.subr.bf16.mxu0 %v10099_v30  ;;  %7108 = vmatprep.subr.bf16.mxu1 %v10103_v14  ;;  %v10115_v23 = vpack.c.bf16 %v4570_v28, %v4566_v10  ;;  %v4278_v14 = vrot.slane %v4265_v13, %v10864_v7 }
 0x732   :  { %10909 = vst [vmem:[#allocation48_spill] sm:$0xff] %v10115_v23 }
 0x733   :  { %7078 = vmatpush1.bf16.msra.mxu0 %v10105_v32  ;;  %7110 = vmatpush1.bf16.msra.mxu1 %v10108_v45 }
 0x734   :  { %7112 = vmatprep.subr.bf16.mxu0 %v10111_v1  ;;  %7144 = vmatprep.subr.bf16.mxu1 %v10115_v23  ;;  %v4282_v1 = vrot.slane %v4265_v13, %v10863_v6 }
 0x7c8   :  { %v4189_v16 = vpop.f32.mrb[22].mxu0  ;;  %v4260_v11 = vpop.f32.mrb[22].mxu1 }
 0x7c9   :  { %v4287_v49 = vadd.f32 %v4270_v58, %v4189_v16  ;;  %v4191_v12 = vpop.f32.mrb[23].mxu0  ;;  %v4262_v32 = vpop.f32.mrb[23].mxu1  ;;  %v4289_v37 = vadd.f32 %v4278_v14, %v4260_v11  ;;  %v5809_v14 = vld [vmem:[%s10381_s0 + $0xc0] sm:$0xff] }
 0x7ca   :  { %v4288_v45 = vadd.f32 %v4274_v54, %v4191_v12  ;;  %v4290_v23 = vadd.f32 %v4282_v1, %v4262_v32 }
 0x7cb   :  { %v5805_v28 = vmul.f32 -1.442695, %v4287_v49 }
 0x7cc   :  { %v5806_v10 = vmul.f32 -1.442695, %v4288_v45  ;;  %v5807_v30 = vmul.f32 -1.442695, %v4290_v23 }
 0x7cd   :  { %7580 = vpow2.f32 %v5805_v28 }
 0x7ce   :  { %7582 = vpow2.f32 %v5806_v10  ;;  %v5812_v10 = vld [vmem:[%s10381_s0 + $0xd8] sm:$0xff] }
 0x7cf   :  { %7584 = vpow2.f32 %v5807_v30 }
 0x7d0   :  { %7586 = vtanh.f32 %v4289_v37 }
 0x7d7   :  { %v7581_v39 = vpop.eup %7580 }
 0x7d8   :  { %v7583_v9 = vpop.eup %7582  ;;  %v4295_v20 = vadd.f32 1.0, %v7581_v39  ;;  %v5810_v39 = vld [vmem:[%s10381_s0 + $0xc8] sm:$0xff] }
 0x7d9   :  { %v4301_v58 = vadd.f32 1.0, %v7583_v9  ;;  %v7585_v54 = vpop.eup %7584 }
 0x7da   :  { %7588 = vrcp.f32 %v4295_v20  ;;  %v7587_v16 = vpop.eup %7586  ;;  %v4308_v28 = vadd.f32 1.0, %v7585_v54 }
 0x7db   :  { %7590 = vrcp.f32 %v4301_v58  ;;  %v5811_v58 = vld [vmem:[%s10381_s0 + $0xd0] sm:$0xff] }
 0x7dc   :  { %7592 = vrcp.f32 %v4308_v28  ;;  %v4572_v28 = vld [vmem:[#allocation6 + $0x48] sm:$0xff] }
 0x7e4   :  { %v7589_v45 = vpop.eup %7588 }
 0x7e5   :  { %v7591_v49 = vpop.eup %7590  ;;  %v4312_v12 = vmul.f32 %v7589_v45, %v7587_v16  ;;  %v4563_v16 = vld [vmem:[#allocation6] sm:$0xff] }
 0x7e6   :  { %v4311_v1 = vmul.f32 %v7591_v49, %v9671_v63  ;;  %v4567_v45 = vld [vmem:[#allocation6 + $0x20] sm:$0xff]  ;;  %v4565_v49 = vld [vmem:[#allocation6 + $0x10] sm:$0xff] }
 0x7e8   :  { %v10133_v30 = vadd.f32 %v4312_v12, %v4311_v1  ;;  %v4456_v20 = vpop.f32.mrb[24].mxu0  ;;  %v4527_v9 = vpop.f32.mrb[24].mxu1  ;;  %v4569_v12 = vld [vmem:[#allocation6 + $0x30] sm:$0xff]  ;;  %v4576_v1 = vld [vmem:[#allocation6 + $0x68] sm:$0xff] }
 0x7e9   :  { %v4532_v37 = vadd.f32 %v5809_v14, %v4456_v20  ;;  %v4458_v32 = vpop.f32.mrb[25].mxu0  ;;  %v4529_v23 = vpop.f32.mrb[25].mxu1  ;;  %v4574_v14 = vld [vmem:[#allocation6 + $0x58] sm:$0xff]  ;;  %v4534_v7 = vadd.f32 %v5811_v58, %v4527_v9 }
 0x7ea   :  { %10910 = vst [vmem:[#allocation49_spill] sm:$0xff] %v10133_v30  ;;  %v4533_v13 = vadd.f32 %v5810_v39, %v4458_v32  ;;  %7594 = vtanh.f32 %v10133_v30  ;;  %v4535_v54 = vadd.f32 %v5812_v10, %v4529_v23  ;;  %v4578_v39 = vld [vmem:[#allocation6 + $0x78] sm:$0xff]  ;;  %v7593_v20 = vpop.eup %7592  ;;  %v4575_v30 = vld [vmem:[#allocation6 + $0x60] sm:$0xff]  ;;  %v10146_v23 = vpack.c.bf16 %v4576_v1, %v4572_v28  ;;  %v4581_v28 = vld [vmem:[#allocation6 + $0x90] sm:$0xff] }
 0x7eb   :  { %v5813_v63 = vmul.f32 -1.442695, %v4532_v37  ;;  %v10148_v10 = vpack.c.bf16 %v4578_v39, %v4574_v14  ;;  %v4585_v1 = vld [vmem:[#allocation6 + $0xb0] sm:$0xff]  ;;  %v4588_v14 = vld [vmem:[#allocation6 + $0xc8] sm:$0xff]  ;;  %v4590_v39 = vld [vmem:[#allocation6 + $0xd8] sm:$0xff] }
 0x7ec   :  { %v5814_v11 = vmul.f32 -1.442695, %v4533_v13  ;;  %v5815_v32 = vmul.f32 -1.442695, %v4535_v54  ;;  %v10142_v13 = vpack.c.bf16 %v4567_v45, %v4563_v16  ;;  %v10157_v16 = vpack.c.bf16 %v4577_v2, %v4573_v8  ;;  %v4579_v45 = vld [vmem:[#allocation6 + $0x80] sm:$0xff]  ;;  %v4594_v2 = vld [vmem:[#allocation6 + $0xf8] sm:$0xff] }
 0x7ed   :  { %7596 = vpow2.f32 %v5813_v63  ;;  %v10144_v63 = vpack.c.bf16 %v4569_v12, %v4565_v49  ;;  %10911 = vst [vmem:[#allocation50_spill] sm:$0xff] %v10148_v10  ;;  %v4583_v49 = vld [vmem:[#allocation6 + $0xa0] sm:$0xff]  ;;  %v10177_v8 = vpack.c.bf16 %v4594_v2, %v4590_v39  ;;  %v4601_v39 = vld [vmem:[#allocation6 + $0x130] sm:$0xff]  ;;  %v4604_v2 = vld [vmem:[#allocation6 + $0x148] sm:$0xff] }
 0x7ee   :  { %7598 = vpow2.f32 %v5814_v11  ;;  %v4571_v11 = vld [vmem:[#allocation6 + $0x40] sm:$0xff]  ;;  %10913 = vst [vmem:[#allocation52_spill] sm:$0xff] %v10157_v16 }
 0x7ef   :  { %7600 = vpow2.f32 %v5815_v32  ;;  %v10155_v58 = vpack.c.bf16 %v4575_v30, %v4571_v11  ;;  %v4592_v30 = vld [vmem:[#allocation6 + $0xe8] sm:$0xff]  ;;  %10919 = vst [vmem:[#allocation58_spill] sm:$0xff] %v10177_v8 }
 0x7f0   :  { %7602 = vtanh.f32 %v4534_v7  ;;  %v10169_v7 = vpack.c.bf16 %v4583_v49, %v4579_v45  ;;  %v4596_v32 = vld [vmem:[#allocation6 + $0x108] sm:$0xff] }
 0x7f1   :  { %10912 = vst [vmem:[#allocation51_spill] sm:$0xff] %v10155_v58  ;;  %v4600_v11 = vld [vmem:[#allocation6 + $0x128] sm:$0xff] }
 0x7f2   :  { %10916 = vst [vmem:[#allocation55_spill] sm:$0xff] %v10169_v7 }
 0x7f4   :  { %v7595_v37 = vpop.eup %7594 }
 0x7f5   :  { %v4315_v6 = vmul.f32 %v7595_v37, %v7593_v20  ;;  %v4589_v20 = vld [vmem:[#allocation6 + $0xd0] sm:$0xff] }
 0x7f6   :  { %v4593_v37 = vld [vmem:[#allocation6 + $0xf0] sm:$0xff] }
 0x7f7   :  { %v7597_v44 = vpop.eup %7596  ;;  %5808 = vst [vmem:[%s10386_s5 + $0x28] sm:$0xff] %v4315_v6  ;;  %4757 = vmatmul.mubr.f32.vlgmr.msra.gmra.mrb[26].mxu0 %v4315_v6  ;;  %4828 = vmatmul.mubr.f32.vlgmr.msra.gmra.mrb[26].mxu1 %v4315_v6  ;;  %v10161_v6 = vpack.c.bf16 %v4584_v27, %v4580_v3  ;;  %v4591_v27 = vld [vmem:[#allocation6 + $0xe0] sm:$0xff]  ;;  %v10175_v3 = vpack.c.bf16 %v4592_v30, %v4588_v14  ;;  %v4597_v30 = vld [vmem:[#allocation6 + $0x110] sm:$0xff] }
 0x7f8   :  { %v7599_v54 = vpop.eup %7598  ;;  %v4540_v9 = vadd.f32 1.0, %v7597_v44  ;;  %7114 = vmatpush1.bf16.msra.mxu0 %v10142_v13  ;;  %7146 = vmatpush1.bf16.msra.mxu1 %v10144_v63  ;;  %v10163_v44 = vpack.c.bf16 %v4586_v5, %v4582_v53  ;;  %v10171_v5 = vpack.c.bf16 %v4585_v1, %v4581_v28  ;;  %v4587_v53 = vld [vmem:[#allocation6 + $0xc0] sm:$0xff]  ;;  %v10183_v49 = vpack.c.bf16 %v4593_v37, %v4589_v20 }
 0x7f9   :  { %v4546_v12 = vadd.f32 1.0, %v7599_v54  ;;  %7116 = vmatprep.subr.bf16.mxu0 %v10146_v23  ;;  %7148 = vmatprep.subr.bf16.mxu1 %v10148_v10  ;;  %10914 = vst [vmem:[#allocation53_spill] sm:$0xff] %v10161_v6  ;;  %10918 = vst [vmem:[#allocation57_spill] sm:$0xff] %v10175_v3  ;;  %v4598_v54 = vld [vmem:[#allocation6 + $0x118] sm:$0xff]  ;;  %v10181_v45 = vpack.c.bf16 %v4591_v27, %v4587_v53  ;;  %v4599_v28 = vld [vmem:[#allocation6 + $0x120] sm:$0xff]  ;;  %v10187_v1 = vpack.c.bf16 %v4600_v11, %v4596_v32 }
 0x7fa   :  { %10915 = vst [vmem:[#allocation54_spill] sm:$0xff] %v10163_v44  ;;  %7604 = vrcp.f32 %v4540_v9  ;;  %4898 = vmatprep.mubr.f32.mxu0 %v10609_v36  ;;  %4969 = vmatprep.mubr.f32.mxu1 %v10609_v36  ;;  %10917 = vst [vmem:[#allocation56_spill] sm:$0xff] %v10171_v5  ;;  %v4602_v9 = vld [vmem:[#allocation6 + $0x138] sm:$0xff]  ;;  %v4603_v32 = vld [vmem:[#allocation6 + $0x140] sm:$0xff] }
 0x7fb   :  { %7606 = vrcp.f32 %v4546_v12  ;;  %10920 = vst [vmem:[#allocation59_spill] sm:$0xff] %v10181_v45  ;;  %10921 = vst [vmem:[#allocation60_spill] sm:$0xff] %v10183_v49  ;;  %v4595_v12 = vld [vmem:[#allocation6 + $0x100] sm:$0xff]  ;;  %v10189_v14 = vpack.c.bf16 %v4602_v9, %v4598_v54  ;;  %v4610_v53 = vld [vmem:[#allocation6 + $0x178] sm:$0xff] }
 0x7fc   :  { %7118 = vmatpush1.bf16.msra.mxu0 %v10155_v58  ;;  %7150 = vmatpush1.bf16.msra.mxu1 %v10157_v16  ;;  %v10193_v37 = vpack.c.bf16 %v4599_v28, %v4595_v12  ;;  %v4607_v11 = vld [vmem:[#allocation6 + $0x160] sm:$0xff]  ;;  %v4609_v58 = vld [vmem:[#allocation6 + $0x170] sm:$0xff]  ;;  %v4616_v28 = vld [vmem:[#allocation6 + $0x1a8] sm:$0xff] }
 0x7fd   :  { %7120 = vmatprep.subr.bf16.mxu0 %v10161_v6  ;;  %7152 = vmatprep.subr.bf16.mxu1 %v10163_v44  ;;  %v4608_v44 = vld [vmem:[#allocation6 + $0x168] sm:$0xff] }
 0x7fe   :  { %v10199_v6 = vpack.c.bf16 %v4608_v44, %v4604_v2  ;;  %v4615_v2 = vld [vmem:[#allocation6 + $0x1a0] sm:$0xff] }
 0x800   :  { %7122 = vmatpush1.bf16.msra.mxu0 %v10169_v7  ;;  %7154 = vmatpush1.bf16.msra.mxu1 %v10171_v5  ;;  %v7601_v7 = vpop.eup %7600  ;;  %v4606_v5 = vld [vmem:[#allocation6 + $0x158] sm:$0xff] }
 0x801   :  { %7124 = vmatprep.subr.bf16.mxu0 %v10175_v3  ;;  %7156 = vmatprep.subr.bf16.mxu1 %v10177_v8  ;;  %v7603_v27 = vpop.eup %7602  ;;  %v10195_v8 = vpack.c.bf16 %v4601_v39, %v4597_v30  ;;  %v4553_v3 = vadd.f32 1.0, %v7601_v7  ;;  %v10201_v16 = vpack.c.bf16 %v4610_v53, %v4606_v5  ;;  %v4614_v30 = vld [vmem:[#allocation6 + $0x198] sm:$0xff]  ;;  %v10208_v7 = vpack.c.bf16 %v4607_v11, %v4603_v32  ;;  %v4611_v5 = vld [vmem:[#allocation6 + $0x180] sm:$0xff] }
 0x802   :  { %v4618_v39 = vld [vmem:[#allocation6 + $0x1b8] sm:$0xff] }
 0x803   :  { %7608 = vrcp.f32 %v4553_v3  ;;  %v10216_v53 = vpack.c.bf16 %v4618_v39, %v4614_v30  ;;  %v4626_v32 = vld [vmem:[#allocation6 + $0x1f8] sm:$0xff]  ;;  %v4621_v30 = vld [vmem:[#allocation6 + $0x1d0] sm:$0xff] }
 0x804   :  { %v7605_v20 = vpop.eup %7604  ;;  %7126 = vmatpush1.bf16.msra.mxu0 %v10181_v45  ;;  %7158 = vmatpush1.bf16.msra.mxu1 %v10183_v49  ;;  %v4605_v45 = vld [vmem:[#allocation6 + $0x150] sm:$0xff]  ;;  %v4612_v49 = vld [vmem:[#allocation6 + $0x188] sm:$0xff] }
 0x805   :  { %v7607_v54 = vpop.eup %7606  ;;  %v4557_v9 = vmul.f32 %v7605_v20, %v7603_v27  ;;  %7128 = vmatprep.subr.bf16.mxu0 %v10187_v1  ;;  %7160 = vmatprep.subr.bf16.mxu1 %v10189_v14  ;;  %v10210_v44 = vpack.c.bf16 %v4609_v58, %v4605_v45  ;;  %v4613_v27 = vld [vmem:[#allocation6 + $0x190] sm:$0xff]  ;;  %v10221_v58 = vpack.c.bf16 %v4615_v2, %v4611_v5  ;;  %v4619_v45 = vld [vmem:[#allocation6 + $0x1c0] sm:$0xff] }
 0x806   :  { %v4556_v12 = vmul.f32 %v7607_v54, %v9702_v18  ;;  %v10214_v18 = vpack.c.bf16 %v4616_v28, %v4612_v49  ;;  %v4617_v20 = vld [vmem:[#allocation6 + $0x1b0] sm:$0xff]  ;;  %v4620_v54 = vld [vmem:[#allocation6 + $0x1c8] sm:$0xff]  ;;  %v4623_v28 = vld [vmem:[#allocation6 + $0x1e0] sm:$0xff] }
 0x807   :  { %v10223_v3 = vpack.c.bf16 %v4617_v20, %v4613_v27  ;;  %v4625_v39 = vld [vmem:[#allocation6 + $0x1f0] sm:$0xff]  ;;  %v10233_v5 = vpack.c.bf16 %v4623_v28, %v4619_v45  ;;  %v10956_v45 = vld [vmem:[#allocation15_spill] sm:$0xff] }
 0x808   :  { %v10204_v10 = vadd.f32 %v4557_v9, %v4556_v12  ;;  %7130 = vmatpush1.bf16.msra.mxu0 %v10193_v37  ;;  %7162 = vmatpush1.bf16.msra.mxu1 %v10195_v8  ;;  %v4624_v9 = vld [vmem:[#allocation6 + $0x1e8] sm:$0xff]  ;;  %v4622_v12 = vld [vmem:[#allocation6 + $0x1d8] sm:$0xff]  ;;  %v10235_v2 = vpack.c.bf16 %v4625_v39, %v4621_v30 }
 0x809   :  { %7132 = vmatprep.subr.bf16.mxu0 %v10199_v6  ;;  %7164 = vmatprep.subr.bf16.mxu1 %v10201_v16  ;;  %v10227_v49 = vpack.c.bf16 %v4624_v9, %v4620_v54  ;;  %v10229_v11 = vpack.c.bf16 %v4626_v32, %v4622_v12  ;;  %v4976_v9 = vld [vmem:[%s10385_s4] sm:$0xf] }
 0x80a   :  { %7610 = vtanh.f32 %v10204_v10  ;;  %v10955_v12 = vld [vmem:[#allocation12_spill] sm:$0xff]  ;;  %v4985_v28 = vrot.slane %v4976_v9, %v10956_v45 }
 0x80b   :  { %v4981_v32 = vrot.slane %v4976_v9, %v10955_v12 }
 0x80c   :  { %7134 = vmatpush1.bf16.msra.mxu0 %v10208_v7  ;;  %7166 = vmatpush1.bf16.msra.mxu1 %v10210_v44 }
 0x80d   :  { %7136 = vmatprep.subr.bf16.mxu0 %v10214_v18  ;;  %7168 = vmatprep.subr.bf16.mxu1 %v10216_v53  ;;  %v7609_v27 = vpop.eup %7608 }
 0x810   :  { %7138 = vmatpush1.bf16.msra.mxu0 %v10221_v58  ;;  %7170 = vmatpush1.bf16.msra.mxu1 %v10223_v3 }
 0x811   :  { %7140 = vmatprep.subr.bf16.mxu0 %v10227_v49  ;;  %7172 = vmatprep.subr.bf16.mxu1 %v10229_v11 }
 0x814   :  { %v7611_v20 = vpop.eup %7610  ;;  %7142 = vmatpush1.bf16.msra.mxu0 %v10233_v5  ;;  %7174 = vmatpush1.bf16.msra.mxu1 %v10235_v2 }
 0x815   :  { %7176 = vmatprep.subr.bf16.mxu0 %v9735_v40  ;;  %7208 = vmatprep.subr.bf16.mxu1 %v9737_v34  ;;  %v4560_v54 = vmul.f32 %v7611_v20, %v7609_v27  ;;  %v10922_v40 = vld [vmem:[#allocation14_spill] sm:$0xff]  ;;  %v10923_v34 = vld [vmem:[#allocation17_spill] sm:$0xff] }
 0x817   :  { %4899 = vmatmul.mubr.f32.vlgmr.msra.gmra.mrb[26].mxu0 %v4560_v54  ;;  %4970 = vmatmul.mubr.f32.vlgmr.msra.gmra.mrb[26].mxu1 %v4560_v54 }
 0x818   :  { %7178 = vmatpush1.bf16.msra.mxu0 %v9759_v15  ;;  %7210 = vmatpush1.bf16.msra.mxu1 %v9761_v29  ;;  %v10924_v15 = vld [vmem:[#allocation18_spill] sm:$0xff]  ;;  %v10925_v29 = vld [vmem:[#allocation19_spill] sm:$0xff] }
 0x819   :  { %7180 = vmatprep.subr.bf16.mxu0 %v9773_v0  ;;  %7212 = vmatprep.subr.bf16.mxu1 %v9775_v4  ;;  %v10926_v0 = vld [vmem:[#allocation20_spill] sm:$0xff]  ;;  %v10927_v4 = vld [vmem:[#allocation21_spill] sm:$0xff] }
 0x81a   :  { %5165 = vmatprep.mubr.f32.mxu0 %v10609_v36  ;;  %5236 = vmatprep.mubr.f32.mxu1 %v10609_v36 }
 0x81c   :  { %7182 = vmatpush1.bf16.msra.mxu0 %v9799_v38  ;;  %7214 = vmatpush1.bf16.msra.mxu1 %v9801_v56  ;;  %v10928_v38 = vld [vmem:[#allocation22_spill] sm:$0xff]  ;;  %v10929_v56 = vld [vmem:[#allocation23_spill] sm:$0xff] }
 0x81d   :  { %7184 = vmatprep.subr.bf16.mxu0 %v9811_v47  ;;  %7216 = vmatprep.subr.bf16.mxu1 %v9813_v22  ;;  %v10930_v47 = vld [vmem:[#allocation24_spill] sm:$0xff]  ;;  %v10931_v22 = vld [vmem:[#allocation25_spill] sm:$0xff] }
 0x820   :  { %7186 = vmatpush1.bf16.msra.mxu0 %v9837_v31  ;;  %7218 = vmatpush1.bf16.msra.mxu1 %v9839_v48  ;;  %v10932_v31 = vld [vmem:[#allocation26_spill] sm:$0xff]  ;;  %v10933_v48 = vld [vmem:[#allocation27_spill] sm:$0xff] }
 0x821   :  { %7188 = vmatprep.subr.bf16.mxu0 %v9849_v60  ;;  %7220 = vmatprep.subr.bf16.mxu1 %v9851_v52  ;;  %v10934_v60 = vld [vmem:[#allocation28_spill] sm:$0xff]  ;;  %v10935_v52 = vld [vmem:[#allocation29_spill] sm:$0xff] }
 0x824   :  { %7190 = vmatpush1.bf16.msra.mxu0 %v9873_v51  ;;  %7222 = vmatpush1.bf16.msra.mxu1 %v9875_v55  ;;  %v10936_v51 = vld [vmem:[#allocation30_spill] sm:$0xff]  ;;  %v10937_v55 = vld [vmem:[#allocation31_spill] sm:$0xff] }
 0x825   :  { %7192 = vmatprep.subr.bf16.mxu0 %v9885_v59  ;;  %7224 = vmatprep.subr.bf16.mxu1 %v9887_v46  ;;  %v10938_v59 = vld [vmem:[#allocation32_spill] sm:$0xff]  ;;  %v10939_v46 = vld [vmem:[#allocation33_spill] sm:$0xff] }
 0x828   :  { %7194 = vmatpush1.bf16.msra.mxu0 %v9909_v57  ;;  %7226 = vmatpush1.bf16.msra.mxu1 %v9911_v21  ;;  %v10940_v57 = vld [vmem:[#allocation34_spill] sm:$0xff]  ;;  %v10941_v21 = vld [vmem:[#allocation35_spill] sm:$0xff] }
 0x829   :  { %7196 = vmatprep.subr.bf16.mxu0 %v9921_v41  ;;  %7228 = vmatprep.subr.bf16.mxu1 %v9923_v43  ;;  %v10942_v41 = vld [vmem:[#allocation36_spill] sm:$0xff]  ;;  %v10943_v43 = vld [vmem:[#allocation37_spill] sm:$0xff] }
 0x82c   :  { %7198 = vmatpush1.bf16.msra.mxu0 %v9945_v24  ;;  %7230 = vmatpush1.bf16.msra.mxu1 %v9947_v17  ;;  %v10944_v24 = vld [vmem:[#allocation38_spill] sm:$0xff]  ;;  %v10945_v17 = vld [vmem:[#allocation39_spill] sm:$0xff] }
 0x82d   :  { %7200 = vmatprep.subr.bf16.mxu0 %v9957_v33  ;;  %7232 = vmatprep.subr.bf16.mxu1 %v9959_v35  ;;  %v10946_v33 = vld [vmem:[#allocation40_spill] sm:$0xff]  ;;  %v10947_v35 = vld [vmem:[#allocation41_spill] sm:$0xff] }
 0x830   :  { %7202 = vmatpush1.bf16.msra.mxu0 %v9981_v61  ;;  %7234 = vmatpush1.bf16.msra.mxu1 %v9983_v50  ;;  %v10948_v61 = vld [vmem:[#allocation42_spill] sm:$0xff]  ;;  %v10949_v50 = vld [vmem:[#allocation43_spill] sm:$0xff] }
 0x831   :  { %7204 = vmatprep.subr.bf16.mxu0 %v9990_v19  ;;  %7236 = vmatprep.subr.bf16.mxu1 %v9992_v25  ;;  %v10950_v19 = vld [vmem:[#allocation44_spill] sm:$0xff]  ;;  %v10951_v25 = vld [vmem:[#allocation45_spill] sm:$0xff] }
 0x834   :  { %7206 = vmatpush1.bf16.msra.mxu0 %v10005_v62  ;;  %7238 = vmatpush1.bf16.msra.mxu1 %v10007_v26  ;;  %v10952_v62 = vld [vmem:[#allocation46_spill] sm:$0xff]  ;;  %v10953_v26 = vld [vmem:[#allocation47_spill] sm:$0xff] }
 0x835   :  { %7240 = vmatprep.subr.bf16.mxu0 %v10017_v42  ;;  %7272 = vmatprep.subr.bf16.mxu1 %v10922_v40  ;;  %v10954_v42 = vld [vmem:[#allocation48_spill] sm:$0xff] }
 0x837   :  { %5166 = vmatmul.mubr.f32.vlgmr.msra.gmra.mrb[28].mxu0 %v4560_v54  ;;  %5237 = vmatmul.mubr.f32.vlgmr.msra.gmra.mrb[28].mxu1 %v4560_v54 }
 0x838   :  { %7242 = vmatpush1.bf16.msra.mxu0 %v10923_v34  ;;  %7274 = vmatpush1.bf16.msra.mxu1 %v10924_v15 }
 0x839   :  { %7244 = vmatprep.subr.bf16.mxu0 %v10925_v29  ;;  %7276 = vmatprep.subr.bf16.mxu1 %v10926_v0  ;;  %v10957_v29 = vld [vmem:[#allocation13_spill] sm:$0xff] }
 0x83a   :  { %5467 = vmatprep.mubr.f32.mxu0 %v10609_v36  ;;  %5538 = vmatprep.mubr.f32.mxu1 %v10609_v36  ;;  %v4993_v0 = vrot.slane %v4976_v9, %v10957_v29 }
 0x83c   :  { %7246 = vmatpush1.bf16.msra.mxu0 %v10927_v4  ;;  %7278 = vmatpush1.bf16.msra.mxu1 %v10928_v38  ;;  %v10958_v38 = vld [vmem:[#allocation16_spill] sm:$0xff] }
 0x83d   :  { %7248 = vmatprep.subr.bf16.mxu0 %v10929_v56  ;;  %7280 = vmatprep.subr.bf16.mxu1 %v10930_v47  ;;  %v4989_v56 = vrot.slane %v4976_v9, %v10958_v38  ;;  %v5823_v9 = vld [vmem:[%s10381_s0 + $0xf8] sm:$0xff] }
 0x840   :  { %7250 = vmatpush1.bf16.msra.mxu0 %v10931_v22  ;;  %7282 = vmatpush1.bf16.msra.mxu1 %v10932_v31 }
 0x841   :  { %7252 = vmatprep.subr.bf16.mxu0 %v10933_v48  ;;  %7284 = vmatprep.subr.bf16.mxu1 %v10934_v60 }
 0x844   :  { %7254 = vmatpush1.bf16.msra.mxu0 %v10935_v52  ;;  %7286 = vmatpush1.bf16.msra.mxu1 %v10936_v51 }
 0x845   :  { %7256 = vmatprep.subr.bf16.mxu0 %v10937_v55  ;;  %7288 = vmatprep.subr.bf16.mxu1 %v10938_v59 }
 0x848   :  { %7258 = vmatpush1.bf16.msra.mxu0 %v10939_v46  ;;  %7290 = vmatpush1.bf16.msra.mxu1 %v10940_v57 }
 0x849   :  { %7260 = vmatprep.subr.bf16.mxu0 %v10941_v21  ;;  %7292 = vmatprep.subr.bf16.mxu1 %v10942_v41  ;;  %v10959_v41 = vld [vmem:[#allocation49_spill] sm:$0xff] }
 0x84c   :  { %7262 = vmatpush1.bf16.msra.mxu0 %v10943_v43  ;;  %7294 = vmatpush1.bf16.msra.mxu1 %v10944_v24  ;;  %v5820_v24 = vld [vmem:[%s10381_s0 + $0xe0] sm:$0xff] }
 0x84d   :  { %7264 = vmatprep.subr.bf16.mxu0 %v10945_v17  ;;  %7296 = vmatprep.subr.bf16.mxu1 %v10946_v33  ;;  %v5821_v17 = vld [vmem:[%s10381_s0 + $0xe8] sm:$0xff] }
 0x850   :  { %7266 = vmatpush1.bf16.msra.mxu0 %v10947_v35  ;;  %7298 = vmatpush1.bf16.msra.mxu1 %v10948_v61 }
 0x851   :  { %7268 = vmatprep.subr.bf16.mxu0 %v10949_v50  ;;  %7300 = vmatprep.subr.bf16.mxu1 %v10950_v19 }
 0x854   :  { %7270 = vmatpush1.bf16.msra.mxu0 %v10951_v25  ;;  %7302 = vmatpush1.bf16.msra.mxu1 %v10952_v62 }
 0x855   :  { %7304 = vmatprep.subr.bf16.mxu0 %v10953_v26  ;;  %7336 = vmatprep.subr.bf16.mxu1 %v10954_v42 }
 0x8ea   :  { %v4900_v30 = vpop.f32.mrb[26].mxu0  ;;  %v4971_v39 = vpop.f32.mrb[26].mxu1 }
 0x8eb   :  { %v4998_v27 = vadd.f32 %v4981_v32, %v4900_v30  ;;  %v4902_v20 = vpop.f32.mrb[27].mxu0  ;;  %v4973_v54 = vpop.f32.mrb[27].mxu1  ;;  %v5000_v22 = vadd.f32 %v4989_v56, %v4971_v39  ;;  %v10961_v56 = vld [vmem:[#allocation51_spill] sm:$0xff] }
 0x8ec   :  { %v4999_v40 = vadd.f32 %v4985_v28, %v4902_v20  ;;  %v5001_v4 = vadd.f32 %v4993_v0, %v4973_v54  ;;  %v5822_v28 = vld [vmem:[%s10381_s0 + $0xf0] sm:$0xff] }
 0x8ed   :  { %v5816_v34 = vmul.f32 -1.442695, %v4998_v27 }
 0x8ee   :  { %v5817_v15 = vmul.f32 -1.442695, %v4999_v40  ;;  %v5818_v47 = vmul.f32 -1.442695, %v5001_v4  ;;  %v10960_v4 = vld [vmem:[#allocation50_spill] sm:$0xff] }
 0x8ef   :  { %7612 = vpow2.f32 %v5816_v34 }
 0x8f0   :  { %7614 = vpow2.f32 %v5817_v15 }
 0x8f1   :  { %7616 = vpow2.f32 %v5818_v47  ;;  %v10962_v47 = vld [vmem:[#allocation52_spill] sm:$0xff] }
 0x8f2   :  { %7618 = vtanh.f32 %v5000_v22  ;;  %v10963_v22 = vld [vmem:[#allocation53_spill] sm:$0xff] }
 0x8f9   :  { %v7613_v31 = vpop.eup %7612 }
 0x8fa   :  { %v7615_v48 = vpop.eup %7614  ;;  %v5006_v60 = vadd.f32 1.0, %v7613_v31  ;;  %v10966_v31 = vld [vmem:[#allocation56_spill] sm:$0xff] }
 0x8fb   :  { %v5012_v52 = vadd.f32 1.0, %v7615_v48  ;;  %v7617_v51 = vpop.eup %7616  ;;  %v10968_v48 = vld [vmem:[#allocation58_spill] sm:$0xff] }
 0x8fc   :  { %7620 = vrcp.f32 %v5006_v60  ;;  %v7619_v55 = vpop.eup %7618  ;;  %v5019_v21 = vadd.f32 1.0, %v7617_v51  ;;  %v10969_v51 = vld [vmem:[#allocation59_spill] sm:$0xff] }
 0x8fd   :  { %7622 = vrcp.f32 %v5012_v52 }
 0x8fe   :  { %7624 = vrcp.f32 %v5019_v21 }
 0x906   :  { %v7621_v59 = vpop.eup %7620 }
 0x907   :  { %v7623_v46 = vpop.eup %7622  ;;  %v5023_v57 = vmul.f32 %v7621_v59, %v7619_v55  ;;  %v10970_v55 = vld [vmem:[#allocation60_spill] sm:$0xff] }
 0x908   :  { %v5022_v43 = vmul.f32 %v7623_v46, %v10959_v41  ;;  %v7625_v30 = vpop.eup %7624 }
 0x90a   :  { %v10325_v33 = vadd.f32 %v5023_v57, %v5022_v43  ;;  %v5167_v35 = vpop.f32.mrb[28].mxu0  ;;  %v5238_v61 = vpop.f32.mrb[28].mxu1 }
 0x90b   :  { %v5243_v50 = vadd.f32 %v5820_v24, %v5167_v35  ;;  %v5169_v19 = vpop.f32.mrb[29].mxu0  ;;  %v5240_v25 = vpop.f32.mrb[29].mxu1  ;;  %v5245_v20 = vadd.f32 %v5822_v28, %v5238_v61 }
 0x90c   :  { %v5244_v62 = vadd.f32 %v5821_v17, %v5169_v19  ;;  %7626 = vtanh.f32 %v10325_v33  ;;  %v5246_v32 = vadd.f32 %v5823_v9, %v5240_v25 }
 0x90d   :  { %v5824_v26 = vmul.f32 -1.442695, %v5243_v50 }
 0x90e   :  { %v5825_v42 = vmul.f32 -1.442695, %v5244_v62  ;;  %v5826_v27 = vmul.f32 -1.442695, %v5246_v32 }
 0x90f   :  { %7628 = vpow2.f32 %v5824_v26 }
 0x910   :  { %7630 = vpow2.f32 %v5825_v42 }
 0x911   :  { %7632 = vpow2.f32 %v5826_v27 }
 0x912   :  { %7634 = vtanh.f32 %v5245_v20 }
 0x916   :  { %v7627_v39 = vpop.eup %7626 }
 0x917   :  { %v5026_v54 = vmul.f32 %v7627_v39, %v7625_v30 }
 0x919   :  { %v7629_v40 = vpop.eup %7628  ;;  %5819 = vst [vmem:[%s10386_s5 + $0x30] sm:$0xff] %v5026_v54  ;;  %5468 = vmatmul.mubr.f32.vlgmr.msra.gmra.mrb[30].mxu0 %v5026_v54  ;;  %5539 = vmatmul.mubr.f32.vlgmr.msra.gmra.mrb[30].mxu1 %v5026_v54 }
 0x91a   :  { %v7631_v34 = vpop.eup %7630  ;;  %v5251_v15 = vadd.f32 1.0, %v7629_v40  ;;  %7306 = vmatpush1.bf16.msra.mxu0 %v10142_v13  ;;  %7338 = vmatpush1.bf16.msra.mxu1 %v10144_v63  ;;  %v10964_v13 = vld [vmem:[#allocation54_spill] sm:$0xff]  ;;  %v10965_v63 = vld [vmem:[#allocation55_spill] sm:$0xff] }
 0x91b   :  { %v5257_v0 = vadd.f32 1.0, %v7631_v34  ;;  %7308 = vmatprep.subr.bf16.mxu0 %v10146_v23  ;;  %7340 = vmatprep.subr.bf16.mxu1 %v10960_v4  ;;  %v10967_v23 = vld [vmem:[#allocation57_spill] sm:$0xff]  ;;  %v7633_v60 = vpop.eup %7632 }
 0x91c   :  { %7636 = vrcp.f32 %v5251_v15  ;;  %5609 = vmatprep.mubr.f32.mxu0 %v10609_v36  ;;  %5680 = vmatprep.mubr.f32.mxu1 %v10609_v36  ;;  %v7635_v52 = vpop.eup %7634  ;;  %v5264_v57 = vadd.f32 1.0, %v7633_v60 }
 0x91d   :  { %7638 = vrcp.f32 %v5257_v0 }
 0x91e   :  { %7310 = vmatpush1.bf16.msra.mxu0 %v10961_v56  ;;  %7342 = vmatpush1.bf16.msra.mxu1 %v10962_v47  ;;  %7640 = vrcp.f32 %v5264_v57 }
 0x91f   :  { %7312 = vmatprep.subr.bf16.mxu0 %v10963_v22  ;;  %7344 = vmatprep.subr.bf16.mxu1 %v10964_v13 }
 0x922   :  { %7314 = vmatpush1.bf16.msra.mxu0 %v10965_v63  ;;  %7346 = vmatpush1.bf16.msra.mxu1 %v10966_v31 }
 0x923   :  { %7316 = vmatprep.subr.bf16.mxu0 %v10967_v23  ;;  %7348 = vmatprep.subr.bf16.mxu1 %v10968_v48 }
 0x926   :  { %v7637_v36 = vpop.eup %7636  ;;  %7318 = vmatpush1.bf16.msra.mxu0 %v10969_v51  ;;  %7350 = vmatpush1.bf16.msra.mxu1 %v10970_v55 }
 0x927   :  { %v7639_v59 = vpop.eup %7638  ;;  %v5268_v46 = vmul.f32 %v7637_v36, %v7635_v52  ;;  %7320 = vmatprep.subr.bf16.mxu0 %v10187_v1  ;;  %7352 = vmatprep.subr.bf16.mxu1 %v10189_v14 }
 0x928   :  { %v5267_v21 = vmul.f32 %v7639_v59, %v10204_v10  ;;  %v7641_v10 = vpop.eup %7640 }
 0x92a   :  { %v5269_v41 = vadd.f32 %v5268_v46, %v5267_v21  ;;  %7322 = vmatpush1.bf16.msra.mxu0 %v10193_v37  ;;  %7354 = vmatpush1.bf16.msra.mxu1 %v10195_v8  ;;  %v5687_v8 = vld [vmem:[%s10385_s4] sm:$0xf] }
 0x92b   :  { %7324 = vmatprep.subr.bf16.mxu0 %v10199_v6  ;;  %7356 = vmatprep.subr.bf16.mxu1 %v10201_v16  ;;  %v5692_v1 = vrot.slane %v5687_v8, %v10955_v12  ;;  %v5696_v14 = vrot.slane %v5687_v8, %v10956_v45 }
 0x92c   :  { %7642 = vtanh.f32 %v5269_v41 }
 0x92e   :  { %7326 = vmatpush1.bf16.msra.mxu0 %v10208_v7  ;;  %7358 = vmatpush1.bf16.msra.mxu1 %v10210_v44 }
 0x92f   :  { %7328 = vmatprep.subr.bf16.mxu0 %v10214_v18  ;;  %7360 = vmatprep.subr.bf16.mxu1 %v10216_v53 }
 0x932   :  { %7330 = vmatpush1.bf16.msra.mxu0 %v10221_v58  ;;  %7362 = vmatpush1.bf16.msra.mxu1 %v10223_v3 }
 0x933   :  { %7332 = vmatprep.subr.bf16.mxu0 %v10227_v49  ;;  %7364 = vmatprep.subr.bf16.mxu1 %v10229_v11  ;;  %v5704_v11 = vrot.slane %v5687_v8, %v10957_v29 }
 0x936   :  { %v7643_v6 = vpop.eup %7642  ;;  %7334 = vmatpush1.bf16.msra.mxu0 %v10233_v5  ;;  %7366 = vmatpush1.bf16.msra.mxu1 %v10235_v2  ;;  %v5700_v2 = vrot.slane %v5687_v8, %v10958_v38 }
 0x937   :  { %v5271_v16 = vmul.f32 %v7643_v6, %v7641_v10 }
 0x939   :  { %5610 = vmatmul.mubr.f32.vlgmr.msra.gmra.mrb[30].mxu0 %v5271_v16  ;;  %5681 = vmatmul.mubr.f32.vlgmr.msra.gmra.mrb[30].mxu1 %v5271_v16 }
 0xa0c   :  { %v5611_v37 = vpop.f32.mrb[30].mxu0  ;;  %v5682_v7 = vpop.f32.mrb[30].mxu1 }
 0xa0d   :  { %v5709_v44 = vadd.f32 %v5692_v1, %v5611_v37  ;;  %v5613_v18 = vpop.f32.mrb[31].mxu0  ;;  %v5684_v53 = vpop.f32.mrb[31].mxu1  ;;  %v5711_v24 = vadd.f32 %v5700_v2, %v5682_v7 }
 0xa0e   :  { %v5710_v58 = vadd.f32 %v5696_v14, %v5613_v18  ;;  %v5712_v5 = vadd.f32 %v5704_v11, %v5684_v53 }
 0xa0f   :  { %v5827_v3 = vmul.f32 -1.442695, %v5709_v44 }
 0xa10   :  { %v5828_v49 = vmul.f32 -1.442695, %v5710_v58  ;;  %v5829_v43 = vmul.f32 -1.442695, %v5712_v5 }
 0xa11   :  { %7644 = vpow2.f32 %v5827_v3 }
 0xa12   :  { %7646 = vpow2.f32 %v5828_v49 }
 0xa13   :  { %7648 = vpow2.f32 %v5829_v43 }
 0xa14   :  { %7650 = vtanh.f32 %v5711_v24 }
 0xa1b   :  { %v7645_v12 = vpop.eup %7644 }
 0xa1c   :  { %v7647_v17 = vpop.eup %7646  ;;  %v5717_v45 = vadd.f32 1.0, %v7645_v12 }
 0xa1d   :  { %v5723_v35 = vadd.f32 1.0, %v7647_v17  ;;  %v7649_v61 = vpop.eup %7648 }
 0xa1e   :  { %7652 = vrcp.f32 %v5717_v45  ;;  %v7651_v50 = vpop.eup %7650  ;;  %v5730_v62 = vadd.f32 1.0, %v7649_v61 }
 0xa1f   :  { %7654 = vrcp.f32 %v5723_v35 }
 0xa20   :  { %7656 = vrcp.f32 %v5730_v62 }
 0xa28   :  { %v7653_v19 = vpop.eup %7652 }
 0xa29   :  { %v7655_v25 = vpop.eup %7654  ;;  %v5734_v29 = vmul.f32 %v7653_v19, %v7651_v50 }
 0xa2a   :  { %v5733_v26 = vmul.f32 %v7655_v25, %v10325_v33  ;;  %v7657_v38 = vpop.eup %7656 }
 0xa2c   :  { %v5735_v42 = vadd.f32 %v5734_v29, %v5733_v26 }
 0xa2e   :  { %7658 = vtanh.f32 %v5735_v42 }
 0xa38   :  { %v7659_v9 = vpop.eup %7658 }
 0xa39   :  { %v5737_v32 = vmul.f32 %v7659_v9, %v7657_v38 }
 0xa3b   :  { %5830 = vst [vmem:[%s10386_s5 + $0x38] sm:$0xff] %v5737_v32 }
 0xa3c   :  { %5746 = vsyncpa [#allocation7], 1 }
 0xa3d   :  { %5747 = vsyncpa [#allocation9], 1 }

</bundles_post_ra>
